<compile_context>
chip_gen: v7x
topology: tpu7x:2x2x1
jax: 0.10.0
libtpu: 0.0.40
codegen_flags: <defaults>
</compile_context>

<pallas_src>
import functools
import math

import jax
import jax.numpy as jnp
from jax.experimental import pallas as pl
from jax.experimental.pallas import tpu as pltpu

# ------------------------------- config ------------------------------------
BASE = 32        # base channel width / sinusoidal embedding dim
TDIM = 64        # time-embedding MLP width
GROUPS = 8       # GroupNorm groups
TIMESTEPS = 50   # diffusion timesteps (alpha_bars buffer; unused by forward)
EPS = 1e-5
KH = KW = 3      # conv kernel size
CIN_PAD = 8      # input channels padded 4 -> 8 (one f32 sublane tile)
MXU_DTYPE = jnp.float32   # conv matmul operand dtype (bfloat16 = faster/looser)


# --------------------------- fused UNet Pallas kernel ------------------------
def _unet_fused_kernel(H, W, x_ref, emb_ref, mask_ref, gproj_ref, *rest):
    """Whole UNet forward for one batch element, fully resident in VMEM.

    Layout: channels on sublanes, flattened spatial (HW) on lanes.

    x_ref    : (1, CIN_PAD, HW)  NCHW-flattened input, channels zero-padded 4->8
    emb_ref  : (1, BASE, 1)      sinusoidal timestep embedding (column vector)
    mask_ref : (9, HW)           per-tap 'SAME' border masks (k = dy*3+dx)
    gproj_ref: (BASE, BASE)      block-diagonal group-membership projector
    rest     : 30 weight refs (conv weights as (Cout, 9*Cin), biases/gammas as
               (D, 1) columns, MLP weights pre-transposed), then o_ref
               (1, Cout, HW), then the (9*BASE, HW) im2col VMEM scratch.
    """
    o_ref, col_ref = rest[-2], rest[-1]
    w = rest[:-2]
    (mlp_w1, mlp_b1, mlp_w2, mlp_b2, cin_w, cin_b,
     *blk, gno_g, gno_b, cout_w, cout_b) = w
    blocks = (blk[0:10], blk[10:20])

    HW = H * W
    C = BASE
    G = GROUPS
    inv_cnt = 1.0 / float(HW * (C // G))

    def silu(v):
        return v * jax.nn.sigmoid(v)

    def conv3x3(h, w_ref, b_ref):
        """'SAME' 3x3 conv: taps built with lane rolls + border masks into the
        (9*Cin, HW) im2col scratch, then one MXU matmul (Cout,9Cin)x(9Cin,HW)."""
        cin = h.shape[0]
        for dy in range(KH):
            for dx in range(KW):
                k = dy * KW + dx
                off = (dy - 1) * W + (dx - 1)
                # tap[p] = h[p + off] (circular), zeroed where it crosses the border
                tap = h if off == 0 else pltpu.roll(h, shift=(-off) % HW, axis=1)
                if not (dy == 1 and dx == 1):          # center mask is all-ones
                    tap = tap * mask_ref[k:k + 1, :]   # (1, HW) sublane-broadcast
                col_ref[k * cin:(k + 1) * cin, :] = tap.astype(col_ref.dtype)
        col = col_ref[0:KH * KW * cin, :]
        return (jnp.dot(w_ref[...], col, preferred_element_type=jnp.float32)
                + b_ref[...])                           # bias (Cout,1) lane-bcast

    def gn_silu(h, g_ref, b_ref):
        """GroupNorm + SiLU on (C, HW): lane reductions for per-channel sums,
        group-sum + broadcast-back via one block-diagonal projector matmul."""
        s1 = jnp.sum(h, axis=1, keepdims=True)          # (C, 1)  XLU lane reduce
        s2 = jnp.sum(h * h, axis=1, keepdims=True)      # (C, 1)
        mean_c = jnp.dot(gproj_ref[...], s1,
                         preferred_element_type=jnp.float32) * inv_cnt
        ex2_c = jnp.dot(gproj_ref[...], s2,
                        preferred_element_type=jnp.float32) * inv_cnt
        inv_c = jax.lax.rsqrt(ex2_c - mean_c * mean_c + EPS)
        return silu((h - mean_c) * inv_c * g_ref[...] + b_ref[...])

    # Time-embedding MLP (column-oriented; tiny, hides under conv MXU work).
    e = emb_ref[0]                                      # (BASE, 1)
    t1 = silu(jnp.dot(mlp_w1[...], e, preferred_element_type=jnp.float32)
              + mlp_b1[...])                            # (TDIM, 1)
    temb = (jnp.dot(mlp_w2[...], t1, preferred_element_type=jnp.float32)
            + mlp_b2[...])                              # (TDIM, 1)
    st = silu(temb)

    # conv_in on the (CIN_PAD, HW) input.
    h = conv3x3(x_ref[0].astype(jnp.float32), cin_w, cin_b)   # (C, HW)

    # Two time-conditioned residual blocks.
    for (g1g, g1b, c1w, c1b, tw, tb, g2g, g2b, c2w, c2b) in blocks:
        r = h
        h = gn_silu(h, g1g, g1b)
        h = conv3x3(h, c1w, c1b)
        h = h + (jnp.dot(tw[...], st, preferred_element_type=jnp.float32)
                 + tb[...])                             # (C,1) lane-broadcast add
        h = gn_silu(h, g2g, g2b)
        h = conv3x3(h, c2w, c2b)
        h = h + r

    # Output head; write lane-dense (Cout, HW).
    h = gn_silu(h, gno_g, gno_b)
    y = conv3x3(h, cout_w, cout_b)                      # (Cout, HW)
    o_ref[0] = y


# ------------------------------- model glue ---------------------------------
def sinusoidal_embedding(t, dim):
    half = dim // 2
    freqs = jnp.exp(-math.log(10000.0) * jnp.arange(half, dtype=jnp.float32) / half)
    args = t.astype(jnp.float32)[:, None] * freqs[None, :]
    return jnp.concatenate([jnp.sin(args), jnp.cos(args)], axis=-1)


def linear_alpha_bars(timesteps, beta_start=1e-4, beta_end=0.02):
    # DiffusionModel buffer `alpha_bars` (LinearSchedule); not used by forward().
    betas = jnp.linspace(beta_start, beta_end, timesteps)
    return jnp.cumprod(1.0 - betas)


def _group_projector(C, G):
    """(C, C) block-diagonal ones: (P @ s)[c] = sum of s over c's group."""
    grp = jnp.arange(C) // (C // G)
    return (grp[:, None] == grp[None, :]).astype(jnp.float32)


def _tap_masks(H, W):
    """(9, HW) border masks for 'SAME' padding, tap order k = dy*3 + dx."""
    yy = jnp.arange(H).reshape(H, 1)
    xx = jnp.arange(W).reshape(1, W)
    rows = []
    for dy in range(KH):
        for dx in range(KW):
            oy, ox = dy - 1, dx - 1
            ok = ((yy + oy >= 0) & (yy + oy < H) &
                  (xx + ox >= 0) & (xx + ox < W))
            rows.append(ok.astype(jnp.float32).reshape(H * W))
    return jnp.stack(rows, axis=0)


def _conv_wT(w, cin_pad=None):
    """HWIO (3,3,Cin,Cout) -> (Cout, 9*Cin) with K ordered [dy, dx, ci]."""
    kh, kw, ci, co = w.shape
    if cin_pad is not None and cin_pad > ci:
        w = jnp.pad(w, ((0, 0), (0, 0), (0, cin_pad - ci), (0, 0)))
        ci = cin_pad
    return jnp.transpose(w, (3, 0, 1, 2)).reshape(co, kh * kw * ci).astype(MXU_DTYPE)


def _col(v):
    """(1, D) row vector -> (D, 1) column vector."""
    return v.reshape(-1, 1).astype(jnp.float32)


def _flatten_params(params):
    p = params
    flat = [p["mlp_w1"].T, _col(p["mlp_b1"]), p["mlp_w2"].T, _col(p["mlp_b2"]),
            _conv_wT(p["conv_in_w"], cin_pad=CIN_PAD), _col(p["conv_in_b"])]
    for name in ("res1", "res2"):
        b = p[name]
        flat += [_col(b["gn1_g"]), _col(b["gn1_b"]),
                 _conv_wT(b["conv1_w"]), _col(b["conv1_b"]),
                 b["temb_w"].T, _col(b["temb_b"]),
                 _col(b["gn2_g"]), _col(b["gn2_b"]),
                 _conv_wT(b["conv2_w"]), _col(b["conv2_b"])]
    flat += [_col(p["gn_out_g"]), _col(p["gn_out_b"]),
             _conv_wT(p["conv_out_w"]), _col(p["conv_out_b"])]
    return flat


def init_params(key):
    ks = jax.random.split(key, 16)

    def w(k, shape, scale=0.05):
        return (scale * jax.random.normal(k, shape)).astype(jnp.float32)

    def block(k1, k2, k3, cin, cout):
        return dict(
            gn1_g=jnp.ones((1, cin), jnp.float32), gn1_b=jnp.zeros((1, cin), jnp.float32),
            conv1_w=w(k1, (3, 3, cin, cout)), conv1_b=jnp.zeros((1, cout), jnp.float32),
            temb_w=w(k2, (TDIM, cout)), temb_b=jnp.zeros((1, cout), jnp.float32),
            gn2_g=jnp.ones((1, cout), jnp.float32), gn2_b=jnp.zeros((1, cout), jnp.float32),
            conv2_w=w(k3, (3, 3, cout, cout)), conv2_b=jnp.zeros((1, cout), jnp.float32),
        )

    return dict(
        mlp_w1=w(ks[0], (BASE, TDIM)), mlp_b1=jnp.zeros((1, TDIM), jnp.float32),
        mlp_w2=w(ks[1], (TDIM, TDIM)), mlp_b2=jnp.zeros((1, TDIM), jnp.float32),
        conv_in_w=w(ks[2], (3, 3, 4, BASE)), conv_in_b=jnp.zeros((1, BASE), jnp.float32),
        res1=block(ks[3], ks[4], ks[5], BASE, BASE),
        res2=block(ks[6], ks[7], ks[8], BASE, BASE),
        gn_out_g=jnp.ones((1, BASE), jnp.float32), gn_out_b=jnp.zeros((1, BASE), jnp.float32),
        conv_out_w=w(ks[9], (3, 3, BASE, 4)), conv_out_b=jnp.zeros((1, 4), jnp.float32),
    )


def diffusion_forward(params, x_nchw, t):
    """DiffusionModel.forward(x, t): predict noise.  x is NCHW like PyTorch."""
    B, Cin, H, W = x_nchw.shape
    HW = H * W
    Cout = params["conv_out_w"].shape[-1]

    # NCHW-flattened input; pad channels 4 -> 8 only (one f32 sublane tile).
    x = x_nchw.reshape(B, Cin, HW).astype(jnp.float32)
    x = jnp.pad(x, ((0, 0), (0, CIN_PAD - Cin), (0, 0)))

    emb = sinusoidal_embedding(t, BASE)[:, :, None]          # (B, BASE, 1)
    mask = _tap_masks(H, W)                                  # (9, HW)
    gproj = _group_projector(BASE, GROUPS)                   # (BASE, BASE)
    flat = _flatten_params(params)

    def full(a):
        return pl.BlockSpec(a.shape, lambda i, nd=a.ndim: (0,) * nd)

    in_specs = ([pl.BlockSpec((1, CIN_PAD, HW), lambda i: (i, 0, 0)),
                 pl.BlockSpec((1, BASE, 1), lambda i: (i, 0, 0)),
                 full(mask), full(gproj)]
                + [full(a) for a in flat])

    flops = B * 2 * HW * (9 * CIN_PAD * BASE + 4 * 9 * BASE * BASE + 9 * BASE * Cout)
    bytes_accessed = (x.size * 4 + emb.size * 4 + mask.size * 4 + gproj.size * 4
                      + sum(int(a.size) * a.dtype.itemsize for a in flat)
                      + B * Cout * HW * 4)
    transcendentals = B * (5 * BASE * HW + 3 * TDIM)

    kernel = functools.partial(_unet_fused_kernel, H, W)

    out = pl.pallas_call(
        kernel,
        out_shape=jax.ShapeDtypeStruct((B, Cout, HW), jnp.float32),
        grid=(B,),
        in_specs=in_specs,
        out_specs=pl.BlockSpec((1, Cout, HW), lambda i: (i, 0, 0)),
        scratch_shapes=[
            pltpu.VMEM((KH * KW * BASE, HW), MXU_DTYPE),   # im2col (9*C, HW)
        ],
        compiler_params=pltpu.CompilerParams(dimension_semantics=("parallel",)),
        cost_estimate=pl.CostEstimate(flops=flops,
                                      transcendentals=transcendentals,
                                      bytes_accessed=bytes_accessed),
    )(x, emb, mask, gproj, *flat)
    # Output already channel-major: just reshape to NCHW (no transpose).
    return out.reshape(B, Cout, H, W)


# ------------------------------ pure-JAX reference ---------------------------
def _silu(x):
    return x * jax.nn.sigmoid(x)


def _ref_conv(x, w, b):
    y = jax.lax.conv_general_dilated(x, w, (1, 1), "SAME",
                                     dimension_numbers=("NHWC", "HWIO", "NHWC"))
    return y + b.reshape(1, 1, 1, -1)


def _ref_gn_silu(x, gamma, beta, groups=GROUPS, eps=EPS):
    B, H, W, C = x.shape
    xg = x.reshape(B, H, W, groups, C // groups)
    mean = xg.mean(axis=(1, 2, 4), keepdims=True)
    var = ((xg - mean) ** 2).mean(axis=(1, 2, 4), keepdims=True)
    y = ((xg - mean) / jnp.sqrt(var + eps)).reshape(B, H, W, C)
    y = y * gamma.reshape(1, 1, 1, C) + beta.reshape(1, 1, 1, C)
    return _silu(y)


def reference_forward(params, x_nchw, t):
    x = jnp.transpose(x_nchw, (0, 2, 3, 1)).astype(jnp.float32)
    emb = sinusoidal_embedding(t, BASE)
    h0 = _silu(emb @ params["mlp_w1"] + params["mlp_b1"])
    temb = h0 @ params["mlp_w2"] + params["mlp_b2"]
    h = _ref_conv(x, params["conv_in_w"], params["conv_in_b"])
    for name in ("res1", "res2"):
        p = params[name]
        r = h
        h = _ref_gn_silu(h, p["gn1_g"], p["gn1_b"])
        h = _ref_conv(h, p["conv1_w"], p["conv1_b"])
        proj = _silu(temb) @ p["temb_w"] + p["temb_b"]
        h = h + proj[:, None, None, :]
        h = _ref_gn_silu(h, p["gn2_g"], p["gn2_b"])
        h = _ref_conv(h, p["conv2_w"], p["conv2_b"])
        h = h + r
    h = _ref_gn_silu(h, params["gn_out_g"], params["gn_out_b"])
    out = _ref_conv(h, params["conv_out_w"], params["conv_out_b"])
    return jnp.transpose(out, (0, 3, 1, 2))


# ----------------------------------- main ------------------------------------
if __name__ == "__main__":
    key = jax.random.PRNGKey(0)
    kx, kt, kp = jax.random.split(key, 3)

    B, C, S = 2, 4, 16
    x = jax.random.normal(kx, (B, C, S, S), jnp.float32)        # NCHW input
    t = jax.random.randint(kt, (B,), 0, TIMESTEPS)
    params = init_params(kp)
    alpha_bars = linear_alpha_bars(TIMESTEPS)                    # registered buffer

    out = jax.jit(diffusion_forward)(params, x, t)
    out = jax.block_until_ready(out)

    ref = reference_forward(params, x, t)
    assert out.shape == (B, C, S, S) and out.dtype == jnp.float32
    max_err = float(jnp.max(jnp.abs(out - ref)))
    assert max_err < 1e-3, f"mismatch vs reference: {max_err}"

    print("KERNEL_OK")
</pallas_src>

<mosaic_0001>
module attributes {stable_mosaic.version = 11 : i64} {
  func.func @_unet_fused_kernel(%arg0: i32, %arg1: memref<1x8x256xf32, #tpu.memory_space<vmem>>, %arg2: memref<1x32x1xf32, #tpu.memory_space<vmem>>, %arg3: memref<9x256xf32, #tpu.memory_space<vmem>>, %arg4: memref<32x32xf32, #tpu.memory_space<vmem>>, %arg5: memref<64x32xf32, #tpu.memory_space<vmem>>, %arg6: memref<64x1xf32, #tpu.memory_space<vmem>>, %arg7: memref<64x64xf32, #tpu.memory_space<vmem>>, %arg8: memref<64x1xf32, #tpu.memory_space<vmem>>, %arg9: memref<32x72xf32, #tpu.memory_space<vmem>>, %arg10: memref<32x1xf32, #tpu.memory_space<vmem>>, %arg11: memref<32x1xf32, #tpu.memory_space<vmem>>, %arg12: memref<32x1xf32, #tpu.memory_space<vmem>>, %arg13: memref<32x288xf32, #tpu.memory_space<vmem>>, %arg14: memref<32x1xf32, #tpu.memory_space<vmem>>, %arg15: memref<32x64xf32, #tpu.memory_space<vmem>>, %arg16: memref<32x1xf32, #tpu.memory_space<vmem>>, %arg17: memref<32x1xf32, #tpu.memory_space<vmem>>, %arg18: memref<32x1xf32, #tpu.memory_space<vmem>>, %arg19: memref<32x288xf32, #tpu.memory_space<vmem>>, %arg20: memref<32x1xf32, #tpu.memory_space<vmem>>, %arg21: memref<32x1xf32, #tpu.memory_space<vmem>>, %arg22: memref<32x1xf32, #tpu.memory_space<vmem>>, %arg23: memref<32x288xf32, #tpu.memory_space<vmem>>, %arg24: memref<32x1xf32, #tpu.memory_space<vmem>>, %arg25: memref<32x64xf32, #tpu.memory_space<vmem>>, %arg26: memref<32x1xf32, #tpu.memory_space<vmem>>, %arg27: memref<32x1xf32, #tpu.memory_space<vmem>>, %arg28: memref<32x1xf32, #tpu.memory_space<vmem>>, %arg29: memref<32x288xf32, #tpu.memory_space<vmem>>, %arg30: memref<32x1xf32, #tpu.memory_space<vmem>>, %arg31: memref<32x1xf32, #tpu.memory_space<vmem>>, %arg32: memref<32x1xf32, #tpu.memory_space<vmem>>, %arg33: memref<4x288xf32, #tpu.memory_space<vmem>>, %arg34: memref<4x1xf32, #tpu.memory_space<vmem>>, %arg35: memref<1x4x256xf32, #tpu.memory_space<vmem>>, %arg36: memref<288x256xf32, #tpu.memory_space<vmem>>) attributes {dimension_semantics = [#tpu.dimension_semantics<parallel>], iteration_bounds = array<i64: 2>, scalar_prefetch = 0 : i64, scratch_operands = 1 : i64, tpu.core_type = #tpu.core_type<tc>, window_params = [{transform_indices = @transform_0, window_bounds = array<i64: 1, 8, 256>}, {transform_indices = @transform_1, window_bounds = array<i64: 1, 32, 1>}, {pipeline_mode = #tpu.pipeline_mode<synchronous>, transform_indices = @transform_2, window_bounds = array<i64: 9, 256>}, {pipeline_mode = #tpu.pipeline_mode<synchronous>, transform_indices = @transform_3, window_bounds = array<i64: 32, 32>}, {pipeline_mode = #tpu.pipeline_mode<synchronous>, transform_indices = @transform_4, window_bounds = array<i64: 64, 32>}, {pipeline_mode = #tpu.pipeline_mode<synchronous>, transform_indices = @transform_5, window_bounds = array<i64: 64, 1>}, {pipeline_mode = #tpu.pipeline_mode<synchronous>, transform_indices = @transform_6, window_bounds = array<i64: 64, 64>}, {pipeline_mode = #tpu.pipeline_mode<synchronous>, transform_indices = @transform_7, window_bounds = array<i64: 64, 1>}, {pipeline_mode = #tpu.pipeline_mode<synchronous>, transform_indices = @transform_8, window_bounds = array<i64: 32, 72>}, {pipeline_mode = #tpu.pipeline_mode<synchronous>, transform_indices = @transform_9, window_bounds = array<i64: 32, 1>}, {pipeline_mode = #tpu.pipeline_mode<synchronous>, transform_indices = @transform_10, window_bounds = array<i64: 32, 1>}, {pipeline_mode = #tpu.pipeline_mode<synchronous>, transform_indices = @transform_11, window_bounds = array<i64: 32, 1>}, {pipeline_mode = #tpu.pipeline_mode<synchronous>, transform_indices = @transform_12, window_bounds = array<i64: 32, 288>}, {pipeline_mode = #tpu.pipeline_mode<synchronous>, transform_indices = @transform_13, window_bounds = array<i64: 32, 1>}, {pipeline_mode = #tpu.pipeline_mode<synchronous>, transform_indices = @transform_14, window_bounds = array<i64: 32, 64>}, {pipeline_mode = #tpu.pipeline_mode<synchronous>, transform_indices = @transform_15, window_bounds = array<i64: 32, 1>}, {pipeline_mode = #tpu.pipeline_mode<synchronous>, transform_indices = @transform_16, window_bounds = array<i64: 32, 1>}, {pipeline_mode = #tpu.pipeline_mode<synchronous>, transform_indices = @transform_17, window_bounds = array<i64: 32, 1>}, {pipeline_mode = #tpu.pipeline_mode<synchronous>, transform_indices = @transform_18, window_bounds = array<i64: 32, 288>}, {pipeline_mode = #tpu.pipeline_mode<synchronous>, transform_indices = @transform_19, window_bounds = array<i64: 32, 1>}, {pipeline_mode = #tpu.pipeline_mode<synchronous>, transform_indices = @transform_20, window_bounds = array<i64: 32, 1>}, {pipeline_mode = #tpu.pipeline_mode<synchronous>, transform_indices = @transform_21, window_bounds = array<i64: 32, 1>}, {pipeline_mode = #tpu.pipeline_mode<synchronous>, transform_indices = @transform_22, window_bounds = array<i64: 32, 288>}, {pipeline_mode = #tpu.pipeline_mode<synchronous>, transform_indices = @transform_23, window_bounds = array<i64: 32, 1>}, {pipeline_mode = #tpu.pipeline_mode<synchronous>, transform_indices = @transform_24, window_bounds = array<i64: 32, 64>}, {pipeline_mode = #tpu.pipeline_mode<synchronous>, transform_indices = @transform_25, window_bounds = array<i64: 32, 1>}, {pipeline_mode = #tpu.pipeline_mode<synchronous>, transform_indices = @transform_26, window_bounds = array<i64: 32, 1>}, {pipeline_mode = #tpu.pipeline_mode<synchronous>, transform_indices = @transform_27, window_bounds = array<i64: 32, 1>}, {pipeline_mode = #tpu.pipeline_mode<synchronous>, transform_indices = @transform_28, window_bounds = array<i64: 32, 288>}, {pipeline_mode = #tpu.pipeline_mode<synchronous>, transform_indices = @transform_29, window_bounds = array<i64: 32, 1>}, {pipeline_mode = #tpu.pipeline_mode<synchronous>, transform_indices = @transform_30, window_bounds = array<i64: 32, 1>}, {pipeline_mode = #tpu.pipeline_mode<synchronous>, transform_indices = @transform_31, window_bounds = array<i64: 32, 1>}, {pipeline_mode = #tpu.pipeline_mode<synchronous>, transform_indices = @transform_32, window_bounds = array<i64: 4, 288>}, {pipeline_mode = #tpu.pipeline_mode<synchronous>, transform_indices = @transform_33, window_bounds = array<i64: 4, 1>}, {transform_indices = @transform_34, window_bounds = array<i64: 1, 4, 256>}]} {
    %c0 = arith.constant 0 : index
    %c0_0 = arith.constant 0 : index
    %c0_1 = arith.constant 0 : index
    %0 = vector.load %arg2[%c0, %c0_0, %c0_1] : memref<1x32x1xf32, #tpu.memory_space<vmem>>, vector<1x32x1xf32>
    %1 = vector.shape_cast %0 : vector<1x32x1xf32> to vector<32x1xf32>
    %c0_2 = arith.constant 0 : index
    %c0_3 = arith.constant 0 : index
    %2 = vector.load %arg5[%c0_2, %c0_3] : memref<64x32xf32, #tpu.memory_space<vmem>>, vector<64x32xf32>
    %cst = arith.constant dense<0.000000e+00> : vector<64x1xf32>
    %3 = tpu.matmul %2, %1, %cst {dimension_numbers = #tpu.dot_dimension_numbers<[1], [0], [0], [1], [0, 0, 1, 1], [], []>} : vector<64x32xf32>, vector<32x1xf32>, vector<64x1xf32> -> vector<64x1xf32>
    %c0_4 = arith.constant 0 : index
    %c0_5 = arith.constant 0 : index
    %4 = vector.load %arg6[%c0_4, %c0_5] : memref<64x1xf32, #tpu.memory_space<vmem>>, vector<64x1xf32>
    %5 = arith.addf %3, %4 : vector<64x1xf32>
    %6 = arith.negf %5 : vector<64x1xf32>
    %7 = math.exp %6 : vector<64x1xf32>
    %cst_6 = arith.constant 1.000000e+00 : f32
    %8 = vector.broadcast %cst_6 : f32 to vector<64x1xf32>
    %9 = arith.addf %8, %7 : vector<64x1xf32>
    %10 = arith.divf %8, %9 : vector<64x1xf32>
    %11 = arith.mulf %5, %10 : vector<64x1xf32>
    %c0_7 = arith.constant 0 : index
    %c0_8 = arith.constant 0 : index
    %12 = vector.load %arg7[%c0_7, %c0_8] : memref<64x64xf32, #tpu.memory_space<vmem>>, vector<64x64xf32>
    %cst_9 = arith.constant dense<0.000000e+00> : vector<64x1xf32>
    %13 = tpu.matmul %12, %11, %cst_9 {dimension_numbers = #tpu.dot_dimension_numbers<[1], [0], [0], [1], [0, 0, 1, 1], [], []>} : vector<64x64xf32>, vector<64x1xf32>, vector<64x1xf32> -> vector<64x1xf32>
    %c0_10 = arith.constant 0 : index
    %c0_11 = arith.constant 0 : index
    %14 = vector.load %arg8[%c0_10, %c0_11] : memref<64x1xf32, #tpu.memory_space<vmem>>, vector<64x1xf32>
    %15 = arith.addf %13, %14 : vector<64x1xf32>
    %16 = arith.negf %15 : vector<64x1xf32>
    %17 = math.exp %16 : vector<64x1xf32>
    %cst_12 = arith.constant 1.000000e+00 : f32
    %18 = vector.broadcast %cst_12 : f32 to vector<64x1xf32>
    %19 = arith.addf %18, %17 : vector<64x1xf32>
    %20 = arith.divf %18, %19 : vector<64x1xf32>
    %21 = arith.mulf %15, %20 : vector<64x1xf32>
    %c0_13 = arith.constant 0 : index
    %c0_14 = arith.constant 0 : index
    %c0_15 = arith.constant 0 : index
    %22 = vector.load %arg1[%c0_13, %c0_14, %c0_15] : memref<1x8x256xf32, #tpu.memory_space<vmem>>, vector<1x8x256xf32>
    %23 = vector.shape_cast %22 : vector<1x8x256xf32> to vector<8x256xf32>
    %c17_i32 = arith.constant 17 : i32
    %24 = tpu.dynamic_rotate %23 by %c17_i32 dim 1 : vector<8x256xf32>, i32 -> vector<8x256xf32>
    %c0_16 = arith.constant 0 : index
    %c0_17 = arith.constant 0 : index
    %25 = vector.load %arg3[%c0_16, %c0_17] : memref<9x256xf32, #tpu.memory_space<vmem>>, vector<1x256xf32>
    %26 = vector.broadcast %25 : vector<1x256xf32> to vector<8x256xf32>
    %27 = arith.mulf %24, %26 : vector<8x256xf32>
    %c0_18 = arith.constant 0 : index
    %c0_19 = arith.constant 0 : index
    %28 = vector.load %arg36[%c0_18, %c0_19] : memref<288x256xf32, #tpu.memory_space<vmem>>, vector<8x256xf32>
    tpu.vector_store %arg36[%c0_18, %c0_19], %27 {strides = array<i32>} : memref<288x256xf32, #tpu.memory_space<vmem>>, vector<8x256xf32>,
    %c16_i32 = arith.constant 16 : i32
    %29 = tpu.dynamic_rotate %23 by %c16_i32 dim 1 : vector<8x256xf32>, i32 -> vector<8x256xf32>
    %c1 = arith.constant 1 : index
    %c0_20 = arith.constant 0 : index
    %30 = vector.load %arg3[%c1, %c0_20] : memref<9x256xf32, #tpu.memory_space<vmem>>, vector<1x256xf32>
    %31 = vector.broadcast %30 : vector<1x256xf32> to vector<8x256xf32>
    %32 = arith.mulf %29, %31 : vector<8x256xf32>
    %c8 = arith.constant 8 : index
    %c0_21 = arith.constant 0 : index
    %33 = vector.load %arg36[%c8, %c0_21] : memref<288x256xf32, #tpu.memory_space<vmem>>, vector<8x256xf32>
    tpu.vector_store %arg36[%c8, %c0_21], %32 {strides = array<i32>} : memref<288x256xf32, #tpu.memory_space<vmem>>, vector<8x256xf32>,
    %c15_i32 = arith.constant 15 : i32
    %34 = tpu.dynamic_rotate %23 by %c15_i32 dim 1 : vector<8x256xf32>, i32 -> vector<8x256xf32>
    %c2 = arith.constant 2 : index
    %c0_22 = arith.constant 0 : index
    %35 = vector.load %arg3[%c2, %c0_22] : memref<9x256xf32, #tpu.memory_space<vmem>>, vector<1x256xf32>
    %36 = vector.broadcast %35 : vector<1x256xf32> to vector<8x256xf32>
    %37 = arith.mulf %34, %36 : vector<8x256xf32>
    %c16 = arith.constant 16 : index
    %c0_23 = arith.constant 0 : index
    %38 = vector.load %arg36[%c16, %c0_23] : memref<288x256xf32, #tpu.memory_space<vmem>>, vector<8x256xf32>
    tpu.vector_store %arg36[%c16, %c0_23], %37 {strides = array<i32>} : memref<288x256xf32, #tpu.memory_space<vmem>>, vector<8x256xf32>,
    %c1_i32 = arith.constant 1 : i32
    %39 = tpu.dynamic_rotate %23 by %c1_i32 dim 1 : vector<8x256xf32>, i32 -> vector<8x256xf32>
    %c3 = arith.constant 3 : index
    %c0_24 = arith.constant 0 : index
    %40 = vector.load %arg3[%c3, %c0_24] : memref<9x256xf32, #tpu.memory_space<vmem>>, vector<1x256xf32>
    %41 = vector.broadcast %40 : vector<1x256xf32> to vector<8x256xf32>
    %42 = arith.mulf %39, %41 : vector<8x256xf32>
    %c24 = arith.constant 24 : index
    %c0_25 = arith.constant 0 : index
    %43 = vector.load %arg36[%c24, %c0_25] : memref<288x256xf32, #tpu.memory_space<vmem>>, vector<8x256xf32>
    tpu.vector_store %arg36[%c24, %c0_25], %42 {strides = array<i32>} : memref<288x256xf32, #tpu.memory_space<vmem>>, vector<8x256xf32>,
    %c32 = arith.constant 32 : index
    %c0_26 = arith.constant 0 : index
    %44 = vector.load %arg36[%c32, %c0_26] : memref<288x256xf32, #tpu.memory_space<vmem>>, vector<8x256xf32>
    tpu.vector_store %arg36[%c32, %c0_26], %23 {strides = array<i32>} : memref<288x256xf32, #tpu.memory_space<vmem>>, vector<8x256xf32>,
    %c255_i32 = arith.constant 255 : i32
    %45 = tpu.dynamic_rotate %23 by %c255_i32 dim 1 : vector<8x256xf32>, i32 -> vector<8x256xf32>
    %c5 = arith.constant 5 : index
    %c0_27 = arith.constant 0 : index
    %46 = vector.load %arg3[%c5, %c0_27] : memref<9x256xf32, #tpu.memory_space<vmem>>, vector<1x256xf32>
    %47 = vector.broadcast %46 : vector<1x256xf32> to vector<8x256xf32>
    %48 = arith.mulf %45, %47 : vector<8x256xf32>
    %c40 = arith.constant 40 : index
    %c0_28 = arith.constant 0 : index
    %49 = vector.load %arg36[%c40, %c0_28] : memref<288x256xf32, #tpu.memory_space<vmem>>, vector<8x256xf32>
    tpu.vector_store %arg36[%c40, %c0_28], %48 {strides = array<i32>} : memref<288x256xf32, #tpu.memory_space<vmem>>, vector<8x256xf32>,
    %c241_i32 = arith.constant 241 : i32
    %50 = tpu.dynamic_rotate %23 by %c241_i32 dim 1 : vector<8x256xf32>, i32 -> vector<8x256xf32>
    %c6 = arith.constant 6 : index
    %c0_29 = arith.constant 0 : index
    %51 = vector.load %arg3[%c6, %c0_29] : memref<9x256xf32, #tpu.memory_space<vmem>>, vector<1x256xf32>
    %52 = vector.broadcast %51 : vector<1x256xf32> to vector<8x256xf32>
    %53 = arith.mulf %50, %52 : vector<8x256xf32>
    %c48 = arith.constant 48 : index
    %c0_30 = arith.constant 0 : index
    %54 = vector.load %arg36[%c48, %c0_30] : memref<288x256xf32, #tpu.memory_space<vmem>>, vector<8x256xf32>
    tpu.vector_store %arg36[%c48, %c0_30], %53 {strides = array<i32>} : memref<288x256xf32, #tpu.memory_space<vmem>>, vector<8x256xf32>,
    %c240_i32 = arith.constant 240 : i32
    %55 = tpu.dynamic_rotate %23 by %c240_i32 dim 1 : vector<8x256xf32>, i32 -> vector<8x256xf32>
    %c7 = arith.constant 7 : index
    %c0_31 = arith.constant 0 : index
    %56 = vector.load %arg3[%c7, %c0_31] : memref<9x256xf32, #tpu.memory_space<vmem>>, vector<1x256xf32>
    %57 = vector.broadcast %56 : vector<1x256xf32> to vector<8x256xf32>
    %58 = arith.mulf %55, %57 : vector<8x256xf32>
    %c56 = arith.constant 56 : index
    %c0_32 = arith.constant 0 : index
    %59 = vector.load %arg36[%c56, %c0_32] : memref<288x256xf32, #tpu.memory_space<vmem>>, vector<8x256xf32>
    tpu.vector_store %arg36[%c56, %c0_32], %58 {strides = array<i32>} : memref<288x256xf32, #tpu.memory_space<vmem>>, vector<8x256xf32>,
    %c239_i32 = arith.constant 239 : i32
    %60 = tpu.dynamic_rotate %23 by %c239_i32 dim 1 : vector<8x256xf32>, i32 -> vector<8x256xf32>
    %c8_33 = arith.constant 8 : index
    %c0_34 = arith.constant 0 : index
    %61 = vector.load %arg3[%c8_33, %c0_34] : memref<9x256xf32, #tpu.memory_space<vmem>>, vector<1x256xf32>
    %62 = vector.broadcast %61 : vector<1x256xf32> to vector<8x256xf32>
    %63 = arith.mulf %60, %62 : vector<8x256xf32>
    %c64 = arith.constant 64 : index
    %c0_35 = arith.constant 0 : index
    %64 = vector.load %arg36[%c64, %c0_35] : memref<288x256xf32, #tpu.memory_space<vmem>>, vector<8x256xf32>
    tpu.vector_store %arg36[%c64, %c0_35], %63 {strides = array<i32>} : memref<288x256xf32, #tpu.memory_space<vmem>>, vector<8x256xf32>,
    %c0_36 = arith.constant 0 : index
    %c0_37 = arith.constant 0 : index
    %65 = vector.load %arg36[%c0_36, %c0_37] : memref<288x256xf32, #tpu.memory_space<vmem>>, vector<72x256xf32>
    %c0_38 = arith.constant 0 : index
    %c0_39 = arith.constant 0 : index
    %66 = vector.load %arg9[%c0_38, %c0_39] : memref<32x72xf32, #tpu.memory_space<vmem>>, vector<32x72xf32>
    %cst_40 = arith.constant dense<0.000000e+00> : vector<32x256xf32>
    %67 = tpu.matmul %66, %65, %cst_40 {dimension_numbers = #tpu.dot_dimension_numbers<[1], [0], [0], [1], [0, 0, 1, 1], [], []>} : vector<32x72xf32>, vector<72x256xf32>, vector<32x256xf32> -> vector<32x256xf32>
    %c0_41 = arith.constant 0 : index
    %c0_42 = arith.constant 0 : index
    %68 = vector.load %arg10[%c0_41, %c0_42] : memref<32x1xf32, #tpu.memory_space<vmem>>, vector<32x1xf32>
    %69 = vector.broadcast %68 : vector<32x1xf32> to vector<32x256xf32>
    %70 = arith.addf %67, %69 : vector<32x256xf32>
    %cst_43 = arith.constant dense<0.000000e+00> : vector<32xf32>
    %71 = vector.multi_reduction <add>, %70, %cst_43 [1] : vector<32x256xf32> to vector<32xf32>
    %72 = vector.shape_cast %71 : vector<32xf32> to vector<32x1xf32>
    %73 = arith.mulf %70, %70 : vector<32x256xf32>
    %cst_44 = arith.constant dense<0.000000e+00> : vector<32xf32>
    %74 = vector.multi_reduction <add>, %73, %cst_44 [1] : vector<32x256xf32> to vector<32xf32>
    %75 = vector.shape_cast %74 : vector<32xf32> to vector<32x1xf32>
    %c0_45 = arith.constant 0 : index
    %c0_46 = arith.constant 0 : index
    %76 = vector.load %arg4[%c0_45, %c0_46] : memref<32x32xf32, #tpu.memory_space<vmem>>, vector<32x32xf32>
    %cst_47 = arith.constant dense<0.000000e+00> : vector<32x1xf32>
    %77 = tpu.matmul %76, %72, %cst_47 {dimension_numbers = #tpu.dot_dimension_numbers<[1], [0], [0], [1], [0, 0, 1, 1], [], []>} : vector<32x32xf32>, vector<32x1xf32>, vector<32x1xf32> -> vector<32x1xf32>
    %cst_48 = arith.constant 9.765625E-4 : f32
    %78 = vector.broadcast %cst_48 : f32 to vector<32x1xf32>
    %79 = arith.mulf %77, %78 : vector<32x1xf32>
    %c0_49 = arith.constant 0 : index
    %c0_50 = arith.constant 0 : index
    %80 = vector.load %arg4[%c0_49, %c0_50] : memref<32x32xf32, #tpu.memory_space<vmem>>, vector<32x32xf32>
    %cst_51 = arith.constant dense<0.000000e+00> : vector<32x1xf32>
    %81 = tpu.matmul %80, %75, %cst_51 {dimension_numbers = #tpu.dot_dimension_numbers<[1], [0], [0], [1], [0, 0, 1, 1], [], []>} : vector<32x32xf32>, vector<32x1xf32>, vector<32x1xf32> -> vector<32x1xf32>
    %cst_52 = arith.constant 9.765625E-4 : f32
    %82 = vector.broadcast %cst_52 : f32 to vector<32x1xf32>
    %83 = arith.mulf %81, %82 : vector<32x1xf32>
    %84 = arith.mulf %79, %79 : vector<32x1xf32>
    %85 = arith.subf %83, %84 : vector<32x1xf32>
    %cst_53 = arith.constant 9.99999974E-6 : f32
    %86 = vector.broadcast %cst_53 : f32 to vector<32x1xf32>
    %87 = arith.addf %85, %86 : vector<32x1xf32>
    %88 = math.rsqrt %87 : vector<32x1xf32>
    %89 = vector.broadcast %79 : vector<32x1xf32> to vector<32x256xf32>
    %90 = arith.subf %70, %89 : vector<32x256xf32>
    %91 = vector.broadcast %88 : vector<32x1xf32> to vector<32x256xf32>
    %92 = arith.mulf %90, %91 : vector<32x256xf32>
    %c0_54 = arith.constant 0 : index
    %c0_55 = arith.constant 0 : index
    %93 = vector.load %arg11[%c0_54, %c0_55] : memref<32x1xf32, #tpu.memory_space<vmem>>, vector<32x1xf32>
    %94 = vector.broadcast %93 : vector<32x1xf32> to vector<32x256xf32>
    %95 = arith.mulf %92, %94 : vector<32x256xf32>
    %c0_56 = arith.constant 0 : index
    %c0_57 = arith.constant 0 : index
    %96 = vector.load %arg12[%c0_56, %c0_57] : memref<32x1xf32, #tpu.memory_space<vmem>>, vector<32x1xf32>
    %97 = vector.broadcast %96 : vector<32x1xf32> to vector<32x256xf32>
    %98 = arith.addf %95, %97 : vector<32x256xf32>
    %99 = arith.negf %98 : vector<32x256xf32>
    %100 = math.exp %99 : vector<32x256xf32>
    %cst_58 = arith.constant 1.000000e+00 : f32
    %101 = vector.broadcast %cst_58 : f32 to vector<32x256xf32>
    %102 = arith.addf %101, %100 : vector<32x256xf32>
    %103 = arith.divf %101, %102 : vector<32x256xf32>
    %104 = arith.mulf %98, %103 : vector<32x256xf32>
    %c17_i32_59 = arith.constant 17 : i32
    %105 = tpu.dynamic_rotate %104 by %c17_i32_59 dim 1 : vector<32x256xf32>, i32 -> vector<32x256xf32>
    %c0_60 = arith.constant 0 : index
    %c0_61 = arith.constant 0 : index
    %106 = vector.load %arg3[%c0_60, %c0_61] : memref<9x256xf32, #tpu.memory_space<vmem>>, vector<1x256xf32>
    %107 = vector.broadcast %106 : vector<1x256xf32> to vector<32x256xf32>
    %108 = arith.mulf %105, %107 : vector<32x256xf32>
    %c0_62 = arith.constant 0 : index
    %c0_63 = arith.constant 0 : index
    %109 = vector.load %arg36[%c0_62, %c0_63] : memref<288x256xf32, #tpu.memory_space<vmem>>, vector<32x256xf32>
    tpu.vector_store %arg36[%c0_62, %c0_63], %108 {strides = array<i32>} : memref<288x256xf32, #tpu.memory_space<vmem>>, vector<32x256xf32>,
    %c16_i32_64 = arith.constant 16 : i32
    %110 = tpu.dynamic_rotate %104 by %c16_i32_64 dim 1 : vector<32x256xf32>, i32 -> vector<32x256xf32>
    %c1_65 = arith.constant 1 : index
    %c0_66 = arith.constant 0 : index
    %111 = vector.load %arg3[%c1_65, %c0_66] : memref<9x256xf32, #tpu.memory_space<vmem>>, vector<1x256xf32>
    %112 = vector.broadcast %111 : vector<1x256xf32> to vector<32x256xf32>
    %113 = arith.mulf %110, %112 : vector<32x256xf32>
    %c32_67 = arith.constant 32 : index
    %c0_68 = arith.constant 0 : index
    %114 = vector.load %arg36[%c32_67, %c0_68] : memref<288x256xf32, #tpu.memory_space<vmem>>, vector<32x256xf32>
    tpu.vector_store %arg36[%c32_67, %c0_68], %113 {strides = array<i32>} : memref<288x256xf32, #tpu.memory_space<vmem>>, vector<32x256xf32>,
    %c15_i32_69 = arith.constant 15 : i32
    %115 = tpu.dynamic_rotate %104 by %c15_i32_69 dim 1 : vector<32x256xf32>, i32 -> vector<32x256xf32>
    %c2_70 = arith.constant 2 : index
    %c0_71 = arith.constant 0 : index
    %116 = vector.load %arg3[%c2_70, %c0_71] : memref<9x256xf32, #tpu.memory_space<vmem>>, vector<1x256xf32>
    %117 = vector.broadcast %116 : vector<1x256xf32> to vector<32x256xf32>
    %118 = arith.mulf %115, %117 : vector<32x256xf32>
    %c64_72 = arith.constant 64 : index
    %c0_73 = arith.constant 0 : index
    %119 = vector.load %arg36[%c64_72, %c0_73] : memref<288x256xf32, #tpu.memory_space<vmem>>, vector<32x256xf32>
    tpu.vector_store %arg36[%c64_72, %c0_73], %118 {strides = array<i32>} : memref<288x256xf32, #tpu.memory_space<vmem>>, vector<32x256xf32>,
    %c1_i32_74 = arith.constant 1 : i32
    %120 = tpu.dynamic_rotate %104 by %c1_i32_74 dim 1 : vector<32x256xf32>, i32 -> vector<32x256xf32>
    %c3_75 = arith.constant 3 : index
    %c0_76 = arith.constant 0 : index
    %121 = vector.load %arg3[%c3_75, %c0_76] : memref<9x256xf32, #tpu.memory_space<vmem>>, vector<1x256xf32>
    %122 = vector.broadcast %121 : vector<1x256xf32> to vector<32x256xf32>
    %123 = arith.mulf %120, %122 : vector<32x256xf32>
    %c96 = arith.constant 96 : index
    %c0_77 = arith.constant 0 : index
    %124 = vector.load %arg36[%c96, %c0_77] : memref<288x256xf32, #tpu.memory_space<vmem>>, vector<32x256xf32>
    tpu.vector_store %arg36[%c96, %c0_77], %123 {strides = array<i32>} : memref<288x256xf32, #tpu.memory_space<vmem>>, vector<32x256xf32>,
    %c128 = arith.constant 128 : index
    %c0_78 = arith.constant 0 : index
    %125 = vector.load %arg36[%c128, %c0_78] : memref<288x256xf32, #tpu.memory_space<vmem>>, vector<32x256xf32>
    tpu.vector_store %arg36[%c128, %c0_78], %104 {strides = array<i32>} : memref<288x256xf32, #tpu.memory_space<vmem>>, vector<32x256xf32>,
    %c255_i32_79 = arith.constant 255 : i32
    %126 = tpu.dynamic_rotate %104 by %c255_i32_79 dim 1 : vector<32x256xf32>, i32 -> vector<32x256xf32>
    %c5_80 = arith.constant 5 : index
    %c0_81 = arith.constant 0 : index
    %127 = vector.load %arg3[%c5_80, %c0_81] : memref<9x256xf32, #tpu.memory_space<vmem>>, vector<1x256xf32>
    %128 = vector.broadcast %127 : vector<1x256xf32> to vector<32x256xf32>
    %129 = arith.mulf %126, %128 : vector<32x256xf32>
    %c160 = arith.constant 160 : index
    %c0_82 = arith.constant 0 : index
    %130 = vector.load %arg36[%c160, %c0_82] : memref<288x256xf32, #tpu.memory_space<vmem>>, vector<32x256xf32>
    tpu.vector_store %arg36[%c160, %c0_82], %129 {strides = array<i32>} : memref<288x256xf32, #tpu.memory_space<vmem>>, vector<32x256xf32>,
    %c241_i32_83 = arith.constant 241 : i32
    %131 = tpu.dynamic_rotate %104 by %c241_i32_83 dim 1 : vector<32x256xf32>, i32 -> vector<32x256xf32>
    %c6_84 = arith.constant 6 : index
    %c0_85 = arith.constant 0 : index
    %132 = vector.load %arg3[%c6_84, %c0_85] : memref<9x256xf32, #tpu.memory_space<vmem>>, vector<1x256xf32>
    %133 = vector.broadcast %132 : vector<1x256xf32> to vector<32x256xf32>
    %134 = arith.mulf %131, %133 : vector<32x256xf32>
    %c192 = arith.constant 192 : index
    %c0_86 = arith.constant 0 : index
    %135 = vector.load %arg36[%c192, %c0_86] : memref<288x256xf32, #tpu.memory_space<vmem>>, vector<32x256xf32>
    tpu.vector_store %arg36[%c192, %c0_86], %134 {strides = array<i32>} : memref<288x256xf32, #tpu.memory_space<vmem>>, vector<32x256xf32>,
    %c240_i32_87 = arith.constant 240 : i32
    %136 = tpu.dynamic_rotate %104 by %c240_i32_87 dim 1 : vector<32x256xf32>, i32 -> vector<32x256xf32>
    %c7_88 = arith.constant 7 : index
    %c0_89 = arith.constant 0 : index
    %137 = vector.load %arg3[%c7_88, %c0_89] : memref<9x256xf32, #tpu.memory_space<vmem>>, vector<1x256xf32>
    %138 = vector.broadcast %137 : vector<1x256xf32> to vector<32x256xf32>
    %139 = arith.mulf %136, %138 : vector<32x256xf32>
    %c224 = arith.constant 224 : index
    %c0_90 = arith.constant 0 : index
    %140 = vector.load %arg36[%c224, %c0_90] : memref<288x256xf32, #tpu.memory_space<vmem>>, vector<32x256xf32>
    tpu.vector_store %arg36[%c224, %c0_90], %139 {strides = array<i32>} : memref<288x256xf32, #tpu.memory_space<vmem>>, vector<32x256xf32>,
    %c239_i32_91 = arith.constant 239 : i32
    %141 = tpu.dynamic_rotate %104 by %c239_i32_91 dim 1 : vector<32x256xf32>, i32 -> vector<32x256xf32>
    %c8_92 = arith.constant 8 : index
    %c0_93 = arith.constant 0 : index
    %142 = vector.load %arg3[%c8_92, %c0_93] : memref<9x256xf32, #tpu.memory_space<vmem>>, vector<1x256xf32>
    %143 = vector.broadcast %142 : vector<1x256xf32> to vector<32x256xf32>
    %144 = arith.mulf %141, %143 : vector<32x256xf32>
    %c256 = arith.constant 256 : index
    %c0_94 = arith.constant 0 : index
    %145 = vector.load %arg36[%c256, %c0_94] : memref<288x256xf32, #tpu.memory_space<vmem>>, vector<32x256xf32>
    tpu.vector_store %arg36[%c256, %c0_94], %144 {strides = array<i32>} : memref<288x256xf32, #tpu.memory_space<vmem>>, vector<32x256xf32>,
    %c0_95 = arith.constant 0 : index
    %c0_96 = arith.constant 0 : index
    %146 = vector.load %arg36[%c0_95, %c0_96] : memref<288x256xf32, #tpu.memory_space<vmem>>, vector<288x256xf32>
    %c0_97 = arith.constant 0 : index
    %c0_98 = arith.constant 0 : index
    %147 = vector.load %arg13[%c0_97, %c0_98] : memref<32x288xf32, #tpu.memory_space<vmem>>, vector<32x288xf32>
    %cst_99 = arith.constant dense<0.000000e+00> : vector<32x256xf32>
    %148 = tpu.matmul %147, %146, %cst_99 {dimension_numbers = #tpu.dot_dimension_numbers<[1], [0], [0], [1], [0, 0, 1, 1], [], []>} : vector<32x288xf32>, vector<288x256xf32>, vector<32x256xf32> -> vector<32x256xf32>
    %c0_100 = arith.constant 0 : index
    %c0_101 = arith.constant 0 : index
    %149 = vector.load %arg14[%c0_100, %c0_101] : memref<32x1xf32, #tpu.memory_space<vmem>>, vector<32x1xf32>
    %150 = vector.broadcast %149 : vector<32x1xf32> to vector<32x256xf32>
    %151 = arith.addf %148, %150 : vector<32x256xf32>
    %c0_102 = arith.constant 0 : index
    %c0_103 = arith.constant 0 : index
    %152 = vector.load %arg15[%c0_102, %c0_103] : memref<32x64xf32, #tpu.memory_space<vmem>>, vector<32x64xf32>
    %cst_104 = arith.constant dense<0.000000e+00> : vector<32x1xf32>
    %153 = tpu.matmul %152, %21, %cst_104 {dimension_numbers = #tpu.dot_dimension_numbers<[1], [0], [0], [1], [0, 0, 1, 1], [], []>} : vector<32x64xf32>, vector<64x1xf32>, vector<32x1xf32> -> vector<32x1xf32>
    %c0_105 = arith.constant 0 : index
    %c0_106 = arith.constant 0 : index
    %154 = vector.load %arg16[%c0_105, %c0_106] : memref<32x1xf32, #tpu.memory_space<vmem>>, vector<32x1xf32>
    %155 = arith.addf %153, %154 : vector<32x1xf32>
    %156 = vector.broadcast %155 : vector<32x1xf32> to vector<32x256xf32>
    %157 = arith.addf %151, %156 : vector<32x256xf32>
    %cst_107 = arith.constant dense<0.000000e+00> : vector<32xf32>
    %158 = vector.multi_reduction <add>, %157, %cst_107 [1] : vector<32x256xf32> to vector<32xf32>
    %159 = vector.shape_cast %158 : vector<32xf32> to vector<32x1xf32>
    %160 = arith.mulf %157, %157 : vector<32x256xf32>
    %cst_108 = arith.constant dense<0.000000e+00> : vector<32xf32>
    %161 = vector.multi_reduction <add>, %160, %cst_108 [1] : vector<32x256xf32> to vector<32xf32>
    %162 = vector.shape_cast %161 : vector<32xf32> to vector<32x1xf32>
    %c0_109 = arith.constant 0 : index
    %c0_110 = arith.constant 0 : index
    %163 = vector.load %arg4[%c0_109, %c0_110] : memref<32x32xf32, #tpu.memory_space<vmem>>, vector<32x32xf32>
    %cst_111 = arith.constant dense<0.000000e+00> : vector<32x1xf32>
    %164 = tpu.matmul %163, %159, %cst_111 {dimension_numbers = #tpu.dot_dimension_numbers<[1], [0], [0], [1], [0, 0, 1, 1], [], []>} : vector<32x32xf32>, vector<32x1xf32>, vector<32x1xf32> -> vector<32x1xf32>
    %cst_112 = arith.constant 9.765625E-4 : f32
    %165 = vector.broadcast %cst_112 : f32 to vector<32x1xf32>
    %166 = arith.mulf %164, %165 : vector<32x1xf32>
    %c0_113 = arith.constant 0 : index
    %c0_114 = arith.constant 0 : index
    %167 = vector.load %arg4[%c0_113, %c0_114] : memref<32x32xf32, #tpu.memory_space<vmem>>, vector<32x32xf32>
    %cst_115 = arith.constant dense<0.000000e+00> : vector<32x1xf32>
    %168 = tpu.matmul %167, %162, %cst_115 {dimension_numbers = #tpu.dot_dimension_numbers<[1], [0], [0], [1], [0, 0, 1, 1], [], []>} : vector<32x32xf32>, vector<32x1xf32>, vector<32x1xf32> -> vector<32x1xf32>
    %cst_116 = arith.constant 9.765625E-4 : f32
    %169 = vector.broadcast %cst_116 : f32 to vector<32x1xf32>
    %170 = arith.mulf %168, %169 : vector<32x1xf32>
    %171 = arith.mulf %166, %166 : vector<32x1xf32>
    %172 = arith.subf %170, %171 : vector<32x1xf32>
    %cst_117 = arith.constant 9.99999974E-6 : f32
    %173 = vector.broadcast %cst_117 : f32 to vector<32x1xf32>
    %174 = arith.addf %172, %173 : vector<32x1xf32>
    %175 = math.rsqrt %174 : vector<32x1xf32>
    %176 = vector.broadcast %166 : vector<32x1xf32> to vector<32x256xf32>
    %177 = arith.subf %157, %176 : vector<32x256xf32>
    %178 = vector.broadcast %175 : vector<32x1xf32> to vector<32x256xf32>
    %179 = arith.mulf %177, %178 : vector<32x256xf32>
    %c0_118 = arith.constant 0 : index
    %c0_119 = arith.constant 0 : index
    %180 = vector.load %arg17[%c0_118, %c0_119] : memref<32x1xf32, #tpu.memory_space<vmem>>, vector<32x1xf32>
    %181 = vector.broadcast %180 : vector<32x1xf32> to vector<32x256xf32>
    %182 = arith.mulf %179, %181 : vector<32x256xf32>
    %c0_120 = arith.constant 0 : index
    %c0_121 = arith.constant 0 : index
    %183 = vector.load %arg18[%c0_120, %c0_121] : memref<32x1xf32, #tpu.memory_space<vmem>>, vector<32x1xf32>
    %184 = vector.broadcast %183 : vector<32x1xf32> to vector<32x256xf32>
    %185 = arith.addf %182, %184 : vector<32x256xf32>
    %186 = arith.negf %185 : vector<32x256xf32>
    %187 = math.exp %186 : vector<32x256xf32>
    %cst_122 = arith.constant 1.000000e+00 : f32
    %188 = vector.broadcast %cst_122 : f32 to vector<32x256xf32>
    %189 = arith.addf %188, %187 : vector<32x256xf32>
    %190 = arith.divf %188, %189 : vector<32x256xf32>
    %191 = arith.mulf %185, %190 : vector<32x256xf32>
    %c17_i32_123 = arith.constant 17 : i32
    %192 = tpu.dynamic_rotate %191 by %c17_i32_123 dim 1 : vector<32x256xf32>, i32 -> vector<32x256xf32>
    %c0_124 = arith.constant 0 : index
    %c0_125 = arith.constant 0 : index
    %193 = vector.load %arg3[%c0_124, %c0_125] : memref<9x256xf32, #tpu.memory_space<vmem>>, vector<1x256xf32>
    %194 = vector.broadcast %193 : vector<1x256xf32> to vector<32x256xf32>
    %195 = arith.mulf %192, %194 : vector<32x256xf32>
    %c0_126 = arith.constant 0 : index
    %c0_127 = arith.constant 0 : index
    %196 = vector.load %arg36[%c0_126, %c0_127] : memref<288x256xf32, #tpu.memory_space<vmem>>, vector<32x256xf32>
    tpu.vector_store %arg36[%c0_126, %c0_127], %195 {strides = array<i32>} : memref<288x256xf32, #tpu.memory_space<vmem>>, vector<32x256xf32>,
    %c16_i32_128 = arith.constant 16 : i32
    %197 = tpu.dynamic_rotate %191 by %c16_i32_128 dim 1 : vector<32x256xf32>, i32 -> vector<32x256xf32>
    %c1_129 = arith.constant 1 : index
    %c0_130 = arith.constant 0 : index
    %198 = vector.load %arg3[%c1_129, %c0_130] : memref<9x256xf32, #tpu.memory_space<vmem>>, vector<1x256xf32>
    %199 = vector.broadcast %198 : vector<1x256xf32> to vector<32x256xf32>
    %200 = arith.mulf %197, %199 : vector<32x256xf32>
    %c32_131 = arith.constant 32 : index
    %c0_132 = arith.constant 0 : index
    %201 = vector.load %arg36[%c32_131, %c0_132] : memref<288x256xf32, #tpu.memory_space<vmem>>, vector<32x256xf32>
    tpu.vector_store %arg36[%c32_131, %c0_132], %200 {strides = array<i32>} : memref<288x256xf32, #tpu.memory_space<vmem>>, vector<32x256xf32>,
    %c15_i32_133 = arith.constant 15 : i32
    %202 = tpu.dynamic_rotate %191 by %c15_i32_133 dim 1 : vector<32x256xf32>, i32 -> vector<32x256xf32>
    %c2_134 = arith.constant 2 : index
    %c0_135 = arith.constant 0 : index
    %203 = vector.load %arg3[%c2_134, %c0_135] : memref<9x256xf32, #tpu.memory_space<vmem>>, vector<1x256xf32>
    %204 = vector.broadcast %203 : vector<1x256xf32> to vector<32x256xf32>
    %205 = arith.mulf %202, %204 : vector<32x256xf32>
    %c64_136 = arith.constant 64 : index
    %c0_137 = arith.constant 0 : index
    %206 = vector.load %arg36[%c64_136, %c0_137] : memref<288x256xf32, #tpu.memory_space<vmem>>, vector<32x256xf32>
    tpu.vector_store %arg36[%c64_136, %c0_137], %205 {strides = array<i32>} : memref<288x256xf32, #tpu.memory_space<vmem>>, vector<32x256xf32>,
    %c1_i32_138 = arith.constant 1 : i32
    %207 = tpu.dynamic_rotate %191 by %c1_i32_138 dim 1 : vector<32x256xf32>, i32 -> vector<32x256xf32>
    %c3_139 = arith.constant 3 : index
    %c0_140 = arith.constant 0 : index
    %208 = vector.load %arg3[%c3_139, %c0_140] : memref<9x256xf32, #tpu.memory_space<vmem>>, vector<1x256xf32>
    %209 = vector.broadcast %208 : vector<1x256xf32> to vector<32x256xf32>
    %210 = arith.mulf %207, %209 : vector<32x256xf32>
    %c96_141 = arith.constant 96 : index
    %c0_142 = arith.constant 0 : index
    %211 = vector.load %arg36[%c96_141, %c0_142] : memref<288x256xf32, #tpu.memory_space<vmem>>, vector<32x256xf32>
    tpu.vector_store %arg36[%c96_141, %c0_142], %210 {strides = array<i32>} : memref<288x256xf32, #tpu.memory_space<vmem>>, vector<32x256xf32>,
    %c128_143 = arith.constant 128 : index
    %c0_144 = arith.constant 0 : index
    %212 = vector.load %arg36[%c128_143, %c0_144] : memref<288x256xf32, #tpu.memory_space<vmem>>, vector<32x256xf32>
    tpu.vector_store %arg36[%c128_143, %c0_144], %191 {strides = array<i32>} : memref<288x256xf32, #tpu.memory_space<vmem>>, vector<32x256xf32>,
    %c255_i32_145 = arith.constant 255 : i32
    %213 = tpu.dynamic_rotate %191 by %c255_i32_145 dim 1 : vector<32x256xf32>, i32 -> vector<32x256xf32>
    %c5_146 = arith.constant 5 : index
    %c0_147 = arith.constant 0 : index
    %214 = vector.load %arg3[%c5_146, %c0_147] : memref<9x256xf32, #tpu.memory_space<vmem>>, vector<1x256xf32>
    %215 = vector.broadcast %214 : vector<1x256xf32> to vector<32x256xf32>
    %216 = arith.mulf %213, %215 : vector<32x256xf32>
    %c160_148 = arith.constant 160 : index
    %c0_149 = arith.constant 0 : index
    %217 = vector.load %arg36[%c160_148, %c0_149] : memref<288x256xf32, #tpu.memory_space<vmem>>, vector<32x256xf32>
    tpu.vector_store %arg36[%c160_148, %c0_149], %216 {strides = array<i32>} : memref<288x256xf32, #tpu.memory_space<vmem>>, vector<32x256xf32>,
    %c241_i32_150 = arith.constant 241 : i32
    %218 = tpu.dynamic_rotate %191 by %c241_i32_150 dim 1 : vector<32x256xf32>, i32 -> vector<32x256xf32>
    %c6_151 = arith.constant 6 : index
    %c0_152 = arith.constant 0 : index
    %219 = vector.load %arg3[%c6_151, %c0_152] : memref<9x256xf32, #tpu.memory_space<vmem>>, vector<1x256xf32>
    %220 = vector.broadcast %219 : vector<1x256xf32> to vector<32x256xf32>
    %221 = arith.mulf %218, %220 : vector<32x256xf32>
    %c192_153 = arith.constant 192 : index
    %c0_154 = arith.constant 0 : index
    %222 = vector.load %arg36[%c192_153, %c0_154] : memref<288x256xf32, #tpu.memory_space<vmem>>, vector<32x256xf32>
    tpu.vector_store %arg36[%c192_153, %c0_154], %221 {strides = array<i32>} : memref<288x256xf32, #tpu.memory_space<vmem>>, vector<32x256xf32>,
    %c240_i32_155 = arith.constant 240 : i32
    %223 = tpu.dynamic_rotate %191 by %c240_i32_155 dim 1 : vector<32x256xf32>, i32 -> vector<32x256xf32>
    %c7_156 = arith.constant 7 : index
    %c0_157 = arith.constant 0 : index
    %224 = vector.load %arg3[%c7_156, %c0_157] : memref<9x256xf32, #tpu.memory_space<vmem>>, vector<1x256xf32>
    %225 = vector.broadcast %224 : vector<1x256xf32> to vector<32x256xf32>
    %226 = arith.mulf %223, %225 : vector<32x256xf32>
    %c224_158 = arith.constant 224 : index
    %c0_159 = arith.constant 0 : index
    %227 = vector.load %arg36[%c224_158, %c0_159] : memref<288x256xf32, #tpu.memory_space<vmem>>, vector<32x256xf32>
    tpu.vector_store %arg36[%c224_158, %c0_159], %226 {strides = array<i32>} : memref<288x256xf32, #tpu.memory_space<vmem>>, vector<32x256xf32>,
    %c239_i32_160 = arith.constant 239 : i32
    %228 = tpu.dynamic_rotate %191 by %c239_i32_160 dim 1 : vector<32x256xf32>, i32 -> vector<32x256xf32>
    %c8_161 = arith.constant 8 : index
    %c0_162 = arith.constant 0 : index
    %229 = vector.load %arg3[%c8_161, %c0_162] : memref<9x256xf32, #tpu.memory_space<vmem>>, vector<1x256xf32>
    %230 = vector.broadcast %229 : vector<1x256xf32> to vector<32x256xf32>
    %231 = arith.mulf %228, %230 : vector<32x256xf32>
    %c256_163 = arith.constant 256 : index
    %c0_164 = arith.constant 0 : index
    %232 = vector.load %arg36[%c256_163, %c0_164] : memref<288x256xf32, #tpu.memory_space<vmem>>, vector<32x256xf32>
    tpu.vector_store %arg36[%c256_163, %c0_164], %231 {strides = array<i32>} : memref<288x256xf32, #tpu.memory_space<vmem>>, vector<32x256xf32>,
    %c0_165 = arith.constant 0 : index
    %c0_166 = arith.constant 0 : index
    %233 = vector.load %arg36[%c0_165, %c0_166] : memref<288x256xf32, #tpu.memory_space<vmem>>, vector<288x256xf32>
    %c0_167 = arith.constant 0 : index
    %c0_168 = arith.constant 0 : index
    %234 = vector.load %arg19[%c0_167, %c0_168] : memref<32x288xf32, #tpu.memory_space<vmem>>, vector<32x288xf32>
    %cst_169 = arith.constant dense<0.000000e+00> : vector<32x256xf32>
    %235 = tpu.matmul %234, %233, %cst_169 {dimension_numbers = #tpu.dot_dimension_numbers<[1], [0], [0], [1], [0, 0, 1, 1], [], []>} : vector<32x288xf32>, vector<288x256xf32>, vector<32x256xf32> -> vector<32x256xf32>
    %c0_170 = arith.constant 0 : index
    %c0_171 = arith.constant 0 : index
    %236 = vector.load %arg20[%c0_170, %c0_171] : memref<32x1xf32, #tpu.memory_space<vmem>>, vector<32x1xf32>
    %237 = vector.broadcast %236 : vector<32x1xf32> to vector<32x256xf32>
    %238 = arith.addf %235, %237 : vector<32x256xf32>
    %239 = arith.addf %238, %70 : vector<32x256xf32>
    %cst_172 = arith.constant dense<0.000000e+00> : vector<32xf32>
    %240 = vector.multi_reduction <add>, %239, %cst_172 [1] : vector<32x256xf32> to vector<32xf32>
    %241 = vector.shape_cast %240 : vector<32xf32> to vector<32x1xf32>
    %242 = arith.mulf %239, %239 : vector<32x256xf32>
    %cst_173 = arith.constant dense<0.000000e+00> : vector<32xf32>
    %243 = vector.multi_reduction <add>, %242, %cst_173 [1] : vector<32x256xf32> to vector<32xf32>
    %244 = vector.shape_cast %243 : vector<32xf32> to vector<32x1xf32>
    %c0_174 = arith.constant 0 : index
    %c0_175 = arith.constant 0 : index
    %245 = vector.load %arg4[%c0_174, %c0_175] : memref<32x32xf32, #tpu.memory_space<vmem>>, vector<32x32xf32>
    %cst_176 = arith.constant dense<0.000000e+00> : vector<32x1xf32>
    %246 = tpu.matmul %245, %241, %cst_176 {dimension_numbers = #tpu.dot_dimension_numbers<[1], [0], [0], [1], [0, 0, 1, 1], [], []>} : vector<32x32xf32>, vector<32x1xf32>, vector<32x1xf32> -> vector<32x1xf32>
    %cst_177 = arith.constant 9.765625E-4 : f32
    %247 = vector.broadcast %cst_177 : f32 to vector<32x1xf32>
    %248 = arith.mulf %246, %247 : vector<32x1xf32>
    %c0_178 = arith.constant 0 : index
    %c0_179 = arith.constant 0 : index
    %249 = vector.load %arg4[%c0_178, %c0_179] : memref<32x32xf32, #tpu.memory_space<vmem>>, vector<32x32xf32>
    %cst_180 = arith.constant dense<0.000000e+00> : vector<32x1xf32>
    %250 = tpu.matmul %249, %244, %cst_180 {dimension_numbers = #tpu.dot_dimension_numbers<[1], [0], [0], [1], [0, 0, 1, 1], [], []>} : vector<32x32xf32>, vector<32x1xf32>, vector<32x1xf32> -> vector<32x1xf32>
    %cst_181 = arith.constant 9.765625E-4 : f32
    %251 = vector.broadcast %cst_181 : f32 to vector<32x1xf32>
    %252 = arith.mulf %250, %251 : vector<32x1xf32>
    %253 = arith.mulf %248, %248 : vector<32x1xf32>
    %254 = arith.subf %252, %253 : vector<32x1xf32>
    %cst_182 = arith.constant 9.99999974E-6 : f32
    %255 = vector.broadcast %cst_182 : f32 to vector<32x1xf32>
    %256 = arith.addf %254, %255 : vector<32x1xf32>
    %257 = math.rsqrt %256 : vector<32x1xf32>
    %258 = vector.broadcast %248 : vector<32x1xf32> to vector<32x256xf32>
    %259 = arith.subf %239, %258 : vector<32x256xf32>
    %260 = vector.broadcast %257 : vector<32x1xf32> to vector<32x256xf32>
    %261 = arith.mulf %259, %260 : vector<32x256xf32>
    %c0_183 = arith.constant 0 : index
    %c0_184 = arith.constant 0 : index
    %262 = vector.load %arg21[%c0_183, %c0_184] : memref<32x1xf32, #tpu.memory_space<vmem>>, vector<32x1xf32>
    %263 = vector.broadcast %262 : vector<32x1xf32> to vector<32x256xf32>
    %264 = arith.mulf %261, %263 : vector<32x256xf32>
    %c0_185 = arith.constant 0 : index
    %c0_186 = arith.constant 0 : index
    %265 = vector.load %arg22[%c0_185, %c0_186] : memref<32x1xf32, #tpu.memory_space<vmem>>, vector<32x1xf32>
    %266 = vector.broadcast %265 : vector<32x1xf32> to vector<32x256xf32>
    %267 = arith.addf %264, %266 : vector<32x256xf32>
    %268 = arith.negf %267 : vector<32x256xf32>
    %269 = math.exp %268 : vector<32x256xf32>
    %cst_187 = arith.constant 1.000000e+00 : f32
    %270 = vector.broadcast %cst_187 : f32 to vector<32x256xf32>
    %271 = arith.addf %270, %269 : vector<32x256xf32>
    %272 = arith.divf %270, %271 : vector<32x256xf32>
    %273 = arith.mulf %267, %272 : vector<32x256xf32>
    %c17_i32_188 = arith.constant 17 : i32
    %274 = tpu.dynamic_rotate %273 by %c17_i32_188 dim 1 : vector<32x256xf32>, i32 -> vector<32x256xf32>
    %c0_189 = arith.constant 0 : index
    %c0_190 = arith.constant 0 : index
    %275 = vector.load %arg3[%c0_189, %c0_190] : memref<9x256xf32, #tpu.memory_space<vmem>>, vector<1x256xf32>
    %276 = vector.broadcast %275 : vector<1x256xf32> to vector<32x256xf32>
    %277 = arith.mulf %274, %276 : vector<32x256xf32>
    %c0_191 = arith.constant 0 : index
    %c0_192 = arith.constant 0 : index
    %278 = vector.load %arg36[%c0_191, %c0_192] : memref<288x256xf32, #tpu.memory_space<vmem>>, vector<32x256xf32>
    tpu.vector_store %arg36[%c0_191, %c0_192], %277 {strides = array<i32>} : memref<288x256xf32, #tpu.memory_space<vmem>>, vector<32x256xf32>,
    %c16_i32_193 = arith.constant 16 : i32
    %279 = tpu.dynamic_rotate %273 by %c16_i32_193 dim 1 : vector<32x256xf32>, i32 -> vector<32x256xf32>
    %c1_194 = arith.constant 1 : index
    %c0_195 = arith.constant 0 : index
    %280 = vector.load %arg3[%c1_194, %c0_195] : memref<9x256xf32, #tpu.memory_space<vmem>>, vector<1x256xf32>
    %281 = vector.broadcast %280 : vector<1x256xf32> to vector<32x256xf32>
    %282 = arith.mulf %279, %281 : vector<32x256xf32>
    %c32_196 = arith.constant 32 : index
    %c0_197 = arith.constant 0 : index
    %283 = vector.load %arg36[%c32_196, %c0_197] : memref<288x256xf32, #tpu.memory_space<vmem>>, vector<32x256xf32>
    tpu.vector_store %arg36[%c32_196, %c0_197], %282 {strides = array<i32>} : memref<288x256xf32, #tpu.memory_space<vmem>>, vector<32x256xf32>,
    %c15_i32_198 = arith.constant 15 : i32
    %284 = tpu.dynamic_rotate %273 by %c15_i32_198 dim 1 : vector<32x256xf32>, i32 -> vector<32x256xf32>
    %c2_199 = arith.constant 2 : index
    %c0_200 = arith.constant 0 : index
    %285 = vector.load %arg3[%c2_199, %c0_200] : memref<9x256xf32, #tpu.memory_space<vmem>>, vector<1x256xf32>
    %286 = vector.broadcast %285 : vector<1x256xf32> to vector<32x256xf32>
    %287 = arith.mulf %284, %286 : vector<32x256xf32>
    %c64_201 = arith.constant 64 : index
    %c0_202 = arith.constant 0 : index
    %288 = vector.load %arg36[%c64_201, %c0_202] : memref<288x256xf32, #tpu.memory_space<vmem>>, vector<32x256xf32>
    tpu.vector_store %arg36[%c64_201, %c0_202], %287 {strides = array<i32>} : memref<288x256xf32, #tpu.memory_space<vmem>>, vector<32x256xf32>,
    %c1_i32_203 = arith.constant 1 : i32
    %289 = tpu.dynamic_rotate %273 by %c1_i32_203 dim 1 : vector<32x256xf32>, i32 -> vector<32x256xf32>
    %c3_204 = arith.constant 3 : index
    %c0_205 = arith.constant 0 : index
    %290 = vector.load %arg3[%c3_204, %c0_205] : memref<9x256xf32, #tpu.memory_space<vmem>>, vector<1x256xf32>
    %291 = vector.broadcast %290 : vector<1x256xf32> to vector<32x256xf32>
    %292 = arith.mulf %289, %291 : vector<32x256xf32>
    %c96_206 = arith.constant 96 : index
    %c0_207 = arith.constant 0 : index
    %293 = vector.load %arg36[%c96_206, %c0_207] : memref<288x256xf32, #tpu.memory_space<vmem>>, vector<32x256xf32>
    tpu.vector_store %arg36[%c96_206, %c0_207], %292 {strides = array<i32>} : memref<288x256xf32, #tpu.memory_space<vmem>>, vector<32x256xf32>,
    %c128_208 = arith.constant 128 : index
    %c0_209 = arith.constant 0 : index
    %294 = vector.load %arg36[%c128_208, %c0_209] : memref<288x256xf32, #tpu.memory_space<vmem>>, vector<32x256xf32>
    tpu.vector_store %arg36[%c128_208, %c0_209], %273 {strides = array<i32>} : memref<288x256xf32, #tpu.memory_space<vmem>>, vector<32x256xf32>,
    %c255_i32_210 = arith.constant 255 : i32
    %295 = tpu.dynamic_rotate %273 by %c255_i32_210 dim 1 : vector<32x256xf32>, i32 -> vector<32x256xf32>
    %c5_211 = arith.constant 5 : index
    %c0_212 = arith.constant 0 : index
    %296 = vector.load %arg3[%c5_211, %c0_212] : memref<9x256xf32, #tpu.memory_space<vmem>>, vector<1x256xf32>
    %297 = vector.broadcast %296 : vector<1x256xf32> to vector<32x256xf32>
    %298 = arith.mulf %295, %297 : vector<32x256xf32>
    %c160_213 = arith.constant 160 : index
    %c0_214 = arith.constant 0 : index
    %299 = vector.load %arg36[%c160_213, %c0_214] : memref<288x256xf32, #tpu.memory_space<vmem>>, vector<32x256xf32>
    tpu.vector_store %arg36[%c160_213, %c0_214], %298 {strides = array<i32>} : memref<288x256xf32, #tpu.memory_space<vmem>>, vector<32x256xf32>,
    %c241_i32_215 = arith.constant 241 : i32
    %300 = tpu.dynamic_rotate %273 by %c241_i32_215 dim 1 : vector<32x256xf32>, i32 -> vector<32x256xf32>
    %c6_216 = arith.constant 6 : index
    %c0_217 = arith.constant 0 : index
    %301 = vector.load %arg3[%c6_216, %c0_217] : memref<9x256xf32, #tpu.memory_space<vmem>>, vector<1x256xf32>
    %302 = vector.broadcast %301 : vector<1x256xf32> to vector<32x256xf32>
    %303 = arith.mulf %300, %302 : vector<32x256xf32>
    %c192_218 = arith.constant 192 : index
    %c0_219 = arith.constant 0 : index
    %304 = vector.load %arg36[%c192_218, %c0_219] : memref<288x256xf32, #tpu.memory_space<vmem>>, vector<32x256xf32>
    tpu.vector_store %arg36[%c192_218, %c0_219], %303 {strides = array<i32>} : memref<288x256xf32, #tpu.memory_space<vmem>>, vector<32x256xf32>,
    %c240_i32_220 = arith.constant 240 : i32
    %305 = tpu.dynamic_rotate %273 by %c240_i32_220 dim 1 : vector<32x256xf32>, i32 -> vector<32x256xf32>
    %c7_221 = arith.constant 7 : index
    %c0_222 = arith.constant 0 : index
    %306 = vector.load %arg3[%c7_221, %c0_222] : memref<9x256xf32, #tpu.memory_space<vmem>>, vector<1x256xf32>
    %307 = vector.broadcast %306 : vector<1x256xf32> to vector<32x256xf32>
    %308 = arith.mulf %305, %307 : vector<32x256xf32>
    %c224_223 = arith.constant 224 : index
    %c0_224 = arith.constant 0 : index
    %309 = vector.load %arg36[%c224_223, %c0_224] : memref<288x256xf32, #tpu.memory_space<vmem>>, vector<32x256xf32>
    tpu.vector_store %arg36[%c224_223, %c0_224], %308 {strides = array<i32>} : memref<288x256xf32, #tpu.memory_space<vmem>>, vector<32x256xf32>,
    %c239_i32_225 = arith.constant 239 : i32
    %310 = tpu.dynamic_rotate %273 by %c239_i32_225 dim 1 : vector<32x256xf32>, i32 -> vector<32x256xf32>
    %c8_226 = arith.constant 8 : index
    %c0_227 = arith.constant 0 : index
    %311 = vector.load %arg3[%c8_226, %c0_227] : memref<9x256xf32, #tpu.memory_space<vmem>>, vector<1x256xf32>
    %312 = vector.broadcast %311 : vector<1x256xf32> to vector<32x256xf32>
    %313 = arith.mulf %310, %312 : vector<32x256xf32>
    %c256_228 = arith.constant 256 : index
    %c0_229 = arith.constant 0 : index
    %314 = vector.load %arg36[%c256_228, %c0_229] : memref<288x256xf32, #tpu.memory_space<vmem>>, vector<32x256xf32>
    tpu.vector_store %arg36[%c256_228, %c0_229], %313 {strides = array<i32>} : memref<288x256xf32, #tpu.memory_space<vmem>>, vector<32x256xf32>,
    %c0_230 = arith.constant 0 : index
    %c0_231 = arith.constant 0 : index
    %315 = vector.load %arg36[%c0_230, %c0_231] : memref<288x256xf32, #tpu.memory_space<vmem>>, vector<288x256xf32>
    %c0_232 = arith.constant 0 : index
    %c0_233 = arith.constant 0 : index
    %316 = vector.load %arg23[%c0_232, %c0_233] : memref<32x288xf32, #tpu.memory_space<vmem>>, vector<32x288xf32>
    %cst_234 = arith.constant dense<0.000000e+00> : vector<32x256xf32>
    %317 = tpu.matmul %316, %315, %cst_234 {dimension_numbers = #tpu.dot_dimension_numbers<[1], [0], [0], [1], [0, 0, 1, 1], [], []>} : vector<32x288xf32>, vector<288x256xf32>, vector<32x256xf32> -> vector<32x256xf32>
    %c0_235 = arith.constant 0 : index
    %c0_236 = arith.constant 0 : index
    %318 = vector.load %arg24[%c0_235, %c0_236] : memref<32x1xf32, #tpu.memory_space<vmem>>, vector<32x1xf32>
    %319 = vector.broadcast %318 : vector<32x1xf32> to vector<32x256xf32>
    %320 = arith.addf %317, %319 : vector<32x256xf32>
    %c0_237 = arith.constant 0 : index
    %c0_238 = arith.constant 0 : index
    %321 = vector.load %arg25[%c0_237, %c0_238] : memref<32x64xf32, #tpu.memory_space<vmem>>, vector<32x64xf32>
    %cst_239 = arith.constant dense<0.000000e+00> : vector<32x1xf32>
    %322 = tpu.matmul %321, %21, %cst_239 {dimension_numbers = #tpu.dot_dimension_numbers<[1], [0], [0], [1], [0, 0, 1, 1], [], []>} : vector<32x64xf32>, vector<64x1xf32>, vector<32x1xf32> -> vector<32x1xf32>
    %c0_240 = arith.constant 0 : index
    %c0_241 = arith.constant 0 : index
    %323 = vector.load %arg26[%c0_240, %c0_241] : memref<32x1xf32, #tpu.memory_space<vmem>>, vector<32x1xf32>
    %324 = arith.addf %322, %323 : vector<32x1xf32>
    %325 = vector.broadcast %324 : vector<32x1xf32> to vector<32x256xf32>
    %326 = arith.addf %320, %325 : vector<32x256xf32>
    %cst_242 = arith.constant dense<0.000000e+00> : vector<32xf32>
    %327 = vector.multi_reduction <add>, %326, %cst_242 [1] : vector<32x256xf32> to vector<32xf32>
    %328 = vector.shape_cast %327 : vector<32xf32> to vector<32x1xf32>
    %329 = arith.mulf %326, %326 : vector<32x256xf32>
    %cst_243 = arith.constant dense<0.000000e+00> : vector<32xf32>
    %330 = vector.multi_reduction <add>, %329, %cst_243 [1] : vector<32x256xf32> to vector<32xf32>
    %331 = vector.shape_cast %330 : vector<32xf32> to vector<32x1xf32>
    %c0_244 = arith.constant 0 : index
    %c0_245 = arith.constant 0 : index
    %332 = vector.load %arg4[%c0_244, %c0_245] : memref<32x32xf32, #tpu.memory_space<vmem>>, vector<32x32xf32>
    %cst_246 = arith.constant dense<0.000000e+00> : vector<32x1xf32>
    %333 = tpu.matmul %332, %328, %cst_246 {dimension_numbers = #tpu.dot_dimension_numbers<[1], [0], [0], [1], [0, 0, 1, 1], [], []>} : vector<32x32xf32>, vector<32x1xf32>, vector<32x1xf32> -> vector<32x1xf32>
    %cst_247 = arith.constant 9.765625E-4 : f32
    %334 = vector.broadcast %cst_247 : f32 to vector<32x1xf32>
    %335 = arith.mulf %333, %334 : vector<32x1xf32>
    %c0_248 = arith.constant 0 : index
    %c0_249 = arith.constant 0 : index
    %336 = vector.load %arg4[%c0_248, %c0_249] : memref<32x32xf32, #tpu.memory_space<vmem>>, vector<32x32xf32>
    %cst_250 = arith.constant dense<0.000000e+00> : vector<32x1xf32>
    %337 = tpu.matmul %336, %331, %cst_250 {dimension_numbers = #tpu.dot_dimension_numbers<[1], [0], [0], [1], [0, 0, 1, 1], [], []>} : vector<32x32xf32>, vector<32x1xf32>, vector<32x1xf32> -> vector<32x1xf32>
    %cst_251 = arith.constant 9.765625E-4 : f32
    %338 = vector.broadcast %cst_251 : f32 to vector<32x1xf32>
    %339 = arith.mulf %337, %338 : vector<32x1xf32>
    %340 = arith.mulf %335, %335 : vector<32x1xf32>
    %341 = arith.subf %339, %340 : vector<32x1xf32>
    %cst_252 = arith.constant 9.99999974E-6 : f32
    %342 = vector.broadcast %cst_252 : f32 to vector<32x1xf32>
    %343 = arith.addf %341, %342 : vector<32x1xf32>
    %344 = math.rsqrt %343 : vector<32x1xf32>
    %345 = vector.broadcast %335 : vector<32x1xf32> to vector<32x256xf32>
    %346 = arith.subf %326, %345 : vector<32x256xf32>
    %347 = vector.broadcast %344 : vector<32x1xf32> to vector<32x256xf32>
    %348 = arith.mulf %346, %347 : vector<32x256xf32>
    %c0_253 = arith.constant 0 : index
    %c0_254 = arith.constant 0 : index
    %349 = vector.load %arg27[%c0_253, %c0_254] : memref<32x1xf32, #tpu.memory_space<vmem>>, vector<32x1xf32>
    %350 = vector.broadcast %349 : vector<32x1xf32> to vector<32x256xf32>
    %351 = arith.mulf %348, %350 : vector<32x256xf32>
    %c0_255 = arith.constant 0 : index
    %c0_256 = arith.constant 0 : index
    %352 = vector.load %arg28[%c0_255, %c0_256] : memref<32x1xf32, #tpu.memory_space<vmem>>, vector<32x1xf32>
    %353 = vector.broadcast %352 : vector<32x1xf32> to vector<32x256xf32>
    %354 = arith.addf %351, %353 : vector<32x256xf32>
    %355 = arith.negf %354 : vector<32x256xf32>
    %356 = math.exp %355 : vector<32x256xf32>
    %cst_257 = arith.constant 1.000000e+00 : f32
    %357 = vector.broadcast %cst_257 : f32 to vector<32x256xf32>
    %358 = arith.addf %357, %356 : vector<32x256xf32>
    %359 = arith.divf %357, %358 : vector<32x256xf32>
    %360 = arith.mulf %354, %359 : vector<32x256xf32>
    %c17_i32_258 = arith.constant 17 : i32
    %361 = tpu.dynamic_rotate %360 by %c17_i32_258 dim 1 : vector<32x256xf32>, i32 -> vector<32x256xf32>
    %c0_259 = arith.constant 0 : index
    %c0_260 = arith.constant 0 : index
    %362 = vector.load %arg3[%c0_259, %c0_260] : memref<9x256xf32, #tpu.memory_space<vmem>>, vector<1x256xf32>
    %363 = vector.broadcast %362 : vector<1x256xf32> to vector<32x256xf32>
    %364 = arith.mulf %361, %363 : vector<32x256xf32>
    %c0_261 = arith.constant 0 : index
    %c0_262 = arith.constant 0 : index
    %365 = vector.load %arg36[%c0_261, %c0_262] : memref<288x256xf32, #tpu.memory_space<vmem>>, vector<32x256xf32>
    tpu.vector_store %arg36[%c0_261, %c0_262], %364 {strides = array<i32>} : memref<288x256xf32, #tpu.memory_space<vmem>>, vector<32x256xf32>,
    %c16_i32_263 = arith.constant 16 : i32
    %366 = tpu.dynamic_rotate %360 by %c16_i32_263 dim 1 : vector<32x256xf32>, i32 -> vector<32x256xf32>
    %c1_264 = arith.constant 1 : index
    %c0_265 = arith.constant 0 : index
    %367 = vector.load %arg3[%c1_264, %c0_265] : memref<9x256xf32, #tpu.memory_space<vmem>>, vector<1x256xf32>
    %368 = vector.broadcast %367 : vector<1x256xf32> to vector<32x256xf32>
    %369 = arith.mulf %366, %368 : vector<32x256xf32>
    %c32_266 = arith.constant 32 : index
    %c0_267 = arith.constant 0 : index
    %370 = vector.load %arg36[%c32_266, %c0_267] : memref<288x256xf32, #tpu.memory_space<vmem>>, vector<32x256xf32>
    tpu.vector_store %arg36[%c32_266, %c0_267], %369 {strides = array<i32>} : memref<288x256xf32, #tpu.memory_space<vmem>>, vector<32x256xf32>,
    %c15_i32_268 = arith.constant 15 : i32
    %371 = tpu.dynamic_rotate %360 by %c15_i32_268 dim 1 : vector<32x256xf32>, i32 -> vector<32x256xf32>
    %c2_269 = arith.constant 2 : index
    %c0_270 = arith.constant 0 : index
    %372 = vector.load %arg3[%c2_269, %c0_270] : memref<9x256xf32, #tpu.memory_space<vmem>>, vector<1x256xf32>
    %373 = vector.broadcast %372 : vector<1x256xf32> to vector<32x256xf32>
    %374 = arith.mulf %371, %373 : vector<32x256xf32>
    %c64_271 = arith.constant 64 : index
    %c0_272 = arith.constant 0 : index
    %375 = vector.load %arg36[%c64_271, %c0_272] : memref<288x256xf32, #tpu.memory_space<vmem>>, vector<32x256xf32>
    tpu.vector_store %arg36[%c64_271, %c0_272], %374 {strides = array<i32>} : memref<288x256xf32, #tpu.memory_space<vmem>>, vector<32x256xf32>,
    %c1_i32_273 = arith.constant 1 : i32
    %376 = tpu.dynamic_rotate %360 by %c1_i32_273 dim 1 : vector<32x256xf32>, i32 -> vector<32x256xf32>
    %c3_274 = arith.constant 3 : index
    %c0_275 = arith.constant 0 : index
    %377 = vector.load %arg3[%c3_274, %c0_275] : memref<9x256xf32, #tpu.memory_space<vmem>>, vector<1x256xf32>
    %378 = vector.broadcast %377 : vector<1x256xf32> to vector<32x256xf32>
    %379 = arith.mulf %376, %378 : vector<32x256xf32>
    %c96_276 = arith.constant 96 : index
    %c0_277 = arith.constant 0 : index
    %380 = vector.load %arg36[%c96_276, %c0_277] : memref<288x256xf32, #tpu.memory_space<vmem>>, vector<32x256xf32>
    tpu.vector_store %arg36[%c96_276, %c0_277], %379 {strides = array<i32>} : memref<288x256xf32, #tpu.memory_space<vmem>>, vector<32x256xf32>,
    %c128_278 = arith.constant 128 : index
    %c0_279 = arith.constant 0 : index
    %381 = vector.load %arg36[%c128_278, %c0_279] : memref<288x256xf32, #tpu.memory_space<vmem>>, vector<32x256xf32>
    tpu.vector_store %arg36[%c128_278, %c0_279], %360 {strides = array<i32>} : memref<288x256xf32, #tpu.memory_space<vmem>>, vector<32x256xf32>,
    %c255_i32_280 = arith.constant 255 : i32
    %382 = tpu.dynamic_rotate %360 by %c255_i32_280 dim 1 : vector<32x256xf32>, i32 -> vector<32x256xf32>
    %c5_281 = arith.constant 5 : index
    %c0_282 = arith.constant 0 : index
    %383 = vector.load %arg3[%c5_281, %c0_282] : memref<9x256xf32, #tpu.memory_space<vmem>>, vector<1x256xf32>
    %384 = vector.broadcast %383 : vector<1x256xf32> to vector<32x256xf32>
    %385 = arith.mulf %382, %384 : vector<32x256xf32>
    %c160_283 = arith.constant 160 : index
    %c0_284 = arith.constant 0 : index
    %386 = vector.load %arg36[%c160_283, %c0_284] : memref<288x256xf32, #tpu.memory_space<vmem>>, vector<32x256xf32>
    tpu.vector_store %arg36[%c160_283, %c0_284], %385 {strides = array<i32>} : memref<288x256xf32, #tpu.memory_space<vmem>>, vector<32x256xf32>,
    %c241_i32_285 = arith.constant 241 : i32
    %387 = tpu.dynamic_rotate %360 by %c241_i32_285 dim 1 : vector<32x256xf32>, i32 -> vector<32x256xf32>
    %c6_286 = arith.constant 6 : index
    %c0_287 = arith.constant 0 : index
    %388 = vector.load %arg3[%c6_286, %c0_287] : memref<9x256xf32, #tpu.memory_space<vmem>>, vector<1x256xf32>
    %389 = vector.broadcast %388 : vector<1x256xf32> to vector<32x256xf32>
    %390 = arith.mulf %387, %389 : vector<32x256xf32>
    %c192_288 = arith.constant 192 : index
    %c0_289 = arith.constant 0 : index
    %391 = vector.load %arg36[%c192_288, %c0_289] : memref<288x256xf32, #tpu.memory_space<vmem>>, vector<32x256xf32>
    tpu.vector_store %arg36[%c192_288, %c0_289], %390 {strides = array<i32>} : memref<288x256xf32, #tpu.memory_space<vmem>>, vector<32x256xf32>,
    %c240_i32_290 = arith.constant 240 : i32
    %392 = tpu.dynamic_rotate %360 by %c240_i32_290 dim 1 : vector<32x256xf32>, i32 -> vector<32x256xf32>
    %c7_291 = arith.constant 7 : index
    %c0_292 = arith.constant 0 : index
    %393 = vector.load %arg3[%c7_291, %c0_292] : memref<9x256xf32, #tpu.memory_space<vmem>>, vector<1x256xf32>
    %394 = vector.broadcast %393 : vector<1x256xf32> to vector<32x256xf32>
    %395 = arith.mulf %392, %394 : vector<32x256xf32>
    %c224_293 = arith.constant 224 : index
    %c0_294 = arith.constant 0 : index
    %396 = vector.load %arg36[%c224_293, %c0_294] : memref<288x256xf32, #tpu.memory_space<vmem>>, vector<32x256xf32>
    tpu.vector_store %arg36[%c224_293, %c0_294], %395 {strides = array<i32>} : memref<288x256xf32, #tpu.memory_space<vmem>>, vector<32x256xf32>,
    %c239_i32_295 = arith.constant 239 : i32
    %397 = tpu.dynamic_rotate %360 by %c239_i32_295 dim 1 : vector<32x256xf32>, i32 -> vector<32x256xf32>
    %c8_296 = arith.constant 8 : index
    %c0_297 = arith.constant 0 : index
    %398 = vector.load %arg3[%c8_296, %c0_297] : memref<9x256xf32, #tpu.memory_space<vmem>>, vector<1x256xf32>
    %399 = vector.broadcast %398 : vector<1x256xf32> to vector<32x256xf32>
    %400 = arith.mulf %397, %399 : vector<32x256xf32>
    %c256_298 = arith.constant 256 : index
    %c0_299 = arith.constant 0 : index
    %401 = vector.load %arg36[%c256_298, %c0_299] : memref<288x256xf32, #tpu.memory_space<vmem>>, vector<32x256xf32>
    tpu.vector_store %arg36[%c256_298, %c0_299], %400 {strides = array<i32>} : memref<288x256xf32, #tpu.memory_space<vmem>>, vector<32x256xf32>,
    %c0_300 = arith.constant 0 : index
    %c0_301 = arith.constant 0 : index
    %402 = vector.load %arg36[%c0_300, %c0_301] : memref<288x256xf32, #tpu.memory_space<vmem>>, vector<288x256xf32>
    %c0_302 = arith.constant 0 : index
    %c0_303 = arith.constant 0 : index
    %403 = vector.load %arg29[%c0_302, %c0_303] : memref<32x288xf32, #tpu.memory_space<vmem>>, vector<32x288xf32>
    %cst_304 = arith.constant dense<0.000000e+00> : vector<32x256xf32>
    %404 = tpu.matmul %403, %402, %cst_304 {dimension_numbers = #tpu.dot_dimension_numbers<[1], [0], [0], [1], [0, 0, 1, 1], [], []>} : vector<32x288xf32>, vector<288x256xf32>, vector<32x256xf32> -> vector<32x256xf32>
    %c0_305 = arith.constant 0 : index
    %c0_306 = arith.constant 0 : index
    %405 = vector.load %arg30[%c0_305, %c0_306] : memref<32x1xf32, #tpu.memory_space<vmem>>, vector<32x1xf32>
    %406 = vector.broadcast %405 : vector<32x1xf32> to vector<32x256xf32>
    %407 = arith.addf %404, %406 : vector<32x256xf32>
    %408 = arith.addf %407, %239 : vector<32x256xf32>
    %cst_307 = arith.constant dense<0.000000e+00> : vector<32xf32>
    %409 = vector.multi_reduction <add>, %408, %cst_307 [1] : vector<32x256xf32> to vector<32xf32>
    %410 = vector.shape_cast %409 : vector<32xf32> to vector<32x1xf32>
    %411 = arith.mulf %408, %408 : vector<32x256xf32>
    %cst_308 = arith.constant dense<0.000000e+00> : vector<32xf32>
    %412 = vector.multi_reduction <add>, %411, %cst_308 [1] : vector<32x256xf32> to vector<32xf32>
    %413 = vector.shape_cast %412 : vector<32xf32> to vector<32x1xf32>
    %c0_309 = arith.constant 0 : index
    %c0_310 = arith.constant 0 : index
    %414 = vector.load %arg4[%c0_309, %c0_310] : memref<32x32xf32, #tpu.memory_space<vmem>>, vector<32x32xf32>
    %cst_311 = arith.constant dense<0.000000e+00> : vector<32x1xf32>
    %415 = tpu.matmul %414, %410, %cst_311 {dimension_numbers = #tpu.dot_dimension_numbers<[1], [0], [0], [1], [0, 0, 1, 1], [], []>} : vector<32x32xf32>, vector<32x1xf32>, vector<32x1xf32> -> vector<32x1xf32>
    %cst_312 = arith.constant 9.765625E-4 : f32
    %416 = vector.broadcast %cst_312 : f32 to vector<32x1xf32>
    %417 = arith.mulf %415, %416 : vector<32x1xf32>
    %c0_313 = arith.constant 0 : index
    %c0_314 = arith.constant 0 : index
    %418 = vector.load %arg4[%c0_313, %c0_314] : memref<32x32xf32, #tpu.memory_space<vmem>>, vector<32x32xf32>
    %cst_315 = arith.constant dense<0.000000e+00> : vector<32x1xf32>
    %419 = tpu.matmul %418, %413, %cst_315 {dimension_numbers = #tpu.dot_dimension_numbers<[1], [0], [0], [1], [0, 0, 1, 1], [], []>} : vector<32x32xf32>, vector<32x1xf32>, vector<32x1xf32> -> vector<32x1xf32>
    %cst_316 = arith.constant 9.765625E-4 : f32
    %420 = vector.broadcast %cst_316 : f32 to vector<32x1xf32>
    %421 = arith.mulf %419, %420 : vector<32x1xf32>
    %422 = arith.mulf %417, %417 : vector<32x1xf32>
    %423 = arith.subf %421, %422 : vector<32x1xf32>
    %cst_317 = arith.constant 9.99999974E-6 : f32
    %424 = vector.broadcast %cst_317 : f32 to vector<32x1xf32>
    %425 = arith.addf %423, %424 : vector<32x1xf32>
    %426 = math.rsqrt %425 : vector<32x1xf32>
    %427 = vector.broadcast %417 : vector<32x1xf32> to vector<32x256xf32>
    %428 = arith.subf %408, %427 : vector<32x256xf32>
    %429 = vector.broadcast %426 : vector<32x1xf32> to vector<32x256xf32>
    %430 = arith.mulf %428, %429 : vector<32x256xf32>
    %c0_318 = arith.constant 0 : index
    %c0_319 = arith.constant 0 : index
    %431 = vector.load %arg31[%c0_318, %c0_319] : memref<32x1xf32, #tpu.memory_space<vmem>>, vector<32x1xf32>
    %432 = vector.broadcast %431 : vector<32x1xf32> to vector<32x256xf32>
    %433 = arith.mulf %430, %432 : vector<32x256xf32>
    %c0_320 = arith.constant 0 : index
    %c0_321 = arith.constant 0 : index
    %434 = vector.load %arg32[%c0_320, %c0_321] : memref<32x1xf32, #tpu.memory_space<vmem>>, vector<32x1xf32>
    %435 = vector.broadcast %434 : vector<32x1xf32> to vector<32x256xf32>
    %436 = arith.addf %433, %435 : vector<32x256xf32>
    %437 = arith.negf %436 : vector<32x256xf32>
    %438 = math.exp %437 : vector<32x256xf32>
    %cst_322 = arith.constant 1.000000e+00 : f32
    %439 = vector.broadcast %cst_322 : f32 to vector<32x256xf32>
    %440 = arith.addf %439, %438 : vector<32x256xf32>
    %441 = arith.divf %439, %440 : vector<32x256xf32>
    %442 = arith.mulf %436, %441 : vector<32x256xf32>
    %c17_i32_323 = arith.constant 17 : i32
    %443 = tpu.dynamic_rotate %442 by %c17_i32_323 dim 1 : vector<32x256xf32>, i32 -> vector<32x256xf32>
    %c0_324 = arith.constant 0 : index
    %c0_325 = arith.constant 0 : index
    %444 = vector.load %arg3[%c0_324, %c0_325] : memref<9x256xf32, #tpu.memory_space<vmem>>, vector<1x256xf32>
    %445 = vector.broadcast %444 : vector<1x256xf32> to vector<32x256xf32>
    %446 = arith.mulf %443, %445 : vector<32x256xf32>
    %c0_326 = arith.constant 0 : index
    %c0_327 = arith.constant 0 : index
    %447 = vector.load %arg36[%c0_326, %c0_327] : memref<288x256xf32, #tpu.memory_space<vmem>>, vector<32x256xf32>
    tpu.vector_store %arg36[%c0_326, %c0_327], %446 {strides = array<i32>} : memref<288x256xf32, #tpu.memory_space<vmem>>, vector<32x256xf32>,
    %c16_i32_328 = arith.constant 16 : i32
    %448 = tpu.dynamic_rotate %442 by %c16_i32_328 dim 1 : vector<32x256xf32>, i32 -> vector<32x256xf32>
    %c1_329 = arith.constant 1 : index
    %c0_330 = arith.constant 0 : index
    %449 = vector.load %arg3[%c1_329, %c0_330] : memref<9x256xf32, #tpu.memory_space<vmem>>, vector<1x256xf32>
    %450 = vector.broadcast %449 : vector<1x256xf32> to vector<32x256xf32>
    %451 = arith.mulf %448, %450 : vector<32x256xf32>
    %c32_331 = arith.constant 32 : index
    %c0_332 = arith.constant 0 : index
    %452 = vector.load %arg36[%c32_331, %c0_332] : memref<288x256xf32, #tpu.memory_space<vmem>>, vector<32x256xf32>
    tpu.vector_store %arg36[%c32_331, %c0_332], %451 {strides = array<i32>} : memref<288x256xf32, #tpu.memory_space<vmem>>, vector<32x256xf32>,
    %c15_i32_333 = arith.constant 15 : i32
    %453 = tpu.dynamic_rotate %442 by %c15_i32_333 dim 1 : vector<32x256xf32>, i32 -> vector<32x256xf32>
    %c2_334 = arith.constant 2 : index
    %c0_335 = arith.constant 0 : index
    %454 = vector.load %arg3[%c2_334, %c0_335] : memref<9x256xf32, #tpu.memory_space<vmem>>, vector<1x256xf32>
    %455 = vector.broadcast %454 : vector<1x256xf32> to vector<32x256xf32>
    %456 = arith.mulf %453, %455 : vector<32x256xf32>
    %c64_336 = arith.constant 64 : index
    %c0_337 = arith.constant 0 : index
    %457 = vector.load %arg36[%c64_336, %c0_337] : memref<288x256xf32, #tpu.memory_space<vmem>>, vector<32x256xf32>
    tpu.vector_store %arg36[%c64_336, %c0_337], %456 {strides = array<i32>} : memref<288x256xf32, #tpu.memory_space<vmem>>, vector<32x256xf32>,
    %c1_i32_338 = arith.constant 1 : i32
    %458 = tpu.dynamic_rotate %442 by %c1_i32_338 dim 1 : vector<32x256xf32>, i32 -> vector<32x256xf32>
    %c3_339 = arith.constant 3 : index
    %c0_340 = arith.constant 0 : index
    %459 = vector.load %arg3[%c3_339, %c0_340] : memref<9x256xf32, #tpu.memory_space<vmem>>, vector<1x256xf32>
    %460 = vector.broadcast %459 : vector<1x256xf32> to vector<32x256xf32>
    %461 = arith.mulf %458, %460 : vector<32x256xf32>
    %c96_341 = arith.constant 96 : index
    %c0_342 = arith.constant 0 : index
    %462 = vector.load %arg36[%c96_341, %c0_342] : memref<288x256xf32, #tpu.memory_space<vmem>>, vector<32x256xf32>
    tpu.vector_store %arg36[%c96_341, %c0_342], %461 {strides = array<i32>} : memref<288x256xf32, #tpu.memory_space<vmem>>, vector<32x256xf32>,
    %c128_343 = arith.constant 128 : index
    %c0_344 = arith.constant 0 : index
    %463 = vector.load %arg36[%c128_343, %c0_344] : memref<288x256xf32, #tpu.memory_space<vmem>>, vector<32x256xf32>
    tpu.vector_store %arg36[%c128_343, %c0_344], %442 {strides = array<i32>} : memref<288x256xf32, #tpu.memory_space<vmem>>, vector<32x256xf32>,
    %c255_i32_345 = arith.constant 255 : i32
    %464 = tpu.dynamic_rotate %442 by %c255_i32_345 dim 1 : vector<32x256xf32>, i32 -> vector<32x256xf32>
    %c5_346 = arith.constant 5 : index
    %c0_347 = arith.constant 0 : index
    %465 = vector.load %arg3[%c5_346, %c0_347] : memref<9x256xf32, #tpu.memory_space<vmem>>, vector<1x256xf32>
    %466 = vector.broadcast %465 : vector<1x256xf32> to vector<32x256xf32>
    %467 = arith.mulf %464, %466 : vector<32x256xf32>
    %c160_348 = arith.constant 160 : index
    %c0_349 = arith.constant 0 : index
    %468 = vector.load %arg36[%c160_348, %c0_349] : memref<288x256xf32, #tpu.memory_space<vmem>>, vector<32x256xf32>
    tpu.vector_store %arg36[%c160_348, %c0_349], %467 {strides = array<i32>} : memref<288x256xf32, #tpu.memory_space<vmem>>, vector<32x256xf32>,
    %c241_i32_350 = arith.constant 241 : i32
    %469 = tpu.dynamic_rotate %442 by %c241_i32_350 dim 1 : vector<32x256xf32>, i32 -> vector<32x256xf32>
    %c6_351 = arith.constant 6 : index
    %c0_352 = arith.constant 0 : index
    %470 = vector.load %arg3[%c6_351, %c0_352] : memref<9x256xf32, #tpu.memory_space<vmem>>, vector<1x256xf32>
    %471 = vector.broadcast %470 : vector<1x256xf32> to vector<32x256xf32>
    %472 = arith.mulf %469, %471 : vector<32x256xf32>
    %c192_353 = arith.constant 192 : index
    %c0_354 = arith.constant 0 : index
    %473 = vector.load %arg36[%c192_353, %c0_354] : memref<288x256xf32, #tpu.memory_space<vmem>>, vector<32x256xf32>
    tpu.vector_store %arg36[%c192_353, %c0_354], %472 {strides = array<i32>} : memref<288x256xf32, #tpu.memory_space<vmem>>, vector<32x256xf32>,
    %c240_i32_355 = arith.constant 240 : i32
    %474 = tpu.dynamic_rotate %442 by %c240_i32_355 dim 1 : vector<32x256xf32>, i32 -> vector<32x256xf32>
    %c7_356 = arith.constant 7 : index
    %c0_357 = arith.constant 0 : index
    %475 = vector.load %arg3[%c7_356, %c0_357] : memref<9x256xf32, #tpu.memory_space<vmem>>, vector<1x256xf32>
    %476 = vector.broadcast %475 : vector<1x256xf32> to vector<32x256xf32>
    %477 = arith.mulf %474, %476 : vector<32x256xf32>
    %c224_358 = arith.constant 224 : index
    %c0_359 = arith.constant 0 : index
    %478 = vector.load %arg36[%c224_358, %c0_359] : memref<288x256xf32, #tpu.memory_space<vmem>>, vector<32x256xf32>
    tpu.vector_store %arg36[%c224_358, %c0_359], %477 {strides = array<i32>} : memref<288x256xf32, #tpu.memory_space<vmem>>, vector<32x256xf32>,
    %c239_i32_360 = arith.constant 239 : i32
    %479 = tpu.dynamic_rotate %442 by %c239_i32_360 dim 1 : vector<32x256xf32>, i32 -> vector<32x256xf32>
    %c8_361 = arith.constant 8 : index
    %c0_362 = arith.constant 0 : index
    %480 = vector.load %arg3[%c8_361, %c0_362] : memref<9x256xf32, #tpu.memory_space<vmem>>, vector<1x256xf32>
    %481 = vector.broadcast %480 : vector<1x256xf32> to vector<32x256xf32>
    %482 = arith.mulf %479, %481 : vector<32x256xf32>
    %c256_363 = arith.constant 256 : index
    %c0_364 = arith.constant 0 : index
    %483 = vector.load %arg36[%c256_363, %c0_364] : memref<288x256xf32, #tpu.memory_space<vmem>>, vector<32x256xf32>
    tpu.vector_store %arg36[%c256_363, %c0_364], %482 {strides = array<i32>} : memref<288x256xf32, #tpu.memory_space<vmem>>, vector<32x256xf32>,
    %c0_365 = arith.constant 0 : index
    %c0_366 = arith.constant 0 : index
    %484 = vector.load %arg36[%c0_365, %c0_366] : memref<288x256xf32, #tpu.memory_space<vmem>>, vector<288x256xf32>
    %c0_367 = arith.constant 0 : index
    %c0_368 = arith.constant 0 : index
    %485 = vector.load %arg33[%c0_367, %c0_368] : memref<4x288xf32, #tpu.memory_space<vmem>>, vector<4x288xf32>
    %cst_369 = arith.constant dense<0.000000e+00> : vector<4x256xf32>
    %486 = tpu.matmul %485, %484, %cst_369 {dimension_numbers = #tpu.dot_dimension_numbers<[1], [0], [0], [1], [0, 0, 1, 1], [], []>} : vector<4x288xf32>, vector<288x256xf32>, vector<4x256xf32> -> vector<4x256xf32>
    %c0_370 = arith.constant 0 : index
    %c0_371 = arith.constant 0 : index
    %487 = vector.load %arg34[%c0_370, %c0_371] : memref<4x1xf32, #tpu.memory_space<vmem>>, vector<4x1xf32>
    %488 = vector.broadcast %487 : vector<4x1xf32> to vector<4x256xf32>
    %489 = arith.addf %486, %488 : vector<4x256xf32>
    %c0_372 = arith.constant 0 : index
    %c0_373 = arith.constant 0 : index
    %c0_374 = arith.constant 0 : index
    %490 = vector.load %arg35[%c0_372, %c0_373, %c0_374] : memref<1x4x256xf32, #tpu.memory_space<vmem>>, vector<1x4x256xf32>
    %491 = vector.shape_cast %490 : vector<1x4x256xf32> to vector<4x256xf32>
    %492 = vector.shape_cast %489 : vector<4x256xf32> to vector<1x4x256xf32>
    tpu.vector_store %arg35[%c0_372, %c0_373, %c0_374], %492 {strides = array<i32>} : memref<1x4x256xf32, #tpu.memory_space<vmem>>, vector<1x4x256xf32>,
    return
  }
  func.func @transform_0(%arg0: i32) -> (i32, i32, i32) {
    %c0_i32 = arith.constant 0 : i32
    %c0_i32_0 = arith.constant 0 : i32
    %c0_i32_1 = arith.constant 0 : i32
    return %arg0, %c0_i32, %c0_i32_0 : i32, i32, i32
  }
  func.func @transform_1(%arg0: i32) -> (i32, i32, i32) {
    %c0_i32 = arith.constant 0 : i32
    %c0_i32_0 = arith.constant 0 : i32
    %c0_i32_1 = arith.constant 0 : i32
    return %arg0, %c0_i32, %c0_i32_0 : i32, i32, i32
  }
  func.func @transform_2(%arg0: i32) -> (i32, i32) {
    %c0_i32 = arith.constant 0 : i32
    %c0_i32_0 = arith.constant 0 : i32
    %c0_i32_1 = arith.constant 0 : i32
    return %c0_i32, %c0_i32_0 : i32, i32
  }
  func.func @transform_3(%arg0: i32) -> (i32, i32) {
    %c0_i32 = arith.constant 0 : i32
    %c0_i32_0 = arith.constant 0 : i32
    %c0_i32_1 = arith.constant 0 : i32
    return %c0_i32, %c0_i32_0 : i32, i32
  }
  func.func @transform_4(%arg0: i32) -> (i32, i32) {
    %c0_i32 = arith.constant 0 : i32
    %c0_i32_0 = arith.constant 0 : i32
    %c0_i32_1 = arith.constant 0 : i32
    return %c0_i32, %c0_i32_0 : i32, i32
  }
  func.func @transform_5(%arg0: i32) -> (i32, i32) {
    %c0_i32 = arith.constant 0 : i32
    %c0_i32_0 = arith.constant 0 : i32
    %c0_i32_1 = arith.constant 0 : i32
    return %c0_i32, %c0_i32_0 : i32, i32
  }
  func.func @transform_6(%arg0: i32) -> (i32, i32) {
    %c0_i32 = arith.constant 0 : i32
    %c0_i32_0 = arith.constant 0 : i32
    %c0_i32_1 = arith.constant 0 : i32
    return %c0_i32, %c0_i32_0 : i32, i32
  }
  func.func @transform_7(%arg0: i32) -> (i32, i32) {
    %c0_i32 = arith.constant 0 : i32
    %c0_i32_0 = arith.constant 0 : i32
    %c0_i32_1 = arith.constant 0 : i32
    return %c0_i32, %c0_i32_0 : i32, i32
  }
  func.func @transform_8(%arg0: i32) -> (i32, i32) {
    %c0_i32 = arith.constant 0 : i32
    %c0_i32_0 = arith.constant 0 : i32
    %c0_i32_1 = arith.constant 0 : i32
    return %c0_i32, %c0_i32_0 : i32, i32
  }
  func.func @transform_9(%arg0: i32) -> (i32, i32) {
    %c0_i32 = arith.constant 0 : i32
    %c0_i32_0 = arith.constant 0 : i32
    %c0_i32_1 = arith.constant 0 : i32
    return %c0_i32, %c0_i32_0 : i32, i32
  }
  func.func @transform_10(%arg0: i32) -> (i32, i32) {
    %c0_i32 = arith.constant 0 : i32
    %c0_i32_0 = arith.constant 0 : i32
    %c0_i32_1 = arith.constant 0 : i32
    return %c0_i32, %c0_i32_0 : i32, i32
  }
  func.func @transform_11(%arg0: i32) -> (i32, i32) {
    %c0_i32 = arith.constant 0 : i32
    %c0_i32_0 = arith.constant 0 : i32
    %c0_i32_1 = arith.constant 0 : i32
    return %c0_i32, %c0_i32_0 : i32, i32
  }
  func.func @transform_12(%arg0: i32) -> (i32, i32) {
    %c0_i32 = arith.constant 0 : i32
    %c0_i32_0 = arith.constant 0 : i32
    %c0_i32_1 = arith.constant 0 : i32
    return %c0_i32, %c0_i32_0 : i32, i32
  }
  func.func @transform_13(%arg0: i32) -> (i32, i32) {
    %c0_i32 = arith.constant 0 : i32
    %c0_i32_0 = arith.constant 0 : i32
    %c0_i32_1 = arith.constant 0 : i32
    return %c0_i32, %c0_i32_0 : i32, i32
  }
  func.func @transform_14(%arg0: i32) -> (i32, i32) {
    %c0_i32 = arith.constant 0 : i32
    %c0_i32_0 = arith.constant 0 : i32
    %c0_i32_1 = arith.constant 0 : i32
    return %c0_i32, %c0_i32_0 : i32, i32
  }
  func.func @transform_15(%arg0: i32) -> (i32, i32) {
    %c0_i32 = arith.constant 0 : i32
    %c0_i32_0 = arith.constant 0 : i32
    %c0_i32_1 = arith.constant 0 : i32
    return %c0_i32, %c0_i32_0 : i32, i32
  }
  func.func @transform_16(%arg0: i32) -> (i32, i32) {
    %c0_i32 = arith.constant 0 : i32
    %c0_i32_0 = arith.constant 0 : i32
    %c0_i32_1 = arith.constant 0 : i32
    return %c0_i32, %c0_i32_0 : i32, i32
  }
  func.func @transform_17(%arg0: i32) -> (i32, i32) {
    %c0_i32 = arith.constant 0 : i32
    %c0_i32_0 = arith.constant 0 : i32
    %c0_i32_1 = arith.constant 0 : i32
    return %c0_i32, %c0_i32_0 : i32, i32
  }
  func.func @transform_18(%arg0: i32) -> (i32, i32) {
    %c0_i32 = arith.constant 0 : i32
    %c0_i32_0 = arith.constant 0 : i32
    %c0_i32_1 = arith.constant 0 : i32
    return %c0_i32, %c0_i32_0 : i32, i32
  }
  func.func @transform_19(%arg0: i32) -> (i32, i32) {
    %c0_i32 = arith.constant 0 : i32
    %c0_i32_0 = arith.constant 0 : i32
    %c0_i32_1 = arith.constant 0 : i32
    return %c0_i32, %c0_i32_0 : i32, i32
  }
  func.func @transform_20(%arg0: i32) -> (i32, i32) {
    %c0_i32 = arith.constant 0 : i32
    %c0_i32_0 = arith.constant 0 : i32
    %c0_i32_1 = arith.constant 0 : i32
    return %c0_i32, %c0_i32_0 : i32, i32
  }
  func.func @transform_21(%arg0: i32) -> (i32, i32) {
    %c0_i32 = arith.constant 0 : i32
    %c0_i32_0 = arith.constant 0 : i32
    %c0_i32_1 = arith.constant 0 : i32
    return %c0_i32, %c0_i32_0 : i32, i32
  }
  func.func @transform_22(%arg0: i32) -> (i32, i32) {
    %c0_i32 = arith.constant 0 : i32
    %c0_i32_0 = arith.constant 0 : i32
    %c0_i32_1 = arith.constant 0 : i32
    return %c0_i32, %c0_i32_0 : i32, i32
  }
  func.func @transform_23(%arg0: i32) -> (i32, i32) {
    %c0_i32 = arith.constant 0 : i32
    %c0_i32_0 = arith.constant 0 : i32
    %c0_i32_1 = arith.constant 0 : i32
    return %c0_i32, %c0_i32_0 : i32, i32
  }
  func.func @transform_24(%arg0: i32) -> (i32, i32) {
    %c0_i32 = arith.constant 0 : i32
    %c0_i32_0 = arith.constant 0 : i32
    %c0_i32_1 = arith.constant 0 : i32
    return %c0_i32, %c0_i32_0 : i32, i32
  }
  func.func @transform_25(%arg0: i32) -> (i32, i32) {
    %c0_i32 = arith.constant 0 : i32
    %c0_i32_0 = arith.constant 0 : i32
    %c0_i32_1 = arith.constant 0 : i32
    return %c0_i32, %c0_i32_0 : i32, i32
  }
  func.func @transform_26(%arg0: i32) -> (i32, i32) {
    %c0_i32 = arith.constant 0 : i32
    %c0_i32_0 = arith.constant 0 : i32
    %c0_i32_1 = arith.constant 0 : i32
    return %c0_i32, %c0_i32_0 : i32, i32
  }
  func.func @transform_27(%arg0: i32) -> (i32, i32) {
    %c0_i32 = arith.constant 0 : i32
    %c0_i32_0 = arith.constant 0 : i32
    %c0_i32_1 = arith.constant 0 : i32
    return %c0_i32, %c0_i32_0 : i32, i32
  }
  func.func @transform_28(%arg0: i32) -> (i32, i32) {
    %c0_i32 = arith.constant 0 : i32
    %c0_i32_0 = arith.constant 0 : i32
    %c0_i32_1 = arith.constant 0 : i32
    return %c0_i32, %c0_i32_0 : i32, i32
  }
  func.func @transform_29(%arg0: i32) -> (i32, i32) {
    %c0_i32 = arith.constant 0 : i32
    %c0_i32_0 = arith.constant 0 : i32
    %c0_i32_1 = arith.constant 0 : i32
    return %c0_i32, %c0_i32_0 : i32, i32
  }
  func.func @transform_30(%arg0: i32) -> (i32, i32) {
    %c0_i32 = arith.constant 0 : i32
    %c0_i32_0 = arith.constant 0 : i32
    %c0_i32_1 = arith.constant 0 : i32
    return %c0_i32, %c0_i32_0 : i32, i32
  }
  func.func @transform_31(%arg0: i32) -> (i32, i32) {
    %c0_i32 = arith.constant 0 : i32
    %c0_i32_0 = arith.constant 0 : i32
    %c0_i32_1 = arith.constant 0 : i32
    return %c0_i32, %c0_i32_0 : i32, i32
  }
  func.func @transform_32(%arg0: i32) -> (i32, i32) {
    %c0_i32 = arith.constant 0 : i32
    %c0_i32_0 = arith.constant 0 : i32
    %c0_i32_1 = arith.constant 0 : i32
    return %c0_i32, %c0_i32_0 : i32, i32
  }
  func.func @transform_33(%arg0: i32) -> (i32, i32) {
    %c0_i32 = arith.constant 0 : i32
    %c0_i32_0 = arith.constant 0 : i32
    %c0_i32_1 = arith.constant 0 : i32
    return %c0_i32, %c0_i32_0 : i32, i32
  }
  func.func @transform_34(%arg0: i32) -> (i32, i32, i32) {
    %c0_i32 = arith.constant 0 : i32
    %c0_i32_0 = arith.constant 0 : i32
    %c0_i32_1 = arith.constant 0 : i32
    return %arg0, %c0_i32, %c0_i32_0 : i32, i32, i32
  }
}

</mosaic_0001>

<bundles_post_ra>
// kernel: diffusion_forward.1
= control target key start
LH: loop header
LB: loop body
LE: loop exit
PB: predicated region body
PF: predicated region fallthrough
CT: control target
= control target key end

     0   :  { %s9304_s6 = smov 1   ;;  %s9305_s10 = smov 2   ;;  %s12354_s0 = inlined_call_operand.smem [shape: u32[35], index: -1, kind: input, shape index: {}] }
   0x1   :  { %s9356_s5 = sld [smem:[%s12354_s0]]   ;;  %s9306_s14 = smov 3  }
   0x2   :  { %s9361_s9 = sld [smem:[%s12354_s0 + %s9304_s6]]   ;;  %s9307_s18 = smov 4  }
   0x3   :  { %s9366_s13 = sld [smem:[%s12354_s0 + %s9305_s10]]   ;;  %s9308_s22 = smov 5  }
   0x4   :  { %s9371_s17 = sld [smem:[%s12354_s0 + %s9306_s14]]   ;;  %s9309_s26 = smov 6  }
   0x5   :  { %s9376_s21 = sld [smem:[%s12354_s0 + %s9307_s18]]   ;;  %s9310_s30 = smov 7  }
   0x6   :  { %s9381_s25 = sld [smem:[%s12354_s0 + %s9308_s22]]   ;;  %s9311_s4 = smov 8  }
   0x7   :  { %12410 = sst [smem:[#allocation3_spill]] %s9356_s5  ;;  %s9312_s10 = smov 9  }
   0x8   :  { %12411 = sst [smem:[#allocation4_spill]] %s9361_s9  ;;  %s9313_s15 = smov 10  }
   0x9   :  { %s9386_s29 = sld [smem:[%s12354_s0 + %s9309_s26]]   ;;  %s9314_s20 = smov 11  }
   0xa   :  { %s9391_s3 = sld [smem:[%s12354_s0 + %s9310_s30]]   ;;  %s9315_s26 = smov 12  }
   0xb   :  { %s9396_s8 = sld [smem:[%s12354_s0 + %s9311_s4]]   ;;  %s9316_s1 = smov 13  }
   0xc   :  { %s9401_s14 = sld [smem:[%s12354_s0 + %s9312_s10]]   ;;  %s9317_s7 = smov 14  }
   0xd   :  { %s9406_s19 = sld [smem:[%s12354_s0 + %s9313_s15]]   ;;  %s9318_s15 = smov 15  }
   0xe   :  { %s9411_s24 = sld [smem:[%s12354_s0 + %s9314_s20]]   ;;  %s9319_s22 = smov 16  }
   0xf   :  { %s9416_s30 = sld [smem:[%s12354_s0 + %s9315_s26]]   ;;  %s9320_s28 = smov 17  }
  0x10   :  { %12412 = sst [smem:[#allocation5_spill]] %s9391_s3 }
  0x11   :  { %12413 = sst [smem:[#allocation6_spill]] %s9396_s8 }
  0x12   :  { %s9421_s6 = sld [smem:[%s12354_s0 + %s9316_s1]]  }
  0x13   :  { %s9426_s12 = sld [smem:[%s12354_s0 + %s9317_s7]]   ;;  %s9321_s7 = smov 18  }
  0x14   :  { %s9431_s20 = sld [smem:[%s12354_s0 + %s9318_s15]]   ;;  %s9322_s15 = smov 19  }
  0x15   :  { %s9436_s27 = sld [smem:[%s12354_s0 + %s9319_s22]]   ;;  %s9323_s22 = smov 20  }
  0x16   :  { %s9441_s4 = sld [smem:[%s12354_s0 + %s9320_s28]]   ;;  %s9324_s28 = smov 21  }
  0x18   :  { %12414 = sst [smem:[#allocation7_spill]] %s9421_s6 }
  0x19   :  { %12415 = sst [smem:[#allocation8_spill]] %s9426_s12 }
  0x1a   :  { %12416 = sst [smem:[#allocation9_spill]] %s9431_s20 }
  0x1b   :  { %12417 = sst [smem:[#allocation10_spill]] %s9436_s27 }
  0x1c   :  { %12418 = sst [smem:[#allocation11_spill]] %s9441_s4 }
  0x1d   :  { %s9446_s12 = sld [smem:[%s12354_s0 + %s9321_s7]]   ;;  %s9325_s7 = smov 22  }
  0x1e   :  { %s9451_s20 = sld [smem:[%s12354_s0 + %s9322_s15]]   ;;  %s9326_s15 = smov 23  }
  0x1f   :  { %s9456_s27 = sld [smem:[%s12354_s0 + %s9323_s22]]   ;;  %s9327_s22 = smov 24  }
  0x20   :  { %s9461_s4 = sld [smem:[%s12354_s0 + %s9324_s28]]   ;;  %s9328_s28 = smov 25  }
  0x23   :  { %12419 = sst [smem:[#allocation12_spill]] %s9446_s12 }
  0x24   :  { %12420 = sst [smem:[#allocation13_spill]] %s9451_s20 }
  0x25   :  { %12421 = sst [smem:[#allocation14_spill]] %s9456_s27 }
  0x26   :  { %12422 = sst [smem:[#allocation15_spill]] %s9461_s4 }
  0x27   :  { %s9466_s12 = sld [smem:[%s12354_s0 + %s9325_s7]]   ;;  %s9329_s7 = smov 26  }
  0x28   :  { %s9471_s20 = sld [smem:[%s12354_s0 + %s9326_s15]]   ;;  %s9330_s15 = smov 27  }
  0x29   :  { %s9476_s27 = sld [smem:[%s12354_s0 + %s9327_s22]]   ;;  %s9331_s22 = smov 28  }
  0x2a   :  { %s9481_s4 = sld [smem:[%s12354_s0 + %s9328_s28]]   ;;  %s9332_s28 = smov 29  }
  0x2d   :  { %12423 = sst [smem:[#allocation16_spill]] %s9466_s12 }
  0x2e   :  { %12424 = sst [smem:[#allocation17_spill]] %s9471_s20 }
  0x2f   :  { %12425 = sst [smem:[#allocation18_spill]] %s9476_s27 }
  0x30   :  { %12426 = sst [smem:[#allocation19_spill]] %s9481_s4 }
  0x31   :  { %s9486_s12 = sld [smem:[%s12354_s0 + %s9329_s7]]   ;;  %s9333_s7 = smov 30  }
  0x32   :  { %s9491_s20 = sld [smem:[%s12354_s0 + %s9330_s15]]   ;;  %s9334_s15 = smov 31  }
  0x33   :  { %s9496_s27 = sld [smem:[%s12354_s0 + %s9331_s22]]   ;;  %s9335_s22 = smov 32  }
  0x34   :  { %s9501_s4 = sld [smem:[%s12354_s0 + %s9332_s28]]   ;;  %s9336_s28 = smov 33  }
  0x37   :  { %12427 = sst [smem:[#allocation20_spill]] %s9486_s12 }
  0x38   :  { %12428 = sst [smem:[#allocation21_spill]] %s9491_s20 }
  0x39   :  { %12429 = sst [smem:[#allocation22_spill]] %s9496_s27 }
  0x3a   :  { %12430 = sst [smem:[#allocation23_spill]] %s9501_s4 }
  0x3b   :  { %s9506_s12 = sld [smem:[%s12354_s0 + %s9333_s7]]   ;;  %s9337_s7 = smov 34  }
  0x3c   :  { %s9511_s20 = sld [smem:[%s12354_s0 + %s9334_s15]]   ;;  %s9528_s15 = smov 0  }
  0x3d   :  { %s9516_s27 = sld [smem:[%s12354_s0 + %s9335_s22]]  }
  0x3e   :  { %s9521_s4 = sld [smem:[%s12354_s0 + %s9336_s28]]  }
  0x41   :  { %12431 = sst [smem:[#allocation24_spill]] %s9506_s12 }
  0x42   :  { %s9526_s12 = sld [smem:[%s12354_s0 + %s9337_s7]]  }
  0x43 LB: > { %s12432_s8 = sld [smem:[#allocation6_spill]]  ;;  %s12433_s6 = sld [smem:[#allocation7_spill]]  ;;  %s9302_s15 = sphi %s9528_s15, %s79_s15  }
  0x44   : > { %s12434_s3 = sld [smem:[#allocation5_spill]]  ;;  %s7834_s16 = sadd.s32 4294967295, %s9302_s15  }
  0x45   : > { %p7838_p0 = scmp.ge.s32.totalorder %s9302_s15, 1  ;;  %p957_p1 = scmp.lt.s32.totalorder %s9302_s15, 3 }
  0x47   : > { %p958_p2 = pnand %p7838_p0, %p957_p1 }
  0x49   : > { %961 = sbr.rel (%p958_p2) target bundleno = 5658 (0x161a), region = 156 }
  0x50   : > { %p1048_p3 = scmp.lt.s32.totalorder %s7834_s16, 1  ;;  %s12435_s5 = sld [smem:[#allocation3_spill]]  ;;  %v1067_v0 = vld [vmem:[%s9376_s21] sm:$0xff]  ;;  %vm1083_vm0 = vcmask 261120   ;;  %v1068_v9 = vld [vmem:[%s9376_s21 + $0x8] sm:$0xff]  ;;  %v1069_v10 = vld [vmem:[%s9376_s21 + $0x10] sm:$0xff]  ;;  %v1477_v22 = vlaneseq }
  0x51   : > { %s12436_s9 = sld [smem:[#allocation4_spill]]  ;;  %8173 = vmatprep.mubr.msk.f32.mxu0 %vm1083_vm0, %v1067_v0  ;;  %s12376_s23 = smov 16   ;;  %v1070_v11 = vld [vmem:[%s9376_s21 + $0x18] sm:$0xff]  ;;  %v1071_v12 = vld [vmem:[%s9376_s21 + $0x20] sm:$0xff]  ;;  %v1072_v13 = vld [vmem:[%s9376_s21 + $0x28] sm:$0xff]  ;;  %v12372_v16 = vmov 0.0  }
  0x52   : > { %s12485_s16 = smov (!%p1048_p3, %s7834_s16), 1  ;;  %s12392_s26 = smov 17   ;;  %v1073_v14 = vld [vmem:[%s9376_s21 + $0x30] sm:$0xff]  ;;  %v1074_v15 = vld [vmem:[%s9376_s21 + $0x38] sm:$0xff]  ;;  %v1690_v17 = vld [vmem:[%s9401_s14] sm:$0xff]  ;;  %v9347_v19 = vmov 0  }
  0x53   : > { %s8030_s0 = sshll.u32 %s12485_s16, 4  ;;  %s8031_s22 = sshll.u32 %s12485_s16, 5  ;;  %v1691_v18 = vld [vmem:[%s9401_s14 + $0x8] sm:$0xff]  ;;  %9029 = vset.pattern.permute.xlu0 %v9347_v19  ;;  %9030 = vset.pattern.permute.xlu1 %v9347_v19  ;;  %v1692_v20 = vld [vmem:[%s9401_s14 + $0x10] sm:$0xff]  ;;  %v1693_v21 = vld [vmem:[%s9401_s14 + $0x18] sm:$0xff]  ;;  %v1485_v23 = vshrl.u32 %v1477_v22, 7 }
  0x54   : > { %s12389_s1 = smov 15   ;;  %s12387_s2 = smov 1   ;;  %v9599_v24 = vand.u32 127, %v1477_v22  ;;  %v7877_v27 = vld [vmem:[%s9366_s13 + $0x1] ss:$8 sm:$0x3] }
  0x55   : > { %s12378_s7 = smov 127   ;;  %s12385_s10 = smov 113   ;;  %v9601_v25 = vsub.s32 0, %v1485_v23  ;;  %v9603_v26 = vsub.s32 1, %v1485_v23  ;;  %vm1714_vm9 = vcmask 588800   ;;  %vm1285_vm10 = vcmask 523264  }
  0x56   : > { %s1052_s18 = scalar_lea.vmem %s12435_s5, %s8030_s0  ;;  %s12380_s11 = smov 112   ;;  %v1482_v28 = vld [vmem:[%s9366_s13] ss:$8 sm:$0x3]  ;;  %vm1502_vm1 = vcmp.lt.s32.totalorder %v9599_v24, 16  ;;  %vm1479_vm2 = vcmp.lt.s32.totalorder %v9599_v24, 17 }
  0x57   : > { %v9542_v1 = vld [vmem:[%s1052_s18] sm:$0xff]  ;;  %v9549_v2 = vld [vmem:[%s1052_s18 + $0x8] sm:$0xff]  ;;  %s1057_s28 = scalar_lea.vmem %s12436_s9, %s8031_s22  ;;  %s12374_s0 = smov 111   ;;  %v1511_v31 = vrot.slane %v7877_v27, %v9601_v25  ;;  %v1515_v32 = vrot.slane %v7877_v27, %v9603_v26  ;;  %v1487_v33 = vrot.slane %v1482_v28, %v9601_v25  ;;  %v1491_v34 = vrot.slane %v1482_v28, %v9603_v26  ;;  %v7883_v28 = vld [vmem:[%s9366_s13 + $0x10] ss:$8 sm:$0x3] }
  0x58   : > { %1498 = vrot.lane.b32.xlu1 %v9542_v1, %s12376_s23  ;;  %1473 = vrot.lane.b32.xlu0 %v9542_v1, %s12392_s26  ;;  %v1063_v3 = vld [vmem:[%s1057_s28] sm:$0xff]  ;;  %v1064_v4 = vld [vmem:[%s1057_s28 + $0x8] sm:$0xff]  ;;  %vm1526_vm3 = vcmp.lt.s32.totalorder %v9599_v24, 15  ;;  %vm1550_vm4 = vcmp.lt.s32.totalorder %v9599_v24, 1  ;;  %vm1576_vm5 = vcmp.lt.s32.totalorder %v9599_v24, 127  ;;  %vm1600_vm6 = vcmp.lt.s32.totalorder %v9599_v24, 113 }
  0x59   : > { %v1065_v5 = vld [vmem:[%s1057_s28 + $0x10] sm:$0xff]  ;;  %v8397_v6 = vpack.c.bf16 %v1064_v4, %v1063_v3  ;;  %v1066_v7 = vld [vmem:[%s1057_s28 + $0x18] sm:$0xff]  ;;  %v7878_v45 = vld [vmem:[%s9366_s13 + $0x2] ss:$8 sm:$0x3]  ;;  %vm1624_vm7 = vcmp.lt.s32.totalorder %v9599_v24, 112 }
  0x5a   : > { %v8401_v8 = vpack.c.bf16 %v1066_v7, %v1065_v5  ;;  %v7879_v46 = vld [vmem:[%s9366_s13 + $0x3] ss:$8 sm:$0x3]  ;;  %v1535_v51 = vrot.slane %v7878_v45, %v9601_v25  ;;  %v1539_v52 = vrot.slane %v7878_v45, %v9603_v26  ;;  %v7880_v55 = vld [vmem:[%s9366_s13 + $0x5] ss:$8 sm:$0x3] }
  0x5b   : > { %8398 = vmatprep.subr.bf16.mxu0 %v8397_v6  ;;  %v1559_v53 = vrot.slane %v7879_v46, %v9601_v25  ;;  %v1563_v54 = vrot.slane %v7879_v46, %v9603_v26  ;;  %v1585_v62 = vrot.slane %v7880_v55, %v9601_v25  ;;  %v1589_v63 = vrot.slane %v7880_v55, %v9603_v26  ;;  %s12440_s18 = sld [smem:[#allocation8_spill]]  ;;  %s12441_s22 = sld [smem:[#allocation9_spill]] }
  0x5c   : > { %1500 = vrot.lane.b32.xlu1 %v9549_v2, %s12376_s23  ;;  %1475 = vrot.lane.b32.xlu0 %v9549_v2, %s12392_s26  ;;  %vm1648_vm8 = vcmp.lt.s32.totalorder %v9599_v24, 111  ;;  %s12442_s28 = sld [smem:[#allocation10_spill]]  ;;  %s12459_s5 = smov 17  }
  0x5d   : > { %8400 = vmatpush3.bf16.msra.mxu0 %v8397_v6  ;;  %s12462_s9 = sld [smem:[#allocation17_spill]] }
  0x5e   : > { %8402 = vmatprep.subr.bf16.mxu0 %v8401_v8 }
  0x60   : > { %1524 = vrot.lane.b32.xlu1 %v9549_v2, %s12389_s1  ;;  %1522 = vrot.lane.b32.xlu0 %v9542_v1, %s12389_s1 }
  0x61   : > { %8404 = vmatpush3.bf16.msra.mxu0 %v8401_v8 }
  0x64   : > { %1548 = vrot.lane.b32.xlu1 %v9549_v2, %s12387_s2  ;;  %1546 = vrot.lane.b32.xlu0 %v9542_v1, %s12387_s2 }
  0x65   : > { %8174 = vmatmul.mubr.msk.f32.vlgmr.msra.gmra.mrb[0].mxu0 %vm1083_vm0, %v1068_v9 }
  0x66   : > { %8176 = vmatprep.mubr.msk.f32.mxu0 %vm1083_vm0, %v1069_v10 }
  0x68   : > { %1574 = vrot.lane.b32.xlu1 %v9549_v2, %s12378_s7  ;;  %1572 = vrot.lane.b32.xlu0 %v9542_v1, %s12378_s7 }
  0x69   : > { %8177 = vmatmul.mubr.msk.f32.gmra.mrb[2].mxu0 %vm1083_vm0, %v1070_v11 }
  0x6a   : > { %8179 = vmatprep.mubr.msk.f32.mxu0 %vm1083_vm0, %v1071_v12 }
  0x6c   : > { %1598 = vrot.lane.b32.xlu1 %v9549_v2, %s12385_s10  ;;  %1596 = vrot.lane.b32.xlu0 %v9542_v1, %s12385_s10 }
  0x6d   : > { %8180 = vmatmul.mubr.msk.f32.gmra.mrb[4].mxu0 %vm1083_vm0, %v1072_v13 }
  0x6e   : > { %8182 = vmatprep.mubr.msk.f32.mxu0 %vm1083_vm0, %v1073_v14  ;;  %v7881_v14 = vld [vmem:[%s9366_s13 + $0x6] ss:$8 sm:$0x3] }
  0x6f   : > { %v1613_v22 = vrot.slane %v7881_v14, %v9603_v26 }
  0x70   : > { %1622 = vrot.lane.b32.xlu1 %v9549_v2, %s12380_s11  ;;  %1620 = vrot.lane.b32.xlu0 %v9542_v1, %s12380_s11 }
  0x71   : > { %8183 = vmatmul.mubr.msk.f32.gmra.mrb[6].mxu0 %vm1083_vm0, %v1074_v15  ;;  %v7882_v15 = vld [vmem:[%s9366_s13 + $0x7] ss:$8 sm:$0x3] }
  0x72   : > { %1791 = vmatprep.mubr.f32.mxu0 %v12372_v16  ;;  %v1633_v23 = vrot.slane %v7882_v15, %v9601_v25  ;;  %v1637_v27 = vrot.slane %v7882_v15, %v9603_v26 }
  0x74   : > { %1646 = vrot.lane.b32.xlu1 %v9549_v2, %s12374_s0  ;;  %1644 = vrot.lane.b32.xlu0 %v9542_v1, %s12374_s0 }
  0x78   : > { %1696 = vperm.xlu0 %9029, %v1690_v17   ;;  %1701 = vperm.xlu1 %9030, %v1691_v18  }
  0x7c   : > { %1706 = vperm.xlu1 %9030, %v1692_v20   ;;  %1711 = vperm.xlu0 %9029, %v1693_v21   ;;  %v1609_v21 = vrot.slane %v7881_v14, %v9601_v25 }
  0xca   : > { %v1499_v29 = vpop.permute.xlu1 %1498  ;;  %v1474_v30 = vpop.permute.xlu0 %1473 }
  0xce   : > { %v1501_v35 = vpop.permute.xlu1 %1500  ;;  %v1476_v36 = vpop.permute.xlu0 %1475 }
  0xcf   : > { %v1503_v37 = vsel %vm1502_vm1, %v1499_v29, %v1501_v35  ;;  %v1504_v38 = vsel %vm1502_vm1, %v1501_v35, %v1499_v29  ;;  %v1480_v39 = vsel %vm1479_vm2, %v1474_v30, %v1476_v36  ;;  %v1481_v40 = vsel %vm1479_vm2, %v1476_v36, %v1474_v30 }
  0xd0   : > { %v1518_v41 = vmul.f32 %v1511_v31, %v1504_v38  ;;  %v1519_v42 = vmul.f32 %v1515_v32, %v1503_v37  ;;  %v1494_v43 = vmul.f32 %v1487_v33, %v1481_v40  ;;  %v1495_v44 = vmul.f32 %v1491_v34, %v1480_v39 }
  0xd1   : > { %v1661_v33 = vrot.slane %v7883_v28, %v9603_v26  ;;  %v1657_v38 = vrot.slane %v7883_v28, %v9601_v25 }
  0xd2   : > { %v8423_v47 = vpack.c.bf16 %v1518_v41, %v1494_v43  ;;  %v1525_v48 = vpop.permute.xlu1 %1524  ;;  %v1523_v49 = vpop.permute.xlu0 %1522  ;;  %v8421_v50 = vpack.c.bf16 %v1519_v42, %v1495_v44 }
  0xd3   : > { %v1527_v56 = vsel %vm1526_vm3, %v1523_v49, %v1525_v48  ;;  %v1528_v57 = vsel %vm1526_vm3, %v1525_v48, %v1523_v49  ;;  %v1687_v48 = vld [vmem:[%s12432_s8 + $0x8] sm:$0xff]  ;;  %v1688_v49 = vld [vmem:[%s12432_s8 + $0x10] sm:$0xff] }
  0xd4   : > { %8422 = vmatprep.subr.bf16.mxu0 %v8421_v50  ;;  %v1542_v0 = vmul.f32 %v1535_v51, %v1528_v57  ;;  %v1543_v3 = vmul.f32 %v1539_v52, %v1527_v56  ;;  %v1689_v50 = vld [vmem:[%s12432_s8 + $0x18] sm:$0xff]  ;;  %v1076_v51 = vld [vmem:[%s9381_s25 + $0x8] sm:$0xff]  ;;  %v1075_v52 = vld [vmem:[%s9381_s25] sm:$0xff] }
  0xd5   : > { %8424 = vmatpush1.bf16.msra.mxu0 %v8423_v47  ;;  %v1686_v47 = vld [vmem:[%s12432_s8] sm:$0xff]  ;;  %v1078_v57 = vld [vmem:[%s9381_s25 + $0x18] sm:$0xff]  ;;  %s12461_s8 = smov 112  }
  0xd6   : > { %v1549_v58 = vpop.permute.xlu1 %1548  ;;  %v1547_v59 = vpop.permute.xlu0 %1546 }
  0xd7   : > { %v1551_v60 = vsel %vm1550_vm4, %v1547_v59, %v1549_v58  ;;  %v1552_v61 = vsel %vm1550_vm4, %v1549_v58, %v1547_v59  ;;  %v1077_v59 = vld [vmem:[%s9381_s25 + $0x10] sm:$0xff] }
  0xd8   : > { %v1566_v4 = vmul.f32 %v1559_v53, %v1552_v61  ;;  %v1567_v5 = vmul.f32 %v1563_v54, %v1551_v60 }
  0xda   : > { %v8427_v6 = vpack.c.bf16 %v1566_v4, %v1542_v0  ;;  %v1575_v7 = vpop.permute.xlu1 %1574  ;;  %v1573_v8 = vpop.permute.xlu0 %1572  ;;  %v8425_v9 = vpack.c.bf16 %v1567_v5, %v1543_v3  ;;  %v1080_v3 = vld [vmem:[%s9381_s25 + $0x28] sm:$0xff]  ;;  %v1079_v5 = vld [vmem:[%s9381_s25 + $0x20] sm:$0xff] }
  0xdb   : > { %v1577_v10 = vsel %vm1576_vm5, %v1573_v8, %v1575_v7  ;;  %v1578_v11 = vsel %vm1576_vm5, %v1575_v7, %v1573_v8 }
  0xdc   : > { %v1592_v12 = vmul.f32 %v1585_v62, %v1577_v10  ;;  %v1593_v13 = vmul.f32 %v1589_v63, %v1578_v11  ;;  %8426 = vmatprep.subr.bf16.mxu0 %v8425_v9  ;;  %v1082_v11 = vld [vmem:[%s9381_s25 + $0x38] sm:$0xff] }
  0xdd   : > { %8428 = vmatpush1.bf16.msra.mxu0 %v8427_v6 }
  0xde   : > { %v8431_v17 = vpack.c.bf16 %v1592_v12, %v9542_v1  ;;  %v1599_v18 = vpop.permute.xlu1 %1598  ;;  %v1597_v19 = vpop.permute.xlu0 %1596  ;;  %v8429_v20 = vpack.c.bf16 %v1593_v13, %v9549_v2  ;;  %v1081_v13 = vld [vmem:[%s9381_s25 + $0x30] sm:$0xff] }
  0xdf   : > { %v1601_v1 = vsel %vm1600_vm6, %v1597_v19, %v1599_v18  ;;  %v1602_v29 = vsel %vm1600_vm6, %v1599_v18, %v1597_v19 }
  0xe0   : > { %8430 = vmatprep.subr.bf16.mxu0 %v8429_v20  ;;  %v1616_v34 = vmul.f32 %v1609_v21, %v1601_v1  ;;  %v1617_v35 = vmul.f32 %v1613_v22, %v1602_v29 }
  0xe1   : > { %8432 = vmatpush1.bf16.msra.mxu0 %v8431_v17 }
  0xe2   : > { %v1623_v2 = vpop.permute.xlu1 %1622  ;;  %v1621_v30 = vpop.permute.xlu0 %1620 }
  0xe3   : > { %v1625_v31 = vsel %vm1624_vm7, %v1621_v30, %v1623_v2  ;;  %v1626_v32 = vsel %vm1624_vm7, %v1623_v2, %v1621_v30 }
  0xe4   : > { %v1640_v36 = vmul.f32 %v1633_v23, %v1625_v31  ;;  %v1641_v37 = vmul.f32 %v1637_v27, %v1626_v32 }
  0xe6   : > { %v8435_v39 = vpack.c.bf16 %v1640_v36, %v1616_v34  ;;  %v1647_v40 = vpop.permute.xlu1 %1646  ;;  %v8433_v41 = vpack.c.bf16 %v1641_v37, %v1617_v35  ;;  %v1645_v42 = vpop.permute.xlu0 %1644 }
  0xe7   : > { %v1649_v43 = vsel %vm1648_vm8, %v1645_v42, %v1647_v40  ;;  %v1650_v44 = vsel %vm1648_vm8, %v1647_v40, %v1645_v42 }
  0xe8   : > { %8434 = vmatprep.subr.bf16.mxu0 %v8433_v41  ;;  %v1665_v45 = vmul.f32 %v1661_v33, %v1650_v44  ;;  %v1664_v46 = vmul.f32 %v1657_v38, %v1649_v43 }
  0xe9   : > { %8436 = vmatpush1.bf16.msra.mxu0 %v8435_v39 }
  0xea   : > { %1743 = vmatprep.subr.mxu0 %v1665_v45 }
  0xed   : > { %1744 = vmatpush1.msra.mxu0 %v1664_v46 }
  0xee   : > { %7884 = vmatmul.mubr.msk.f32.vlgmr.msra.gmra.mrb[8].mxu0 %vm1714_vm9, %v1686_v47 }
  0xef   : > { %1797 = vmatprep.mubr.f32.mxu0 %v12372_v16 }
  0xf2   : > { %7885 = vmatmul.mubr.msk.f32.gmra.mrb[10].mxu0 %vm1714_vm9, %v1687_v48 }
  0xf3   : > { %1803 = vmatprep.mubr.f32.mxu0 %v12372_v16 }
  0xf6   : > { %7886 = vmatmul.mubr.msk.f32.gmra.mrb[12].mxu0 %vm1714_vm9, %v1688_v49 }
  0xf7   : > { %1809 = vmatprep.mubr.f32.mxu0 %v12372_v16 }
  0xfa   : > { %7887 = vmatmul.mubr.msk.f32.gmra.mrb[14].mxu0 %vm1714_vm9, %v1689_v50 }
 0x138   : > { %v8175_v53 = vpop.f32.mrb[0].mxu0 }
 0x139   : > { %v1180_v54 = vadd.f32 %v8175_v53, %v1076_v51  ;;  %v1174_v55 = vpop.f32.mrb[1].mxu0 }
 0x13a   : > { %v1175_v56 = vadd.f32 %v1174_v55, %v1075_v52 }
 0x13b   : > { %v7854_v58 = vmul.f32 -1.442695, %v1180_v54 }
 0x13c   : > { %v7853_v60 = vmul.f32 -1.442695, %v1175_v56  ;;  %v8178_v61 = vpop.f32.mrb[2].mxu0 }
 0x13d   : > { %9032 = vpow2.f32 %v7854_v58  ;;  %v1190_v62 = vadd.f32 %v8178_v61, %v1078_v57  ;;  %v1184_v63 = vpop.f32.mrb[3].mxu0  ;;  %v1271_v61 = vld [vmem:[%s9386_s29 + $0x10] sm:$0xff] }
 0x13e   : > { %9034 = vpow2.f32 %v7853_v60  ;;  %v1185_v0 = vadd.f32 %v1184_v63, %v1077_v59  ;;  %v1269_v59 = vld [vmem:[%s9386_s29] sm:$0xff]  ;;  %v1270_v60 = vld [vmem:[%s9386_s29 + $0x8] sm:$0xff] }
 0x13f   : > { %v7856_v4 = vmul.f32 -1.442695, %v1190_v62  ;;  %8201 = vmatprep.mubr.msk.f32.mxu1 %vm1285_vm10, %v1269_v59  ;;  %v1273_v63 = vld [vmem:[%s9386_s29 + $0x20] sm:$0xff] }
 0x140   : > { %v7855_v6 = vmul.f32 -1.442695, %v1185_v0  ;;  %v8181_v7 = vpop.f32.mrb[4].mxu0 }
 0x141   : > { %9036 = vpow2.f32 %v7856_v4  ;;  %v1200_v8 = vadd.f32 %v8181_v7, %v1080_v3  ;;  %v1194_v9 = vpop.f32.mrb[5].mxu0  ;;  %v1275_v3 = vld [vmem:[%s9386_s29 + $0x30] sm:$0xff]  ;;  %v1276_v4 = vld [vmem:[%s9386_s29 + $0x38] sm:$0xff]  ;;  %v1702_v7 = vpop.permute.xlu1 %1701 }
 0x142   : > { %9038 = vpow2.f32 %v7855_v6  ;;  %v1195_v10 = vadd.f32 %v1194_v9, %v1079_v5  ;;  %v1697_v5 = vpop.permute.xlu0 %1696 }
 0x143   : > { %v7858_v12 = vmul.f32 -1.442695, %v1200_v8 }
 0x144   : > { %v7857_v14 = vmul.f32 -1.442695, %v1195_v10  ;;  %v8184_v15 = vpop.f32.mrb[6].mxu0 }
 0x145   : > { %9040 = vpow2.f32 %v7858_v12  ;;  %v1210_v17 = vadd.f32 %v8184_v15, %v1082_v11  ;;  %v1204_v18 = vpop.f32.mrb[7].mxu0  ;;  %v1707_v15 = vpop.permute.xlu1 %1706 }
 0x146   : > { %9042 = vpow2.f32 %v7857_v14  ;;  %v1205_v19 = vadd.f32 %v1204_v18, %v1081_v13 }
 0x147   : > { %v9033_v20 = vpop.eup %9032  ;;  %v7860_v21 = vmul.f32 -1.442695, %v1210_v17 }
 0x148   : > { %v9035_v22 = vpop.eup %9034  ;;  %v1238_v23 = vadd.f32 1.0, %v9033_v20  ;;  %v7859_v27 = vmul.f32 -1.442695, %v1205_v19 }
 0x149   : > { %v1237_v28 = vadd.f32 1.0, %v9035_v22  ;;  %9044 = vpow2.f32 %v7860_v21 }
 0x14a   : > { %9046 = vrcp.f32 %v1238_v23 }
 0x14b   : > { %v9037_v1 = vpop.eup %9036  ;;  %9048 = vrcp.f32 %v1237_v28  ;;  %v1712_v28 = vpop.permute.xlu0 %1711 }
 0x14c   : > { %v9039_v29 = vpop.eup %9038  ;;  %v1240_v2 = vadd.f32 1.0, %v9037_v1  ;;  %9050 = vpow2.f32 %v7859_v27 }
 0x14d   : > { %v1239_v30 = vadd.f32 1.0, %v9039_v29 }
 0x14e   : > { %9052 = vrcp.f32 %v1240_v2 }
 0x14f   : > { %v9041_v31 = vpop.eup %9040  ;;  %9054 = vrcp.f32 %v1239_v30 }
 0x150   : > { %v9043_v32 = vpop.eup %9042  ;;  %v1242_v33 = vadd.f32 1.0, %v9041_v31 }
 0x151   : > { %v1241_v34 = vadd.f32 1.0, %v9043_v32 }
 0x152   : > { %9056 = vrcp.f32 %v1242_v33 }
 0x153   : > { %v9045_v35 = vpop.eup %9044  ;;  %9058 = vrcp.f32 %v1241_v34 }
 0x154   : > { %v9047_v36 = vpop.eup %9046  ;;  %v1244_v37 = vadd.f32 1.0, %v9045_v35 }
 0x155   : > { %v9049_v38 = vpop.eup %9048  ;;  %v1262_v39 = vmul.f32 %v9047_v36, %v1180_v54 }
 0x156   : > { %v9051_v40 = vpop.eup %9050  ;;  %v1261_v41 = vmul.f32 %v9049_v38, %v1175_v56  ;;  %9060 = vrcp.f32 %v1244_v37 }
 0x157   : > { %v1243_v42 = vadd.f32 1.0, %v9051_v40 }
 0x158   : > { %v9053_v43 = vpop.eup %9052  ;;  %v8405_v44 = vpack.c.bf16 %v1262_v39, %v1261_v41 }
 0x159   : > { %v9055_v45 = vpop.eup %9054  ;;  %v1264_v46 = vmul.f32 %v9053_v43, %v1190_v62  ;;  %9062 = vrcp.f32 %v1243_v42  ;;  %v1272_v62 = vld [vmem:[%s9386_s29 + $0x18] sm:$0xff]  ;;  %v9743_v43 = vld [vmem:[%s9371_s17] sm:$0xff] }
 0x15a   : > { %v1263_v47 = vmul.f32 %v9055_v45, %v1185_v0  ;;  %8406 = vmatprep.subr.bf16.mxu1 %v8405_v44  ;;  %v1274_v0 = vld [vmem:[%s9386_s29 + $0x28] sm:$0xff] }
 0x15b   : > { %8408 = vmatpush3.bf16.msra.mxu1 %v8405_v44  ;;  %v2114_v44 = vld [vmem:[%s9406_s19] sm:$0xff]  ;;  %v2115_v45 = vld [vmem:[%s9406_s19 + $0x8] sm:$0xff] }
 0x15c   : > { %v9057_v48 = vpop.eup %9056  ;;  %v8409_v49 = vpack.c.bf16 %v1264_v46, %v1263_v47  ;;  %v2146_v46 = vld [vmem:[%s9411_s24] sm:$0xff]  ;;  %v2147_v47 = vld [vmem:[%s9411_s24 + $0x8] sm:$0xff] }
 0x15d   : > { %v9059_v50 = vpop.eup %9058  ;;  %v1266_v51 = vmul.f32 %v9057_v48, %v1200_v8  ;;  %v2116_v48 = vld [vmem:[%s9406_s19 + $0x10] sm:$0xff] }
 0x15e   : > { %v1265_v52 = vmul.f32 %v9059_v50, %v1195_v10  ;;  %8410 = vmatprep.subr.bf16.mxu1 %v8409_v49  ;;  %v1278_v50 = vld [vmem:[%s12434_s3 + $0x8] sm:$0xff] }
 0x15f   : > { %8412 = vmatpush3.bf16.msra.mxu1 %v8409_v49  ;;  %v2117_v49 = vld [vmem:[%s9406_s19 + $0x18] sm:$0xff] }
 0x160   : > { %v9061_v53 = vpop.eup %9060  ;;  %v8413_v54 = vpack.c.bf16 %v1266_v51, %v1265_v52  ;;  %v1277_v51 = vld [vmem:[%s12434_s3] sm:$0xff] }
 0x161   : > { %v1268_v55 = vmul.f32 %v9061_v53, %v1210_v17 }
 0x162   : > { %8414 = vmatprep.subr.bf16.mxu1 %v8413_v54 }
 0x163   : > { %v9063_v56 = vpop.eup %9062  ;;  %8416 = vmatpush3.bf16.msra.mxu1 %v8413_v54 }
 0x164   : > { %v1267_v57 = vmul.f32 %v9063_v56, %v1205_v19  ;;  %v1280_v56 = vld [vmem:[%s12434_s3 + $0x18] sm:$0xff] }
 0x166   : > { %v8417_v58 = vpack.c.bf16 %v1268_v55, %v1267_v57 }
 0x168   : > { %8418 = vmatprep.subr.bf16.mxu1 %v8417_v58 }
 0x169   : > { %8420 = vmatpush3.bf16.msra.mxu1 %v8417_v58  ;;  %v1279_v58 = vld [vmem:[%s12434_s3 + $0x10] sm:$0xff] }
 0x16c   : > { %8202 = vmatmul.mubr.msk.f32.vlgmr.msra.gmra.mrb[0].mxu1 %vm1285_vm10, %v1270_v60 }
 0x16d   : > { %8204 = vmatprep.mubr.msk.f32.mxu1 %vm1285_vm10, %v1271_v61 }
 0x170   : > { %8205 = vmatmul.mubr.msk.f32.gmra.mrb[2].mxu1 %vm1285_vm10, %v1272_v62 }
 0x171   : > { %8207 = vmatprep.mubr.msk.f32.mxu1 %vm1285_vm10, %v1273_v63 }
 0x174   : > { %8208 = vmatmul.mubr.msk.f32.gmra.mrb[4].mxu1 %vm1285_vm10, %v1274_v0  ;;  %v1282_v0 = vld [vmem:[%s12434_s3 + $0x28] sm:$0xff] }
 0x175   : > { %8210 = vmatprep.mubr.msk.f32.mxu1 %vm1285_vm10, %v1275_v3 }
 0x178   : > { %8211 = vmatmul.mubr.msk.f32.gmra.mrb[6].mxu1 %vm1285_vm10, %v1276_v4  ;;  %v1281_v4 = vld [vmem:[%s12434_s3 + $0x20] sm:$0xff] }
 0x179   : > { %8221 = vmatprep.mubr.msk.f32.mxu1 %vm1083_vm0, %v9743_v43 }
 0x1c1   : > { %v1793_v6 = vpop.f32.mrb[8].mxu0 }
 0x1c2   : > { %v9702_v8 = vadd.f32 %v1793_v6, %v1697_v5  ;;  %v1795_v9 = vpop.f32.mrb[9].mxu0 }
 0x1c3   : > { %v9704_v10 = vadd.f32 %v1795_v9, %v1697_v5 }
 0x1c4   : > { %v1828_v23 = vmul.f32 %v9702_v8, %v9702_v8 }
 0x1c5   : > { %v1799_v11 = vpop.f32.mrb[10].mxu0  ;;  %v1816_v12 = vadd.f32 %v9704_v10, %v9702_v8  ;;  %v1829_v27 = vmul.f32 %v9704_v10, %v9704_v10 }
 0x1c6   : > { %v9708_v13 = vadd.f32 %v1799_v11, %v1702_v7  ;;  %v1801_v14 = vpop.f32.mrb[11].mxu0 }
 0x1c7   : > { %v9710_v17 = vadd.f32 %v1801_v14, %v1702_v7  ;;  %1817 = vadd.xlane.f32.xlu1 %v1816_v12  ;;  %v1836_v32 = vadd.f32 %v1829_v27, %v1828_v23  ;;  %v1284_v12 = vld [vmem:[%s12434_s3 + $0x38] sm:$0xff] }
 0x1c8   : > { %v1830_v33 = vmul.f32 %v9708_v13, %v9708_v13 }
 0x1c9   : > { %v1805_v18 = vpop.f32.mrb[12].mxu0  ;;  %v1819_v19 = vadd.f32 %v9710_v17, %v9708_v13  ;;  %v1831_v37 = vmul.f32 %v9710_v17, %v9710_v17 }
 0x1ca   : > { %v9714_v20 = vadd.f32 %v1805_v18, %v1707_v15  ;;  %v1807_v21 = vpop.f32.mrb[13].mxu0 }
 0x1cb   : > { %v9716_v22 = vadd.f32 %v1807_v21, %v1707_v15  ;;  %1820 = vadd.xlane.f32.xlu0 %v1819_v19  ;;  %v1839_v39 = vadd.f32 %v1831_v37, %v1830_v33  ;;  %v1283_v15 = vld [vmem:[%s12434_s3 + $0x30] sm:$0xff]  ;;  %s12458_s3 = smov 113  }
 0x1cc   : > { %v1832_v35 = vmul.f32 %v9714_v20, %v9714_v20 }
 0x1cd   : > { %12437 = vst [vmem:[#allocation25_spill] sm:$0xff] %v9716_v22  ;;  %v1811_v1 = vpop.f32.mrb[14].mxu0  ;;  %v1822_v29 = vadd.f32 %v9716_v22, %v9714_v20  ;;  %v1833_v36 = vmul.f32 %v9716_v22, %v9716_v22 }
 0x1ce   : > { %v9724_v2 = vadd.f32 %v1811_v1, %v1712_v28  ;;  %v1813_v30 = vpop.f32.mrb[15].mxu0 }
 0x1cf   : > { %v9726_v31 = vadd.f32 %v1813_v30, %v1712_v28  ;;  %1823 = vadd.xlane.f32.xlu0 %v1822_v29  ;;  %v1842_v38 = vadd.f32 %v1833_v36, %v1832_v35 }
 0x1d0   : > { %12438 = vst [vmem:[#allocation26_spill] sm:$0xff] %v9724_v2  ;;  %v1834_v40 = vmul.f32 %v9724_v2, %v9724_v2 }
 0x1d1   : > { %12439 = vst [vmem:[#allocation27_spill] sm:$0xff] %v9726_v31  ;;  %v1825_v34 = vadd.f32 %v9726_v31, %v9724_v2  ;;  %v1835_v41 = vmul.f32 %v9726_v31, %v9726_v31 }
 0x1d3   : > { %1837 = vadd.xlane.f32.xlu0 %v1836_v32  ;;  %1826 = vadd.xlane.f32.xlu1 %v1825_v34  ;;  %v1845_v42 = vadd.f32 %v1835_v41, %v1834_v40 }
 0x1d7   : > { %1843 = vadd.xlane.f32.xlu0 %v1842_v38  ;;  %1840 = vadd.xlane.f32.xlu1 %v1839_v39 }
 0x1db   : > { %1846 = vadd.xlane.f32.xlu1 %v1845_v42 }
 0x1ec   : > { %2120 = vperm.xlu1 %9030, %v2114_v44  }
 0x1ed   : > { %2125 = vperm.xlu0 %9029, %v2115_v45  }
 0x1f0   : > { %2152 = vperm.xlu1 %9030, %v2146_v46  }
 0x1f1   : > { %2157 = vperm.xlu0 %9029, %v2147_v47  }
 0x1f4   : > { %2130 = vperm.xlu1 %9030, %v2116_v48  }
 0x1f5   : > { %2135 = vperm.xlu0 %9029, %v2117_v49  }
 0x23f   : > { %v8203_v52 = vpop.f32.mrb[0].mxu1 }
 0x240   : > { %v9755_v53 = vadd.f32 %v8203_v52, %v1278_v50  ;;  %v1376_v54 = vpop.f32.mrb[1].mxu1 }
 0x241   : > { %v9757_v55 = vadd.f32 %v1376_v54, %v1277_v51  ;;  %v1849_v51 = vld [vmem:[%s9371_s17 + $0x8] sm:$0xff] }
 0x242   : > { %v7870_v57 = vmul.f32 -1.442695, %v9755_v53 }
 0x243   : > { %v7869_v59 = vmul.f32 -1.442695, %v9757_v55  ;;  %v8206_v60 = vpop.f32.mrb[2].mxu1 }
 0x244   : > { %9064 = vpow2.f32 %v7870_v57  ;;  %v9763_v61 = vadd.f32 %v8206_v60, %v1280_v56  ;;  %v1386_v62 = vpop.f32.mrb[3].mxu1  ;;  %v1850_v56 = vld [vmem:[%s9371_s17 + $0x10] sm:$0xff] }
 0x245   : > { %9066 = vpow2.f32 %v7869_v59  ;;  %v9765_v63 = vadd.f32 %v1386_v62, %v1279_v58 }
 0x246   : > { %v7872_v3 = vmul.f32 -1.442695, %v9763_v61 }
 0x247   : > { %v7871_v5 = vmul.f32 -1.442695, %v9765_v63  ;;  %v8209_v6 = vpop.f32.mrb[4].mxu1 }
 0x248   : > { %9068 = vpow2.f32 %v7872_v3  ;;  %v9771_v7 = vadd.f32 %v8209_v6, %v1282_v0  ;;  %v1396_v9 = vpop.f32.mrb[5].mxu1 }
 0x249   : > { %9070 = vpow2.f32 %v7871_v5  ;;  %v9773_v11 = vadd.f32 %v1396_v9, %v1281_v4  ;;  %v1851_v4 = vld [vmem:[%s9371_s17 + $0x18] sm:$0xff] }
 0x24a   : > { %v7874_v14 = vmul.f32 -1.442695, %v9771_v7 }
 0x24b   : > { %v7873_v18 = vmul.f32 -1.442695, %v9773_v11  ;;  %v8212_v19 = vpop.f32.mrb[6].mxu1 }
 0x24c   : > { %9072 = vpow2.f32 %v7874_v14  ;;  %v9779_v21 = vadd.f32 %v8212_v19, %v1284_v12  ;;  %v1406_v23 = vpop.f32.mrb[7].mxu1 }
 0x24d   : > { %9074 = vpow2.f32 %v7873_v18  ;;  %v9781_v1 = vadd.f32 %v1406_v23, %v1283_v15 }
 0x24e   : > { %v9065_v29 = vpop.eup %9064  ;;  %v7876_v32 = vmul.f32 -1.442695, %v9779_v21 }
 0x24f   : > { %v9067_v33 = vpop.eup %9066  ;;  %v1440_v34 = vadd.f32 1.0, %v9065_v29  ;;  %v7875_v35 = vmul.f32 -1.442695, %v9781_v1 }
 0x250   : > { %v1439_v36 = vadd.f32 1.0, %v9067_v33  ;;  %9076 = vpow2.f32 %v7876_v32 }
 0x251   : > { %9078 = vrcp.f32 %v1440_v34 }
 0x252   : > { %v9069_v38 = vpop.eup %9068  ;;  %9080 = vrcp.f32 %v1439_v36 }
 0x253   : > { %v9071_v39 = vpop.eup %9070  ;;  %v1442_v40 = vadd.f32 1.0, %v9069_v38  ;;  %9082 = vpow2.f32 %v7875_v35 }
 0x254   : > { %v1818_v27 = vpop.xlane.xlu1 %1817  ;;  %v1441_v41 = vadd.f32 1.0, %v9071_v39 }
 0x255   : > { %9084 = vrcp.f32 %v1442_v40 }
 0x256   : > { %v9073_v44 = vpop.eup %9072  ;;  %9086 = vrcp.f32 %v1441_v41 }
 0x257   : > { %v9075_v46 = vpop.eup %9074  ;;  %v1444_v48 = vadd.f32 1.0, %v9073_v44 }
 0x258   : > { %v1821_v28 = vpop.xlane.xlu0 %1820  ;;  %v1443_v49 = vadd.f32 1.0, %v9075_v46 }
 0x259   : > { %v8437_v30 = vpack.c.bf16 %v1821_v28, %v1818_v27  ;;  %9088 = vrcp.f32 %v1444_v48 }
 0x25a   : > { %v9077_v52 = vpop.eup %9076  ;;  %9090 = vrcp.f32 %v1443_v49 }
 0x25b   : > { %8438 = vmatprep.subr.bf16.mxu1 %v8437_v30  ;;  %v9079_v57 = vpop.eup %9078  ;;  %v1446_v58 = vadd.f32 1.0, %v9077_v52 }
 0x25c   : > { %8440 = vmatpush3.bf16.msra.mxu1 %v8437_v30  ;;  %v1824_v37 = vpop.xlane.xlu0 %1823  ;;  %v9081_v59 = vpop.eup %9080  ;;  %v1464_v60 = vmul.f32 %v9079_v57, %v9755_v53 }
 0x25d   : > { %v9083_v62 = vpop.eup %9082  ;;  %v1463_v5 = vmul.f32 %v9081_v59, %v9757_v55  ;;  %9092 = vrcp.f32 %v1446_v58 }
 0x25e   : > { %v1445_v9 = vadd.f32 1.0, %v9083_v62 }
 0x25f   : > { %v9085_v12 = vpop.eup %9084  ;;  %v9792_v14 = vpack.c.bf16 %v1464_v60, %v1463_v5  ;;  %v2148_v5 = vld [vmem:[%s9411_s24 + $0x10] sm:$0xff] }
 0x260   : > { %v1827_v42 = vpop.xlane.xlu1 %1826  ;;  %v1838_v47 = vpop.xlane.xlu0 %1837  ;;  %v1466_v53 = vmul.f32 %v9085_v12, %v9763_v61  ;;  %9094 = vrcp.f32 %v1445_v9 }
 0x261   : > { %v8441_v45 = vpack.c.bf16 %v1827_v42, %v1824_v37  ;;  %v9087_v15 = vpop.eup %9086 }
 0x262   : > { %v1465_v18 = vmul.f32 %v9087_v15, %v9765_v63 }
 0x263   : > { %8442 = vmatprep.subr.bf16.mxu1 %v8441_v45  ;;  %v9089_v55 = vpop.eup %9088 }
 0x264   : > { %v1841_v50 = vpop.xlane.xlu1 %1840  ;;  %8444 = vmatpush3.bf16.msra.mxu1 %v8441_v45  ;;  %v1844_v0 = vpop.xlane.xlu0 %1843  ;;  %v9799_v19 = vpack.c.bf16 %v1466_v53, %v1465_v18  ;;  %v1468_v27 = vmul.f32 %v9089_v55, %v9771_v7 }
 0x265   : > { %v8445_v54 = vpack.c.bf16 %v1841_v50, %v1838_v47  ;;  %v9091_v23 = vpop.eup %9090 }
 0x266   : > { %v1467_v28 = vmul.f32 %v9091_v23, %v9773_v11 }
 0x267   : > { %8222 = vmatmul.mubr.msk.f32.vlgmr.msra.gmra.mrb[8].mxu1 %vm1083_vm0, %v1849_v51  ;;  %8446 = vmatprep.subr.bf16.mxu1 %v8445_v54  ;;  %v9093_v61 = vpop.eup %9092 }
 0x268   : > { %v1847_v3 = vpop.xlane.xlu1 %1846  ;;  %8448 = vmatpush3.bf16.msra.mxu1 %v8445_v54  ;;  %8224 = vmatprep.mubr.msk.f32.mxu1 %vm1083_vm0, %v1850_v56  ;;  %v9805_v29 = vpack.c.bf16 %v1468_v27, %v1467_v28 }
 0x269   : > { %v8449_v6 = vpack.c.bf16 %v1847_v3, %v1844_v0 }
 0x26a   : > { %v9095_v63 = vpop.eup %9094 }
 0x26b   : > { %8225 = vmatmul.mubr.msk.f32.gmra.mrb[10].mxu1 %vm1083_vm0, %v1851_v4  ;;  %8450 = vmatprep.subr.bf16.mxu1 %v8449_v6  ;;  %v1469_v30 = vmul.f32 %v9095_v63, %v9781_v1 }
 0x26c   : > { %8452 = vmatpush3.bf16.msra.mxu1 %v8449_v6  ;;  %8235 = vmatprep.mubr.msk.f32.mxu1 %vm1083_vm0, %v9743_v43  ;;  %v1470_v43 = vmul.f32 %v9093_v61, %v9779_v21  ;;  %v2126_v6 = vpop.permute.xlu0 %2125  ;;  %v2121_v9 = vpop.permute.xlu1 %2120 }
 0x26e   : > { %v9811_v32 = vpack.c.bf16 %v1470_v43, %v1469_v30 }
 0x26f   : > { %8236 = vmatmul.mubr.msk.f32.vlgmr.msra.gmra.mrb[12].mxu1 %vm1083_vm0, %v1849_v51 }
 0x270   : > { %8238 = vmatprep.mubr.msk.f32.mxu1 %vm1083_vm0, %v1850_v56  ;;  %v2158_v12 = vpop.permute.xlu0 %2157  ;;  %v2153_v15 = vpop.permute.xlu1 %2152 }
 0x273   : > { %8239 = vmatmul.mubr.msk.f32.gmra.mrb[14].mxu1 %vm1083_vm0, %v1851_v4  ;;  %v2149_v4 = vld [vmem:[%s9411_s24 + $0x18] sm:$0xff] }
 0x274   : > { %2931 = vmatprep.mubr.f32.mxu1 %v12372_v16  ;;  %v9815_v53 = vpop.permute.xlu0 %2135  ;;  %v9817_v18 = vpop.permute.xlu1 %2130 }
 0x33a   : > { %v8223_v33 = vpop.f32.mrb[8].mxu1 }
 0x33b   : > { %v1950_v7 = vmul.f32 0.0009765625, %v8223_v33  ;;  %v1930_v34 = vpop.f32.mrb[9].mxu1 }
 0x33c   : > { %v1949_v35 = vmul.f32 0.0009765625, %v1930_v34 }
 0x33d   : > { %2065 = vperm.xlu1 %9030, %v1950_v7   ;;  %v2043_v39 = vmul.f32 %v1950_v7, %v1950_v7 }
 0x33e   : > { %2060 = vperm.xlu0 %9029, %v1949_v35   ;;  %v8226_v11 = vpop.f32.mrb[10].mxu1  ;;  %v2042_v42 = vmul.f32 %v1949_v35, %v1949_v35 }
 0x33f   : > { %v1952_v36 = vmul.f32 0.0009765625, %v8226_v11  ;;  %v1940_v37 = vpop.f32.mrb[11].mxu1 }
 0x340   : > { %v1951_v38 = vmul.f32 0.0009765625, %v1940_v37 }
 0x341   : > { %v2045_v47 = vmul.f32 %v1952_v36, %v1952_v36 }
 0x342   : > { %2075 = vperm.xlu0 %9029, %v1952_v36   ;;  %2070 = vperm.xlu1 %9030, %v1951_v38   ;;  %v8237_v21 = vpop.f32.mrb[12].mxu1  ;;  %v2044_v51 = vmul.f32 %v1951_v38, %v1951_v38 }
 0x343   : > { %v2039_v40 = vmul.f32 0.0009765625, %v8237_v21  ;;  %v2019_v41 = vpop.f32.mrb[13].mxu1 }
 0x344   : > { %v2038_v1 = vmul.f32 0.0009765625, %v2019_v41 }
 0x345   : > { %v2047_v44 = vsub.f32 %v2039_v40, %v2043_v39 }
 0x346   : > { %v2046_v45 = vsub.f32 %v2038_v1, %v2042_v42  ;;  %v8240_v46 = vpop.f32.mrb[14].mxu1 }
 0x347   : > { %v2051_v48 = vadd.f32 1e-05, %v2047_v44  ;;  %v2041_v49 = vmul.f32 0.0009765625, %v8240_v46  ;;  %v2029_v50 = vpop.f32.mrb[15].mxu1 }
 0x348   : > { %v2050_v52 = vadd.f32 1e-05, %v2046_v45  ;;  %v2040_v54 = vmul.f32 0.0009765625, %v2029_v50 }
 0x349   : > { %9096 = vrsqrt.f32 %v2051_v48  ;;  %v2049_v56 = vsub.f32 %v2041_v49, %v2045_v47 }
 0x34a   : > { %9098 = vrsqrt.f32 %v2050_v52  ;;  %v2048_v57 = vsub.f32 %v2040_v54, %v2044_v51 }
 0x34b   : > { %v2053_v58 = vadd.f32 1e-05, %v2049_v56 }
 0x34c   : > { %v2052_v59 = vadd.f32 1e-05, %v2048_v57 }
 0x34d   : > { %9100 = vrsqrt.f32 %v2053_v58 }
 0x34e   : > { %9102 = vrsqrt.f32 %v2052_v59 }
 0x353   : > { %v9097_v60 = vpop.eup %9096 }
 0x354   : > { %v9099_v62 = vpop.eup %9098  ;;  %2093 = vperm.xlu0 %9029, %v9097_v60  }
 0x355   : > { %2088 = vperm.xlu1 %9030, %v9099_v62  }
 0x357   : > { %v9101_v0 = vpop.eup %9100 }
 0x358   : > { %v9103_v3 = vpop.eup %9102  ;;  %2103 = vperm.xlu0 %9029, %v9101_v0  }
 0x359   : > { %2098 = vperm.xlu1 %9030, %v9103_v3  }
 0x35c   : > { %2167 = vperm.xlu0 %9029, %v2149_v4  }
 0x35d   : > { %2162 = vperm.xlu1 %9030, %v2148_v5  }
 0x3bc   : > { %v2066_v23 = vpop.permute.xlu1 %2065 }
 0x3bd   : > { %v2061_v55 = vpop.permute.xlu0 %2060  ;;  %v2080_v61 = vsub.f32 %v9708_v13, %v2066_v23  ;;  %v2081_v43 = vsub.f32 %v9710_v17, %v2066_v23 }
 0x3be   : > { %v2078_v63 = vsub.f32 %v9702_v8, %v2061_v55  ;;  %v2079_v30 = vsub.f32 %v9704_v10, %v2061_v55 }
 0x3c1   : > { %v2076_v27 = vpop.permute.xlu0 %2075  ;;  %v2071_v28 = vpop.permute.xlu1 %2070 }
 0x3c2   : > { %v2084_v62 = vsub.f32 %v9724_v2, %v2076_v27  ;;  %v2082_v5 = vsub.f32 %v9714_v20, %v2071_v28 }
 0x3d3   : > { %v2094_v33 = vpop.permute.xlu0 %2093 }
 0x3d4   : > { %v2108_v7 = vmul.f32 %v2094_v33, %v2080_v61  ;;  %v2109_v34 = vmul.f32 %v2094_v33, %v2081_v43  ;;  %v2089_v35 = vpop.permute.xlu1 %2088  ;;  %v2083_v61 = vsub.f32 %v9716_v22, %v2071_v28 }
 0x3d5   : > { %v2106_v11 = vmul.f32 %v2089_v35, %v2078_v63  ;;  %v2107_v36 = vmul.f32 %v2089_v35, %v2079_v30 }
 0x3d6   : > { %v2140_v37 = vmul.f32 %v2126_v6, %v2108_v7  ;;  %v2141_v38 = vmul.f32 %v2126_v6, %v2109_v34 }
 0x3d7   : > { %v2138_v21 = vmul.f32 %v2121_v9, %v2106_v11  ;;  %v2139_v39 = vmul.f32 %v2121_v9, %v2107_v36  ;;  %v2104_v59 = vpop.permute.xlu0 %2103 }
 0x3d8   : > { %v2172_v40 = vadd.f32 %v2158_v12, %v2140_v37  ;;  %v2173_v41 = vadd.f32 %v2158_v12, %v2141_v38  ;;  %v2099_v4 = vpop.permute.xlu1 %2098  ;;  %v2112_v9 = vmul.f32 %v2104_v59, %v2084_v62 }
 0x3d9   : > { %v2170_v42 = vadd.f32 %v2153_v15, %v2138_v21  ;;  %v2171_v1 = vadd.f32 %v2153_v15, %v2139_v39  ;;  %v2085_v15 = vsub.f32 %v9726_v31, %v2076_v27  ;;  %v2110_v23 = vmul.f32 %v2099_v4, %v2082_v5 }
 0x3da   : > { %v7898_v44 = vmul.f32 -1.442695, %v2172_v40  ;;  %v7899_v45 = vmul.f32 -1.442695, %v2173_v41  ;;  %v2144_v30 = vmul.f32 %v9815_v53, %v2112_v9  ;;  %v2111_v7 = vmul.f32 %v2099_v4, %v2083_v61 }
 0x3db   : > { %v7896_v46 = vmul.f32 -1.442695, %v2170_v42  ;;  %v7897_v47 = vmul.f32 -1.442695, %v2171_v1  ;;  %v2113_v63 = vmul.f32 %v2104_v59, %v2085_v15  ;;  %v2168_v33 = vpop.permute.xlu0 %2167  ;;  %v2142_v27 = vmul.f32 %v9817_v18, %v2110_v23 }
 0x3dc   : > { %9104 = vpow2.f32 %v7898_v44  ;;  %v2163_v34 = vpop.permute.xlu1 %2162  ;;  %v2176_v11 = vadd.f32 %v2168_v33, %v2144_v30  ;;  %v2143_v28 = vmul.f32 %v9817_v18, %v2111_v7 }
 0x3dd   : > { %9106 = vpow2.f32 %v7899_v45  ;;  %v2145_v35 = vmul.f32 %v9815_v53, %v2113_v63  ;;  %v2174_v36 = vadd.f32 %v2163_v34, %v2142_v27 }
 0x3de   : > { %9108 = vpow2.f32 %v7896_v46  ;;  %v7902_v38 = vmul.f32 -1.442695, %v2176_v11  ;;  %v2175_v21 = vadd.f32 %v2163_v34, %v2143_v28 }
 0x3df   : > { %9110 = vpow2.f32 %v7897_v47  ;;  %v2177_v37 = vadd.f32 %v2168_v33, %v2145_v35  ;;  %v7900_v39 = vmul.f32 -1.442695, %v2174_v36  ;;  %v2258_v33 = vld [vmem:[%s9366_s13] ss:$8 sm:$0x3] }
 0x3e0   : > { %v7901_v18 = vmul.f32 -1.442695, %v2175_v21 }
 0x3e1   : > { %v7903_v53 = vmul.f32 -1.442695, %v2177_v37 }
 0x3e6   : > { %v9105_v48 = vpop.eup %9104 }
 0x3e7   : > { %v9107_v49 = vpop.eup %9106  ;;  %v2204_v50 = vadd.f32 1.0, %v9105_v48 }
 0x3e8   : > { %v9109_v51 = vpop.eup %9108  ;;  %v2205_v52 = vadd.f32 1.0, %v9107_v49 }
 0x3e9   : > { %v9111_v54 = vpop.eup %9110  ;;  %9112 = vrcp.f32 %v2204_v50  ;;  %v2202_v56 = vadd.f32 1.0, %v9109_v51 }
 0x3ea   : > { %9114 = vrcp.f32 %v2205_v52  ;;  %v2203_v57 = vadd.f32 1.0, %v9111_v54 }
 0x3eb   : > { %9116 = vrcp.f32 %v2202_v56 }
 0x3ec   : > { %9118 = vrcp.f32 %v2203_v57 }
 0x3ed   : > { %9120 = vpow2.f32 %v7902_v38  ;;  %v2743_v38 = vld [vmem:[%s12433_s6 + $0x8] sm:$0xff] }
 0x3ee   : > { %9122 = vpow2.f32 %v7900_v39 }
 0x3ef   : > { %9124 = vpow2.f32 %v7903_v53 }
 0x3f0   : > { %9126 = vpow2.f32 %v7901_v18  ;;  %v2742_v18 = vld [vmem:[%s12433_s6] sm:$0xff] }
 0x3f3   : > { %v9113_v58 = vpop.eup %9112 }
 0x3f4   : > { %v9115_v60 = vpop.eup %9114  ;;  %v9824_v0 = vmul.f32 %v9113_v58, %v2172_v40  ;;  %v7910_v58 = vld [vmem:[%s9366_s13 + $0x10] ss:$8 sm:$0x3] }
 0x3f5   : > { %v9117_v3 = vpop.eup %9116  ;;  %v9832_v55 = vmul.f32 %v9115_v60, %v2173_v41  ;;  %v9967_v62 = vrot.slane %v7910_v58, %v9601_v25 }
 0x3f6   : > { %v9827_v6 = vmul.f32 %v9117_v3, %v2170_v42  ;;  %2608 = vrot.lane.b32.xlu0 %v9824_v0, %s12374_s0  ;;  %v9119_v12 = vpop.eup %9118  ;;  %v9970_v3 = vrot.slane %v7910_v58, %v9603_v26 }
 0x3f7   : > { %v9837_v43 = vmul.f32 %v9119_v12, %v2171_v1  ;;  %v9121_v40 = vpop.eup %9120  ;;  %v2731_v12 = vld [vmem:[%s9416_s30 + $0x8] sm:$0xff] }
 0x3f8   : > { %2606 = vrot.lane.b32.xlu1 %v9827_v6, %s12374_s0  ;;  %v9123_v41 = vpop.eup %9122  ;;  %v2208_v42 = vadd.f32 1.0, %v9121_v40  ;;  %2842 = vmatprep.mubr.f32.mxu0 %v2731_v12 }
 0x3f9   : > { %v9125_v1 = vpop.eup %9124  ;;  %v2206_v44 = vadd.f32 1.0, %v9123_v41 }
 0x3fa   : > { %2616 = vrot.lane.b32.xlu0 %v9832_v55, %s12374_s0  ;;  %v9127_v45 = vpop.eup %9126  ;;  %v2209_v46 = vadd.f32 1.0, %v9125_v1  ;;  %9128 = vrcp.f32 %v2208_v42 }
 0x3fb   : > { %v2207_v47 = vadd.f32 1.0, %v9127_v45  ;;  %9130 = vrcp.f32 %v2206_v44  ;;  %v2745_v45 = vld [vmem:[%s12433_s6 + $0x18] sm:$0xff] }
 0x3fc   : > { %2614 = vrot.lane.b32.xlu1 %v9837_v43, %s12374_s0  ;;  %9132 = vrcp.f32 %v2209_v46 }
 0x3fd   : > { %9134 = vrcp.f32 %v2207_v47 }
 0x3fe   : > { %2236 = vrot.lane.b32.xlu0 %v9824_v0, %s12392_s26 }
 0x400   : > { %2234 = vrot.lane.b32.xlu1 %v9827_v6, %s12392_s26 }
 0x402   : > { %2244 = vrot.lane.b32.xlu0 %v9832_v55, %s12392_s26 }
 0x404   : > { %2242 = vrot.lane.b32.xlu1 %v9837_v43, %s12392_s26  ;;  %v9129_v48 = vpop.eup %9128 }
 0x405   : > { %v9131_v49 = vpop.eup %9130  ;;  %v9885_v50 = vmul.f32 %v9129_v48, %v2176_v11 }
 0x406   : > { %2288 = vrot.lane.b32.xlu0 %v9824_v0, %s12376_s23  ;;  %v9133_v51 = vpop.eup %9132  ;;  %v9889_v52 = vmul.f32 %v9131_v49, %v2174_v36  ;;  %v9995_v36 = vrot.slane %v2258_v33, %v9601_v25  ;;  %v2744_v49 = vld [vmem:[%s12433_s6 + $0x10] sm:$0xff]  ;;  %s12460_s6 = sld [smem:[#allocation16_spill]] }
 0x407   : > { %v9135_v54 = vpop.eup %9134  ;;  %v9893_v56 = vmul.f32 %v9133_v51, %v2177_v37  ;;  %v9998_v37 = vrot.slane %v2258_v33, %v9603_v26 }
 0x408   : > { %2286 = vrot.lane.b32.xlu1 %v9827_v6, %s12376_s23  ;;  %v9897_v57 = vmul.f32 %v9135_v54, %v2175_v21 }
 0x40a   : > { %2296 = vrot.lane.b32.xlu0 %v9832_v55, %s12376_s23 }
 0x40c   : > { %2294 = vrot.lane.b32.xlu1 %v9837_v43, %s12376_s23 }
 0x40e   : > { %2340 = vrot.lane.b32.xlu0 %v9824_v0, %s12389_s1 }
 0x410   : > { %2338 = vrot.lane.b32.xlu1 %v9827_v6, %s12389_s1 }
 0x412   : > { %2348 = vrot.lane.b32.xlu0 %v9832_v55, %s12389_s1 }
 0x414   : > { %2346 = vrot.lane.b32.xlu1 %v9837_v43, %s12389_s1 }
 0x416   : > { %2392 = vrot.lane.b32.xlu0 %v9824_v0, %s12387_s2 }
 0x418   : > { %2390 = vrot.lane.b32.xlu1 %v9827_v6, %s12387_s2 }
 0x41a   : > { %2400 = vrot.lane.b32.xlu0 %v9832_v55, %s12387_s2 }
 0x41c   : > { %2398 = vrot.lane.b32.xlu1 %v9837_v43, %s12387_s2 }
 0x41e   : > { %2452 = vrot.lane.b32.xlu0 %v9824_v0, %s12378_s7 }
 0x420   : > { %2450 = vrot.lane.b32.xlu1 %v9827_v6, %s12378_s7 }
 0x422   : > { %2460 = vrot.lane.b32.xlu0 %v9832_v55, %s12378_s7 }
 0x424   : > { %2458 = vrot.lane.b32.xlu1 %v9837_v43, %s12378_s7 }
 0x426   : > { %2612 = vrot.lane.b32.xlu0 %v9885_v50, %s12374_s0 }
 0x428   : > { %2610 = vrot.lane.b32.xlu1 %v9889_v52, %s12374_s0 }
 0x42a   : > { %2620 = vrot.lane.b32.xlu0 %v9893_v56, %s12374_s0 }
 0x42c   : > { %2618 = vrot.lane.b32.xlu1 %v9897_v57, %s12374_s0  ;;  %s12443_s0 = sld [smem:[#allocation11_spill]] }
 0x42e   : > { %2240 = vrot.lane.b32.xlu0 %v9885_v50, %s12392_s26 }
 0x430   : > { %2502 = vrot.lane.b32.xlu1 %v9827_v6, %s12385_s10 }
 0x432   : > { %2248 = vrot.lane.b32.xlu0 %v9893_v56, %s12392_s26 }
 0x434   : > { %2510 = vrot.lane.b32.xlu1 %v9837_v43, %s12385_s10 }
 0x436   : > { %2292 = vrot.lane.b32.xlu0 %v9885_v50, %s12376_s23 }
 0x438   : > { %2238 = vrot.lane.b32.xlu1 %v9889_v52, %s12392_s26 }
 0x43a   : > { %2300 = vrot.lane.b32.xlu0 %v9893_v56, %s12376_s23 }
 0x43c   : > { %2246 = vrot.lane.b32.xlu1 %v9897_v57, %s12392_s26 }
 0x43e   : > { %2344 = vrot.lane.b32.xlu0 %v9885_v50, %s12389_s1 }
 0x440   : > { %2290 = vrot.lane.b32.xlu1 %v9889_v52, %s12376_s23 }
 0x442   : > { %2352 = vrot.lane.b32.xlu0 %v9893_v56, %s12389_s1 }
 0x444   : > { %2298 = vrot.lane.b32.xlu1 %v9897_v57, %s12376_s23 }
 0x446   : > { %2396 = vrot.lane.b32.xlu0 %v9885_v50, %s12387_s2 }
 0x448   : > { %2342 = vrot.lane.b32.xlu1 %v9889_v52, %s12389_s1 }
 0x44a   : > { %2404 = vrot.lane.b32.xlu0 %v9893_v56, %s12387_s2 }
 0x44c   : > { %2350 = vrot.lane.b32.xlu1 %v9897_v57, %s12389_s1 }
 0x44e   : > { %2456 = vrot.lane.b32.xlu0 %v9885_v50, %s12378_s7 }
 0x450   : > { %2394 = vrot.lane.b32.xlu1 %v9889_v52, %s12387_s2 }
 0x452   : > { %2464 = vrot.lane.b32.xlu0 %v9893_v56, %s12378_s7 }
 0x454   : > { %2402 = vrot.lane.b32.xlu1 %v9897_v57, %s12387_s2 }
 0x456   : > { %2504 = vrot.lane.b32.xlu0 %v9824_v0, %s12385_s10 }
 0x458   : > { %2554 = vrot.lane.b32.xlu1 %v9827_v6, %s12380_s11 }
 0x45a   : > { %2512 = vrot.lane.b32.xlu0 %v9832_v55, %s12385_s10 }
 0x45c   : > { %2562 = vrot.lane.b32.xlu1 %v9837_v43, %s12380_s11 }
 0x45e   : > { %2508 = vrot.lane.b32.xlu0 %v9885_v50, %s12385_s10 }
 0x460   : > { %2454 = vrot.lane.b32.xlu1 %v9889_v52, %s12378_s7 }
 0x462   : > { %2516 = vrot.lane.b32.xlu0 %v9893_v56, %s12385_s10 }
 0x464   : > { %2462 = vrot.lane.b32.xlu1 %v9897_v57, %s12378_s7 }
 0x466   : > { %2556 = vrot.lane.b32.xlu0 %v9824_v0, %s12380_s11 }
 0x468   : > { %2506 = vrot.lane.b32.xlu1 %v9889_v52, %s12385_s10  ;;  %v2609_v59 = vpop.permute.xlu0 %2608 }
 0x46a   : > { %v2607_v60 = vpop.permute.xlu1 %2606  ;;  %2564 = vrot.lane.b32.xlu0 %v9832_v55, %s12380_s11 }
 0x46c   : > { %2514 = vrot.lane.b32.xlu1 %v9897_v57, %s12385_s10  ;;  %v2617_v4 = vpop.permute.xlu0 %2616 }
 0x46d   : > { %v2623_v5 = vsel %vm1648_vm8, %v2609_v59, %v2617_v4  ;;  %v2627_v9 = vsel %vm1648_vm8, %v2617_v4, %v2609_v59 }
 0x46e   : > { %v2644_v15 = vmul.f32 %v9967_v62, %v2623_v5  ;;  %v2645_v23 = vmul.f32 %v9970_v3, %v2627_v9  ;;  %v2615_v61 = vpop.permute.xlu1 %2614  ;;  %2560 = vrot.lane.b32.xlu0 %v9885_v50, %s12380_s11 }
 0x46f   : > { %v2622_v63 = vsel %vm1648_vm8, %v2607_v60, %v2615_v61  ;;  %v2626_v30 = vsel %vm1648_vm8, %v2615_v61, %v2607_v60 }
 0x470   : > { %v2642_v7 = vmul.f32 %v9967_v62, %v2622_v63  ;;  %v2643_v27 = vmul.f32 %v9970_v3, %v2626_v30  ;;  %2558 = vrot.lane.b32.xlu1 %v9889_v52, %s12380_s11  ;;  %v2237_v34 = vpop.permute.xlu0 %2236 }
 0x472   : > { %v8519_v35 = vpack.c.bf16 %v2644_v15, %v2642_v7  ;;  %v2235_v11 = vpop.permute.xlu1 %2234  ;;  %2568 = vrot.lane.b32.xlu0 %v9893_v56, %s12380_s11  ;;  %v8517_v28 = vpack.c.bf16 %v2645_v23, %v2643_v27 }
 0x474   : > { %2566 = vrot.lane.b32.xlu1 %v9897_v57, %s12380_s11  ;;  %8518 = vmatprep.subr.bf16.mxu1 %v8517_v28  ;;  %v2245_v21 = vpop.permute.xlu0 %2244 }
 0x475   : > { %8520 = vmatpush1.bf16.msra.mxu1 %v8519_v35  ;;  %v2251_v39 = vsel %vm1479_vm2, %v2237_v34, %v2245_v21  ;;  %v2255_v53 = vsel %vm1479_vm2, %v2245_v21, %v2237_v34 }
 0x476   : > { %v2272_v40 = vmul.f32 %v9995_v36, %v2255_v53  ;;  %v2273_v41 = vmul.f32 %v9998_v37, %v2251_v39  ;;  %v2243_v42 = vpop.permute.xlu1 %2242  ;;  %2753 = vperm.xlu0 %9029, %v2743_v38  }
 0x477   : > { %v2250_v1 = vsel %vm1479_vm2, %v2235_v11, %v2243_v42  ;;  %v2254_v44 = vsel %vm1479_vm2, %v2243_v42, %v2235_v11 }
 0x478   : > { %v2270_v46 = vmul.f32 %v9995_v36, %v2254_v44  ;;  %v2271_v47 = vmul.f32 %v9998_v37, %v2250_v1  ;;  %2748 = vperm.xlu1 %9030, %v2742_v18   ;;  %v10017_v48 = vpop.permute.xlu0 %2288 }
 0x47a   : > { %v8455_v51 = vpack.c.bf16 %v2272_v40, %v2270_v46  ;;  %v10020_v54 = vpop.permute.xlu1 %2286  ;;  %2763 = vperm.xlu0 %9029, %v2745_v45   ;;  %v8453_v58 = vpack.c.bf16 %v2273_v41, %v2271_v47 }
 0x47c   : > { %2758 = vperm.xlu1 %9030, %v2744_v49   ;;  %8454 = vmatprep.subr.bf16.mxu0 %v8453_v58  ;;  %v2297_v59 = vpop.permute.xlu0 %2296  ;;  %v2732_v49 = vld [vmem:[%s9416_s30 + $0x10] sm:$0xff]  ;;  %v7904_v58 = vld [vmem:[%s9366_s13 + $0x1] ss:$8 sm:$0x3] }
 0x47d   : > { %8456 = vmatpush1.bf16.msra.mxu0 %v8455_v51 }
 0x47e   : > { %v2295_v60 = vpop.permute.xlu1 %2294 }
 0x480   : > { %v10022_v4 = vpop.permute.xlu0 %2340 }
 0x482   : > { %v10024_v5 = vpop.permute.xlu1 %2338 }
 0x484   : > { %v10026_v9 = vpop.permute.xlu0 %2348 }
 0x486   : > { %v10028_v12 = vpop.permute.xlu1 %2346 }
 0x488   : > { %v10030_v15 = vpop.permute.xlu0 %2392 }
 0x48a   : > { %v10032_v23 = vpop.permute.xlu1 %2390 }
 0x48c   : > { %v10034_v61 = vpop.permute.xlu0 %2400 }
 0x48e   : > { %v10036_v63 = vpop.permute.xlu1 %2398 }
 0x490   : > { %v10038_v30 = vpop.permute.xlu0 %2452 }
 0x492   : > { %v10040_v33 = vpop.permute.xlu1 %2450 }
 0x494   : > { %v10042_v7 = vpop.permute.xlu0 %2460 }
 0x496   : > { %v10044_v27 = vpop.permute.xlu1 %2458 }
 0x498   : > { %v2613_v34 = vpop.permute.xlu0 %2612 }
 0x49a   : > { %v2611_v35 = vpop.permute.xlu1 %2610 }
 0x49c   : > { %v2621_v11 = vpop.permute.xlu0 %2620 }
 0x49d   : > { %v2625_v28 = vsel %vm1648_vm8, %v2613_v34, %v2621_v11  ;;  %v2629_v38 = vsel %vm1648_vm8, %v2621_v11, %v2613_v34  ;;  %v10070_v34 = vrot.slane %v7904_v58, %v9603_v26  ;;  %v2303_v11 = vsel %vm1502_vm1, %v10017_v48, %v2297_v59 }
 0x49e   : > { %v2648_v21 = vmul.f32 %v9967_v62, %v2625_v28  ;;  %v2649_v39 = vmul.f32 %v9970_v3, %v2629_v38  ;;  %v2619_v53 = vpop.permute.xlu1 %2618  ;;  %v2302_v28 = vsel %vm1502_vm1, %v10020_v54, %v2295_v60 }
 0x49f   : > { %v2624_v18 = vsel %vm1648_vm8, %v2611_v35, %v2619_v53  ;;  %v2628_v40 = vsel %vm1648_vm8, %v2619_v53, %v2611_v35  ;;  %v2738_v53 = vld [vmem:[%s9416_s30 + $0x40] sm:$0xff] }
 0x4a0   : > { %v2646_v41 = vmul.f32 %v9967_v62, %v2624_v18  ;;  %v2647_v42 = vmul.f32 %v9970_v3, %v2628_v40  ;;  %v2241_v1 = vpop.permute.xlu0 %2240  ;;  %v2735_v3 = vld [vmem:[%s9416_s30 + $0x28] sm:$0xff]  ;;  %v2315_v18 = vrot.slane %v7904_v58, %v9601_v25  ;;  %v2307_v40 = vsel %vm1502_vm1, %v2297_v59, %v10017_v48 }
 0x4a2   : > { %v8523_v44 = vpack.c.bf16 %v2648_v21, %v2646_v41  ;;  %v10058_v45 = vpop.permute.xlu1 %2502  ;;  %v8521_v46 = vpack.c.bf16 %v2649_v39, %v2647_v42  ;;  %v2325_v41 = vmul.f32 %v10070_v34, %v2303_v11  ;;  %v7905_v42 = vld [vmem:[%s9366_s13 + $0x2] ss:$8 sm:$0x3]  ;;  %v2324_v11 = vmul.f32 %v2315_v18, %v2307_v40 }
 0x4a4   : > { %8522 = vmatprep.subr.bf16.mxu1 %v8521_v46  ;;  %v2249_v47 = vpop.permute.xlu0 %2248  ;;  %v2323_v46 = vmul.f32 %v10070_v34, %v2302_v28 }
 0x4a5   : > { %8524 = vmatpush1.bf16.msra.mxu1 %v8523_v44  ;;  %v2253_v21 = vsel %vm1479_vm2, %v2241_v1, %v2249_v47  ;;  %v2257_v39 = vsel %vm1479_vm2, %v2249_v47, %v2241_v1  ;;  %v2306_v1 = vsel %vm1502_vm1, %v2295_v60, %v10020_v54  ;;  %v10108_v60 = vrot.slane %v7905_v42, %v9603_v26 }
 0x4a6   : > { %v10061_v51 = vpop.permute.xlu1 %2510  ;;  %8526 = vmatprep.subr.bf16.mxu1 %v9792_v14  ;;  %v2276_v48 = vmul.f32 %v9995_v36, %v2257_v39  ;;  %v2277_v59 = vmul.f32 %v9998_v37, %v2253_v21  ;;  %v2322_v28 = vmul.f32 %v2315_v18, %v2306_v1  ;;  %v8461_v1 = vpack.c.bf16 %v2325_v41, %v2323_v46  ;;  %v7906_v46 = vld [vmem:[%s9366_s13 + $0x3] ss:$8 sm:$0x3] }
 0x4a8   : > { %7911 = vmatmul.mubr.msk.f32.vlgmr.msra.gmra.mrb[16].mxu1 %vm1083_vm0, %v2732_v49  ;;  %v2293_v62 = vpop.permute.xlu0 %2292 }
 0x4a9   : > { %8528 = vmatpush3.bf16.msra.mxu1 %v9792_v14  ;;  %2937 = vmatprep.mubr.f32.mxu1 %v12372_v16 }
 0x4aa   : > { %v2239_v35 = vpop.permute.xlu1 %2238  ;;  %8530 = vmatprep.subr.bf16.mxu1 %v9799_v19 }
 0x4ac   : > { %7912 = vmatmul.mubr.msk.f32.gmra.mrb[18].mxu1 %vm1083_vm0, %v2735_v3  ;;  %v2301_v38 = vpop.permute.xlu0 %2300 }
 0x4ad   : > { %8532 = vmatpush3.bf16.msra.mxu1 %v9799_v19  ;;  %2943 = vmatprep.mubr.f32.mxu1 %v12372_v16 }
 0x4ae   : > { %v2247_v44 = vpop.permute.xlu1 %2246  ;;  %8534 = vmatprep.subr.bf16.mxu1 %v9805_v29 }
 0x4af   : > { %v2252_v47 = vsel %vm1479_vm2, %v2239_v35, %v2247_v44  ;;  %v2256_v49 = vsel %vm1479_vm2, %v2247_v44, %v2239_v35  ;;  %v2741_v35 = vld [vmem:[%s9416_s30 + $0x58] sm:$0xff]  ;;  %v2354_v44 = vsel %vm1526_vm3, %v10024_v5, %v10028_v12 }
 0x4b0   : > { %v2274_v58 = vmul.f32 %v9995_v36, %v2256_v49  ;;  %v2275_v3 = vmul.f32 %v9998_v37, %v2252_v47  ;;  %7913 = vmatmul.mubr.msk.f32.gmra.mrb[20].mxu1 %vm1083_vm0, %v2738_v53  ;;  %v2345_v54 = vpop.permute.xlu0 %2344  ;;  %v2355_v37 = vsel %vm1526_vm3, %v10022_v4, %v10026_v9  ;;  %v2956_v53 = vld [vmem:[%s12440_s18] sm:$0xff]  ;;  %v2367_v47 = vrot.slane %v7905_v42, %v9601_v25 }
 0x4b1   : > { %8536 = vmatpush3.bf16.msra.mxu1 %v9805_v29  ;;  %2949 = vmatprep.mubr.f32.mxu1 %v12372_v16  ;;  %v2305_v49 = vsel %vm1502_vm1, %v2293_v62, %v2301_v38  ;;  %v2377_v41 = vmul.f32 %v10108_v60, %v2355_v37 }
 0x4b2   : > { %v8459_v39 = vpack.c.bf16 %v2276_v48, %v2274_v58  ;;  %v2291_v21 = vpop.permute.xlu1 %2290  ;;  %8538 = vmatprep.subr.bf16.mxu1 %v9811_v32  ;;  %v8457_v36 = vpack.c.bf16 %v2277_v59, %v2275_v3  ;;  %v2309_v48 = vsel %vm1502_vm1, %v2301_v38, %v2293_v62  ;;  %v2957_v59 = vld [vmem:[%s12440_s18 + $0x8] sm:$0xff]  ;;  %v8463_v58 = vpack.c.bf16 %v2324_v11, %v2322_v28 }
 0x4b3   : > { %v2359_v3 = vsel %vm1526_vm3, %v10026_v9, %v10022_v4  ;;  %v2358_v62 = vsel %vm1526_vm3, %v10028_v12, %v10024_v5  ;;  %v2375_v38 = vmul.f32 %v10108_v60, %v2354_v44  ;;  %v2328_v9 = vmul.f32 %v2315_v18, %v2309_v48  ;;  %v2959_v5 = vld [vmem:[%s12440_s18 + $0x18] sm:$0xff] }
 0x4b4   : > { %8458 = vmatprep.subr.bf16.mxu0 %v8457_v36  ;;  %7914 = vmatmul.mubr.msk.f32.gmra.mrb[22].mxu1 %vm1083_vm0, %v2741_v35  ;;  %v2353_v40 = vpop.permute.xlu0 %2352  ;;  %v2958_v35 = vld [vmem:[%s12440_s18 + $0x10] sm:$0xff]  ;;  %v2329_v28 = vmul.f32 %v10070_v34, %v2305_v49  ;;  %v2376_v12 = vmul.f32 %v2367_v47, %v2359_v3  ;;  %v2374_v44 = vmul.f32 %v2367_v47, %v2358_v62 }
 0x4b5   : > { %8460 = vmatpush1.bf16.msra.mxu0 %v8459_v39  ;;  %8540 = vmatpush3.bf16.msra.mxu1 %v9811_v32  ;;  %v8469_v48 = vpack.c.bf16 %v2377_v41, %v2375_v38  ;;  %v2410_v41 = vsel %vm1550_vm4, %v10036_v63, %v10032_v23 }
 0x4b6   : > { %v2299_v42 = vpop.permute.xlu1 %2298  ;;  %8462 = vmatprep.subr.bf16.mxu0 %v8461_v1  ;;  %8257 = vmatprep.mubr.msk.f32.mxu1 %vm1285_vm10, %v2956_v53  ;;  %v2423_v53 = vrot.slane %v7906_v46, %v9603_v26  ;;  %v8471_v3 = vpack.c.bf16 %v2376_v12, %v2374_v44 }
 0x4b7   : > { %v2304_v11 = vsel %vm1502_vm1, %v2291_v21, %v2299_v42  ;;  %v2308_v4 = vsel %vm1502_vm1, %v2299_v42, %v2291_v21  ;;  %v2419_v42 = vrot.slane %v7906_v46, %v9601_v25 }
 0x4b8   : > { %v2326_v39 = vmul.f32 %v2315_v18, %v2308_v4  ;;  %v2327_v36 = vmul.f32 %v10070_v34, %v2304_v11  ;;  %8258 = vmatmul.mubr.msk.f32.vlgmr.msra.gmra.mrb[24].mxu1 %vm1285_vm10, %v2957_v59  ;;  %v2397_v37 = vpop.permute.xlu0 %2396  ;;  %v2407_v18 = vsel %vm1550_vm4, %v10030_v15, %v10034_v61  ;;  %v2406_v34 = vsel %vm1550_vm4, %v10032_v23, %v10036_v63 }
 0x4b9   : > { %8464 = vmatpush1.bf16.msra.mxu0 %v8463_v58  ;;  %8260 = vmatprep.mubr.msk.f32.mxu1 %vm1285_vm10, %v2958_v35  ;;  %v2357_v59 = vsel %vm1526_vm3, %v2345_v54, %v2353_v40  ;;  %v2361_v58 = vsel %vm1526_vm3, %v2353_v40, %v2345_v54  ;;  %v2411_v35 = vsel %vm1550_vm4, %v10034_v61, %v10030_v15 }
 0x4ba   : > { %v8467_v1 = vpack.c.bf16 %v2328_v9, %v2326_v39  ;;  %v2343_v16 = vpop.permute.xlu1 %2342  ;;  %v8465_v21 = vpack.c.bf16 %v2329_v28, %v2327_v36  ;;  %v2429_v62 = vmul.f32 %v2423_v53, %v2407_v18  ;;  %v2427_v38 = vmul.f32 %v2423_v53, %v2406_v34 }
 0x4bb   : > { %v2380_v46 = vmul.f32 %v2367_v47, %v2361_v58  ;;  %v2381_v4 = vmul.f32 %v10108_v60, %v2357_v59  ;;  %v2426_v23 = vmul.f32 %v2419_v42, %v2410_v41  ;;  %v8485_v41 = vpack.c.bf16 %v9832_v55, %v9837_v43 }
 0x4bc   : > { %8466 = vmatprep.subr.bf16.mxu0 %v8465_v21  ;;  %8261 = vmatmul.mubr.msk.f32.gmra.mrb[26].mxu1 %vm1285_vm10, %v2959_v5  ;;  %v2405_v49 = vpop.permute.xlu0 %2404  ;;  %v2428_v5 = vmul.f32 %v2419_v42, %v2411_v35  ;;  %v8477_v12 = vpack.c.bf16 %v2429_v62, %v2427_v38  ;;  %v2467_v55 = vsel %vm1576_vm5, %v10038_v30, %v10042_v7 }
 0x4bd   : > { %8468 = vmatpush1.bf16.msra.mxu0 %v8467_v1  ;;  %v2413_v44 = vsel %vm1550_vm4, %v2405_v49, %v2397_v37  ;;  %v2466_v43 = vsel %vm1576_vm5, %v10040_v33, %v10044_v27 }
 0x4be   : > { %v2351_v11 = vpop.permute.xlu1 %2350  ;;  %8470 = vmatprep.subr.bf16.mxu0 %v8469_v48  ;;  %v2432_v18 = vmul.f32 %v2419_v42, %v2413_v44 }
 0x4bf   : > { %v2356_v54 = vsel %vm1526_vm3, %v2343_v16, %v2351_v11  ;;  %v2360_v40 = vsel %vm1526_vm3, %v2351_v11, %v2343_v16  ;;  %v2409_v16 = vsel %vm1550_vm4, %v2397_v37, %v2405_v49 }
 0x4c0   : > { %v2378_v9 = vmul.f32 %v2367_v47, %v2360_v40  ;;  %v2379_v15 = vmul.f32 %v10108_v60, %v2356_v54  ;;  %v2457_v61 = vpop.permute.xlu0 %2456  ;;  %v8479_v60 = vpack.c.bf16 %v2428_v5, %v2426_v23  ;;  %v2433_v34 = vmul.f32 %v2423_v53, %v2409_v16 }
 0x4c1   : > { %8472 = vmatpush1.bf16.msra.mxu0 %v8471_v3  ;;  %v7907_v3 = vld [vmem:[%s9366_s13 + $0x5] ss:$8 sm:$0x3]  ;;  %v8487_v40 = vpack.c.bf16 %v9824_v0, %v9827_v6 }
 0x4c2   : > { %v8475_v28 = vpack.c.bf16 %v2380_v46, %v2378_v9  ;;  %v2395_v39 = vpop.permute.xlu1 %2394  ;;  %v8473_v36 = vpack.c.bf16 %v2381_v4, %v2379_v15  ;;  %v2483_v49 = vrot.slane %v7907_v3, %v9603_v26  ;;  %v2479_v38 = vrot.slane %v7907_v3, %v9601_v25 }
 0x4c3   : > { %v8489_v15 = vpack.c.bf16 %v9893_v56, %v9897_v57 }
 0x4c4   : > { %8474 = vmatprep.subr.bf16.mxu0 %v8473_v36  ;;  %v2465_v63 = vpop.permute.xlu0 %2464 }
 0x4c5   : > { %8476 = vmatpush1.bf16.msra.mxu0 %v8475_v28  ;;  %v2488_v28 = vmul.f32 %v2479_v38, %v2467_v55  ;;  %v2473_v6 = vsel %vm1576_vm5, %v2465_v63, %v2457_v61 }
 0x4c6   : > { %v2403_v47 = vpop.permute.xlu1 %2402  ;;  %8478 = vmatprep.subr.bf16.mxu0 %v8477_v12  ;;  %v2493_v44 = vmul.f32 %v2483_v49, %v2473_v6 }
 0x4c7   : > { %v2408_v1 = vsel %vm1550_vm4, %v2395_v39, %v2403_v47  ;;  %v2412_v21 = vsel %vm1550_vm4, %v2403_v47, %v2395_v39  ;;  %v2486_v39 = vmul.f32 %v2479_v38, %v2466_v43 }
 0x4c8   : > { %v2430_v48 = vmul.f32 %v2419_v42, %v2412_v21  ;;  %v2431_v59 = vmul.f32 %v2423_v53, %v2408_v1  ;;  %v2505_v58 = vpop.permute.xlu0 %2504  ;;  %v2471_v42 = vsel %vm1576_vm5, %v10042_v7, %v10038_v30  ;;  %v2470_v53 = vsel %vm1576_vm5, %v10044_v27, %v10040_v33  ;;  %v7908_v30 = vld [vmem:[%s9366_s13 + $0x6] ss:$8 sm:$0x3] }
 0x4c9   : > { %8480 = vmatpush1.bf16.msra.mxu0 %v8479_v60  ;;  %v2489_v46 = vmul.f32 %v2483_v49, %v2471_v42  ;;  %v2487_v4 = vmul.f32 %v2483_v49, %v2470_v53  ;;  %v8491_v7 = vpack.c.bf16 %v9885_v50, %v9889_v52  ;;  %v2469_v33 = vsel %vm1576_vm5, %v2457_v61, %v2465_v63 }
 0x4ca   : > { %v8483_v35 = vpack.c.bf16 %v2432_v18, %v2430_v48  ;;  %v10191_v62 = vpop.permute.xlu1 %2554  ;;  %v8481_v37 = vpack.c.bf16 %v2433_v34, %v2431_v59  ;;  %v8495_v57 = vpack.c.bf16 %v2488_v28, %v2486_v39  ;;  %v2531_v5 = vrot.slane %v7908_v30, %v9601_v25 }
 0x4cb   : > { %v8493_v0 = vpack.c.bf16 %v2489_v46, %v2487_v4  ;;  %v2535_v23 = vrot.slane %v7908_v30, %v9603_v26  ;;  %v2522_v50 = vsel %vm1600_vm6, %v10061_v51, %v10058_v45  ;;  %v2492_v12 = vmul.f32 %v2479_v38, %v2469_v33 }
 0x4cc   : > { %8482 = vmatprep.subr.bf16.mxu0 %v8481_v37  ;;  %v2513_v11 = vpop.permute.xlu0 %2512  ;;  %v2518_v18 = vsel %vm1600_vm6, %v10058_v45, %v10061_v51 }
 0x4cd   : > { %8484 = vmatpush1.bf16.msra.mxu0 %v8483_v35  ;;  %v2523_v56 = vsel %vm1600_vm6, %v2513_v11, %v2505_v58  ;;  %v2519_v61 = vsel %vm1600_vm6, %v2505_v58, %v2513_v11  ;;  %v2539_v34 = vmul.f32 %v2535_v23, %v2522_v50  ;;  %v7909_v35 = vld [vmem:[%s9366_s13 + $0x7] ss:$8 sm:$0x3]  ;;  %v2538_v37 = vmul.f32 %v2531_v5, %v2518_v18 }
 0x4ce   : > { %v10205_v54 = vpop.permute.xlu1 %2562  ;;  %8486 = vmatprep.subr.bf16.mxu0 %v8485_v41  ;;  %v2541_v47 = vmul.f32 %v2535_v23, %v2523_v56  ;;  %v2540_v48 = vmul.f32 %v2531_v5, %v2519_v61  ;;  %v2587_v53 = vrot.slane %v7909_v35, %v9603_v26  ;;  %v2583_v30 = vrot.slane %v7909_v35, %v9601_v25  ;;  %v2734_v18 = vld [vmem:[%s9416_s30 + $0x20] sm:$0xff] }
 0x4d0   : > { %v2509_v9 = vpop.permute.xlu0 %2508  ;;  %v8501_v42 = vpack.c.bf16 %v2541_v47, %v2539_v34  ;;  %v8503_v51 = vpack.c.bf16 %v2540_v48, %v2538_v37  ;;  %v2733_v34 = vld [vmem:[%s9416_s30 + $0x18] sm:$0xff] }
 0x4d1   : > { %8488 = vmatpush1.bf16.msra.mxu0 %v8487_v40  ;;  %v2737_v48 = vld [vmem:[%s9416_s30 + $0x38] sm:$0xff] }
 0x4d2   : > { %v2455_v36 = vpop.permute.xlu1 %2454  ;;  %8490 = vmatprep.subr.bf16.mxu0 %v8489_v15 }
 0x4d4   : > { %v2517_v27 = vpop.permute.xlu0 %2516 }
 0x4d5   : > { %8492 = vmatpush1.bf16.msra.mxu0 %v8491_v7  ;;  %v2521_v11 = vsel %vm1600_vm6, %v2509_v9, %v2517_v27  ;;  %v2570_v7 = vsel %vm1624_vm7, %v10191_v62, %v10205_v54 }
 0x4d6   : > { %v2463_v52 = vpop.permute.xlu1 %2462  ;;  %8494 = vmatprep.subr.bf16.mxu0 %v8493_v0  ;;  %v2544_v43 = vmul.f32 %v2531_v5, %v2521_v11 }
 0x4d7   : > { %v2468_v63 = vsel %vm1576_vm5, %v2455_v36, %v2463_v52  ;;  %v2472_v16 = vsel %vm1576_vm5, %v2463_v52, %v2455_v36  ;;  %v2590_v52 = vmul.f32 %v2583_v30, %v2570_v7 }
 0x4d8   : > { %v2490_v60 = vmul.f32 %v2479_v38, %v2468_v63  ;;  %v2491_v1 = vmul.f32 %v2483_v49, %v2472_v16  ;;  %v2557_v21 = vpop.permute.xlu0 %2556  ;;  %v2525_v49 = vsel %vm1600_vm6, %v2517_v27, %v2509_v9  ;;  %v2574_v38 = vsel %vm1624_vm7, %v10205_v54, %v10191_v62 }
 0x4d9   : > { %8496 = vmatpush1.bf16.msra.mxu0 %v8495_v57  ;;  %v2545_v40 = vmul.f32 %v2535_v23, %v2525_v49  ;;  %v2591_v33 = vmul.f32 %v2587_v53, %v2574_v38  ;;  %v2960_v38 = vld [vmem:[%s12441_s22] sm:$0xff] }
 0x4da   : > { %v8499_v59 = vpack.c.bf16 %v2492_v12, %v2490_v60  ;;  %v2507_v58 = vpop.permute.xlu1 %2506  ;;  %v8497_v3 = vpack.c.bf16 %v2493_v44, %v2491_v1 }
 0x4dc   : > { %8498 = vmatprep.subr.bf16.mxu0 %v8497_v3  ;;  %v2565_v41 = vpop.permute.xlu0 %2564  ;;  %v2739_v3 = vld [vmem:[%s9416_s30 + $0x48] sm:$0xff] }
 0x4dd   : > { %8500 = vmatpush1.bf16.msra.mxu0 %v8499_v59  ;;  %v2575_v45 = vsel %vm1624_vm7, %v2565_v41, %v2557_v21  ;;  %v2571_v9 = vsel %vm1624_vm7, %v2557_v21, %v2565_v41  ;;  %v2730_v21 = vld [vmem:[%s9416_s30] sm:$0xff]  ;;  %v2736_v59 = vld [vmem:[%s9416_s30 + $0x30] sm:$0xff] }
 0x4de   : > { %v2515_v55 = vpop.permute.xlu1 %2514  ;;  %8502 = vmatprep.subr.bf16.mxu0 %v8501_v42  ;;  %v2593_v15 = vmul.f32 %v2587_v53, %v2575_v45  ;;  %v2592_v56 = vmul.f32 %v2583_v30, %v2571_v9  ;;  %v2962_v9 = vld [vmem:[%s12441_s22 + $0x10] sm:$0xff] }
 0x4df   : > { %v2520_v46 = vsel %vm1600_vm6, %v2507_v58, %v2515_v55  ;;  %v2524_v4 = vsel %vm1600_vm6, %v2515_v55, %v2507_v58  ;;  %v2740_v58 = vld [vmem:[%s9416_s30 + $0x50] sm:$0xff] }
 0x4e0   : > { %v2542_v28 = vmul.f32 %v2531_v5, %v2520_v46  ;;  %v2543_v39 = vmul.f32 %v2535_v23, %v2524_v4  ;;  %v2561_v36 = vpop.permute.xlu0 %2560  ;;  %v8509_v50 = vpack.c.bf16 %v2593_v15, %v2591_v33  ;;  %v8511_v61 = vpack.c.bf16 %v2592_v56, %v2590_v52  ;;  %v2963_v4 = vld [vmem:[%s12441_s22 + $0x18] sm:$0xff] }
 0x4e1   : > { %8504 = vmatpush1.bf16.msra.mxu0 %v8503_v51 }
 0x4e2   : > { %v8507_v27 = vpack.c.bf16 %v2544_v43, %v2542_v28  ;;  %v2559_v0 = vpop.permute.xlu1 %2558  ;;  %v8505_v6 = vpack.c.bf16 %v2545_v40, %v2543_v39 }
 0x4e4   : > { %8506 = vmatprep.subr.bf16.mxu0 %v8505_v6  ;;  %v2569_v57 = vpop.permute.xlu0 %2568 }
 0x4e5   : > { %8508 = vmatpush1.bf16.msra.mxu0 %v8507_v27  ;;  %v2573_v5 = vsel %vm1624_vm7, %v2561_v36, %v2569_v57  ;;  %v2577_v23 = vsel %vm1624_vm7, %v2569_v57, %v2561_v36 }
 0x4e6   : > { %v2596_v12 = vmul.f32 %v2583_v30, %v2573_v5  ;;  %v2597_v62 = vmul.f32 %v2587_v53, %v2577_v23  ;;  %v2567_v54 = vpop.permute.xlu1 %2566  ;;  %8510 = vmatprep.subr.bf16.mxu0 %v8509_v50 }
 0x4e7   : > { %v2572_v63 = vsel %vm1624_vm7, %v2559_v0, %v2567_v54  ;;  %v2576_v16 = vsel %vm1624_vm7, %v2567_v54, %v2559_v0 }
 0x4e8   : > { %v2594_v44 = vmul.f32 %v2583_v30, %v2572_v63  ;;  %v2595_v47 = vmul.f32 %v2587_v53, %v2576_v16  ;;  %v2961_v53 = vld [vmem:[%s12441_s22 + $0x8] sm:$0xff] }
 0x4e9   : > { %8512 = vmatpush1.bf16.msra.mxu0 %v8511_v61 }
 0x4ea   : > { %v8515_v60 = vpack.c.bf16 %v2596_v12, %v2594_v44  ;;  %v8513_v1 = vpack.c.bf16 %v2597_v62, %v2595_v47 }
 0x4ec   : > { %8514 = vmatprep.subr.bf16.mxu0 %v8513_v1 }
 0x4ed   : > { %8516 = vmatpush1.bf16.msra.mxu0 %v8515_v60 }
 0x4f0   : > { %2843 = vmatmul.mubr.f32.vlgmr.msra.gmra.mrb[16].mxu0 %v2730_v21 }
 0x4f1   : > { %2848 = vmatprep.mubr.f32.mxu0 %v2734_v18 }
 0x4f4   : > { %2849 = vmatmul.mubr.f32.gmra.mrb[18].mxu0 %v2733_v34 }
 0x4f5   : > { %2854 = vmatprep.mubr.f32.mxu0 %v2737_v48  ;;  %v2754_v56 = vpop.permute.xlu0 %2753 }
 0x4f7   : > { %v2749_v30 = vpop.permute.xlu1 %2748 }
 0x4f8   : > { %2855 = vmatmul.mubr.f32.gmra.mrb[20].mxu0 %v2736_v59 }
 0x4f9   : > { %2860 = vmatprep.mubr.f32.mxu0 %v2740_v58  ;;  %v2764_v60 = vpop.permute.xlu0 %2763 }
 0x4fb   : > { %v2759_v62 = vpop.permute.xlu1 %2758 }
 0x4fc   : > { %2861 = vmatmul.mubr.f32.gmra.mrb[22].mxu0 %v2739_v3 }
 0x57b   : > { %v2933_v35 = vpop.f32.mrb[16].mxu1 }
 0x57c   : > { %v2935_v37 = vpop.f32.mrb[17].mxu1 }
 0x57f   : > { %v2939_v11 = vpop.f32.mrb[18].mxu1 }
 0x580   : > { %v2941_v49 = vpop.f32.mrb[19].mxu1 }
 0x583   : > { %v2945_v41 = vpop.f32.mrb[20].mxu1 }
 0x584   : > { %v2947_v42 = vpop.f32.mrb[21].mxu1 }
 0x587   : > { %v2951_v45 = vpop.f32.mrb[22].mxu1 }
 0x588   : > { %v2953_v51 = vpop.f32.mrb[23].mxu1 }
 0x58b   : > { %v8259_v55 = vpop.f32.mrb[24].mxu1 }
 0x58c   : > { %v3048_v43 = vadd.f32 %v8259_v55, %v2961_v53  ;;  %v3042_v40 = vpop.f32.mrb[25].mxu1 }
 0x58d   : > { %v3043_v46 = vadd.f32 %v3042_v40, %v2960_v38 }
 0x58e   : > { %3068 = vperm.xlu0 %9029, %v3048_v43  }
 0x58f   : > { %v8262_v15 = vpop.f32.mrb[26].mxu1  ;;  %3063 = vperm.xlu1 %9030, %v3043_v46  }
 0x590   : > { %v3058_v28 = vadd.f32 %v8262_v15, %v2963_v4  ;;  %v3052_v39 = vpop.f32.mrb[27].mxu1 }
 0x591   : > { %v3053_v36 = vadd.f32 %v3052_v39, %v2962_v9 }
 0x592   : > { %3078 = vperm.xlu0 %9029, %v3058_v28  }
 0x593   : > { %3073 = vperm.xlu1 %9030, %v3053_v36  }
 0x5c3   : > { %v2844_v7 = vpop.f32.mrb[16].mxu0 }
 0x5c4   : > { %v2845_v33 = vadd.f32 %v2844_v7, %v2749_v30  ;;  %v2846_v27 = vpop.f32.mrb[17].mxu0 }
 0x5c5   : > { %v2847_v0 = vadd.f32 %v2846_v27, %v2749_v30 }
 0x5c6   : > { %v2934_v6 = vadd.f32 %v2933_v35, %v2845_v33 }
 0x5c7   : > { %v2936_v57 = vadd.f32 %v2935_v37, %v2847_v0  ;;  %v2850_v50 = vpop.f32.mrb[18].mxu0 }
 0x5c8   : > { %v2851_v52 = vadd.f32 %v2850_v50, %v2754_v56  ;;  %v2852_v5 = vpop.f32.mrb[19].mxu0  ;;  %v3387_v50 = vld [vmem:[%s12442_s28] sm:$0xff] }
 0x5c9   : > { %v2853_v23 = vadd.f32 %v2852_v5, %v2754_v56  ;;  %v3388_v5 = vld [vmem:[%s12442_s28 + $0x8] sm:$0xff] }
 0x5ca   : > { %v2940_v12 = vadd.f32 %v2939_v11, %v2851_v52  ;;  %v3419_v52 = vld [vmem:[%s12443_s0] sm:$0xff] }
 0x5cb   : > { %v2942_v54 = vadd.f32 %v2941_v49, %v2853_v23  ;;  %v2856_v61 = vpop.f32.mrb[20].mxu0  ;;  %v3389_v23 = vld [vmem:[%s12442_s28 + $0x10] sm:$0xff] }
 0x5cc   : > { %v2857_v63 = vadd.f32 %v2856_v61, %v2759_v62  ;;  %v2858_v16 = vpop.f32.mrb[21].mxu0 }
 0x5cd   : > { %v2859_v44 = vadd.f32 %v2858_v16, %v2759_v62  ;;  %v3390_v62 = vld [vmem:[%s12442_s28 + $0x18] sm:$0xff] }
 0x5ce   : > { %v2946_v47 = vadd.f32 %v2945_v41, %v2857_v63 }
 0x5cf   : > { %v2948_v1 = vadd.f32 %v2947_v42, %v2859_v44  ;;  %v2862_v21 = vpop.f32.mrb[22].mxu0 }
 0x5d0   : > { %v2863_v18 = vadd.f32 %v2862_v21, %v2764_v60  ;;  %v2864_v34 = vpop.f32.mrb[23].mxu0  ;;  %v3122_v21 = vld [vmem:[%s9371_s17 + $0x8] sm:$0xff] }
 0x5d1   : > { %v2865_v48 = vadd.f32 %v2864_v34, %v2764_v60  ;;  %v3123_v34 = vld [vmem:[%s9371_s17 + $0x10] sm:$0xff] }
 0x5d2   : > { %v2952_v59 = vadd.f32 %v2951_v45, %v2863_v18 }
 0x5d3   : > { %v2954_v58 = vadd.f32 %v2953_v51, %v2865_v48 }
 0x60d   : > { %v3069_v3 = vpop.permute.xlu0 %3068 }
 0x60e   : > { %v10286_v35 = vadd.f32 %v3069_v3, %v2940_v12  ;;  %v10288_v37 = vadd.f32 %v3069_v3, %v2942_v54  ;;  %v3064_v11 = vpop.permute.xlu1 %3063  ;;  %v3420_v12 = vld [vmem:[%s12443_s0 + $0x8] sm:$0xff] }
 0x60f   : > { %v10290_v49 = vadd.f32 %v3064_v11, %v2934_v6  ;;  %v10292_v53 = vadd.f32 %v3064_v11, %v2936_v57  ;;  %v3121_v57 = vld [vmem:[%s9371_s17] sm:$0xff] }
 0x610   : > { %v3092_v41 = vadd.f32 %v10288_v37, %v10286_v35  ;;  %v3103_v46 = vmul.f32 %v10286_v35, %v10286_v35  ;;  %v3104_v28 = vmul.f32 %v10288_v37, %v10288_v37  ;;  %8271 = vmatprep.mubr.msk.f32.mxu1 %vm1083_vm0, %v3121_v57 }
 0x611   : > { %v3079_v42 = vpop.permute.xlu0 %3078  ;;  %v3089_v38 = vadd.f32 %v10292_v53, %v10290_v49  ;;  %v3101_v9 = vmul.f32 %v10290_v49, %v10290_v49  ;;  %v3102_v15 = vmul.f32 %v10292_v53, %v10292_v53 }
 0x612   : > { %v10298_v55 = vadd.f32 %v3079_v42, %v2952_v59  ;;  %v10300_v45 = vadd.f32 %v3079_v42, %v2954_v58  ;;  %v3074_v51 = vpop.permute.xlu1 %3073  ;;  %3093 = vadd.xlane.f32.xlu0 %v3092_v41  ;;  %v3112_v30 = vadd.f32 %v3104_v28, %v3103_v46  ;;  %v3124_v58 = vld [vmem:[%s9371_s17 + $0x18] sm:$0xff] }
 0x613   : > { %v10302_v43 = vadd.f32 %v3074_v51, %v2946_v47  ;;  %v10304_v40 = vadd.f32 %v3074_v51, %v2948_v1  ;;  %3090 = vadd.xlane.f32.xlu1 %v3089_v38  ;;  %v3109_v36 = vadd.f32 %v3102_v15, %v3101_v9 }
 0x614   : > { %v3098_v4 = vadd.f32 %v10300_v45, %v10298_v55  ;;  %v3107_v27 = vmul.f32 %v10298_v55, %v10298_v55  ;;  %v3108_v0 = vmul.f32 %v10300_v45, %v10300_v45 }
 0x615   : > { %v3095_v39 = vadd.f32 %v10304_v40, %v10302_v43  ;;  %v3105_v7 = vmul.f32 %v10302_v43, %v10302_v43  ;;  %v3106_v33 = vmul.f32 %v10304_v40, %v10304_v40 }
 0x616   : > { %v3118_v56 = vadd.f32 %v3108_v0, %v3107_v27 }
 0x617   : > { %3096 = vadd.xlane.f32.xlu0 %v3095_v39  ;;  %3099 = vadd.xlane.f32.xlu1 %v3098_v4  ;;  %v3115_v6 = vadd.f32 %v3106_v33, %v3105_v7 }
 0x61b   : > { %3110 = vadd.xlane.f32.xlu0 %v3109_v36  ;;  %3113 = vadd.xlane.f32.xlu1 %v3112_v30 }
 0x61f   : > { %3116 = vadd.xlane.f32.xlu0 %v3115_v6  ;;  %3119 = vadd.xlane.f32.xlu1 %v3118_v56 }
 0x630   : > { %3393 = vperm.xlu1 %9030, %v3387_v50  }
 0x634   : > { %3425 = vperm.xlu1 %9030, %v3419_v52  }
 0x635   : > { %3398 = vperm.xlu0 %9029, %v3388_v5  }
 0x638   : > { %3403 = vperm.xlu1 %9030, %v3389_v23  }
 0x639   : > { %3430 = vperm.xlu0 %9029, %v3420_v12  }
 0x63d   : > { %3408 = vperm.xlu0 %9029, %v3390_v62  }
 0x69f   : > { %v3094_v54 = vpop.xlane.xlu0 %3093 }
 0x6a0   : > { %v3091_v61 = vpop.xlane.xlu1 %3090 }
 0x6a1   : > { %v8541_v63 = vpack.c.bf16 %v3094_v54, %v3091_v61 }
 0x6a3   : > { %8542 = vmatprep.subr.bf16.mxu1 %v8541_v63 }
 0x6a4   : > { %v3100_v16 = vpop.xlane.xlu1 %3099  ;;  %8544 = vmatpush3.bf16.msra.mxu1 %v8541_v63  ;;  %v3097_v44 = vpop.xlane.xlu0 %3096 }
 0x6a5   : > { %v8545_v47 = vpack.c.bf16 %v3100_v16, %v3097_v44 }
 0x6a7   : > { %8546 = vmatprep.subr.bf16.mxu1 %v8545_v47 }
 0x6a8   : > { %v3114_v60 = vpop.xlane.xlu1 %3113  ;;  %8548 = vmatpush3.bf16.msra.mxu1 %v8545_v47  ;;  %v3111_v1 = vpop.xlane.xlu0 %3110 }
 0x6a9   : > { %v8549_v18 = vpack.c.bf16 %v3114_v60, %v3111_v1  ;;  %v3422_v60 = vld [vmem:[%s12443_s0 + $0x18] sm:$0xff]  ;;  %v3421_v1 = vld [vmem:[%s12443_s0 + $0x10] sm:$0xff]  ;;  %s12454_s0 = smov 16  }
 0x6ab   : > { %8272 = vmatmul.mubr.msk.f32.vlgmr.msra.gmra.mrb[28].mxu1 %vm1083_vm0, %v3122_v21  ;;  %8550 = vmatprep.subr.bf16.mxu1 %v8549_v18 }
 0x6ac   : > { %v3120_v48 = vpop.xlane.xlu1 %3119  ;;  %8552 = vmatpush3.bf16.msra.mxu1 %v8549_v18  ;;  %v3117_v59 = vpop.xlane.xlu0 %3116  ;;  %8274 = vmatprep.mubr.msk.f32.mxu1 %vm1083_vm0, %v3123_v34 }
 0x6ad   : > { %v8553_v3 = vpack.c.bf16 %v3120_v48, %v3117_v59 }
 0x6af   : > { %8275 = vmatmul.mubr.msk.f32.gmra.mrb[30].mxu1 %vm1083_vm0, %v3124_v58  ;;  %8554 = vmatprep.subr.bf16.mxu1 %v8553_v3 }
 0x6b0   : > { %8556 = vmatpush3.bf16.msra.mxu1 %v8553_v3  ;;  %8285 = vmatprep.mubr.msk.f32.mxu1 %vm1083_vm0, %v3121_v57  ;;  %v3394_v18 = vpop.permute.xlu1 %3393 }
 0x6b3   : > { %8286 = vmatmul.mubr.msk.f32.vlgmr.msra.gmra.mrb[32].mxu1 %vm1083_vm0, %v3122_v21 }
 0x6b4   : > { %8288 = vmatprep.mubr.msk.f32.mxu1 %vm1083_vm0, %v3123_v34  ;;  %v3399_v21 = vpop.permute.xlu0 %3398  ;;  %v3426_v48 = vpop.permute.xlu1 %3425 }
 0x6b7   : > { %8289 = vmatmul.mubr.msk.f32.gmra.mrb[34].mxu1 %vm1083_vm0, %v3124_v58 }
 0x6b8   : > { %v3431_v34 = vpop.permute.xlu0 %3430  ;;  %v10348_v58 = vpop.permute.xlu1 %3403 }
 0x6bc   : > { %v10346_v59 = vpop.permute.xlu0 %3408 }
 0x77e   : > { %v8273_v11 = vpop.f32.mrb[28].mxu1 }
 0x77f   : > { %v3223_v41 = vmul.f32 0.0009765625, %v8273_v11  ;;  %v3203_v42 = vpop.f32.mrb[29].mxu1 }
 0x780   : > { %v3222_v38 = vmul.f32 0.0009765625, %v3203_v42 }
 0x781   : > { %3338 = vperm.xlu1 %9030, %v3223_v41   ;;  %v3316_v28 = vmul.f32 %v3223_v41, %v3223_v41 }
 0x782   : > { %3333 = vperm.xlu0 %9029, %v3222_v38   ;;  %v8276_v51 = vpop.f32.mrb[30].mxu1  ;;  %v3315_v30 = vmul.f32 %v3222_v38, %v3222_v38 }
 0x783   : > { %v3225_v46 = vmul.f32 0.0009765625, %v8276_v51  ;;  %v3213_v4 = vpop.f32.mrb[31].mxu1 }
 0x784   : > { %v3224_v9 = vmul.f32 0.0009765625, %v3213_v4 }
 0x785   : > { %v3318_v6 = vmul.f32 %v3225_v46, %v3225_v46 }
 0x786   : > { %3348 = vperm.xlu0 %9029, %v3225_v46   ;;  %3343 = vperm.xlu1 %9030, %v3224_v9   ;;  %v8287_v15 = vpop.f32.mrb[32].mxu1  ;;  %v3317_v52 = vmul.f32 %v3224_v9, %v3224_v9 }
 0x787   : > { %v3312_v39 = vmul.f32 0.0009765625, %v8287_v15  ;;  %v3292_v36 = vpop.f32.mrb[33].mxu1 }
 0x788   : > { %v3311_v7 = vmul.f32 0.0009765625, %v3292_v36 }
 0x789   : > { %v3320_v33 = vsub.f32 %v3312_v39, %v3316_v28 }
 0x78a   : > { %v3319_v27 = vsub.f32 %v3311_v7, %v3315_v30  ;;  %v8290_v0 = vpop.f32.mrb[34].mxu1 }
 0x78b   : > { %v3324_v56 = vadd.f32 1e-05, %v3320_v33  ;;  %v3314_v57 = vmul.f32 0.0009765625, %v8290_v0  ;;  %v3302_v50 = vpop.f32.mrb[35].mxu1 }
 0x78c   : > { %v3323_v5 = vadd.f32 1e-05, %v3319_v27  ;;  %v3313_v23 = vmul.f32 0.0009765625, %v3302_v50 }
 0x78d   : > { %9136 = vrsqrt.f32 %v3324_v56  ;;  %v3322_v12 = vsub.f32 %v3314_v57, %v3318_v6 }
 0x78e   : > { %9138 = vrsqrt.f32 %v3323_v5  ;;  %v3321_v62 = vsub.f32 %v3313_v23, %v3317_v52 }
 0x78f   : > { %v3326_v54 = vadd.f32 1e-05, %v3322_v12 }
 0x790   : > { %v3325_v61 = vadd.f32 1e-05, %v3321_v62 }
 0x791   : > { %9140 = vrsqrt.f32 %v3326_v54 }
 0x792   : > { %9142 = vrsqrt.f32 %v3325_v61 }
 0x797   : > { %v9137_v63 = vpop.eup %9136 }
 0x798   : > { %v9139_v16 = vpop.eup %9138  ;;  %3366 = vperm.xlu0 %9029, %v9137_v63  }
 0x799   : > { %3361 = vperm.xlu1 %9030, %v9139_v16  }
 0x79b   : > { %v9141_v44 = vpop.eup %9140 }
 0x79c   : > { %v9143_v47 = vpop.eup %9142  ;;  %3376 = vperm.xlu0 %9029, %v9141_v44  }
 0x79d   : > { %3371 = vperm.xlu1 %9030, %v9143_v47  }
 0x7a0   : > { %3440 = vperm.xlu0 %9029, %v3422_v60  }
 0x7a1   : > { %3435 = vperm.xlu1 %9030, %v3421_v1  }
 0x800   : > { %v3339_v11 = vpop.permute.xlu1 %3338 }
 0x801   : > { %v3334_v3 = vpop.permute.xlu0 %3333  ;;  %v3353_v38 = vsub.f32 %v10286_v35, %v3339_v11  ;;  %v3354_v51 = vsub.f32 %v10288_v37, %v3339_v11 }
 0x802   : > { %v3351_v46 = vsub.f32 %v10290_v49, %v3334_v3  ;;  %v3352_v4 = vsub.f32 %v10292_v53, %v3334_v3 }
 0x805   : > { %v3349_v41 = vpop.permute.xlu0 %3348  ;;  %v3344_v42 = vpop.permute.xlu1 %3343 }
 0x806   : > { %v3357_v60 = vsub.f32 %v10298_v55, %v3349_v41  ;;  %v3356_v55 = vsub.f32 %v10304_v40, %v3344_v42 }
 0x817   : > { %v3367_v9 = vpop.permute.xlu0 %3366 }
 0x818   : > { %v3381_v15 = vmul.f32 %v3367_v9, %v3353_v38  ;;  %v3382_v28 = vmul.f32 %v3367_v9, %v3354_v51  ;;  %v3362_v39 = vpop.permute.xlu1 %3361  ;;  %v3358_v38 = vsub.f32 %v10300_v45, %v3349_v41 }
 0x819   : > { %v3379_v36 = vmul.f32 %v3362_v39, %v3351_v46  ;;  %v3380_v30 = vmul.f32 %v3362_v39, %v3352_v4 }
 0x81a   : > { %v3413_v7 = vmul.f32 %v3399_v21, %v3381_v15  ;;  %v3414_v33 = vmul.f32 %v3399_v21, %v3382_v28 }
 0x81b   : > { %v3411_v27 = vmul.f32 %v3394_v18, %v3379_v36  ;;  %v3412_v0 = vmul.f32 %v3394_v18, %v3380_v30  ;;  %v3377_v44 = vpop.permute.xlu0 %3376 }
 0x81c   : > { %v3445_v6 = vadd.f32 %v3431_v34, %v3413_v7  ;;  %v3446_v56 = vadd.f32 %v3431_v34, %v3414_v33  ;;  %v3372_v18 = vpop.permute.xlu1 %3371  ;;  %v3355_v34 = vsub.f32 %v10302_v43, %v3344_v42  ;;  %v3385_v3 = vmul.f32 %v3377_v44, %v3357_v60 }
 0x81d   : > { %v3443_v57 = vadd.f32 %v3426_v48, %v3411_v27  ;;  %v3444_v35 = vadd.f32 %v3426_v48, %v3412_v0  ;;  %v3386_v43 = vmul.f32 %v3377_v44, %v3358_v38  ;;  %v3384_v28 = vmul.f32 %v3372_v18, %v3356_v55 }
 0x81e   : > { %v7929_v50 = vmul.f32 -1.442695, %v3445_v6  ;;  %v7930_v37 = vmul.f32 -1.442695, %v3446_v56  ;;  %v3383_v46 = vmul.f32 %v3372_v18, %v3355_v34  ;;  %v3417_v9 = vmul.f32 %v10346_v59, %v3385_v3 }
 0x81f   : > { %v7927_v52 = vmul.f32 -1.442695, %v3443_v57  ;;  %v7928_v49 = vmul.f32 -1.442695, %v3444_v35  ;;  %v3441_v15 = vpop.permute.xlu0 %3440  ;;  %v3418_v39 = vmul.f32 %v10346_v59, %v3386_v43  ;;  %v3416_v40 = vmul.f32 %v10348_v58, %v3384_v28 }
 0x820   : > { %9144 = vpow2.f32 %v7929_v50  ;;  %v3415_v45 = vmul.f32 %v10348_v58, %v3383_v46  ;;  %v3436_v41 = vpop.permute.xlu1 %3435  ;;  %v3449_v36 = vadd.f32 %v3441_v15, %v3417_v9 }
 0x821   : > { %9146 = vpow2.f32 %v7930_v37  ;;  %v3450_v30 = vadd.f32 %v3441_v15, %v3418_v39  ;;  %v3448_v33 = vadd.f32 %v3436_v41, %v3416_v40 }
 0x822   : > { %9148 = vpow2.f32 %v7927_v52  ;;  %v3447_v42 = vadd.f32 %v3436_v41, %v3415_v45  ;;  %v7933_v7 = vmul.f32 -1.442695, %v3449_v36 }
 0x823   : > { %9150 = vpow2.f32 %v7928_v49  ;;  %v7934_v59 = vmul.f32 -1.442695, %v3450_v30  ;;  %v7932_v58 = vmul.f32 -1.442695, %v3448_v33 }
 0x824   : > { %v7931_v27 = vmul.f32 -1.442695, %v3447_v42 }
 0x82a   : > { %v9145_v53 = vpop.eup %9144 }
 0x82b   : > { %v9147_v5 = vpop.eup %9146  ;;  %v3477_v23 = vadd.f32 1.0, %v9145_v53 }
 0x82c   : > { %v9149_v12 = vpop.eup %9148  ;;  %v3478_v62 = vadd.f32 1.0, %v9147_v5 }
 0x82d   : > { %v9151_v54 = vpop.eup %9150  ;;  %9152 = vrcp.f32 %v3477_v23  ;;  %v3475_v61 = vadd.f32 1.0, %v9149_v12 }
 0x82e   : > { %9154 = vrcp.f32 %v3478_v62  ;;  %v3476_v63 = vadd.f32 1.0, %v9151_v54 }
 0x82f   : > { %9156 = vrcp.f32 %v3475_v61 }
 0x830   : > { %9158 = vrcp.f32 %v3476_v63 }
 0x831   : > { %9160 = vpow2.f32 %v7933_v7 }
 0x832   : > { %9162 = vpow2.f32 %v7931_v27 }
 0x833   : > { %9164 = vpow2.f32 %v7934_v59 }
 0x834   : > { %9166 = vpow2.f32 %v7932_v58 }
 0x837   : > { %v9153_v16 = vpop.eup %9152 }
 0x838   : > { %v9155_v47 = vpop.eup %9154  ;;  %v10355_v1 = vmul.f32 %v9153_v16, %v3445_v6  ;;  %v3531_v16 = vld [vmem:[%s9366_s13] ss:$8 sm:$0x3] }
 0x839   : > { %v9157_v21 = vpop.eup %9156  ;;  %v10363_v51 = vmul.f32 %v9155_v47, %v3446_v56  ;;  %v10499_v60 = vrot.slane %v3531_v16, %v9601_v25 }
 0x83a   : > { %v10358_v48 = vmul.f32 %v9157_v21, %v3443_v57  ;;  %3509 = vrot.lane.b32.xlu0 %v10355_v1, %s12392_s26  ;;  %v9159_v11 = vpop.eup %9158  ;;  %v10502_v21 = vrot.slane %v3531_v16, %v9603_v26 }
 0x83b   : > { %v10368_v4 = vmul.f32 %v9159_v11, %v3444_v35  ;;  %v9161_v0 = vpop.eup %9160 }
 0x83c   : > { %3507 = vrot.lane.b32.xlu1 %v10358_v48, %s12392_s26  ;;  %v9163_v6 = vpop.eup %9162  ;;  %v3481_v56 = vadd.f32 1.0, %v9161_v0 }
 0x83d   : > { %v9165_v57 = vpop.eup %9164  ;;  %v3479_v35 = vadd.f32 1.0, %v9163_v6 }
 0x83e   : > { %3517 = vrot.lane.b32.xlu0 %v10363_v51, %s12392_s26  ;;  %v9167_v50 = vpop.eup %9166  ;;  %v3482_v37 = vadd.f32 1.0, %v9165_v57  ;;  %9168 = vrcp.f32 %v3481_v56 }
 0x83f   : > { %v3480_v52 = vadd.f32 1.0, %v9167_v50  ;;  %9170 = vrcp.f32 %v3479_v35 }
 0x840   : > { %3515 = vrot.lane.b32.xlu1 %v10368_v4, %s12392_s26  ;;  %9172 = vrcp.f32 %v3482_v37 }
 0x841   : > { %9174 = vrcp.f32 %v3480_v52 }
 0x842   : > { %3561 = vrot.lane.b32.xlu0 %v10355_v1, %s12376_s23 }
 0x844   : > { %3559 = vrot.lane.b32.xlu1 %v10358_v48, %s12376_s23 }
 0x846   : > { %3569 = vrot.lane.b32.xlu0 %v10363_v51, %s12376_s23 }
 0x848   : > { %3567 = vrot.lane.b32.xlu1 %v10368_v4, %s12376_s23  ;;  %v9169_v49 = vpop.eup %9168 }
 0x849   : > { %v9171_v53 = vpop.eup %9170  ;;  %v10416_v5 = vmul.f32 %v9169_v49, %v3449_v36 }
 0x84a   : > { %3613 = vrot.lane.b32.xlu0 %v10355_v1, %s12389_s1  ;;  %v9173_v23 = vpop.eup %9172  ;;  %v10420_v12 = vmul.f32 %v9171_v53, %v3447_v42 }
 0x84b   : > { %v9175_v62 = vpop.eup %9174  ;;  %v10424_v54 = vmul.f32 %v9173_v23, %v3450_v30 }
 0x84c   : > { %3611 = vrot.lane.b32.xlu1 %v10358_v48, %s12389_s1  ;;  %v10428_v61 = vmul.f32 %v9175_v62, %v3448_v33 }
 0x84e   : > { %3621 = vrot.lane.b32.xlu0 %v10363_v51, %s12389_s1 }
 0x850   : > { %3619 = vrot.lane.b32.xlu1 %v10368_v4, %s12389_s1 }
 0x852   : > { %3665 = vrot.lane.b32.xlu0 %v10355_v1, %s12387_s2 }
 0x854   : > { %3663 = vrot.lane.b32.xlu1 %v10358_v48, %s12387_s2 }
 0x856   : > { %3673 = vrot.lane.b32.xlu0 %v10363_v51, %s12387_s2 }
 0x858   : > { %3671 = vrot.lane.b32.xlu1 %v10368_v4, %s12387_s2 }
 0x85a   : > { %3725 = vrot.lane.b32.xlu0 %v10355_v1, %s12378_s7 }
 0x85c   : > { %3723 = vrot.lane.b32.xlu1 %v10358_v48, %s12378_s7 }
 0x85e   : > { %3733 = vrot.lane.b32.xlu0 %v10363_v51, %s12378_s7 }
 0x860   : > { %3731 = vrot.lane.b32.xlu1 %v10368_v4, %s12378_s7 }
 0x862   : > { %3777 = vrot.lane.b32.xlu0 %v10355_v1, %s12385_s10 }
 0x864   : > { %3775 = vrot.lane.b32.xlu1 %v10358_v48, %s12385_s10 }
 0x866   : > { %3785 = vrot.lane.b32.xlu0 %v10363_v51, %s12385_s10 }
 0x868   : > { %3783 = vrot.lane.b32.xlu1 %v10368_v4, %s12385_s10 }
 0x86a   : > { %3513 = vrot.lane.b32.xlu0 %v10416_v5, %s12392_s26 }
 0x86c   : > { %3511 = vrot.lane.b32.xlu1 %v10420_v12, %s12392_s26 }
 0x86e   : > { %3521 = vrot.lane.b32.xlu0 %v10424_v54, %s12392_s26 }
 0x870   : > { %3519 = vrot.lane.b32.xlu1 %v10428_v61, %s12392_s26 }
 0x872   : > { %3565 = vrot.lane.b32.xlu0 %v10416_v5, %s12376_s23 }
 0x874   : > { %3563 = vrot.lane.b32.xlu1 %v10420_v12, %s12376_s23 }
 0x876   : > { %3573 = vrot.lane.b32.xlu0 %v10424_v54, %s12376_s23 }
 0x878   : > { %3571 = vrot.lane.b32.xlu1 %v10428_v61, %s12376_s23  ;;  %s12444_s23 = sld [smem:[#allocation12_spill]] }
 0x87a   : > { %3617 = vrot.lane.b32.xlu0 %v10416_v5, %s12389_s1 }
 0x87c   : > { %3615 = vrot.lane.b32.xlu1 %v10420_v12, %s12389_s1 }
 0x87e   : > { %3625 = vrot.lane.b32.xlu0 %v10424_v54, %s12389_s1  ;;  %v4004_v63 = vld [vmem:[%s12444_s23 + $0x8] sm:$0xff] }
 0x87f   : > { %4115 = vmatprep.mubr.f32.mxu1 %v4004_v63 }
 0x880   : > { %3623 = vrot.lane.b32.xlu1 %v10428_v61, %s12389_s1  ;;  %s12453_s1 = sld [smem:[#allocation18_spill]] }
 0x882   : > { %3669 = vrot.lane.b32.xlu0 %v10416_v5, %s12387_s2 }
 0x884   : > { %3667 = vrot.lane.b32.xlu1 %v10420_v12, %s12387_s2 }
 0x886   : > { %3677 = vrot.lane.b32.xlu0 %v10424_v54, %s12387_s2 }
 0x888   : > { %3675 = vrot.lane.b32.xlu1 %v10428_v61, %s12387_s2  ;;  %s12452_s2 = sld [smem:[#allocation15_spill]] }
 0x88a   : > { %3729 = vrot.lane.b32.xlu0 %v10416_v5, %s12378_s7 }
 0x88c   : > { %3827 = vrot.lane.b32.xlu1 %v10358_v48, %s12380_s11 }
 0x88e   : > { %3737 = vrot.lane.b32.xlu0 %v10424_v54, %s12378_s7 }
 0x890   : > { %3835 = vrot.lane.b32.xlu1 %v10368_v4, %s12380_s11 }
 0x892   : > { %3781 = vrot.lane.b32.xlu0 %v10416_v5, %s12385_s10 }
 0x894   : > { %3727 = vrot.lane.b32.xlu1 %v10420_v12, %s12378_s7 }
 0x896   : > { %3789 = vrot.lane.b32.xlu0 %v10424_v54, %s12385_s10 }
 0x898   : > { %3735 = vrot.lane.b32.xlu1 %v10428_v61, %s12378_s7  ;;  %s12445_s7 = smov 111  }
 0x89a   : > { %3829 = vrot.lane.b32.xlu0 %v10355_v1, %s12380_s11 }
 0x89c   : > { %3779 = vrot.lane.b32.xlu1 %v10420_v12, %s12385_s10 }
 0x89e   : > { %3837 = vrot.lane.b32.xlu0 %v10363_v51, %s12380_s11 }
 0x8a0   : > { %3787 = vrot.lane.b32.xlu1 %v10428_v61, %s12385_s10  ;;  %s12451_s10 = sld [smem:[#allocation14_spill]] }
 0x8a2   : > { %3833 = vrot.lane.b32.xlu0 %v10416_v5, %s12380_s11 }
 0x8a4   : > { %3831 = vrot.lane.b32.xlu1 %v10420_v12, %s12380_s11 }
 0x8a6   : > { %3841 = vrot.lane.b32.xlu0 %v10424_v54, %s12380_s11 }
 0x8a8   : > { %3839 = vrot.lane.b32.xlu1 %v10428_v61, %s12380_s11  ;;  %s12446_s11 = sld [smem:[#allocation13_spill]] }
 0x8aa   : > { %3881 = vrot.lane.b32.xlu0 %v10355_v1, %s12445_s7 }
 0x8ac   : > { %3879 = vrot.lane.b32.xlu1 %v10358_v48, %s12445_s7  ;;  %v3510_v44 = vpop.permute.xlu0 %3509 }
 0x8ae   : > { %v3508_v47 = vpop.permute.xlu1 %3507  ;;  %3889 = vrot.lane.b32.xlu0 %v10363_v51, %s12445_s7  ;;  %v4016_v36 = vld [vmem:[%s12446_s11 + $0x8] sm:$0xff]  ;;  %v4015_v42 = vld [vmem:[%s12446_s11] sm:$0xff]  ;;  %v4018_v7 = vld [vmem:[%s12446_s11 + $0x18] sm:$0xff] }
 0x8af   : > { %v4017_v27 = vld [vmem:[%s12446_s11 + $0x10] sm:$0xff] }
 0x8b0   : > { %3887 = vrot.lane.b32.xlu1 %v10368_v4, %s12445_s7  ;;  %v3518_v18 = vpop.permute.xlu0 %3517 }
 0x8b1   : > { %v3524_v34 = vsel %vm1479_vm2, %v3510_v44, %v3518_v18  ;;  %v3528_v3 = vsel %vm1479_vm2, %v3518_v18, %v3510_v44  ;;  %v7935_v44 = vld [vmem:[%s9366_s13 + $0x1] ss:$8 sm:$0x3] }
 0x8b2   : > { %v3545_v11 = vmul.f32 %v10499_v60, %v3528_v3  ;;  %v3546_v38 = vmul.f32 %v10502_v21, %v3524_v34  ;;  %v3516_v46 = vpop.permute.xlu1 %3515  ;;  %3885 = vrot.lane.b32.xlu0 %v10416_v5, %s12445_s7  ;;  %v3592_v18 = vrot.slane %v7935_v44, %v9603_v26 }
 0x8b3   : > { %v3523_v55 = vsel %vm1479_vm2, %v3508_v47, %v3516_v46  ;;  %v3527_v43 = vsel %vm1479_vm2, %v3516_v46, %v3508_v47 }
 0x8b4   : > { %v3543_v9 = vmul.f32 %v10499_v60, %v3527_v43  ;;  %v3544_v15 = vmul.f32 %v10502_v21, %v3523_v55  ;;  %3883 = vrot.lane.b32.xlu1 %v10420_v12, %s12445_s7  ;;  %v3562_v28 = vpop.permute.xlu0 %3561  ;;  %v3588_v55 = vrot.slane %v7935_v44, %v9601_v25 }
 0x8b6   : > { %v8559_v45 = vpack.c.bf16 %v3545_v11, %v3543_v9  ;;  %v3560_v41 = vpop.permute.xlu1 %3559  ;;  %3893 = vrot.lane.b32.xlu0 %v10424_v54, %s12445_s7  ;;  %v8557_v39 = vpack.c.bf16 %v3546_v38, %v3544_v15 }
 0x8b8   : > { %3891 = vrot.lane.b32.xlu1 %v10428_v61, %s12445_s7  ;;  %8558 = vmatprep.subr.bf16.mxu1 %v8557_v39  ;;  %v3570_v40 = vpop.permute.xlu0 %3569 }
 0x8b9   : > { %8560 = vmatpush1.bf16.msra.mxu1 %v8559_v45  ;;  %v3576_v3 = vsel %vm1502_vm1, %v3562_v28, %v3570_v40  ;;  %v3580_v45 = vsel %vm1502_vm1, %v3570_v40, %v3562_v28 }
 0x8ba   : > { %v3568_v30 = vpop.permute.xlu1 %3567  ;;  %4026 = vperm.xlu0 %9029, %v4016_v36  }
 0x8bb   : > { %v3575_v11 = vsel %vm1502_vm1, %v3560_v41, %v3568_v30  ;;  %v3579_v39 = vsel %vm1502_vm1, %v3568_v30, %v3560_v41 }
 0x8bc   : > { %4021 = vperm.xlu1 %9030, %v4015_v42   ;;  %v10529_v33 = vpop.permute.xlu0 %3613  ;;  %v3595_v31 = vmul.f32 %v3588_v55, %v3579_v39 }
 0x8be   : > { %v3612_v59 = vpop.permute.xlu1 %3611  ;;  %4036 = vperm.xlu0 %9029, %v4018_v7   ;;  %v3598_v7 = vmul.f32 %v3592_v18, %v3576_v3 }
 0x8c0   : > { %4031 = vperm.xlu1 %9030, %v4017_v27   ;;  %v3622_v58 = vpop.permute.xlu0 %3621  ;;  %v3596_v27 = vmul.f32 %v3592_v18, %v3575_v11 }
 0x8c2   : > { %v3620_v0 = vpop.permute.xlu1 %3619  ;;  %v8565_v22 = vpack.c.bf16 %v3598_v7, %v3596_v27  ;;  %v7937_v27 = vld [vmem:[%s9366_s13 + $0x3] ss:$8 sm:$0x3] }
 0x8c3   : > { %v3631_v39 = vsel %vm1526_vm3, %v3620_v0, %v3612_v59 }
 0x8c4   : > { %v10532_v6 = vpop.permute.xlu0 %3665 }
 0x8c6   : > { %v10534_v56 = vpop.permute.xlu1 %3663 }
 0x8c8   : > { %v10536_v57 = vpop.permute.xlu0 %3673 }
 0x8ca   : > { %v10538_v35 = vpop.permute.xlu1 %3671 }
 0x8cc   : > { %v10540_v50 = vpop.permute.xlu0 %3725 }
 0x8ce   : > { %v10542_v37 = vpop.permute.xlu1 %3723 }
 0x8d0   : > { %v10544_v52 = vpop.permute.xlu0 %3733 }
 0x8d2   : > { %v10546_v49 = vpop.permute.xlu1 %3731 }
 0x8d4   : > { %v10548_v53 = vpop.permute.xlu0 %3777 }
 0x8d6   : > { %v10550_v23 = vpop.permute.xlu1 %3775 }
 0x8d8   : > { %v10552_v62 = vpop.permute.xlu0 %3785 }
 0x8da   : > { %v10554_v63 = vpop.permute.xlu1 %3783 }
 0x8dc   : > { %v3514_v16 = vpop.permute.xlu0 %3513 }
 0x8de   : > { %v3512_v47 = vpop.permute.xlu1 %3511 }
 0x8e0   : > { %v3522_v34 = vpop.permute.xlu0 %3521 }
 0x8e1   : > { %v3526_v38 = vsel %vm1479_vm2, %v3514_v16, %v3522_v34  ;;  %v3530_v46 = vsel %vm1479_vm2, %v3522_v34, %v3514_v16 }
 0x8e2   : > { %v3549_v43 = vmul.f32 %v10499_v60, %v3530_v46  ;;  %v3550_v9 = vmul.f32 %v10502_v21, %v3526_v38  ;;  %v3520_v15 = vpop.permute.xlu1 %3519  ;;  %v7936_v38 = vld [vmem:[%s9366_s13 + $0x2] ss:$8 sm:$0x3]  ;;  %v3597_v46 = vmul.f32 %v3588_v55, %v3580_v45  ;;  %v3632_v45 = vsel %vm1526_vm3, %v3622_v58, %v10529_v33 }
 0x8e3   : > { %v3525_v36 = vsel %vm1479_vm2, %v3512_v47, %v3520_v15  ;;  %v3529_v42 = vsel %vm1479_vm2, %v3520_v15, %v3512_v47  ;;  %v3644_v41 = vrot.slane %v7936_v38, %v9603_v26  ;;  %v3628_v47 = vsel %vm1526_vm3, %v10529_v33, %v3622_v58 }
 0x8e4   : > { %v3547_v16 = vmul.f32 %v10499_v60, %v3529_v42  ;;  %v3548_v44 = vmul.f32 %v10502_v21, %v3525_v36  ;;  %v3566_v34 = vpop.permute.xlu0 %3565  ;;  %v3627_v60 = vsel %vm1526_vm3, %v3612_v59, %v3620_v0  ;;  %v8567_v11 = vpack.c.bf16 %v3597_v46, %v3595_v31 }
 0x8e5   : > { %v3650_v31 = vmul.f32 %v3644_v41, %v3628_v47  ;;  %v3648_v7 = vmul.f32 %v3644_v41, %v3627_v60  ;;  %v3696_v59 = vrot.slane %v7937_v27, %v9603_v26  ;;  %v3680_v0 = vsel %vm1550_vm4, %v10532_v6, %v10536_v57 }
 0x8e6   : > { %v8563_v28 = vpack.c.bf16 %v3549_v43, %v3547_v16  ;;  %v3564_v40 = vpop.permute.xlu1 %3563  ;;  %v8561_v2 = vpack.c.bf16 %v3550_v9, %v3548_v44  ;;  %v3692_v60 = vrot.slane %v7937_v27, %v9601_v25 }
 0x8e8   : > { %8562 = vmatprep.subr.bf16.mxu1 %v8561_v2  ;;  %v3574_v30 = vpop.permute.xlu0 %3573  ;;  %v3640_v2 = vrot.slane %v7936_v38, %v9601_v25 }
 0x8e9   : > { %8564 = vmatpush1.bf16.msra.mxu1 %v8563_v28  ;;  %v3578_v21 = vsel %vm1502_vm1, %v3566_v34, %v3574_v30  ;;  %v3582_v3 = vsel %vm1502_vm1, %v3574_v30, %v3566_v34 }
 0x8ea   : > { %v3601_v43 = vmul.f32 %v3588_v55, %v3582_v3  ;;  %v3602_v9 = vmul.f32 %v3592_v18, %v3578_v21  ;;  %v3572_v15 = vpop.permute.xlu1 %3571  ;;  %8566 = vmatprep.subr.bf16.mxu1 %v8565_v22  ;;  %v3649_v22 = vmul.f32 %v3640_v2, %v3632_v45  ;;  %v3647_v38 = vmul.f32 %v3640_v2, %v3631_v39 }
 0x8eb   : > { %v3577_v36 = vsel %vm1502_vm1, %v3564_v40, %v3572_v15  ;;  %v3581_v42 = vsel %vm1502_vm1, %v3572_v15, %v3564_v40  ;;  %v8573_v40 = vpack.c.bf16 %v3650_v31, %v3648_v7  ;;  %v3683_v39 = vsel %vm1550_vm4, %v10538_v35, %v10534_v56 }
 0x8ec   : > { %v3599_v16 = vmul.f32 %v3588_v55, %v3581_v42  ;;  %v3600_v44 = vmul.f32 %v3592_v18, %v3577_v36  ;;  %v3618_v34 = vpop.permute.xlu0 %3617  ;;  %v3679_v18 = vsel %vm1550_vm4, %v10534_v56, %v10538_v35  ;;  %v8575_v47 = vpack.c.bf16 %v3649_v22, %v3647_v38 }
 0x8ed   : > { %8568 = vmatpush1.bf16.msra.mxu1 %v8567_v11  ;;  %v3700_v36 = vmul.f32 %v3696_v59, %v3679_v18  ;;  %v7938_v18 = vld [vmem:[%s9366_s13 + $0x5] ss:$8 sm:$0x3] }
 0x8ee   : > { %v8571_v46 = vpack.c.bf16 %v3601_v43, %v3599_v16  ;;  %v3616_v33 = vpop.permute.xlu1 %3615  ;;  %v8569_v58 = vpack.c.bf16 %v3602_v9, %v3600_v44  ;;  %v3684_v43 = vsel %vm1550_vm4, %v10536_v57, %v10532_v6  ;;  %v3702_v9 = vmul.f32 %v3696_v59, %v3680_v0 }
 0x8ef   : > { %v3701_v57 = vmul.f32 %v3692_v60, %v3684_v43  ;;  %v3699_v44 = vmul.f32 %v3692_v60, %v3683_v39  ;;  %v3752_v43 = vrot.slane %v7938_v18, %v9601_v25 }
 0x8f0   : > { %8570 = vmatprep.subr.bf16.mxu1 %v8569_v58  ;;  %v3626_v28 = vpop.permute.xlu0 %3625  ;;  %v8581_v22 = vpack.c.bf16 %v3702_v9, %v3700_v36 }
 0x8f1   : > { %8572 = vmatpush1.bf16.msra.mxu1 %v8571_v46  ;;  %v3630_v55 = vsel %vm1526_vm3, %v3618_v34, %v3626_v28  ;;  %v3634_v30 = vsel %vm1526_vm3, %v3626_v28, %v3618_v34  ;;  %v8583_v46 = vpack.c.bf16 %v3701_v57, %v3699_v44 }
 0x8f2   : > { %v3653_v21 = vmul.f32 %v3640_v2, %v3634_v30  ;;  %v3654_v3 = vmul.f32 %v3644_v41, %v3630_v55  ;;  %v3624_v11 = vpop.permute.xlu1 %3623  ;;  %8574 = vmatprep.subr.bf16.mxu1 %v8573_v40 }
 0x8f3   : > { %v3629_v15 = vsel %vm1526_vm3, %v3616_v33, %v3624_v11  ;;  %v3633_v45 = vsel %vm1526_vm3, %v3624_v11, %v3616_v33  ;;  %v8589_v11 = vpack.c.bf16 %v10363_v51, %v10368_v4  ;;  %v3740_v51 = vsel %vm1576_vm5, %v10540_v50, %v10544_v52 }
 0x8f4   : > { %v3651_v42 = vmul.f32 %v3640_v2, %v3633_v45  ;;  %v3652_v31 = vmul.f32 %v3644_v41, %v3629_v15  ;;  %v3670_v7 = vpop.permute.xlu0 %3669  ;;  %v3739_v4 = vsel %vm1576_vm5, %v10542_v37, %v10546_v49  ;;  %v7939_v15 = vld [vmem:[%s9366_s13 + $0x6] ss:$8 sm:$0x3]  ;;  %v8591_v45 = vpack.c.bf16 %v10355_v1, %v10358_v48 }
 0x8f5   : > { %8576 = vmatpush1.bf16.msra.mxu1 %v8575_v47  ;;  %v8595_v1 = vpack.c.bf16 %v10416_v5, %v10420_v12  ;;  %v3795_v48 = vsel %vm1600_vm6, %v10554_v63, %v10550_v23  ;;  %v3804_v57 = vrot.slane %v7939_v15, %v9601_v25  ;;  %v3792_v5 = vsel %vm1600_vm6, %v10548_v53, %v10552_v62 }
 0x8f6   : > { %v8579_v27 = vpack.c.bf16 %v3653_v21, %v3651_v42  ;;  %v3668_v16 = vpop.permute.xlu1 %3667  ;;  %v8577_v6 = vpack.c.bf16 %v3654_v3, %v3652_v31  ;;  %v3756_v21 = vrot.slane %v7938_v18, %v9603_v26  ;;  %v8593_v31 = vpack.c.bf16 %v10424_v54, %v10428_v61 }
 0x8f8   : > { %8578 = vmatprep.subr.bf16.mxu1 %v8577_v6  ;;  %v3678_v34 = vpop.permute.xlu0 %3677 }
 0x8f9   : > { %8580 = vmatpush1.bf16.msra.mxu1 %v8579_v27  ;;  %v3682_v38 = vsel %vm1550_vm4, %v3670_v7, %v3678_v34  ;;  %v3686_v56 = vsel %vm1550_vm4, %v3678_v34, %v3670_v7  ;;  %v3761_v7 = vmul.f32 %v3752_v43, %v3740_v51  ;;  %v3759_v27 = vmul.f32 %v3752_v43, %v3739_v4 }
 0x8fa   : > { %v3705_v35 = vmul.f32 %v3692_v60, %v3686_v56  ;;  %v3706_v41 = vmul.f32 %v3696_v59, %v3682_v38  ;;  %v3676_v2 = vpop.permute.xlu1 %3675  ;;  %8582 = vmatprep.subr.bf16.mxu1 %v8581_v22  ;;  %v3791_v34 = vsel %vm1600_vm6, %v10550_v23, %v10554_v63 }
 0x8fb   : > { %v3681_v33 = vsel %vm1550_vm4, %v3668_v16, %v3676_v2  ;;  %v3685_v58 = vsel %vm1550_vm4, %v3676_v2, %v3668_v16  ;;  %v8599_v6 = vpack.c.bf16 %v3761_v7, %v3759_v27 }
 0x8fc   : > { %v3703_v0 = vmul.f32 %v3692_v60, %v3685_v58  ;;  %v3704_v28 = vmul.f32 %v3696_v59, %v3681_v33  ;;  %v3730_v40 = vpop.permute.xlu0 %3729  ;;  %v3744_v59 = vsel %vm1576_vm5, %v10544_v52, %v10540_v50  ;;  %v3743_v60 = vsel %vm1576_vm5, %v10546_v49, %v10542_v37 }
 0x8fd   : > { %8584 = vmatpush1.bf16.msra.mxu1 %v8583_v46  ;;  %v3762_v39 = vmul.f32 %v3756_v21, %v3744_v59  ;;  %v3760_v36 = vmul.f32 %v3756_v21, %v3743_v60  ;;  %v3808_v50 = vrot.slane %v7939_v15, %v9603_v26  ;;  %v3796_v37 = vsel %vm1600_vm6, %v10552_v62, %v10548_v53 }
 0x8fe   : > { %v8587_v55 = vpack.c.bf16 %v3705_v35, %v3703_v0  ;;  %v10636_v30 = vpop.permute.xlu1 %3827  ;;  %v8585_v47 = vpack.c.bf16 %v3706_v41, %v3704_v28  ;;  %v3813_v46 = vmul.f32 %v3804_v57, %v3792_v5  ;;  %v3811_v33 = vmul.f32 %v3804_v57, %v3791_v34 }
 0x8ff   : > { %v8597_v61 = vpack.c.bf16 %v3762_v39, %v3760_v36  ;;  %v3814_v12 = vmul.f32 %v3808_v50, %v3796_v37  ;;  %v3812_v22 = vmul.f32 %v3808_v50, %v3795_v48 }
 0x900   : > { %8586 = vmatprep.subr.bf16.mxu1 %v8585_v47  ;;  %v3738_v3 = vpop.permute.xlu0 %3737 }
 0x901   : > { %8588 = vmatpush1.bf16.msra.mxu1 %v8587_v55  ;;  %v3742_v49 = vsel %vm1576_vm5, %v3730_v40, %v3738_v3  ;;  %v3746_v16 = vsel %vm1576_vm5, %v3738_v3, %v3730_v40  ;;  %v7940_v40 = vld [vmem:[%s9366_s13 + $0x7] ss:$8 sm:$0x3]  ;;  %v8605_v55 = vpack.c.bf16 %v3814_v12, %v3812_v22 }
 0x902   : > { %v10650_v9 = vpop.permute.xlu1 %3835  ;;  %8590 = vmatprep.subr.bf16.mxu1 %v8589_v11  ;;  %v3765_v35 = vmul.f32 %v3752_v43, %v3742_v49  ;;  %v3766_v41 = vmul.f32 %v3756_v21, %v3746_v16  ;;  %v3860_v3 = vrot.slane %v7940_v40, %v9603_v26 }
 0x903   : > { %v3847_v11 = vsel %vm1624_vm7, %v10650_v9, %v10636_v30  ;;  %v3843_v7 = vsel %vm1624_vm7, %v10636_v30, %v10650_v9 }
 0x904   : > { %v3782_v42 = vpop.permute.xlu0 %3781  ;;  %v3864_v27 = vmul.f32 %v3860_v3, %v3847_v11 }
 0x905   : > { %8592 = vmatpush1.bf16.msra.mxu1 %v8591_v45 }
 0x906   : > { %v3728_v52 = vpop.permute.xlu1 %3727  ;;  %8594 = vmatprep.subr.bf16.mxu1 %v8593_v31  ;;  %v3856_v31 = vrot.slane %v7940_v40, %v9601_v25 }
 0x908   : > { %v3790_v54 = vpop.permute.xlu0 %3789  ;;  %v3863_v49 = vmul.f32 %v3856_v31, %v3843_v7 }
 0x909   : > { %8596 = vmatpush1.bf16.msra.mxu1 %v8595_v1  ;;  %v3794_v23 = vsel %vm1600_vm6, %v3782_v42, %v3790_v54  ;;  %v3798_v63 = vsel %vm1600_vm6, %v3790_v54, %v3782_v42 }
 0x90a   : > { %v3736_v44 = vpop.permute.xlu1 %3735  ;;  %8598 = vmatprep.subr.bf16.mxu1 %v8597_v61  ;;  %v3817_v60 = vmul.f32 %v3804_v57, %v3794_v23  ;;  %v4007_v23 = vld [vmem:[%s12444_s23 + $0x20] sm:$0xff] }
 0x90b   : > { %v3741_v38 = vsel %vm1576_vm5, %v3728_v52, %v3736_v44  ;;  %v3745_v56 = vsel %vm1576_vm5, %v3736_v44, %v3728_v52  ;;  %v7941_v44 = vld [vmem:[%s9366_s13 + $0x10] ss:$8 sm:$0x3] }
 0x90c   : > { %v3763_v2 = vmul.f32 %v3752_v43, %v3741_v38  ;;  %v3764_v53 = vmul.f32 %v3756_v21, %v3745_v56  ;;  %v3830_v62 = vpop.permute.xlu0 %3829  ;;  %v8607_v21 = vpack.c.bf16 %v3813_v46, %v3811_v33  ;;  %v3818_v43 = vmul.f32 %v3808_v50, %v3798_v63 }
 0x90d   : > { %8600 = vmatpush1.bf16.msra.mxu1 %v8599_v6 }
 0x90e   : > { %v8603_v58 = vpack.c.bf16 %v3765_v35, %v3763_v2  ;;  %v3780_v0 = vpop.permute.xlu1 %3779  ;;  %v8601_v28 = vpack.c.bf16 %v3766_v41, %v3764_v53  ;;  %v3908_v2 = vrot.slane %v7941_v44, %v9601_v25  ;;  %v3912_v53 = vrot.slane %v7941_v44, %v9603_v26 }
 0x910   : > { %8602 = vmatprep.subr.bf16.mxu1 %v8601_v28  ;;  %v3838_v18 = vpop.permute.xlu0 %3837 }
 0x911   : > { %8604 = vmatpush1.bf16.msra.mxu1 %v8603_v58  ;;  %v3848_v47 = vsel %vm1624_vm7, %v3838_v18, %v3830_v62  ;;  %v3844_v15 = vsel %vm1624_vm7, %v3830_v62, %v3838_v18  ;;  %v4003_v58 = vld [vmem:[%s12444_s23] sm:$0xff] }
 0x912   : > { %v3788_v59 = vpop.permute.xlu1 %3787  ;;  %8606 = vmatprep.subr.bf16.mxu1 %v8605_v55  ;;  %v3866_v45 = vmul.f32 %v3860_v3, %v3848_v47  ;;  %v3865_v48 = vmul.f32 %v3856_v31, %v3844_v15 }
 0x913   : > { %v3793_v51 = vsel %vm1600_vm6, %v3780_v0, %v3788_v59  ;;  %v3797_v4 = vsel %vm1600_vm6, %v3788_v59, %v3780_v0 }
 0x914   : > { %v3815_v39 = vmul.f32 %v3804_v57, %v3793_v51  ;;  %v3816_v36 = vmul.f32 %v3808_v50, %v3797_v4  ;;  %v3834_v42 = vpop.permute.xlu0 %3833  ;;  %v8613_v61 = vpack.c.bf16 %v3866_v45, %v3864_v27  ;;  %v8615_v9 = vpack.c.bf16 %v3865_v48, %v3863_v49  ;;  %v4009_v45 = vld [vmem:[%s12444_s23 + $0x30] sm:$0xff] }
 0x915   : > { %8608 = vmatpush1.bf16.msra.mxu1 %v8607_v21  ;;  %v4005_v49 = vld [vmem:[%s12444_s23 + $0x10] sm:$0xff] }
 0x916   : > { %v8611_v52 = vpack.c.bf16 %v3817_v60, %v3815_v39  ;;  %v3832_v37 = vpop.permute.xlu1 %3831  ;;  %v8609_v1 = vpack.c.bf16 %v3818_v43, %v3816_v36  ;;  %v4010_v43 = vld [vmem:[%s12444_s23 + $0x38] sm:$0xff] }
 0x918   : > { %8610 = vmatprep.subr.bf16.mxu1 %v8609_v1  ;;  %v3842_v54 = vpop.permute.xlu0 %3841  ;;  %v4012_v1 = vld [vmem:[%s12444_s23 + $0x48] sm:$0xff] }
 0x919   : > { %8612 = vmatpush1.bf16.msra.mxu1 %v8611_v52  ;;  %v3846_v50 = vsel %vm1624_vm7, %v3834_v42, %v3842_v54  ;;  %v3850_v16 = vsel %vm1624_vm7, %v3842_v54, %v3834_v42 }
 0x91a   : > { %v3869_v6 = vmul.f32 %v3856_v31, %v3846_v50  ;;  %v3870_v57 = vmul.f32 %v3860_v3, %v3850_v16  ;;  %v3840_v30 = vpop.permute.xlu1 %3839  ;;  %8614 = vmatprep.subr.bf16.mxu1 %v8613_v61  ;;  %v12447_v61 = vmov 0.0   ;;  %v4008_v50 = vld [vmem:[%s12444_s23 + $0x28] sm:$0xff]  ;;  %v4011_v16 = vld [vmem:[%s12444_s23 + $0x40] sm:$0xff] }
 0x91b   : > { %v3845_v5 = vsel %vm1624_vm7, %v3832_v37, %v3840_v30  ;;  %v3849_v12 = vsel %vm1624_vm7, %v3840_v30, %v3832_v37 }
 0x91c   : > { %v3867_v34 = vmul.f32 %v3856_v31, %v3845_v5  ;;  %v3868_v22 = vmul.f32 %v3860_v3, %v3849_v12  ;;  %v3882_v38 = vpop.permute.xlu0 %3881  ;;  %v4006_v3 = vld [vmem:[%s12444_s23 + $0x18] sm:$0xff]  ;;  %v4013_v31 = vld [vmem:[%s12444_s23 + $0x50] sm:$0xff] }
 0x91d   : > { %8616 = vmatpush1.bf16.msra.mxu1 %v8615_v9 }
 0x91e   : > { %v8619_v56 = vpack.c.bf16 %v3869_v6, %v3867_v34  ;;  %v3880_v35 = vpop.permute.xlu1 %3879  ;;  %v8617_v41 = vpack.c.bf16 %v3870_v57, %v3868_v22 }
 0x920   : > { %8618 = vmatprep.subr.bf16.mxu1 %v8617_v41  ;;  %v3890_v62 = vpop.permute.xlu0 %3889 }
 0x921   : > { %8620 = vmatpush1.bf16.msra.mxu1 %v8619_v56  ;;  %v3896_v46 = vsel %vm1648_vm8, %v3882_v38, %v3890_v62  ;;  %v3900_v33 = vsel %vm1648_vm8, %v3890_v62, %v3882_v38 }
 0x922   : > { %v3917_v0 = vmul.f32 %v3908_v2, %v3896_v46  ;;  %v3918_v28 = vmul.f32 %v3912_v53, %v3900_v33  ;;  %v3888_v40 = vpop.permute.xlu1 %3887 }
 0x923   : > { %v3895_v63 = vsel %vm1648_vm8, %v3880_v35, %v3888_v40  ;;  %v3899_v18 = vsel %vm1648_vm8, %v3888_v40, %v3880_v35 }
 0x924   : > { %v3915_v55 = vmul.f32 %v3908_v2, %v3895_v63  ;;  %v3916_v47 = vmul.f32 %v3912_v53, %v3899_v18  ;;  %4116 = vmatmul.mubr.f32.vlgmr.msra.gmra.mrb[36].mxu1 %v4003_v58  ;;  %v3886_v21 = vpop.permute.xlu0 %3885  ;;  %v12448_v58 = vld [vmem:[#allocation25_spill] sm:$0xff] }
 0x925   : > { %4121 = vmatprep.mubr.f32.mxu1 %v4007_v23 }
 0x926   : > { %v8623_v11 = vpack.c.bf16 %v3917_v0, %v3915_v55  ;;  %v3884_v59 = vpop.permute.xlu1 %3883  ;;  %v8621_v60 = vpack.c.bf16 %v3918_v28, %v3916_v47  ;;  %v12450_v47 = vld [vmem:[#allocation27_spill] sm:$0xff] }
 0x928   : > { %4122 = vmatmul.mubr.f32.gmra.mrb[38].mxu1 %v4006_v3  ;;  %8622 = vmatprep.subr.bf16.mxu1 %v8621_v60  ;;  %v3894_v51 = vpop.permute.xlu0 %3893 }
 0x929   : > { %8624 = vmatpush1.bf16.msra.mxu1 %v8623_v11  ;;  %v3898_v4 = vsel %vm1648_vm8, %v3886_v21, %v3894_v51  ;;  %v3902_v15 = vsel %vm1648_vm8, %v3894_v51, %v3886_v21  ;;  %4127 = vmatprep.mubr.f32.mxu1 %v4010_v43 }
 0x92a   : > { %v3921_v39 = vmul.f32 %v3908_v2, %v3898_v4  ;;  %v3922_v36 = vmul.f32 %v3912_v53, %v3902_v15  ;;  %v3892_v42 = vpop.permute.xlu1 %3891 }
 0x92b   : > { %v3897_v7 = vsel %vm1648_vm8, %v3884_v59, %v3892_v42  ;;  %v3901_v27 = vsel %vm1648_vm8, %v3892_v42, %v3884_v59  ;;  %v4269_v42 = vld [vmem:[%s9371_s17] sm:$0xff] }
 0x92c   : > { %v3919_v52 = vmul.f32 %v3908_v2, %v3897_v7  ;;  %v3920_v37 = vmul.f32 %v3912_v53, %v3901_v27  ;;  %4128 = vmatmul.mubr.f32.gmra.mrb[40].mxu1 %v4009_v45  ;;  %8299 = vmatprep.mubr.msk.f32.mxu0 %vm1083_vm0, %v4269_v42  ;;  %v4536_v7 = vld [vmem:[%s12451_s10 + $0x8] sm:$0xff]  ;;  %v4567_v27 = vld [vmem:[%s12452_s2] sm:$0xff] }
 0x92d   : > { %4133 = vmatprep.mubr.f32.mxu1 %v4013_v31  ;;  %v4535_v31 = vld [vmem:[%s12451_s10] sm:$0xff] }
 0x92e   : > { %v8627_v48 = vpack.c.bf16 %v3921_v39, %v3919_v52  ;;  %v8625_v54 = vpack.c.bf16 %v3922_v36, %v3920_v37  ;;  %v4568_v52 = vld [vmem:[%s12452_s2 + $0x8] sm:$0xff]  ;;  %v4537_v37 = vld [vmem:[%s12451_s10 + $0x10] sm:$0xff] }
 0x930   : > { %4134 = vmatmul.mubr.f32.gmra.mrb[42].mxu1 %v4012_v1  ;;  %8626 = vmatprep.subr.bf16.mxu1 %v8625_v54  ;;  %v4538_v1 = vld [vmem:[%s12451_s10 + $0x18] sm:$0xff]  ;;  %s12463_s10 = sld [smem:[#allocation19_spill]] }
 0x931   : > { %8628 = vmatpush1.bf16.msra.mxu1 %v8627_v48  ;;  %4204 = vmatprep.mubr.f32.mxu1 %v12447_v61 }
 0x932   : > { %8718 = vmatprep.subr.bf16.mxu1 %v9792_v14 }
 0x934   : > { %7942 = vmatmul.mubr.msk.f32.vlgmr.msra.gmra.mrb[36].mxu1 %vm1083_vm0, %v4005_v49 }
 0x935   : > { %8720 = vmatpush3.bf16.msra.mxu1 %v9792_v14  ;;  %4210 = vmatprep.mubr.f32.mxu1 %v12447_v61  ;;  %v4014_v14 = vld [vmem:[%s12444_s23 + $0x58] sm:$0xff] }
 0x936   : > { %8722 = vmatprep.subr.bf16.mxu1 %v9799_v19 }
 0x938   : > { %7943 = vmatmul.mubr.msk.f32.gmra.mrb[38].mxu1 %vm1083_vm0, %v4008_v50 }
 0x939   : > { %8724 = vmatpush3.bf16.msra.mxu1 %v9799_v19  ;;  %4216 = vmatprep.mubr.f32.mxu1 %v12447_v61  ;;  %v4027_v12 = vpop.permute.xlu0 %4026 }
 0x93a   : > { %8726 = vmatprep.subr.bf16.mxu1 %v9805_v29 }
 0x93b   : > { %v4022_v6 = vpop.permute.xlu1 %4021 }
 0x93c   : > { %7944 = vmatmul.mubr.msk.f32.gmra.mrb[40].mxu1 %vm1083_vm0, %v4011_v16 }
 0x93d   : > { %8728 = vmatpush3.bf16.msra.mxu1 %v9805_v29  ;;  %4222 = vmatprep.mubr.f32.mxu1 %v12447_v61  ;;  %v4037_v33 = vpop.permute.xlu0 %4036 }
 0x93e   : > { %8730 = vmatprep.subr.bf16.mxu1 %v9811_v32 }
 0x93f   : > { %v4032_v35 = vpop.permute.xlu1 %4031 }
 0x940   : > { %7945 = vmatmul.mubr.msk.f32.gmra.mrb[42].mxu1 %vm1083_vm0, %v4014_v14 }
 0x941   : > { %8732 = vmatpush3.bf16.msra.mxu1 %v9811_v32 }
 0xa07   : > { %v4206_v19 = vpop.f32.mrb[36].mxu1 }
 0xa08   : > { %v8925_v57 = vadd.f32 %v4206_v19, %v4022_v6  ;;  %v4208_v30 = vpop.f32.mrb[37].mxu1 }
 0xa09   : > { %v8926_v9 = vadd.f32 %v4208_v30, %v4022_v6 }
 0xa0a   : > { %v10771_v5 = vadd.f32 %v8925_v57, %v9702_v8  ;;  %v4270_v57 = vld [vmem:[%s9371_s17 + $0x8] sm:$0xff] }
 0xa0b   : > { %v10774_v29 = vadd.f32 %v8926_v9, %v9704_v10  ;;  %v4212_v44 = vpop.f32.mrb[38].mxu1  ;;  %v4271_v9 = vld [vmem:[%s9371_s17 + $0x10] sm:$0xff] }
 0xa0c   : > { %v8927_v34 = vadd.f32 %v4212_v44, %v4027_v12  ;;  %v4214_v22 = vpop.f32.mrb[39].mxu1  ;;  %v4249_v40 = vmul.f32 %v10771_v5, %v10771_v5 }
 0xa0d   : > { %v8928_v38 = vadd.f32 %v4214_v22, %v4027_v12  ;;  %v4237_v56 = vadd.f32 %v10774_v29, %v10771_v5  ;;  %v4250_v23 = vmul.f32 %v10774_v29, %v10774_v29 }
 0xa0e   : > { %v10779_v32 = vadd.f32 %v8927_v34, %v9708_v13  ;;  %v4272_v34 = vld [vmem:[%s9371_s17 + $0x18] sm:$0xff] }
 0xa0f   : > { %v10782_v41 = vadd.f32 %v8928_v38, %v9710_v17  ;;  %v4218_v8 = vpop.f32.mrb[40].mxu1  ;;  %4238 = vadd.xlane.f32.xlu1 %v4237_v56  ;;  %v4257_v3 = vadd.f32 %v4250_v23, %v4249_v40  ;;  %v5377_v38 = vld [vmem:[%s12453_s1] sm:$0xff]  ;;  %v5378_v56 = vld [vmem:[%s12453_s1 + $0x8] sm:$0xff] }
 0xa10   : > { %v8929_v2 = vadd.f32 %v4218_v8, %v4032_v35  ;;  %v4220_v53 = vpop.f32.mrb[41].mxu1  ;;  %v4251_v11 = vmul.f32 %v10779_v32, %v10779_v32  ;;  %8335 = vmatprep.mubr.msk.f32.mxu1 %vm1285_vm10, %v5377_v38  ;;  %v5380_v8 = vld [vmem:[%s12453_s1 + $0x18] sm:$0xff] }
 0xa11   : > { %v8930_v10 = vadd.f32 %v4220_v53, %v4032_v35  ;;  %v4240_v62 = vadd.f32 %v10782_v41, %v10779_v32  ;;  %v4252_v51 = vmul.f32 %v10782_v41, %v10782_v41  ;;  %v5379_v35 = vld [vmem:[%s12453_s1 + $0x10] sm:$0xff]  ;;  %8336 = vmatmul.mubr.msk.f32.vlgmr.msra.gmra.mrb[44].mxu1 %vm1285_vm10, %v5378_v56  ;;  %s12456_s1 = smov 1  }
 0xa12   : > { %v10787_v46 = vadd.f32 %v8929_v2, %v9714_v20  ;;  %v12449_v20 = vld [vmem:[#allocation26_spill] sm:$0xff]  ;;  %8338 = vmatprep.mubr.msk.f32.mxu1 %vm1285_vm10, %v5379_v35 }
 0xa13   : > { %v10790_v0 = vadd.f32 %v8930_v10, %v12448_v58  ;;  %v4224_v13 = vpop.f32.mrb[42].mxu1  ;;  %4241 = vadd.xlane.f32.xlu0 %v4240_v62  ;;  %v4260_v15 = vadd.f32 %v4252_v51, %v4251_v11 }
 0xa14   : > { %v8931_v28 = vadd.f32 %v4224_v13, %v4037_v33  ;;  %v4226_v17 = vpop.f32.mrb[43].mxu1  ;;  %v4253_v60 = vmul.f32 %v10787_v46, %v10787_v46 }
 0xa15   : > { %v8932_v63 = vadd.f32 %v4226_v17, %v4037_v33  ;;  %v4243_v18 = vadd.f32 %v10790_v0, %v10787_v46  ;;  %v4254_v43 = vmul.f32 %v10790_v0, %v10790_v0  ;;  %8339 = vmatmul.mubr.msk.f32.gmra.mrb[46].mxu1 %vm1285_vm10, %v5380_v8 }
 0xa16   : > { %v10799_v55 = vadd.f32 %v8931_v28, %v12449_v20 }
 0xa17   : > { %v10802_v21 = vadd.f32 %v8932_v63, %v12450_v47  ;;  %4244 = vadd.xlane.f32.xlu0 %v4243_v18  ;;  %v4263_v4 = vadd.f32 %v4254_v43, %v4253_v60 }
 0xa18   : > { %v4255_v45 = vmul.f32 %v10799_v55, %v10799_v55 }
 0xa19   : > { %v4246_v59 = vadd.f32 %v10802_v21, %v10799_v55  ;;  %v4256_v39 = vmul.f32 %v10802_v21, %v10802_v21 }
 0xa1b   : > { %4258 = vadd.xlane.f32.xlu0 %v4257_v3  ;;  %4247 = vadd.xlane.f32.xlu1 %v4246_v59  ;;  %v4266_v36 = vadd.f32 %v4256_v39, %v4255_v45 }
 0xa1f   : > { %4264 = vadd.xlane.f32.xlu0 %v4263_v4  ;;  %4261 = vadd.xlane.f32.xlu1 %v4260_v15 }
 0xa23   : > { %4267 = vadd.xlane.f32.xlu1 %v4266_v36 }
 0xa34   : > { %4541 = vperm.xlu1 %9030, %v4535_v31  }
 0xa35   : > { %4546 = vperm.xlu0 %9029, %v4536_v7  }
 0xa38   : > { %4573 = vperm.xlu1 %9030, %v4567_v27  }
 0xa39   : > { %4578 = vperm.xlu0 %9029, %v4568_v52  }
 0xa3c   : > { %4551 = vperm.xlu1 %9030, %v4537_v37  }
 0xa3d   : > { %4556 = vperm.xlu0 %9029, %v4538_v1   ;;  %v4570_v1 = vld [vmem:[%s12452_s2 + $0x18] sm:$0xff] }
 0xa9c   : > { %v4239_v48 = vpop.xlane.xlu1 %4238 }
 0xaa0   : > { %v4242_v54 = vpop.xlane.xlu0 %4241 }
 0xaa1   : > { %v8629_v49 = vpack.c.bf16 %v4242_v54, %v4239_v48  ;;  %v4569_v48 = vld [vmem:[%s12452_s2 + $0x10] sm:$0xff]  ;;  %s12457_s2 = smov 127  }
 0xaa3   : > { %8630 = vmatprep.subr.bf16.mxu0 %v8629_v49 }
 0xaa4   : > { %8632 = vmatpush3.bf16.msra.mxu0 %v8629_v49  ;;  %v4245_v50 = vpop.xlane.xlu0 %4244 }
 0xaa8   : > { %v4248_v16 = vpop.xlane.xlu1 %4247  ;;  %v4259_v6 = vpop.xlane.xlu0 %4258 }
 0xaa9   : > { %v8633_v14 = vpack.c.bf16 %v4248_v16, %v4245_v50 }
 0xaab   : > { %8634 = vmatprep.subr.bf16.mxu0 %v8633_v14 }
 0xaac   : > { %v4262_v19 = vpop.xlane.xlu1 %4261  ;;  %8636 = vmatpush3.bf16.msra.mxu0 %v8633_v14  ;;  %v4265_v12 = vpop.xlane.xlu0 %4264 }
 0xaad   : > { %v8637_v30 = vpack.c.bf16 %v4262_v19, %v4259_v6 }
 0xaaf   : > { %8300 = vmatmul.mubr.msk.f32.vlgmr.msra.gmra.mrb[24].mxu0 %vm1083_vm0, %v4270_v57  ;;  %8638 = vmatprep.subr.bf16.mxu0 %v8637_v30 }
 0xab0   : > { %v4268_v44 = vpop.xlane.xlu1 %4267  ;;  %8640 = vmatpush3.bf16.msra.mxu0 %v8637_v30  ;;  %8302 = vmatprep.mubr.msk.f32.mxu0 %vm1083_vm0, %v4271_v9 }
 0xab1   : > { %v8641_v22 = vpack.c.bf16 %v4268_v44, %v4265_v12 }
 0xab3   : > { %8303 = vmatmul.mubr.msk.f32.gmra.mrb[26].mxu0 %vm1083_vm0, %v4272_v34  ;;  %8642 = vmatprep.subr.bf16.mxu0 %v8641_v22 }
 0xab4   : > { %8644 = vmatpush3.bf16.msra.mxu0 %v8641_v22  ;;  %8313 = vmatprep.mubr.msk.f32.mxu0 %vm1083_vm0, %v4269_v42  ;;  %v4547_v54 = vpop.permute.xlu0 %4546  ;;  %v4542_v49 = vpop.permute.xlu1 %4541 }
 0xab7   : > { %8314 = vmatmul.mubr.msk.f32.vlgmr.msra.gmra.mrb[28].mxu0 %vm1083_vm0, %v4270_v57 }
 0xab8   : > { %8316 = vmatprep.mubr.msk.f32.mxu0 %vm1083_vm0, %v4271_v9  ;;  %v4579_v50 = vpop.permute.xlu0 %4578  ;;  %v4574_v16 = vpop.permute.xlu1 %4573 }
 0xabb   : > { %8317 = vmatmul.mubr.msk.f32.gmra.mrb[30].mxu0 %vm1083_vm0, %v4272_v34 }
 0xabc   : > { %v10846_v14 = vpop.permute.xlu0 %4556  ;;  %v10848_v6 = vpop.permute.xlu1 %4551 }
 0xb82   : > { %v8301_v2 = vpop.f32.mrb[24].mxu0 }
 0xb83   : > { %v4371_v53 = vmul.f32 0.0009765625, %v8301_v2  ;;  %v4351_v10 = vpop.f32.mrb[25].mxu0 }
 0xb84   : > { %v4370_v62 = vmul.f32 0.0009765625, %v4351_v10 }
 0xb85   : > { %4486 = vperm.xlu1 %9030, %v4371_v53   ;;  %v4464_v40 = vmul.f32 %v4371_v53, %v4371_v53 }
 0xb86   : > { %4481 = vperm.xlu0 %9029, %v4370_v62   ;;  %v8304_v33 = vpop.f32.mrb[26].mxu0  ;;  %v4463_v18 = vmul.f32 %v4370_v62, %v4370_v62 }
 0xb87   : > { %v4373_v58 = vmul.f32 0.0009765625, %v8304_v33  ;;  %v4361_v13 = vpop.f32.mrb[27].mxu0 }
 0xb88   : > { %v4372_v28 = vmul.f32 0.0009765625, %v4361_v13 }
 0xb89   : > { %v4466_v59 = vmul.f32 %v4373_v58, %v4373_v58 }
 0xb8a   : > { %4496 = vperm.xlu0 %9029, %v4373_v58   ;;  %4491 = vperm.xlu1 %9030, %v4372_v28   ;;  %v8315_v17 = vpop.f32.mrb[28].mxu0  ;;  %v4465_v4 = vmul.f32 %v4372_v28, %v4372_v28 }
 0xb8b   : > { %v4460_v23 = vmul.f32 0.0009765625, %v8315_v17  ;;  %v4440_v63 = vpop.f32.mrb[29].mxu0 }
 0xb8c   : > { %v4459_v20 = vmul.f32 0.0009765625, %v4440_v63 }
 0xb8d   : > { %v4468_v47 = vsub.f32 %v4460_v23, %v4464_v40 }
 0xb8e   : > { %v4467_v3 = vsub.f32 %v4459_v20, %v4463_v18  ;;  %v8318_v11 = vpop.f32.mrb[30].mxu0 }
 0xb8f   : > { %v4472_v60 = vadd.f32 1e-05, %v4468_v47  ;;  %v4462_v43 = vmul.f32 0.0009765625, %v8318_v11  ;;  %v4450_v51 = vpop.f32.mrb[31].mxu0 }
 0xb90   : > { %v4471_v15 = vadd.f32 1e-05, %v4467_v3  ;;  %v4461_v45 = vmul.f32 0.0009765625, %v4450_v51 }
 0xb91   : > { %9176 = vrsqrt.f32 %v4472_v60  ;;  %v4470_v39 = vsub.f32 %v4462_v43, %v4466_v59 }
 0xb92   : > { %9178 = vrsqrt.f32 %v4471_v15  ;;  %v4469_v36 = vsub.f32 %v4461_v45, %v4465_v4 }
 0xb93   : > { %v4474_v42 = vadd.f32 1e-05, %v4470_v39 }
 0xb94   : > { %v4473_v31 = vadd.f32 1e-05, %v4469_v36 }
 0xb95   : > { %9180 = vrsqrt.f32 %v4474_v42 }
 0xb96   : > { %9182 = vrsqrt.f32 %v4473_v31 }
 0xb9b   : > { %v9177_v7 = vpop.eup %9176 }
 0xb9c   : > { %v9179_v27 = vpop.eup %9178  ;;  %4514 = vperm.xlu0 %9029, %v9177_v7  }
 0xb9d   : > { %4509 = vperm.xlu1 %9030, %v9179_v27  }
 0xb9f   : > { %v9181_v52 = vpop.eup %9180 }
 0xba0   : > { %v9183_v37 = vpop.eup %9182  ;;  %4524 = vperm.xlu0 %9029, %v9181_v52  }
 0xba1   : > { %4519 = vperm.xlu1 %9030, %v9183_v37  }
 0xba4   : > { %4588 = vperm.xlu0 %9029, %v4570_v1  }
 0xba5   : > { %4583 = vperm.xlu1 %9030, %v4569_v48  }
 0xc04   : > { %v4487_v57 = vpop.permute.xlu1 %4486 }
 0xc05   : > { %v4482_v19 = vpop.permute.xlu0 %4481  ;;  %v4501_v12 = vsub.f32 %v10779_v32, %v4487_v57  ;;  %v4502_v44 = vsub.f32 %v10782_v41, %v4487_v57 }
 0xc06   : > { %v4499_v34 = vsub.f32 %v10771_v5, %v4482_v19  ;;  %v4500_v22 = vsub.f32 %v10774_v29, %v4482_v19 }
 0xc09   : > { %v4497_v30 = vpop.permute.xlu0 %4496  ;;  %v10850_v9 = vpop.permute.xlu1 %4491 }
 0xc0a   : > { %v4505_v36 = vsub.f32 %v10799_v55, %v4497_v30  ;;  %v4503_v27 = vsub.f32 %v10787_v46, %v10850_v9  ;;  %v4506_v48 = vsub.f32 %v10802_v21, %v4497_v30 }
 0xc1b   : > { %v4515_v38 = vpop.permute.xlu0 %4514 }
 0xc1c   : > { %v4529_v56 = vmul.f32 %v4515_v38, %v4501_v12  ;;  %v4530_v35 = vmul.f32 %v4515_v38, %v4502_v44  ;;  %v4510_v8 = vpop.permute.xlu1 %4509 }
 0xc1d   : > { %v4527_v2 = vmul.f32 %v4510_v8, %v4499_v34  ;;  %v4528_v53 = vmul.f32 %v4510_v8, %v4500_v22 }
 0xc1e   : > { %v4561_v10 = vmul.f32 %v4547_v54, %v4529_v56  ;;  %v4562_v62 = vmul.f32 %v4547_v54, %v4530_v35 }
 0xc1f   : > { %v4559_v33 = vmul.f32 %v4542_v49, %v4527_v2  ;;  %v4560_v58 = vmul.f32 %v4542_v49, %v4528_v53  ;;  %v4525_v45 = vpop.permute.xlu0 %4524 }
 0xc20   : > { %v4593_v13 = vadd.f32 %v4579_v50, %v4561_v10  ;;  %v4594_v28 = vadd.f32 %v4579_v50, %v4562_v62  ;;  %v4520_v7 = vpop.permute.xlu1 %4519  ;;  %v4533_v37 = vmul.f32 %v4525_v45, %v4505_v36  ;;  %v10870_v50 = vpop.f32.mrb[44].mxu1  ;;  %v4534_v57 = vmul.f32 %v4525_v45, %v4506_v48  ;;  %v4679_v45 = vld [vmem:[%s9366_s13] ss:$8 sm:$0x3] }
 0xc21   : > { %v4591_v17 = vadd.f32 %v4574_v16, %v4559_v33  ;;  %v4592_v40 = vadd.f32 %v4574_v16, %v4560_v58  ;;  %v4531_v49 = vmul.f32 %v4520_v7, %v4503_v27  ;;  %v4504_v16 = vsub.f32 %v10790_v0, %v10850_v9  ;;  %v10879_v30 = vpop.f32.mrb[45].mxu1 }
 0xc22   : > { %v7956_v23 = vmul.f32 -1.442695, %v4593_v13  ;;  %v7957_v63 = vmul.f32 -1.442695, %v4594_v28  ;;  %v4565_v12 = vmul.f32 %v10846_v14, %v4533_v37  ;;  %v4566_v9 = vmul.f32 %v10846_v14, %v4534_v57  ;;  %v10890_v2 = vpop.f32.mrb[46].mxu1 }
 0xc23   : > { %v7954_v18 = vmul.f32 -1.442695, %v4591_v17  ;;  %v7955_v20 = vmul.f32 -1.442695, %v4592_v40  ;;  %v4589_v44 = vpop.permute.xlu0 %4588  ;;  %v4532_v34 = vmul.f32 %v4520_v7, %v4504_v16  ;;  %v4563_v22 = vmul.f32 %v10848_v6, %v4531_v49  ;;  %v10894_v62 = vpop.f32.mrb[47].mxu1 }
 0xc24   : > { %9184 = vpow2.f32 %v7956_v23  ;;  %v4584_v38 = vpop.permute.xlu1 %4583  ;;  %v4597_v56 = vadd.f32 %v4589_v44, %v4565_v12  ;;  %v4598_v53 = vadd.f32 %v4589_v44, %v4566_v9  ;;  %v11014_v7 = vrot.slane %v4679_v45, %v9603_v26 }
 0xc25   : > { %9186 = vpow2.f32 %v7957_v63  ;;  %v4564_v35 = vmul.f32 %v10848_v6, %v4532_v34  ;;  %v4595_v8 = vadd.f32 %v4584_v38, %v4563_v22 }
 0xc26   : > { %9188 = vpow2.f32 %v7954_v18  ;;  %v7960_v10 = vmul.f32 -1.442695, %v4597_v56  ;;  %v7961_v6 = vmul.f32 -1.442695, %v4598_v53 }
 0xc27   : > { %9190 = vpow2.f32 %v7955_v20  ;;  %v4596_v14 = vadd.f32 %v4584_v38, %v4564_v35  ;;  %v7958_v33 = vmul.f32 -1.442695, %v4595_v8  ;;  %v5164_v35 = vld [vmem:[%s12462_s9 + $0x8] sm:$0xff] }
 0xc29   : > { %v7959_v58 = vmul.f32 -1.442695, %v4596_v14 }
 0xc2e   : > { %v9185_v47 = vpop.eup %9184 }
 0xc2f   : > { %v9187_v3 = vpop.eup %9186  ;;  %v4625_v11 = vadd.f32 1.0, %v9185_v47 }
 0xc30   : > { %v9189_v59 = vpop.eup %9188  ;;  %v4626_v60 = vadd.f32 1.0, %v9187_v3 }
 0xc31   : > { %v9191_v43 = vpop.eup %9190  ;;  %9192 = vrcp.f32 %v4625_v11  ;;  %v4623_v51 = vadd.f32 1.0, %v9189_v59 }
 0xc32   : > { %9194 = vrcp.f32 %v4626_v60  ;;  %v4624_v4 = vadd.f32 1.0, %v9191_v43 }
 0xc33   : > { %9196 = vrcp.f32 %v4623_v51 }
 0xc34   : > { %9198 = vrcp.f32 %v4624_v4 }
 0xc35   : > { %9200 = vpow2.f32 %v7960_v10  ;;  %v5163_v10 = vld [vmem:[%s12462_s9] sm:$0xff] }
 0xc36   : > { %9202 = vpow2.f32 %v7958_v33 }
 0xc37   : > { %9204 = vpow2.f32 %v7961_v6 }
 0xc38   : > { %9206 = vpow2.f32 %v7959_v58 }
 0xc3b   : > { %v9193_v15 = vpop.eup %9192 }
 0xc3c   : > { %v9195_v39 = vpop.eup %9194  ;;  %v10857_v42 = vmul.f32 %v9193_v15, %v4593_v13  ;;  %v5152_v15 = vld [vmem:[%s12460_s6 + $0x8] sm:$0xff] }
 0xc3d   : > { %v9197_v31 = vpop.eup %9196  ;;  %v10866_v54 = vmul.f32 %v9195_v39, %v4594_v28  ;;  %5263 = vmatprep.mubr.f32.mxu0 %v5152_v15 }
 0xc3e   : > { %v10861_v52 = vmul.f32 %v9197_v31, %v4591_v17  ;;  %4657 = vrot.lane.b32.xlu0 %v10857_v42, %s12392_s26  ;;  %v9199_v1 = vpop.eup %9198  ;;  %v11011_v31 = vrot.slane %v4679_v45, %v9601_v25 }
 0xc3f   : > { %v10874_v19 = vmul.f32 %v9199_v1, %v4592_v40  ;;  %v9201_v13 = vpop.eup %9200 }
 0xc40   : > { %4655 = vrot.lane.b32.xlu1 %v10861_v52, %s12392_s26  ;;  %v9203_v28 = vpop.eup %9202  ;;  %v4629_v17 = vadd.f32 1.0, %v9201_v13 }
 0xc41   : > { %v9205_v40 = vpop.eup %9204  ;;  %v4627_v23 = vadd.f32 1.0, %v9203_v28 }
 0xc42   : > { %4665 = vrot.lane.b32.xlu0 %v10866_v54, %s12392_s26  ;;  %v9207_v63 = vpop.eup %9206  ;;  %v4630_v18 = vadd.f32 1.0, %v9205_v40  ;;  %9208 = vrcp.f32 %v4629_v17  ;;  %v5166_v17 = vld [vmem:[%s12462_s9 + $0x18] sm:$0xff] }
 0xc43   : > { %v4628_v20 = vadd.f32 1.0, %v9207_v63  ;;  %9210 = vrcp.f32 %v4627_v23  ;;  %v5384_v40 = vld [vmem:[%s12463_s10 + $0x18] sm:$0xff]  ;;  %v5165_v63 = vld [vmem:[%s12462_s9 + $0x10] sm:$0xff]  ;;  %s12465_s9 = sld [smem:[#allocation21_spill]] }
 0xc44   : > { %4663 = vrot.lane.b32.xlu1 %v10874_v19, %s12392_s26  ;;  %s12455_s26 = smov 15   ;;  %9212 = vrcp.f32 %v4630_v18  ;;  %v5383_v18 = vld [vmem:[%s12463_s10 + $0x10] sm:$0xff] }
 0xc45   : > { %9214 = vrcp.f32 %v4628_v20 }
 0xc46   : > { %4709 = vrot.lane.b32.xlu0 %v10857_v42, %s12454_s0 }
 0xc48   : > { %4707 = vrot.lane.b32.xlu1 %v10861_v52, %s12454_s0 }
 0xc4a   : > { %4717 = vrot.lane.b32.xlu0 %v10866_v54, %s12454_s0 }
 0xc4c   : > { %4715 = vrot.lane.b32.xlu1 %v10874_v19, %s12454_s0  ;;  %v9209_v47 = vpop.eup %9208 }
 0xc4d   : > { %v9211_v3 = vpop.eup %9210  ;;  %v10928_v11 = vmul.f32 %v9209_v47, %v4597_v56 }
 0xc4e   : > { %4761 = vrot.lane.b32.xlu0 %v10857_v42, %s12455_s26  ;;  %v9213_v59 = vpop.eup %9212  ;;  %v10932_v60 = vmul.f32 %v9211_v3, %v4595_v8  ;;  %v5382_v8 = vld [vmem:[%s12463_s10 + $0x8] sm:$0xff] }
 0xc4f   : > { %v9215_v43 = vpop.eup %9214  ;;  %v10936_v51 = vmul.f32 %v9213_v59, %v4598_v53  ;;  %v5469_v6 = vadd.f32 %v10870_v50, %v5382_v8  ;;  %v5479_v50 = vadd.f32 %v10890_v2, %v5384_v40 }
 0xc50   : > { %4759 = vrot.lane.b32.xlu1 %v10861_v52, %s12455_s26  ;;  %v10940_v4 = vmul.f32 %v9215_v43, %v4596_v14  ;;  %v5381_v14 = vld [vmem:[%s12463_s10] sm:$0xff] }
 0xc51   : > { %v5464_v58 = vadd.f32 %v10879_v30, %v5381_v14  ;;  %v5474_v30 = vadd.f32 %v10894_v62, %v5383_v18 }
 0xc52   : > { %4769 = vrot.lane.b32.xlu0 %v10866_v54, %s12455_s26 }
 0xc54   : > { %4767 = vrot.lane.b32.xlu1 %v10874_v19, %s12455_s26 }
 0xc56   : > { %4813 = vrot.lane.b32.xlu0 %v10857_v42, %s12456_s1 }
 0xc58   : > { %4811 = vrot.lane.b32.xlu1 %v10861_v52, %s12456_s1 }
 0xc5a   : > { %4821 = vrot.lane.b32.xlu0 %v10866_v54, %s12456_s1 }
 0xc5c   : > { %4819 = vrot.lane.b32.xlu1 %v10874_v19, %s12456_s1 }
 0xc5e   : > { %4873 = vrot.lane.b32.xlu0 %v10857_v42, %s12457_s2 }
 0xc60   : > { %4871 = vrot.lane.b32.xlu1 %v10861_v52, %s12457_s2 }
 0xc62   : > { %4881 = vrot.lane.b32.xlu0 %v10866_v54, %s12457_s2 }
 0xc64   : > { %4879 = vrot.lane.b32.xlu1 %v10874_v19, %s12457_s2 }
 0xc66   : > { %4925 = vrot.lane.b32.xlu0 %v10857_v42, %s12458_s3 }
 0xc68   : > { %4923 = vrot.lane.b32.xlu1 %v10861_v52, %s12458_s3 }
 0xc6a   : > { %4933 = vrot.lane.b32.xlu0 %v10866_v54, %s12458_s3 }
 0xc6c   : > { %4931 = vrot.lane.b32.xlu1 %v10874_v19, %s12458_s3 }
 0xc6e   : > { %4661 = vrot.lane.b32.xlu0 %v10928_v11, %s12459_s5 }
 0xc70   : > { %4659 = vrot.lane.b32.xlu1 %v10932_v60, %s12459_s5 }
 0xc72   : > { %4669 = vrot.lane.b32.xlu0 %v10936_v51, %s12459_s5 }
 0xc74   : > { %4667 = vrot.lane.b32.xlu1 %v10940_v4, %s12459_s5 }
 0xc76   : > { %4713 = vrot.lane.b32.xlu0 %v10928_v11, %s12454_s0 }
 0xc78   : > { %4711 = vrot.lane.b32.xlu1 %v10932_v60, %s12454_s0 }
 0xc7a   : > { %4721 = vrot.lane.b32.xlu0 %v10936_v51, %s12454_s0 }
 0xc7c   : > { %4719 = vrot.lane.b32.xlu1 %v10940_v4, %s12454_s0 }
 0xc7e   : > { %4765 = vrot.lane.b32.xlu0 %v10928_v11, %s12455_s26 }
 0xc80   : > { %4763 = vrot.lane.b32.xlu1 %v10932_v60, %s12455_s26 }
 0xc82   : > { %4773 = vrot.lane.b32.xlu0 %v10936_v51, %s12455_s26 }
 0xc84   : > { %4771 = vrot.lane.b32.xlu1 %v10940_v4, %s12455_s26 }
 0xc86   : > { %4817 = vrot.lane.b32.xlu0 %v10928_v11, %s12456_s1 }
 0xc88   : > { %4815 = vrot.lane.b32.xlu1 %v10932_v60, %s12456_s1 }
 0xc8a   : > { %4825 = vrot.lane.b32.xlu0 %v10936_v51, %s12456_s1 }
 0xc8c   : > { %4823 = vrot.lane.b32.xlu1 %v10940_v4, %s12456_s1 }
 0xc8e   : > { %4877 = vrot.lane.b32.xlu0 %v10928_v11, %s12457_s2 }
 0xc90   : > { %4975 = vrot.lane.b32.xlu1 %v10861_v52, %s12461_s8 }
 0xc92   : > { %4885 = vrot.lane.b32.xlu0 %v10936_v51, %s12457_s2 }
 0xc94   : > { %4983 = vrot.lane.b32.xlu1 %v10874_v19, %s12461_s8 }
 0xc96   : > { %4929 = vrot.lane.b32.xlu0 %v10928_v11, %s12458_s3 }
 0xc98   : > { %4875 = vrot.lane.b32.xlu1 %v10932_v60, %s12457_s2 }
 0xc9a   : > { %4937 = vrot.lane.b32.xlu0 %v10936_v51, %s12458_s3 }
 0xc9c   : > { %4883 = vrot.lane.b32.xlu1 %v10940_v4, %s12457_s2 }
 0xc9e   : > { %4977 = vrot.lane.b32.xlu0 %v10857_v42, %s12461_s8 }
 0xca0   : > { %4927 = vrot.lane.b32.xlu1 %v10932_v60, %s12458_s3 }
 0xca2   : > { %4985 = vrot.lane.b32.xlu0 %v10866_v54, %s12461_s8 }
 0xca4   : > { %4935 = vrot.lane.b32.xlu1 %v10940_v4, %s12458_s3 }
 0xca6   : > { %4981 = vrot.lane.b32.xlu0 %v10928_v11, %s12461_s8 }
 0xca8   : > { %4979 = vrot.lane.b32.xlu1 %v10932_v60, %s12461_s8 }
 0xcaa   : > { %4989 = vrot.lane.b32.xlu0 %v10936_v51, %s12461_s8 }
 0xcac   : > { %4987 = vrot.lane.b32.xlu1 %v10940_v4, %s12461_s8 }
 0xcae   : > { %5029 = vrot.lane.b32.xlu0 %v10857_v42, %s12445_s7 }
 0xcb0   : > { %5027 = vrot.lane.b32.xlu1 %v10861_v52, %s12445_s7  ;;  %v4658_v39 = vpop.permute.xlu0 %4657 }
 0xcb2   : > { %v4656_v36 = vpop.permute.xlu1 %4655  ;;  %5037 = vrot.lane.b32.xlu0 %v10866_v54, %s12445_s7 }
 0xcb4   : > { %5035 = vrot.lane.b32.xlu1 %v10874_v19, %s12445_s7  ;;  %v4666_v27 = vpop.permute.xlu0 %4665 }
 0xcb5   : > { %v4672_v37 = vsel %vm1479_vm2, %v4658_v39, %v4666_v27  ;;  %v4676_v1 = vsel %vm1479_vm2, %v4666_v27, %v4658_v39 }
 0xcb6   : > { %v4693_v48 = vmul.f32 %v11011_v31, %v4676_v1  ;;  %v4694_v49 = vmul.f32 %v11014_v7, %v4672_v37  ;;  %v4664_v16 = vpop.permute.xlu1 %4663  ;;  %5033 = vrot.lane.b32.xlu0 %v10928_v11, %s12445_s7 }
 0xcb7   : > { %v4671_v57 = vsel %vm1479_vm2, %v4656_v36, %v4664_v16  ;;  %v4675_v12 = vsel %vm1479_vm2, %v4664_v16, %v4656_v36 }
 0xcb8   : > { %v4691_v44 = vmul.f32 %v11011_v31, %v4675_v12  ;;  %v4692_v34 = vmul.f32 %v11014_v7, %v4671_v57  ;;  %5031 = vrot.lane.b32.xlu1 %v10932_v60, %s12445_s7  ;;  %v4710_v22 = vpop.permute.xlu0 %4709 }
 0xcba   : > { %v8647_v38 = vpack.c.bf16 %v4693_v48, %v4691_v44  ;;  %v4708_v9 = vpop.permute.xlu1 %4707  ;;  %5041 = vrot.lane.b32.xlu0 %v10936_v51, %s12445_s7  ;;  %v8645_v56 = vpack.c.bf16 %v4694_v49, %v4692_v34  ;;  %v7962_v48 = vld [vmem:[%s9366_s13 + $0x1] ss:$8 sm:$0x3] }
 0xcbb   : > { %v4740_v16 = vrot.slane %v7962_v48, %v9603_v26 }
 0xcbc   : > { %5039 = vrot.lane.b32.xlu1 %v10940_v4, %s12445_s7  ;;  %8646 = vmatprep.subr.bf16.mxu0 %v8645_v56  ;;  %v4718_v53 = vpop.permute.xlu0 %4717  ;;  %v4736_v56 = vrot.slane %v7962_v48, %v9601_v25 }
 0xcbd   : > { %8648 = vmatpush1.bf16.msra.mxu0 %v8647_v38  ;;  %v4724_v12 = vsel %vm1502_vm1, %v4710_v22, %v4718_v53  ;;  %v4728_v14 = vsel %vm1502_vm1, %v4718_v53, %v4710_v22 }
 0xcbe   : > { %v4716_v33 = vpop.permute.xlu1 %4715  ;;  %5174 = vperm.xlu0 %9029, %v5164_v35   ;;  %v4746_v40 = vmul.f32 %v4740_v16, %v4724_v12  ;;  %v4745_v48 = vmul.f32 %v4736_v56, %v4728_v14 }
 0xcbf   : > { %v4723_v44 = vsel %vm1502_vm1, %v4708_v9, %v4716_v33 }
 0xcc0   : > { %5169 = vperm.xlu1 %9030, %v5163_v10   ;;  %v11044_v13 = vpop.permute.xlu0 %4761 }
 0xcc2   : > { %v11046_v28 = vpop.permute.xlu1 %4759  ;;  %5489 = vperm.xlu0 %9029, %v5469_v6   ;;  %v4727_v6 = vsel %vm1502_vm1, %v4716_v33, %v4708_v9 }
 0xcc4   : > { %5484 = vperm.xlu1 %9030, %v5464_v58   ;;  %v11050_v23 = vpop.permute.xlu0 %4769 }
 0xcc6   : > { %v11054_v20 = vpop.permute.xlu1 %4767  ;;  %5184 = vperm.xlu0 %9029, %v5166_v17  }
 0xcc8   : > { %5179 = vperm.xlu1 %9030, %v5165_v63   ;;  %v11058_v47 = vpop.permute.xlu0 %4813  ;;  %v4744_v63 = vmul.f32 %v4740_v16, %v4723_v44 }
 0xcca   : > { %v11060_v3 = vpop.permute.xlu1 %4811  ;;  %5499 = vperm.xlu0 %9029, %v5479_v50  }
 0xccc   : > { %5494 = vperm.xlu1 %9030, %v5474_v30   ;;  %v11062_v59 = vpop.permute.xlu0 %4821 }
 0xcce   : > { %v11064_v43 = vpop.permute.xlu1 %4819 }
 0xcd0   : > { %v11066_v15 = vpop.permute.xlu0 %4873 }
 0xcd2   : > { %v11068_v45 = vpop.permute.xlu1 %4871 }
 0xcd4   : > { %v11070_v39 = vpop.permute.xlu0 %4881 }
 0xcd6   : > { %v11072_v2 = vpop.permute.xlu1 %4879 }
 0xcd8   : > { %v11074_v62 = vpop.permute.xlu0 %4925 }
 0xcda   : > { %v11076_v36 = vpop.permute.xlu1 %4923 }
 0xcdc   : > { %v11078_v27 = vpop.permute.xlu0 %4933 }
 0xcde   : > { %v11080_v37 = vpop.permute.xlu1 %4931 }
 0xce0   : > { %v4662_v1 = vpop.permute.xlu0 %4661 }
 0xce2   : > { %v4660_v49 = vpop.permute.xlu1 %4659 }
 0xce4   : > { %v4670_v57 = vpop.permute.xlu0 %4669 }
 0xce5   : > { %v4674_v34 = vsel %vm1479_vm2, %v4662_v1, %v4670_v57  ;;  %v4678_v38 = vsel %vm1479_vm2, %v4670_v57, %v4662_v1  ;;  %v7963_v1 = vld [vmem:[%s9366_s13 + $0x2] ss:$8 sm:$0x3]  ;;  %v4743_v57 = vmul.f32 %v4736_v56, %v4727_v6  ;;  %v4780_v6 = vsel %vm1526_vm3, %v11050_v23, %v11044_v13 }
 0xce6   : > { %v4697_v35 = vmul.f32 %v11011_v31, %v4678_v38  ;;  %v4698_v8 = vmul.f32 %v11014_v7, %v4674_v34  ;;  %v4668_v10 = vpop.permute.xlu1 %4667  ;;  %v4792_v9 = vrot.slane %v7963_v1, %v9603_v26  ;;  %v8653_v38 = vpack.c.bf16 %v4746_v40, %v4744_v63 }
 0xce7   : > { %v4673_v58 = vsel %vm1479_vm2, %v4660_v49, %v4668_v10  ;;  %v4677_v17 = vsel %vm1479_vm2, %v4668_v10, %v4660_v49  ;;  %v4776_v49 = vsel %vm1526_vm3, %v11044_v13, %v11050_v23  ;;  %v8655_v44 = vpack.c.bf16 %v4745_v48, %v4743_v57 }
 0xce8   : > { %v4695_v18 = vmul.f32 %v11011_v31, %v4677_v17  ;;  %v4696_v50 = vmul.f32 %v11014_v7, %v4673_v58  ;;  %v4714_v30 = vpop.permute.xlu0 %4713  ;;  %v4775_v31 = vsel %vm1526_vm3, %v11046_v28, %v11054_v20  ;;  %v4779_v58 = vsel %vm1526_vm3, %v11054_v20, %v11046_v28 }
 0xce9   : > { %v4798_v63 = vmul.f32 %v4792_v9, %v4776_v49  ;;  %v4828_v20 = vsel %vm1550_vm4, %v11058_v47, %v11062_v59 }
 0xcea   : > { %v8651_v22 = vpack.c.bf16 %v4697_v35, %v4695_v18  ;;  %v4712_v53 = vpop.permute.xlu1 %4711  ;;  %v8649_v34 = vpack.c.bf16 %v4698_v8, %v4696_v50  ;;  %v4788_v35 = vrot.slane %v7963_v1, %v9601_v25  ;;  %v4796_v18 = vmul.f32 %v4792_v9, %v4775_v31  ;;  %v7964_v50 = vld [vmem:[%s9366_s13 + $0x3] ss:$8 sm:$0x3] }
 0xceb   : > { %v4844_v28 = vrot.slane %v7964_v50, %v9603_v26  ;;  %v4840_v31 = vrot.slane %v7964_v50, %v9601_v25 }
 0xcec   : > { %8650 = vmatprep.subr.bf16.mxu0 %v8649_v34  ;;  %v4722_v33 = vpop.permute.xlu0 %4721  ;;  %v4797_v57 = vmul.f32 %v4788_v35, %v4780_v6  ;;  %v4795_v13 = vmul.f32 %v4788_v35, %v4779_v58  ;;  %v4831_v58 = vsel %vm1550_vm4, %v11064_v43, %v11060_v3 }
 0xced   : > { %8652 = vmatpush1.bf16.msra.mxu0 %v8651_v22  ;;  %v4726_v7 = vsel %vm1502_vm1, %v4714_v30, %v4722_v33  ;;  %v4730_v12 = vsel %vm1502_vm1, %v4722_v33, %v4714_v30  ;;  %v8661_v33 = vpack.c.bf16 %v4798_v63, %v4796_v18 }
 0xcee   : > { %v4749_v8 = vmul.f32 %v4736_v56, %v4730_v12  ;;  %v4750_v10 = vmul.f32 %v4740_v16, %v4726_v7  ;;  %v4720_v14 = vpop.permute.xlu1 %4719  ;;  %8654 = vmatprep.subr.bf16.mxu0 %v8653_v38  ;;  %v8663_v49 = vpack.c.bf16 %v4797_v57, %v4795_v13 }
 0xcef   : > { %v4725_v17 = vsel %vm1502_vm1, %v4712_v53, %v4720_v14  ;;  %v4729_v40 = vsel %vm1502_vm1, %v4720_v14, %v4712_v53 }
 0xcf0   : > { %v4747_v30 = vmul.f32 %v4736_v56, %v4729_v40  ;;  %v4748_v1 = vmul.f32 %v4740_v16, %v4725_v17  ;;  %v4766_v48 = vpop.permute.xlu0 %4765  ;;  %v4827_v16 = vsel %vm1550_vm4, %v11060_v3, %v11064_v43 }
 0xcf1   : > { %8656 = vmatpush1.bf16.msra.mxu0 %v8655_v44  ;;  %v4848_v17 = vmul.f32 %v4844_v28, %v4827_v16  ;;  %v7965_v16 = vld [vmem:[%s9366_s13 + $0x5] ss:$8 sm:$0x3] }
 0xcf2   : > { %v8659_v23 = vpack.c.bf16 %v4749_v8, %v4747_v30  ;;  %v4764_v22 = vpop.permute.xlu1 %4763  ;;  %v8657_v34 = vpack.c.bf16 %v4750_v10, %v4748_v1  ;;  %v4832_v8 = vsel %vm1550_vm4, %v11062_v59, %v11058_v47  ;;  %v4850_v10 = vmul.f32 %v4844_v28, %v4828_v20 }
 0xcf3   : > { %v4849_v59 = vmul.f32 %v4840_v31, %v4832_v8  ;;  %v4847_v1 = vmul.f32 %v4840_v31, %v4831_v58  ;;  %v4900_v8 = vrot.slane %v7965_v16, %v9601_v25 }
 0xcf4   : > { %8658 = vmatprep.subr.bf16.mxu0 %v8657_v34  ;;  %v4774_v53 = vpop.permute.xlu0 %4773  ;;  %v8669_v57 = vpack.c.bf16 %v4850_v10, %v4848_v17 }
 0xcf5   : > { %8660 = vmatpush1.bf16.msra.mxu0 %v8659_v23  ;;  %v4778_v56 = vsel %vm1526_vm3, %v4766_v48, %v4774_v53  ;;  %v4782_v38 = vsel %vm1526_vm3, %v4774_v53, %v4766_v48  ;;  %v8671_v23 = vpack.c.bf16 %v4849_v59, %v4847_v1 }
 0xcf6   : > { %v4801_v7 = vmul.f32 %v4788_v35, %v4782_v38  ;;  %v4802_v12 = vmul.f32 %v4792_v9, %v4778_v56  ;;  %v4772_v44 = vpop.permute.xlu1 %4771  ;;  %8662 = vmatprep.subr.bf16.mxu0 %v8661_v33 }
 0xcf7   : > { %v4777_v14 = vsel %vm1526_vm3, %v4764_v22, %v4772_v44  ;;  %v4781_v6 = vsel %vm1526_vm3, %v4772_v44, %v4764_v22  ;;  %v8677_v44 = vpack.c.bf16 %v10866_v54, %v10874_v19  ;;  %v4888_v54 = vsel %vm1576_vm5, %v11066_v15, %v11070_v39 }
 0xcf8   : > { %v4799_v40 = vmul.f32 %v4788_v35, %v4781_v6  ;;  %v4800_v63 = vmul.f32 %v4792_v9, %v4777_v14  ;;  %v4818_v18 = vpop.permute.xlu0 %4817  ;;  %v4887_v19 = vsel %vm1576_vm5, %v11068_v45, %v11072_v2  ;;  %v7966_v14 = vld [vmem:[%s9366_s13 + $0x6] ss:$8 sm:$0x3]  ;;  %v8679_v6 = vpack.c.bf16 %v10857_v42, %v10861_v52 }
 0xcf9   : > { %8664 = vmatpush1.bf16.msra.mxu0 %v8663_v49  ;;  %v8683_v42 = vpack.c.bf16 %v10928_v11, %v10932_v60  ;;  %v4943_v52 = vsel %vm1600_vm6, %v11080_v37, %v11076_v36  ;;  %v4952_v59 = vrot.slane %v7966_v14, %v9601_v25  ;;  %v4940_v11 = vsel %vm1600_vm6, %v11074_v62, %v11078_v27 }
 0xcfa   : > { %v8667_v50 = vpack.c.bf16 %v4801_v7, %v4799_v40  ;;  %v4816_v30 = vpop.permute.xlu1 %4815  ;;  %v8665_v47 = vpack.c.bf16 %v4802_v12, %v4800_v63  ;;  %v4904_v7 = vrot.slane %v7965_v16, %v9603_v26  ;;  %v8681_v63 = vpack.c.bf16 %v10936_v51, %v10940_v4 }
 0xcfc   : > { %8666 = vmatprep.subr.bf16.mxu0 %v8665_v47  ;;  %v4826_v48 = vpop.permute.xlu0 %4825 }
 0xcfd   : > { %8668 = vmatpush1.bf16.msra.mxu0 %v8667_v50  ;;  %v4830_v13 = vsel %vm1550_vm4, %v4818_v18, %v4826_v48  ;;  %v4834_v3 = vsel %vm1550_vm4, %v4826_v48, %v4818_v18  ;;  %v4909_v18 = vmul.f32 %v4900_v8, %v4888_v54  ;;  %v4907_v50 = vmul.f32 %v4900_v8, %v4887_v19 }
 0xcfe   : > { %v4853_v43 = vmul.f32 %v4840_v31, %v4834_v3  ;;  %v4854_v9 = vmul.f32 %v4844_v28, %v4830_v13  ;;  %v4824_v35 = vpop.permute.xlu1 %4823  ;;  %8670 = vmatprep.subr.bf16.mxu0 %v8669_v57  ;;  %v4939_v48 = vsel %vm1600_vm6, %v11076_v36, %v11080_v37 }
 0xcff   : > { %v4829_v22 = vsel %vm1550_vm4, %v4816_v30, %v4824_v35  ;;  %v4833_v34 = vsel %vm1550_vm4, %v4824_v35, %v4816_v30  ;;  %v8687_v47 = vpack.c.bf16 %v4909_v18, %v4907_v50 }
 0xd00   : > { %v4851_v20 = vmul.f32 %v4840_v31, %v4833_v34  ;;  %v4852_v53 = vmul.f32 %v4844_v28, %v4829_v22  ;;  %v4878_v33 = vpop.permute.xlu0 %4877  ;;  %v4892_v28 = vsel %vm1576_vm5, %v11070_v39, %v11066_v15  ;;  %v4891_v31 = vsel %vm1576_vm5, %v11072_v2, %v11068_v45 }
 0xd01   : > { %8672 = vmatpush1.bf16.msra.mxu0 %v8671_v23  ;;  %v4910_v58 = vmul.f32 %v4904_v7, %v4892_v28  ;;  %v4908_v17 = vmul.f32 %v4904_v7, %v4891_v31  ;;  %v4956_v15 = vrot.slane %v7966_v14, %v9603_v26  ;;  %v4944_v45 = vsel %vm1600_vm6, %v11078_v27, %v11074_v62 }
 0xd02   : > { %v8675_v56 = vpack.c.bf16 %v4853_v43, %v4851_v20  ;;  %v11168_v38 = vpop.permute.xlu1 %4975  ;;  %v8673_v49 = vpack.c.bf16 %v4854_v9, %v4852_v53  ;;  %v4961_v23 = vmul.f32 %v4952_v59, %v4940_v11  ;;  %v4959_v22 = vmul.f32 %v4952_v59, %v4939_v48 }
 0xd03   : > { %v8685_v4 = vpack.c.bf16 %v4910_v58, %v4908_v17  ;;  %v4962_v60 = vmul.f32 %v4956_v15, %v4944_v45  ;;  %v4960_v57 = vmul.f32 %v4956_v15, %v4943_v52 }
 0xd04   : > { %8674 = vmatprep.subr.bf16.mxu0 %v8673_v49  ;;  %v4886_v12 = vpop.permute.xlu0 %4885 }
 0xd05   : > { %8676 = vmatpush1.bf16.msra.mxu0 %v8675_v56  ;;  %v4890_v2 = vsel %vm1576_vm5, %v4878_v33, %v4886_v12  ;;  %v4894_v30 = vsel %vm1576_vm5, %v4886_v12, %v4878_v33  ;;  %v7967_v33 = vld [vmem:[%s9366_s13 + $0x7] ss:$8 sm:$0x3]  ;;  %v8693_v56 = vpack.c.bf16 %v4962_v60, %v4960_v57 }
 0xd06   : > { %v11182_v10 = vpop.permute.xlu1 %4983  ;;  %8678 = vmatprep.subr.bf16.mxu0 %v8677_v44  ;;  %v4913_v43 = vmul.f32 %v4900_v8, %v4890_v2  ;;  %v4914_v9 = vmul.f32 %v4904_v7, %v4894_v30  ;;  %v5008_v12 = vrot.slane %v7967_v33, %v9603_v26 }
 0xd07   : > { %v4995_v44 = vsel %vm1624_vm7, %v11182_v10, %v11168_v38  ;;  %v4991_v18 = vsel %vm1624_vm7, %v11168_v38, %v11182_v10 }
 0xd08   : > { %v4930_v40 = vpop.permute.xlu0 %4929  ;;  %v5012_v50 = vmul.f32 %v5008_v12, %v4995_v44 }
 0xd09   : > { %8680 = vmatpush1.bf16.msra.mxu0 %v8679_v6 }
 0xd0a   : > { %v4876_v39 = vpop.permute.xlu1 %4875  ;;  %8682 = vmatprep.subr.bf16.mxu0 %v8681_v63  ;;  %v5004_v63 = vrot.slane %v7967_v33, %v9601_v25 }
 0xd0c   : > { %v4938_v51 = vpop.permute.xlu0 %4937  ;;  %v5011_v2 = vmul.f32 %v5004_v63, %v4991_v18 }
 0xd0d   : > { %8684 = vmatpush1.bf16.msra.mxu0 %v8683_v42  ;;  %v4942_v36 = vsel %vm1600_vm6, %v4930_v40, %v4938_v51  ;;  %v4946_v37 = vsel %vm1600_vm6, %v4938_v51, %v4930_v40 }
 0xd0e   : > { %v4884_v1 = vpop.permute.xlu1 %4883  ;;  %8686 = vmatprep.subr.bf16.mxu0 %v8685_v4  ;;  %v4965_v31 = vmul.f32 %v4952_v59, %v4942_v36  ;;  %v5155_v36 = vld [vmem:[%s12460_s6 + $0x20] sm:$0xff] }
 0xd0f   : > { %v4889_v13 = vsel %vm1576_vm5, %v4876_v39, %v4884_v1  ;;  %v4893_v3 = vsel %vm1576_vm5, %v4884_v1, %v4876_v39  ;;  %v7968_v1 = vld [vmem:[%s9366_s13 + $0x10] ss:$8 sm:$0x3] }
 0xd10   : > { %v4911_v35 = vmul.f32 %v4900_v8, %v4889_v13  ;;  %v4912_v62 = vmul.f32 %v4904_v7, %v4893_v3  ;;  %v4978_v27 = vpop.permute.xlu0 %4977  ;;  %v8695_v7 = vpack.c.bf16 %v4961_v23, %v4959_v22  ;;  %v4966_v8 = vmul.f32 %v4956_v15, %v4946_v37 }
 0xd11   : > { %8688 = vmatpush1.bf16.msra.mxu0 %v8687_v47 }
 0xd12   : > { %v8691_v34 = vpack.c.bf16 %v4913_v43, %v4911_v35  ;;  %v4928_v20 = vpop.permute.xlu1 %4927  ;;  %v8689_v53 = vpack.c.bf16 %v4914_v9, %v4912_v62  ;;  %v5056_v35 = vrot.slane %v7968_v1, %v9601_v25  ;;  %v5060_v62 = vrot.slane %v7968_v1, %v9603_v26 }
 0xd14   : > { %8690 = vmatprep.subr.bf16.mxu0 %v8689_v53  ;;  %v4986_v16 = vpop.permute.xlu0 %4985 }
 0xd15   : > { %8692 = vmatpush1.bf16.msra.mxu0 %v8691_v34  ;;  %v4996_v49 = vsel %vm1624_vm7, %v4986_v16, %v4978_v27  ;;  %v4992_v14 = vsel %vm1624_vm7, %v4978_v27, %v4986_v16  ;;  %v5151_v34 = vld [vmem:[%s12460_s6] sm:$0xff] }
 0xd16   : > { %v4936_v28 = vpop.permute.xlu1 %4935  ;;  %8694 = vmatprep.subr.bf16.mxu0 %v8693_v56  ;;  %v5014_v6 = vmul.f32 %v5008_v12, %v4996_v49  ;;  %v5013_v52 = vmul.f32 %v5004_v63, %v4992_v14 }
 0xd17   : > { %v4941_v54 = vsel %vm1600_vm6, %v4928_v20, %v4936_v28  ;;  %v4945_v19 = vsel %vm1600_vm6, %v4936_v28, %v4928_v20 }
 0xd18   : > { %v4963_v58 = vmul.f32 %v4952_v59, %v4941_v54  ;;  %v4964_v17 = vmul.f32 %v4956_v15, %v4945_v19  ;;  %v4982_v40 = vpop.permute.xlu0 %4981  ;;  %v8701_v4 = vpack.c.bf16 %v5014_v6, %v5012_v50  ;;  %v8703_v10 = vpack.c.bf16 %v5013_v52, %v5011_v2  ;;  %v5157_v6 = vld [vmem:[%s12460_s6 + $0x30] sm:$0xff]  ;;  %v5156_v2 = vld [vmem:[%s12460_s6 + $0x28] sm:$0xff] }
 0xd19   : > { %8696 = vmatpush1.bf16.msra.mxu0 %v8695_v7 }
 0xd1a   : > { %v8699_v39 = vpack.c.bf16 %v4965_v31, %v4963_v58  ;;  %v4980_v45 = vpop.permute.xlu1 %4979  ;;  %v8697_v42 = vpack.c.bf16 %v4966_v8, %v4964_v17  ;;  %v5158_v8 = vld [vmem:[%s12460_s6 + $0x38] sm:$0xff] }
 0xd1c   : > { %8698 = vmatprep.subr.bf16.mxu0 %v8697_v42  ;;  %v4990_v51 = vpop.permute.xlu0 %4989  ;;  %v5160_v42 = vld [vmem:[%s12460_s6 + $0x48] sm:$0xff] }
 0xd1d   : > { %8700 = vmatpush1.bf16.msra.mxu0 %v8699_v39  ;;  %v4994_v15 = vsel %vm1624_vm7, %v4982_v40, %v4990_v51  ;;  %v4998_v30 = vsel %vm1624_vm7, %v4990_v51, %v4982_v40 }
 0xd1e   : > { %v5017_v47 = vmul.f32 %v5004_v63, %v4994_v15  ;;  %v5018_v59 = vmul.f32 %v5008_v12, %v4998_v30  ;;  %v4988_v38 = vpop.permute.xlu1 %4987  ;;  %8702 = vmatprep.subr.bf16.mxu0 %v8701_v4  ;;  %v5153_v4 = vld [vmem:[%s12460_s6 + $0x10] sm:$0xff]  ;;  %v5159_v15 = vld [vmem:[%s12460_s6 + $0x40] sm:$0xff]  ;;  %v5162_v30 = vld [vmem:[%s12460_s6 + $0x58] sm:$0xff] }
 0xd1f   : > { %v4993_v11 = vsel %vm1624_vm7, %v4980_v45, %v4988_v38  ;;  %v4997_v60 = vsel %vm1624_vm7, %v4988_v38, %v4980_v45 }
 0xd20   : > { %v5015_v48 = vmul.f32 %v5004_v63, %v4993_v11  ;;  %v5016_v57 = vmul.f32 %v5008_v12, %v4997_v60  ;;  %v5030_v13 = vpop.permute.xlu0 %5029  ;;  %v5154_v12 = vld [vmem:[%s12460_s6 + $0x18] sm:$0xff]  ;;  %v5161_v63 = vld [vmem:[%s12460_s6 + $0x50] sm:$0xff]  ;;  %s12464_s6 = sld [smem:[#allocation20_spill]] }
 0xd21   : > { %8704 = vmatpush1.bf16.msra.mxu0 %v8703_v10 }
 0xd22   : > { %v8707_v3 = vpack.c.bf16 %v5017_v47, %v5015_v48  ;;  %v5028_v43 = vpop.permute.xlu1 %5027  ;;  %v8705_v9 = vpack.c.bf16 %v5018_v59, %v5016_v57 }
 0xd24   : > { %8706 = vmatprep.subr.bf16.mxu0 %v8705_v9  ;;  %v5038_v27 = vpop.permute.xlu0 %5037 }
 0xd25   : > { %8708 = vmatpush1.bf16.msra.mxu0 %v8707_v3  ;;  %v5044_v23 = vsel %vm1648_vm8, %v5030_v13, %v5038_v27  ;;  %v5048_v22 = vsel %vm1648_vm8, %v5038_v27, %v5030_v13 }
 0xd26   : > { %v5065_v20 = vmul.f32 %v5056_v35, %v5044_v23  ;;  %v5066_v53 = vmul.f32 %v5060_v62, %v5048_v22  ;;  %v5036_v33 = vpop.permute.xlu1 %5035 }
 0xd27   : > { %v5043_v37 = vsel %vm1648_vm8, %v5028_v43, %v5036_v33  ;;  %v5047_v16 = vsel %vm1648_vm8, %v5036_v33, %v5028_v43 }
 0xd28   : > { %v5063_v56 = vmul.f32 %v5056_v35, %v5043_v37  ;;  %v5064_v49 = vmul.f32 %v5060_v62, %v5047_v16  ;;  %5264 = vmatmul.mubr.f32.vlgmr.msra.gmra.mrb[32].mxu0 %v5151_v34  ;;  %v5034_v7 = vpop.permute.xlu0 %5033 }
 0xd29   : > { %5269 = vmatprep.mubr.f32.mxu0 %v5155_v36 }
 0xd2a   : > { %v8711_v44 = vpack.c.bf16 %v5065_v20, %v5063_v56  ;;  %v5032_v28 = vpop.permute.xlu1 %5031  ;;  %v8709_v31 = vpack.c.bf16 %v5066_v53, %v5064_v49 }
 0xd2c   : > { %5270 = vmatmul.mubr.f32.gmra.mrb[34].mxu0 %v5154_v12  ;;  %8710 = vmatprep.subr.bf16.mxu0 %v8709_v31  ;;  %v5042_v54 = vpop.permute.xlu0 %5041 }
 0xd2d   : > { %8712 = vmatpush1.bf16.msra.mxu0 %v8711_v44  ;;  %v5046_v19 = vsel %vm1648_vm8, %v5034_v7, %v5042_v54  ;;  %v5050_v14 = vsel %vm1648_vm8, %v5042_v54, %v5034_v7  ;;  %5275 = vmatprep.mubr.f32.mxu0 %v5158_v8 }
 0xd2e   : > { %v5069_v58 = vmul.f32 %v5056_v35, %v5046_v19  ;;  %v5070_v17 = vmul.f32 %v5060_v62, %v5050_v14  ;;  %v5040_v40 = vpop.permute.xlu1 %5039 }
 0xd2f   : > { %v5045_v18 = vsel %vm1648_vm8, %v5032_v28, %v5040_v40  ;;  %v5049_v50 = vsel %vm1648_vm8, %v5040_v40, %v5032_v28 }
 0xd30   : > { %v5067_v39 = vmul.f32 %v5056_v35, %v5045_v18  ;;  %v5068_v45 = vmul.f32 %v5060_v62, %v5049_v50  ;;  %5276 = vmatmul.mubr.f32.gmra.mrb[36].mxu0 %v5157_v6 }
 0xd31   : > { %5281 = vmatprep.mubr.f32.mxu0 %v5161_v63 }
 0xd32   : > { %v8715_v52 = vpack.c.bf16 %v5069_v58, %v5067_v39  ;;  %v8713_v51 = vpack.c.bf16 %v5070_v17, %v5068_v45 }
 0xd34   : > { %5282 = vmatmul.mubr.f32.gmra.mrb[38].mxu0 %v5160_v42  ;;  %8714 = vmatprep.subr.bf16.mxu0 %v8713_v51 }
 0xd35   : > { %8716 = vmatpush1.bf16.msra.mxu0 %v8715_v52  ;;  %5352 = vmatprep.mubr.f32.mxu0 %v12447_v61 }
 0xd38   : > { %7969 = vmatmul.mubr.msk.f32.vlgmr.msra.gmra.mrb[32].mxu0 %vm1083_vm0, %v5153_v4  ;;  %v5542_v4 = vld [vmem:[%s9371_s17] sm:$0xff] }
 0xd39   : > { %5358 = vmatprep.mubr.f32.mxu0 %v12447_v61  ;;  %8349 = vmatprep.mubr.msk.f32.mxu1 %vm1083_vm0, %v5542_v4 }
 0xd3c   : > { %7970 = vmatmul.mubr.msk.f32.gmra.mrb[34].mxu0 %vm1083_vm0, %v5156_v2  ;;  %v5808_v2 = vld [vmem:[%s12464_s6] sm:$0xff] }
 0xd3d   : > { %5364 = vmatprep.mubr.f32.mxu0 %v12447_v61  ;;  %v5175_v59 = vpop.permute.xlu0 %5174 }
 0xd3f   : > { %v5170_v47 = vpop.permute.xlu1 %5169 }
 0xd40   : > { %7971 = vmatmul.mubr.msk.f32.gmra.mrb[36].mxu0 %vm1083_vm0, %v5159_v15  ;;  %v5809_v15 = vld [vmem:[%s12464_s6 + $0x8] sm:$0xff] }
 0xd41   : > { %5370 = vmatprep.mubr.f32.mxu0 %v12447_v61  ;;  %v5490_v1 = vpop.permute.xlu0 %5489 }
 0xd43   : > { %v5485_v38 = vpop.permute.xlu1 %5484 }
 0xd44   : > { %7972 = vmatmul.mubr.msk.f32.gmra.mrb[38].mxu0 %vm1083_vm0, %v5162_v30  ;;  %v5840_v30 = vld [vmem:[%s12465_s9] sm:$0xff] }
 0xd45   : > { %v5185_v22 = vpop.permute.xlu0 %5184 }
 0xd47   : > { %v5180_v13 = vpop.permute.xlu1 %5179 }
 0xd49   : > { %v5500_v8 = vpop.permute.xlu0 %5499 }
 0xd4b   : > { %v5495_v36 = vpop.permute.xlu1 %5494 }
 0xe0b   : > { %v5354_v10 = vpop.f32.mrb[32].mxu0 }
 0xe0c   : > { %v8933_v11 = vadd.f32 %v5354_v10, %v5170_v47  ;;  %v5356_v60 = vpop.f32.mrb[33].mxu0 }
 0xe0d   : > { %v8934_v48 = vadd.f32 %v5356_v60, %v5170_v47  ;;  %v5841_v47 = vld [vmem:[%s12465_s9 + $0x8] sm:$0xff] }
 0xe0e   : > { %v11294_v57 = vadd.f32 %v8933_v11, %v5485_v38 }
 0xe0f   : > { %v11296_v3 = vadd.f32 %v8934_v48, %v5485_v38  ;;  %v5360_v43 = vpop.f32.mrb[34].mxu0  ;;  %v5811_v38 = vld [vmem:[%s12464_s6 + $0x18] sm:$0xff] }
 0xe10   : > { %v8935_v9 = vadd.f32 %v5360_v43, %v5175_v59  ;;  %v5362_v35 = vpop.f32.mrb[35].mxu0  ;;  %v5522_v28 = vmul.f32 %v11294_v57, %v11294_v57 }
 0xe11   : > { %v8936_v62 = vadd.f32 %v5362_v35, %v5175_v59  ;;  %v5510_v27 = vadd.f32 %v11296_v3, %v11294_v57  ;;  %v5523_v31 = vmul.f32 %v11296_v3, %v11296_v3  ;;  %v5810_v59 = vld [vmem:[%s12464_s6 + $0x10] sm:$0xff]  ;;  %v5543_v35 = vld [vmem:[%s9371_s17 + $0x8] sm:$0xff]  ;;  %s12466_s6 = sld [smem:[#allocation22_spill]] }
 0xe12   : > { %v11300_v23 = vadd.f32 %v8935_v9, %v5490_v1 }
 0xe13   : > { %v11302_v34 = vadd.f32 %v8936_v62, %v5490_v1  ;;  %v5366_v20 = vpop.f32.mrb[36].mxu0  ;;  %5511 = vadd.xlane.f32.xlu1 %v5510_v27  ;;  %v5530_v58 = vadd.f32 %v5523_v31, %v5522_v28  ;;  %v5544_v27 = vld [vmem:[%s9371_s17 + $0x10] sm:$0xff] }
 0xe14   : > { %v8937_v53 = vadd.f32 %v5366_v20, %v5180_v13  ;;  %v5368_v33 = vpop.f32.mrb[37].mxu0  ;;  %v5524_v17 = vmul.f32 %v11300_v23, %v11300_v23 }
 0xe15   : > { %v8938_v37 = vadd.f32 %v5368_v33, %v5180_v13  ;;  %v5513_v16 = vadd.f32 %v11302_v34, %v11300_v23  ;;  %v5525_v50 = vmul.f32 %v11302_v34, %v11302_v34 }
 0xe16   : > { %v11306_v56 = vadd.f32 %v8937_v53, %v5495_v36  ;;  %v5545_v53 = vld [vmem:[%s9371_s17 + $0x18] sm:$0xff] }
 0xe17   : > { %v11308_v49 = vadd.f32 %v8938_v37, %v5495_v36  ;;  %v5372_v7 = vpop.f32.mrb[38].mxu0  ;;  %5514 = vadd.xlane.f32.xlu0 %v5513_v16  ;;  %v5533_v45 = vadd.f32 %v5525_v50, %v5524_v17 }
 0xe18   : > { %v8939_v12 = vadd.f32 %v5372_v7, %v5185_v22  ;;  %v5374_v44 = vpop.f32.mrb[39].mxu0  ;;  %v5526_v63 = vmul.f32 %v11306_v56, %v11306_v56 }
 0xe19   : > { %v8940_v54 = vadd.f32 %v5374_v44, %v5185_v22  ;;  %v5516_v19 = vadd.f32 %v11308_v49, %v11306_v56  ;;  %v5527_v18 = vmul.f32 %v11308_v49, %v11308_v49 }
 0xe1a   : > { %v11316_v14 = vadd.f32 %v8939_v12, %v5500_v8 }
 0xe1b   : > { %v11318_v6 = vadd.f32 %v8940_v54, %v5500_v8  ;;  %5517 = vadd.xlane.f32.xlu0 %v5516_v19  ;;  %v5536_v39 = vadd.f32 %v5527_v18, %v5526_v63 }
 0xe1c   : > { %v5528_v42 = vmul.f32 %v11316_v14, %v11316_v14 }
 0xe1d   : > { %v5519_v40 = vadd.f32 %v11318_v6, %v11316_v14  ;;  %v5529_v52 = vmul.f32 %v11318_v6, %v11318_v6 }
 0xe1f   : > { %5531 = vadd.xlane.f32.xlu0 %v5530_v58  ;;  %5520 = vadd.xlane.f32.xlu1 %v5519_v40  ;;  %v5539_v51 = vadd.f32 %v5529_v52, %v5528_v42 }
 0xe23   : > { %5537 = vadd.xlane.f32.xlu0 %v5536_v39  ;;  %5534 = vadd.xlane.f32.xlu1 %v5533_v45 }
 0xe27   : > { %5540 = vadd.xlane.f32.xlu1 %v5539_v51 }
 0xe38   : > { %5814 = vperm.xlu1 %9030, %v5808_v2  }
 0xe39   : > { %5819 = vperm.xlu0 %9029, %v5809_v15  }
 0xe3c   : > { %5846 = vperm.xlu1 %9030, %v5840_v30  }
 0xe3d   : > { %5851 = vperm.xlu0 %9029, %v5841_v47  }
 0xe40   : > { %5824 = vperm.xlu1 %9030, %v5810_v59  }
 0xe41   : > { %5829 = vperm.xlu0 %9029, %v5811_v38  }
 0xea0   : > { %v5512_v10 = vpop.xlane.xlu1 %5511 }
 0xea4   : > { %v5515_v11 = vpop.xlane.xlu0 %5514 }
 0xea5   : > { %v8733_v60 = vpack.c.bf16 %v5515_v11, %v5512_v10 }
 0xea7   : > { %8734 = vmatprep.subr.bf16.mxu1 %v8733_v60 }
 0xea8   : > { %8736 = vmatpush3.bf16.msra.mxu1 %v8733_v60  ;;  %v5518_v1 = vpop.xlane.xlu0 %5517 }
 0xeac   : > { %v5521_v48 = vpop.xlane.xlu1 %5520  ;;  %v5532_v43 = vpop.xlane.xlu0 %5531 }
 0xead   : > { %v8737_v13 = vpack.c.bf16 %v5521_v48, %v5518_v1  ;;  %v5843_v1 = vld [vmem:[%s12465_s9 + $0x18] sm:$0xff]  ;;  %v5842_v48 = vld [vmem:[%s12465_s9 + $0x10] sm:$0xff]  ;;  %s12467_s9 = sld [smem:[#allocation23_spill]] }
 0xeaf   : > { %8738 = vmatprep.subr.bf16.mxu1 %v8737_v13 }
 0xeb0   : > { %v5535_v9 = vpop.xlane.xlu1 %5534  ;;  %8740 = vmatpush3.bf16.msra.mxu1 %v8737_v13  ;;  %v5538_v22 = vpop.xlane.xlu0 %5537 }
 0xeb1   : > { %v8741_v62 = vpack.c.bf16 %v5535_v9, %v5532_v43 }
 0xeb3   : > { %8350 = vmatmul.mubr.msk.f32.vlgmr.msra.gmra.mrb[48].mxu1 %vm1083_vm0, %v5543_v35  ;;  %8742 = vmatprep.subr.bf16.mxu1 %v8741_v62 }
 0xeb4   : > { %v5541_v20 = vpop.xlane.xlu1 %5540  ;;  %8744 = vmatpush3.bf16.msra.mxu1 %v8741_v62  ;;  %8352 = vmatprep.mubr.msk.f32.mxu1 %vm1083_vm0, %v5544_v27 }
 0xeb5   : > { %v8745_v33 = vpack.c.bf16 %v5541_v20, %v5538_v22 }
 0xeb7   : > { %8353 = vmatmul.mubr.msk.f32.gmra.mrb[50].mxu1 %vm1083_vm0, %v5545_v53  ;;  %8746 = vmatprep.subr.bf16.mxu1 %v8745_v33 }
 0xeb8   : > { %8748 = vmatpush3.bf16.msra.mxu1 %v8745_v33  ;;  %8363 = vmatprep.mubr.msk.f32.mxu1 %vm1083_vm0, %v5542_v4  ;;  %v5820_v13 = vpop.permute.xlu0 %5819  ;;  %v5815_v43 = vpop.permute.xlu1 %5814 }
 0xebb   : > { %8364 = vmatmul.mubr.msk.f32.vlgmr.msra.gmra.mrb[52].mxu1 %vm1083_vm0, %v5543_v35 }
 0xebc   : > { %8366 = vmatprep.mubr.msk.f32.mxu1 %vm1083_vm0, %v5544_v27  ;;  %v5852_v9 = vpop.permute.xlu0 %5851  ;;  %v5847_v35 = vpop.permute.xlu1 %5846 }
 0xebf   : > { %8367 = vmatmul.mubr.msk.f32.gmra.mrb[54].mxu1 %vm1083_vm0, %v5545_v53 }
 0xec0   : > { %v11354_v62 = vpop.permute.xlu0 %5829  ;;  %v11356_v27 = vpop.permute.xlu1 %5824 }
 0xf86   : > { %v8351_v36 = vpop.f32.mrb[48].mxu1 }
 0xf87   : > { %v5644_v37 = vmul.f32 0.0009765625, %v8351_v36  ;;  %v5624_v16 = vpop.f32.mrb[49].mxu1 }
 0xf88   : > { %v5643_v7 = vmul.f32 0.0009765625, %v5624_v16 }
 0xf89   : > { %5759 = vperm.xlu1 %9030, %v5644_v37   ;;  %v5737_v54 = vmul.f32 %v5644_v37, %v5644_v37 }
 0xf8a   : > { %5754 = vperm.xlu0 %9029, %v5643_v7   ;;  %v8354_v12 = vpop.f32.mrb[50].mxu1  ;;  %v5736_v17 = vmul.f32 %v5643_v7, %v5643_v7 }
 0xf8b   : > { %v5646_v44 = vmul.f32 0.0009765625, %v8354_v12  ;;  %v5634_v28 = vpop.f32.mrb[51].mxu1 }
 0xf8c   : > { %v5645_v31 = vmul.f32 0.0009765625, %v5634_v28 }
 0xf8d   : > { %v5739_v39 = vmul.f32 %v5646_v44, %v5646_v44 }
 0xf8e   : > { %5769 = vperm.xlu0 %9029, %v5646_v44   ;;  %5764 = vperm.xlu1 %9030, %v5645_v31   ;;  %v8365_v8 = vpop.f32.mrb[52].mxu1  ;;  %v5738_v51 = vmul.f32 %v5645_v31, %v5645_v31 }
 0xf8f   : > { %v5733_v19 = vmul.f32 0.0009765625, %v8365_v8  ;;  %v5713_v58 = vpop.f32.mrb[53].mxu1 }
 0xf90   : > { %v5732_v40 = vmul.f32 0.0009765625, %v5713_v58 }
 0xf91   : > { %v5741_v63 = vsub.f32 %v5733_v19, %v5737_v54 }
 0xf92   : > { %v5740_v18 = vsub.f32 %v5732_v40, %v5736_v17  ;;  %v8368_v50 = vpop.f32.mrb[54].mxu1 }
 0xf93   : > { %v5745_v45 = vadd.f32 1e-05, %v5741_v63  ;;  %v5735_v42 = vmul.f32 0.0009765625, %v8368_v50  ;;  %v5723_v52 = vpop.f32.mrb[55].mxu1 }
 0xf94   : > { %v5744_v4 = vadd.f32 1e-05, %v5740_v18  ;;  %v5734_v2 = vmul.f32 0.0009765625, %v5723_v52 }
 0xf95   : > { %9216 = vrsqrt.f32 %v5745_v45  ;;  %v5743_v15 = vsub.f32 %v5735_v42, %v5739_v39 }
 0xf96   : > { %9218 = vrsqrt.f32 %v5744_v4  ;;  %v5742_v30 = vsub.f32 %v5734_v2, %v5738_v51 }
 0xf97   : > { %v5747_v47 = vadd.f32 1e-05, %v5743_v15 }
 0xf98   : > { %v5746_v59 = vadd.f32 1e-05, %v5742_v30 }
 0xf99   : > { %9220 = vrsqrt.f32 %v5747_v47 }
 0xf9a   : > { %9222 = vrsqrt.f32 %v5746_v59 }
 0xf9f   : > { %v9217_v38 = vpop.eup %9216 }
 0xfa0   : > { %v9219_v10 = vpop.eup %9218  ;;  %5787 = vperm.xlu0 %9029, %v9217_v38  }
 0xfa1   : > { %5782 = vperm.xlu1 %9030, %v9219_v10  }
 0xfa3   : > { %v9221_v11 = vpop.eup %9220 }
 0xfa4   : > { %v9223_v60 = vpop.eup %9222  ;;  %5797 = vperm.xlu0 %9029, %v9221_v11  }
 0xfa5   : > { %5792 = vperm.xlu1 %9030, %v9223_v60  }
 0xfa8   : > { %5861 = vperm.xlu0 %9029, %v5843_v1  }
 0xfa9   : > { %5856 = vperm.xlu1 %9030, %v5842_v48  }
0x1008   : > { %v5760_v20 = vpop.permute.xlu1 %5759 }
0x1009   : > { %v5755_v22 = vpop.permute.xlu0 %5754  ;;  %v5774_v36 = vsub.f32 %v11300_v23, %v5760_v20  ;;  %v5775_v37 = vsub.f32 %v11302_v34, %v5760_v20 }
0x100a   : > { %v5772_v16 = vsub.f32 %v11294_v57, %v5755_v22  ;;  %v5773_v7 = vsub.f32 %v11296_v3, %v5755_v22 }
0x100d   : > { %v5770_v53 = vpop.permute.xlu0 %5769  ;;  %v5765_v33 = vpop.permute.xlu1 %5764 }
0x100e   : > { %v5778_v10 = vsub.f32 %v11316_v14, %v5770_v53  ;;  %v5776_v48 = vsub.f32 %v11306_v56, %v5765_v33  ;;  %v5777_v14 = vsub.f32 %v11308_v49, %v5765_v33 }
0x101f   : > { %v5788_v12 = vpop.permute.xlu0 %5787 }
0x1020   : > { %v5802_v44 = vmul.f32 %v5788_v12, %v5774_v36  ;;  %v5803_v28 = vmul.f32 %v5788_v12, %v5775_v37  ;;  %v5783_v31 = vpop.permute.xlu1 %5782 }
0x1021   : > { %v5800_v8 = vmul.f32 %v5783_v31, %v5772_v16  ;;  %v5801_v54 = vmul.f32 %v5783_v31, %v5773_v7 }
0x1022   : > { %v5834_v19 = vmul.f32 %v5820_v13, %v5802_v44  ;;  %v5835_v58 = vmul.f32 %v5820_v13, %v5803_v28 }
0x1023   : > { %v5832_v17 = vmul.f32 %v5815_v43, %v5800_v8  ;;  %v5833_v40 = vmul.f32 %v5815_v43, %v5801_v54  ;;  %v5798_v59 = vpop.permute.xlu0 %5797 }
0x1024   : > { %v5866_v63 = vadd.f32 %v5852_v9, %v5834_v19  ;;  %v5867_v18 = vadd.f32 %v5852_v9, %v5835_v58  ;;  %v5793_v1 = vpop.permute.xlu1 %5792  ;;  %v5806_v43 = vmul.f32 %v5798_v59, %v5778_v10 }
0x1025   : > { %v5864_v50 = vadd.f32 %v5847_v35, %v5832_v17  ;;  %v5865_v23 = vadd.f32 %v5847_v35, %v5833_v40  ;;  %v5779_v35 = vsub.f32 %v11318_v6, %v5770_v53  ;;  %v5804_v20 = vmul.f32 %v5793_v1, %v5776_v48 }
0x1026   : > { %v7987_v39 = vmul.f32 -1.442695, %v5866_v63  ;;  %v7988_v34 = vmul.f32 -1.442695, %v5867_v18  ;;  %v5838_v37 = vmul.f32 %v11354_v62, %v5806_v43  ;;  %v5805_v7 = vmul.f32 %v5793_v1, %v5777_v14 }
0x1027   : > { %v7985_v45 = vmul.f32 -1.442695, %v5864_v50  ;;  %v7986_v57 = vmul.f32 -1.442695, %v5865_v23  ;;  %v5807_v56 = vmul.f32 %v5798_v59, %v5779_v35  ;;  %v5862_v16 = vpop.permute.xlu0 %5861  ;;  %v5836_v6 = vmul.f32 %v11356_v27, %v5804_v20 }
0x1028   : > { %9224 = vpow2.f32 %v7987_v39  ;;  %v5857_v53 = vpop.permute.xlu1 %5856  ;;  %v5870_v44 = vadd.f32 %v5862_v16, %v5838_v37  ;;  %v5837_v49 = vmul.f32 %v11356_v27, %v5805_v7 }
0x1029   : > { %9226 = vpow2.f32 %v7988_v34  ;;  %v5839_v12 = vmul.f32 %v11354_v62, %v5807_v56  ;;  %v5868_v33 = vadd.f32 %v5857_v53, %v5836_v6  ;;  %v6437_v6 = vld [vmem:[%s12467_s9 + $0x8] sm:$0xff] }
0x102a   : > { %9228 = vpow2.f32 %v7985_v45  ;;  %v7991_v31 = vmul.f32 -1.442695, %v5870_v44  ;;  %v5869_v8 = vadd.f32 %v5857_v53, %v5837_v49  ;;  %v6439_v49 = vld [vmem:[%s12467_s9 + $0x18] sm:$0xff] }
0x102b   : > { %9230 = vpow2.f32 %v7986_v57  ;;  %v5871_v28 = vadd.f32 %v5862_v16, %v5839_v12  ;;  %v7989_v54 = vmul.f32 -1.442695, %v5868_v33  ;;  %v6436_v12 = vld [vmem:[%s12467_s9] sm:$0xff] }
0x102c   : > { %v7990_v27 = vmul.f32 -1.442695, %v5869_v8 }
0x102d   : > { %v7992_v62 = vmul.f32 -1.442695, %v5871_v28 }
0x1032   : > { %v9225_v3 = vpop.eup %9224 }
0x1033   : > { %v9227_v42 = vpop.eup %9226  ;;  %v5898_v52 = vadd.f32 1.0, %v9225_v3 }
0x1034   : > { %v9229_v51 = vpop.eup %9228  ;;  %v5899_v4 = vadd.f32 1.0, %v9227_v42 }
0x1035   : > { %v9231_v2 = vpop.eup %9230  ;;  %9232 = vrcp.f32 %v5898_v52  ;;  %v5896_v15 = vadd.f32 1.0, %v9229_v51 }
0x1036   : > { %9234 = vrcp.f32 %v5899_v4  ;;  %v5897_v30 = vadd.f32 1.0, %v9231_v2  ;;  %v6425_v4 = vld [vmem:[%s12466_s6 + $0x8] sm:$0xff] }
0x1037   : > { %9236 = vrcp.f32 %v5896_v15  ;;  %6536 = vmatprep.mubr.f32.mxu1 %v6425_v4  ;;  %v5952_v2 = vld [vmem:[%s9366_s13] ss:$8 sm:$0x3] }
0x1038   : > { %9238 = vrcp.f32 %v5897_v30  ;;  %v11510_v59 = vrot.slane %v5952_v2, %v9603_v26 }
0x1039   : > { %9240 = vpow2.f32 %v7991_v31 }
0x103a   : > { %9242 = vpow2.f32 %v7989_v54 }
0x103b   : > { %9244 = vpow2.f32 %v7992_v62 }
0x103c   : > { %9246 = vpow2.f32 %v7990_v27 }
0x103f   : > { %v9233_v47 = vpop.eup %9232 }
0x1040   : > { %v9235_v38 = vpop.eup %9234  ;;  %v11363_v11 = vmul.f32 %v9233_v47, %v5866_v63  ;;  %v11507_v47 = vrot.slane %v5952_v2, %v9601_v25 }
0x1041   : > { %v9237_v60 = vpop.eup %9236  ;;  %v11371_v22 = vmul.f32 %v9235_v38, %v5867_v18 }
0x1042   : > { %v11366_v13 = vmul.f32 %v9237_v60, %v5864_v50  ;;  %5930 = vrot.lane.b32.xlu0 %v11363_v11, %s12459_s5  ;;  %v9239_v9 = vpop.eup %9238 }
0x1043   : > { %v11376_v36 = vmul.f32 %v9239_v9, %v5865_v23  ;;  %v9241_v19 = vpop.eup %9240 }
0x1044   : > { %5928 = vrot.lane.b32.xlu1 %v11366_v13, %s12459_s5  ;;  %v9243_v58 = vpop.eup %9242  ;;  %v5902_v17 = vadd.f32 1.0, %v9241_v19 }
0x1045   : > { %v9245_v40 = vpop.eup %9244  ;;  %v5900_v63 = vadd.f32 1.0, %v9243_v58 }
0x1046   : > { %5938 = vrot.lane.b32.xlu0 %v11371_v22, %s12459_s5  ;;  %v9247_v18 = vpop.eup %9246  ;;  %v5903_v50 = vadd.f32 1.0, %v9245_v40  ;;  %9248 = vrcp.f32 %v5902_v17 }
0x1047   : > { %v5901_v23 = vadd.f32 1.0, %v9247_v18  ;;  %9250 = vrcp.f32 %v5900_v63 }
0x1048   : > { %5936 = vrot.lane.b32.xlu1 %v11376_v36, %s12459_s5  ;;  %9252 = vrcp.f32 %v5903_v50 }
0x1049   : > { %9254 = vrcp.f32 %v5901_v23 }
0x104a   : > { %5982 = vrot.lane.b32.xlu0 %v11363_v11, %s12454_s0 }
0x104c   : > { %5980 = vrot.lane.b32.xlu1 %v11366_v13, %s12454_s0 }
0x104e   : > { %5990 = vrot.lane.b32.xlu0 %v11371_v22, %s12454_s0 }
0x1050   : > { %5988 = vrot.lane.b32.xlu1 %v11376_v36, %s12454_s0  ;;  %v9249_v39 = vpop.eup %9248 }
0x1051   : > { %v9251_v34 = vpop.eup %9250  ;;  %v11424_v45 = vmul.f32 %v9249_v39, %v5870_v44 }
0x1052   : > { %6034 = vrot.lane.b32.xlu0 %v11363_v11, %s12455_s26  ;;  %v9253_v57 = vpop.eup %9252  ;;  %v11428_v3 = vmul.f32 %v9251_v34, %v5868_v33 }
0x1053   : > { %v9255_v42 = vpop.eup %9254  ;;  %v11432_v52 = vmul.f32 %v9253_v57, %v5871_v28  ;;  %v6438_v28 = vld [vmem:[%s12467_s9 + $0x10] sm:$0xff] }
0x1054   : > { %6032 = vrot.lane.b32.xlu1 %v11366_v13, %s12455_s26  ;;  %v11436_v51 = vmul.f32 %v9255_v42, %v5869_v8  ;;  %v7993_v42 = vld [vmem:[%s9366_s13 + $0x1] ss:$8 sm:$0x3] }
0x1055   : > { %v6013_v2 = vrot.slane %v7993_v42, %v9603_v26 }
0x1056   : > { %6042 = vrot.lane.b32.xlu0 %v11371_v22, %s12455_s26 }
0x1058   : > { %6040 = vrot.lane.b32.xlu1 %v11376_v36, %s12455_s26 }
0x105a   : > { %6086 = vrot.lane.b32.xlu0 %v11363_v11, %s12456_s1 }
0x105c   : > { %6084 = vrot.lane.b32.xlu1 %v11366_v13, %s12456_s1 }
0x105e   : > { %6094 = vrot.lane.b32.xlu0 %v11371_v22, %s12456_s1 }
0x1060   : > { %6092 = vrot.lane.b32.xlu1 %v11376_v36, %s12456_s1 }
0x1062   : > { %6146 = vrot.lane.b32.xlu0 %v11363_v11, %s12457_s2 }
0x1064   : > { %6144 = vrot.lane.b32.xlu1 %v11366_v13, %s12457_s2 }
0x1066   : > { %6154 = vrot.lane.b32.xlu0 %v11371_v22, %s12457_s2 }
0x1068   : > { %6152 = vrot.lane.b32.xlu1 %v11376_v36, %s12457_s2 }
0x106a   : > { %6198 = vrot.lane.b32.xlu0 %v11363_v11, %s12458_s3 }
0x106c   : > { %6196 = vrot.lane.b32.xlu1 %v11366_v13, %s12458_s3 }
0x106e   : > { %6206 = vrot.lane.b32.xlu0 %v11371_v22, %s12458_s3 }
0x1070   : > { %6204 = vrot.lane.b32.xlu1 %v11376_v36, %s12458_s3 }
0x1072   : > { %5934 = vrot.lane.b32.xlu0 %v11424_v45, %s12459_s5 }
0x1074   : > { %5932 = vrot.lane.b32.xlu1 %v11428_v3, %s12459_s5 }
0x1076   : > { %5942 = vrot.lane.b32.xlu0 %v11432_v52, %s12459_s5 }
0x1078   : > { %5940 = vrot.lane.b32.xlu1 %v11436_v51, %s12459_s5 }
0x107a   : > { %5986 = vrot.lane.b32.xlu0 %v11424_v45, %s12454_s0 }
0x107c   : > { %5984 = vrot.lane.b32.xlu1 %v11428_v3, %s12454_s0 }
0x107e   : > { %5994 = vrot.lane.b32.xlu0 %v11432_v52, %s12454_s0 }
0x1080   : > { %5992 = vrot.lane.b32.xlu1 %v11436_v51, %s12454_s0 }
0x1082   : > { %6038 = vrot.lane.b32.xlu0 %v11424_v45, %s12455_s26 }
0x1084   : > { %6036 = vrot.lane.b32.xlu1 %v11428_v3, %s12455_s26 }
0x1086   : > { %6046 = vrot.lane.b32.xlu0 %v11432_v52, %s12455_s26 }
0x1088   : > { %6044 = vrot.lane.b32.xlu1 %v11436_v51, %s12455_s26 }
0x108a   : > { %6090 = vrot.lane.b32.xlu0 %v11424_v45, %s12456_s1 }
0x108c   : > { %6088 = vrot.lane.b32.xlu1 %v11428_v3, %s12456_s1 }
0x108e   : > { %6098 = vrot.lane.b32.xlu0 %v11432_v52, %s12456_s1 }
0x1090   : > { %6096 = vrot.lane.b32.xlu1 %v11436_v51, %s12456_s1 }
0x1092   : > { %6150 = vrot.lane.b32.xlu0 %v11424_v45, %s12457_s2 }
0x1094   : > { %6248 = vrot.lane.b32.xlu1 %v11366_v13, %s12461_s8 }
0x1096   : > { %6158 = vrot.lane.b32.xlu0 %v11432_v52, %s12457_s2 }
0x1098   : > { %6256 = vrot.lane.b32.xlu1 %v11376_v36, %s12461_s8 }
0x109a   : > { %6202 = vrot.lane.b32.xlu0 %v11424_v45, %s12458_s3 }
0x109c   : > { %6148 = vrot.lane.b32.xlu1 %v11428_v3, %s12457_s2 }
0x109e   : > { %6210 = vrot.lane.b32.xlu0 %v11432_v52, %s12458_s3 }
0x10a0   : > { %6156 = vrot.lane.b32.xlu1 %v11436_v51, %s12457_s2 }
0x10a2   : > { %6250 = vrot.lane.b32.xlu0 %v11363_v11, %s12461_s8 }
0x10a4   : > { %6200 = vrot.lane.b32.xlu1 %v11428_v3, %s12458_s3 }
0x10a6   : > { %6258 = vrot.lane.b32.xlu0 %v11371_v22, %s12461_s8 }
0x10a8   : > { %6208 = vrot.lane.b32.xlu1 %v11436_v51, %s12458_s3 }
0x10aa   : > { %6254 = vrot.lane.b32.xlu0 %v11424_v45, %s12461_s8 }
0x10ac   : > { %6252 = vrot.lane.b32.xlu1 %v11428_v3, %s12461_s8 }
0x10ae   : > { %6262 = vrot.lane.b32.xlu0 %v11432_v52, %s12461_s8 }
0x10b0   : > { %6260 = vrot.lane.b32.xlu1 %v11436_v51, %s12461_s8 }
0x10b2   : > { %6302 = vrot.lane.b32.xlu0 %v11363_v11, %s12445_s7 }
0x10b4   : > { %6300 = vrot.lane.b32.xlu1 %v11366_v13, %s12445_s7  ;;  %v5931_v15 = vpop.permute.xlu0 %5930 }
0x10b6   : > { %v5929_v30 = vpop.permute.xlu1 %5928  ;;  %6310 = vrot.lane.b32.xlu0 %v11371_v22, %s12445_s7 }
0x10b8   : > { %6308 = vrot.lane.b32.xlu1 %v11376_v36, %s12445_s7  ;;  %v5939_v38 = vpop.permute.xlu0 %5938 }
0x10b9   : > { %v5945_v10 = vsel %vm1479_vm2, %v5931_v15, %v5939_v38  ;;  %v5949_v60 = vsel %vm1479_vm2, %v5939_v38, %v5931_v15 }
0x10ba   : > { %v5966_v1 = vmul.f32 %v11507_v47, %v5949_v60  ;;  %v5967_v48 = vmul.f32 %v11510_v59, %v5945_v10  ;;  %v5937_v43 = vpop.permute.xlu1 %5936  ;;  %6306 = vrot.lane.b32.xlu0 %v11424_v45, %s12445_s7 }
0x10bb   : > { %v5944_v9 = vsel %vm1479_vm2, %v5929_v30, %v5937_v43  ;;  %v5948_v35 = vsel %vm1479_vm2, %v5937_v43, %v5929_v30 }
0x10bc   : > { %v5964_v20 = vmul.f32 %v11507_v47, %v5948_v35  ;;  %v5965_v14 = vmul.f32 %v11510_v59, %v5944_v9  ;;  %6304 = vrot.lane.b32.xlu1 %v11428_v3, %s12445_s7  ;;  %v5983_v56 = vpop.permute.xlu0 %5982 }
0x10be   : > { %v8751_v37 = vpack.c.bf16 %v5966_v1, %v5964_v20  ;;  %v5981_v16 = vpop.permute.xlu1 %5980  ;;  %6314 = vrot.lane.b32.xlu0 %v11432_v52, %s12445_s7  ;;  %v8749_v7 = vpack.c.bf16 %v5967_v48, %v5965_v14  ;;  %v6009_v1 = vrot.slane %v7993_v42, %v9601_v25 }
0x10c0   : > { %6312 = vrot.lane.b32.xlu1 %v11436_v51, %s12445_s7  ;;  %8750 = vmatprep.subr.bf16.mxu1 %v8749_v7  ;;  %v5991_v53 = vpop.permute.xlu0 %5990 }
0x10c1   : > { %8752 = vmatpush1.bf16.msra.mxu1 %v8751_v37  ;;  %v5997_v30 = vsel %vm1502_vm1, %v5983_v56, %v5991_v53  ;;  %v6001_v35 = vsel %vm1502_vm1, %v5991_v53, %v5983_v56 }
0x10c2   : > { %v5989_v44 = vpop.permute.xlu1 %5988  ;;  %6447 = vperm.xlu0 %9029, %v6437_v6   ;;  %v6019_v7 = vmul.f32 %v6013_v2, %v5997_v30  ;;  %v6018_v42 = vmul.f32 %v6009_v1, %v6001_v35 }
0x10c3   : > { %v5996_v38 = vsel %vm1502_vm1, %v5981_v16, %v5989_v44  ;;  %v6000_v20 = vsel %vm1502_vm1, %v5989_v44, %v5981_v16 }
0x10c4   : > { %6442 = vperm.xlu1 %9030, %v6436_v12   ;;  %v11537_v33 = vpop.permute.xlu0 %6034  ;;  %v6017_v6 = vmul.f32 %v6013_v2, %v5996_v38 }
0x10c6   : > { %v6033_v31 = vpop.permute.xlu1 %6032  ;;  %6457 = vperm.xlu0 %9029, %v6439_v49  }
0x10c8   : > { %6452 = vperm.xlu1 %9030, %v6438_v28   ;;  %v6043_v8 = vpop.permute.xlu0 %6042 }
0x10ca   : > { %v6041_v54 = vpop.permute.xlu1 %6040 }
0x10cc   : > { %v11540_v62 = vpop.permute.xlu0 %6086 }
0x10ce   : > { %v11542_v27 = vpop.permute.xlu1 %6084 }
0x10d0   : > { %v11544_v19 = vpop.permute.xlu0 %6094 }
0x10d2   : > { %v11546_v58 = vpop.permute.xlu1 %6092 }
0x10d4   : > { %v11548_v17 = vpop.permute.xlu0 %6146 }
0x10d6   : > { %v11550_v40 = vpop.permute.xlu1 %6144 }
0x10d8   : > { %v11552_v63 = vpop.permute.xlu0 %6154 }
0x10da   : > { %v11554_v18 = vpop.permute.xlu1 %6152 }
0x10dc   : > { %v11556_v50 = vpop.permute.xlu0 %6198 }
0x10de   : > { %v11558_v23 = vpop.permute.xlu1 %6196 }
0x10e0   : > { %v11560_v39 = vpop.permute.xlu0 %6206 }
0x10e2   : > { %v11562_v34 = vpop.permute.xlu1 %6204 }
0x10e4   : > { %v5935_v57 = vpop.permute.xlu0 %5934 }
0x10e6   : > { %v5933_v4 = vpop.permute.xlu1 %5932 }
0x10e8   : > { %v5943_v15 = vpop.permute.xlu0 %5942 }
0x10e9   : > { %v5947_v10 = vsel %vm1479_vm2, %v5935_v57, %v5943_v15  ;;  %v5951_v60 = vsel %vm1479_vm2, %v5943_v15, %v5935_v57  ;;  %v7994_v57 = vld [vmem:[%s9366_s13 + $0x2] ss:$8 sm:$0x3]  ;;  %v6016_v15 = vmul.f32 %v6009_v1, %v6000_v20  ;;  %v6053_v20 = vsel %vm1526_vm3, %v6043_v8, %v11537_v33 }
0x10ea   : > { %v5970_v48 = vmul.f32 %v11507_v47, %v5951_v60  ;;  %v5971_v43 = vmul.f32 %v11510_v59, %v5947_v10  ;;  %v5941_v9 = vpop.permute.xlu1 %5940  ;;  %v6065_v16 = vrot.slane %v7994_v57, %v9603_v26  ;;  %v8757_v60 = vpack.c.bf16 %v6019_v7, %v6017_v6 }
0x10eb   : > { %v5946_v14 = vsel %vm1479_vm2, %v5933_v4, %v5941_v9  ;;  %v5950_v37 = vsel %vm1479_vm2, %v5941_v9, %v5933_v4  ;;  %v6049_v4 = vsel %vm1526_vm3, %v11537_v33, %v6043_v8  ;;  %v8759_v38 = vpack.c.bf16 %v6018_v42, %v6016_v15 }
0x10ec   : > { %v5968_v12 = vmul.f32 %v11507_v47, %v5950_v37  ;;  %v5969_v49 = vmul.f32 %v11510_v59, %v5946_v14  ;;  %v5987_v28 = vpop.permute.xlu0 %5986  ;;  %v6048_v47 = vsel %vm1526_vm3, %v6033_v31, %v6041_v54  ;;  %v6052_v14 = vsel %vm1526_vm3, %v6041_v54, %v6033_v31 }
0x10ed   : > { %v6071_v6 = vmul.f32 %v6065_v16, %v6049_v4  ;;  %v6101_v54 = vsel %vm1550_vm4, %v11540_v62, %v11544_v19 }
0x10ee   : > { %v8755_v56 = vpack.c.bf16 %v5970_v48, %v5968_v12  ;;  %v5985_v53 = vpop.permute.xlu1 %5984  ;;  %v8753_v10 = vpack.c.bf16 %v5971_v43, %v5969_v49  ;;  %v6061_v48 = vrot.slane %v7994_v57, %v9601_v25  ;;  %v6069_v12 = vmul.f32 %v6065_v16, %v6048_v47  ;;  %v7995_v49 = vld [vmem:[%s9366_s13 + $0x3] ss:$8 sm:$0x3] }
0x10ef   : > { %v6117_v31 = vrot.slane %v7995_v49, %v9603_v26  ;;  %v6113_v47 = vrot.slane %v7995_v49, %v9601_v25 }
0x10f0   : > { %8754 = vmatprep.subr.bf16.mxu1 %v8753_v10  ;;  %v5995_v44 = vpop.permute.xlu0 %5994  ;;  %v6070_v15 = vmul.f32 %v6061_v48, %v6053_v20 }
0x10f1   : > { %8756 = vmatpush1.bf16.msra.mxu1 %v8755_v56  ;;  %v5999_v59 = vsel %vm1502_vm1, %v5987_v28, %v5995_v44  ;;  %v6003_v30 = vsel %vm1502_vm1, %v5995_v44, %v5987_v28  ;;  %v6068_v56 = vmul.f32 %v6061_v48, %v6052_v14  ;;  %v8765_v44 = vpack.c.bf16 %v6071_v6, %v6069_v12 }
0x10f2   : > { %v6022_v43 = vmul.f32 %v6009_v1, %v6003_v30  ;;  %v6023_v9 = vmul.f32 %v6013_v2, %v5999_v59  ;;  %v5993_v35 = vpop.permute.xlu1 %5992  ;;  %8758 = vmatprep.subr.bf16.mxu1 %v8757_v60  ;;  %v6104_v14 = vsel %vm1550_vm4, %v11546_v58, %v11542_v27 }
0x10f3   : > { %v5998_v37 = vsel %vm1502_vm1, %v5985_v53, %v5993_v35  ;;  %v6002_v7 = vsel %vm1502_vm1, %v5993_v35, %v5985_v53  ;;  %v8767_v4 = vpack.c.bf16 %v6070_v15, %v6068_v56 }
0x10f4   : > { %v6020_v28 = vmul.f32 %v6009_v1, %v6002_v7  ;;  %v6021_v57 = vmul.f32 %v6013_v2, %v5998_v37  ;;  %v6039_v42 = vpop.permute.xlu0 %6038  ;;  %v6100_v2 = vsel %vm1550_vm4, %v11542_v27, %v11546_v58 }
0x10f5   : > { %8760 = vmatpush1.bf16.msra.mxu1 %v8759_v38  ;;  %v6121_v37 = vmul.f32 %v6117_v31, %v6100_v2  ;;  %v7996_v2 = vld [vmem:[%s9366_s13 + $0x5] ss:$8 sm:$0x3] }
0x10f6   : > { %v8763_v10 = vpack.c.bf16 %v6022_v43, %v6020_v28  ;;  %v6037_v33 = vpop.permute.xlu1 %6036  ;;  %v8761_v8 = vpack.c.bf16 %v6023_v9, %v6021_v57  ;;  %v6105_v43 = vsel %vm1550_vm4, %v11544_v19, %v11540_v62  ;;  %v6123_v9 = vmul.f32 %v6117_v31, %v6101_v54 }
0x10f7   : > { %v6122_v19 = vmul.f32 %v6113_v47, %v6105_v43  ;;  %v6120_v57 = vmul.f32 %v6113_v47, %v6104_v14  ;;  %v6173_v43 = vrot.slane %v7996_v2, %v9601_v25 }
0x10f8   : > { %8762 = vmatprep.subr.bf16.mxu1 %v8761_v8  ;;  %v6047_v53 = vpop.permute.xlu0 %6046  ;;  %v8773_v15 = vpack.c.bf16 %v6123_v9, %v6121_v37 }
0x10f9   : > { %8764 = vmatpush1.bf16.msra.mxu1 %v8763_v10  ;;  %v6051_v1 = vsel %vm1526_vm3, %v6039_v42, %v6047_v53  ;;  %v6055_v60 = vsel %vm1526_vm3, %v6047_v53, %v6039_v42  ;;  %v8775_v10 = vpack.c.bf16 %v6122_v19, %v6120_v57 }
0x10fa   : > { %v6074_v59 = vmul.f32 %v6061_v48, %v6055_v60  ;;  %v6075_v30 = vmul.f32 %v6065_v16, %v6051_v1  ;;  %v6045_v38 = vpop.permute.xlu1 %6044  ;;  %8766 = vmatprep.subr.bf16.mxu1 %v8765_v44 }
0x10fb   : > { %v6050_v35 = vsel %vm1526_vm3, %v6037_v33, %v6045_v38  ;;  %v6054_v20 = vsel %vm1526_vm3, %v6045_v38, %v6037_v33  ;;  %v8781_v38 = vpack.c.bf16 %v11371_v22, %v11376_v36  ;;  %v6161_v22 = vsel %vm1576_vm5, %v11548_v17, %v11552_v63 }
0x10fc   : > { %v6072_v7 = vmul.f32 %v6061_v48, %v6054_v20  ;;  %v6073_v6 = vmul.f32 %v6065_v16, %v6050_v35  ;;  %v6091_v12 = vpop.permute.xlu0 %6090  ;;  %v6160_v36 = vsel %vm1576_vm5, %v11550_v40, %v11554_v18  ;;  %v7997_v35 = vld [vmem:[%s9366_s13 + $0x6] ss:$8 sm:$0x3]  ;;  %v8783_v20 = vpack.c.bf16 %v11363_v11, %v11366_v13 }
0x10fd   : > { %8768 = vmatpush1.bf16.msra.mxu1 %v8767_v4  ;;  %v8787_v11 = vpack.c.bf16 %v11424_v45, %v11428_v3  ;;  %v6216_v13 = vsel %vm1600_vm6, %v11562_v34, %v11558_v23  ;;  %v6225_v19 = vrot.slane %v7997_v35, %v9601_v25  ;;  %v6213_v45 = vsel %vm1600_vm6, %v11556_v50, %v11560_v39 }
0x10fe   : > { %v8771_v49 = vpack.c.bf16 %v6074_v59, %v6072_v7  ;;  %v6089_v28 = vpop.permute.xlu1 %6088  ;;  %v8769_v62 = vpack.c.bf16 %v6075_v30, %v6073_v6  ;;  %v6177_v59 = vrot.slane %v7996_v2, %v9603_v26  ;;  %v8785_v6 = vpack.c.bf16 %v11432_v52, %v11436_v51 }
0x1100   : > { %8770 = vmatprep.subr.bf16.mxu1 %v8769_v62  ;;  %v6099_v42 = vpop.permute.xlu0 %6098 }
0x1101   : > { %8772 = vmatpush1.bf16.msra.mxu1 %v8771_v49  ;;  %v6103_v56 = vsel %vm1550_vm4, %v6091_v12, %v6099_v42  ;;  %v6107_v27 = vsel %vm1550_vm4, %v6099_v42, %v6091_v12  ;;  %v6182_v12 = vmul.f32 %v6173_v43, %v6161_v22  ;;  %v6180_v49 = vmul.f32 %v6173_v43, %v6160_v36 }
0x1102   : > { %v6126_v58 = vmul.f32 %v6113_v47, %v6107_v27  ;;  %v6127_v16 = vmul.f32 %v6117_v31, %v6103_v56  ;;  %v6097_v48 = vpop.permute.xlu1 %6096  ;;  %8774 = vmatprep.subr.bf16.mxu1 %v8773_v15  ;;  %v6212_v42 = vsel %vm1600_vm6, %v11558_v23, %v11562_v34 }
0x1103   : > { %v6102_v33 = vsel %vm1550_vm4, %v6089_v28, %v6097_v48  ;;  %v6106_v8 = vsel %vm1550_vm4, %v6097_v48, %v6089_v28  ;;  %v8791_v62 = vpack.c.bf16 %v6182_v12, %v6180_v49 }
0x1104   : > { %v6124_v54 = vmul.f32 %v6113_v47, %v6106_v8  ;;  %v6125_v53 = vmul.f32 %v6117_v31, %v6102_v33  ;;  %v6151_v44 = vpop.permute.xlu0 %6150  ;;  %v6165_v31 = vsel %vm1576_vm5, %v11552_v63, %v11548_v17  ;;  %v6164_v47 = vsel %vm1576_vm5, %v11554_v18, %v11550_v40 }
0x1105   : > { %8776 = vmatpush1.bf16.msra.mxu1 %v8775_v10  ;;  %v6183_v14 = vmul.f32 %v6177_v59, %v6165_v31  ;;  %v6181_v37 = vmul.f32 %v6177_v59, %v6164_v47  ;;  %v6229_v17 = vrot.slane %v7997_v35, %v9603_v26  ;;  %v6217_v40 = vsel %vm1600_vm6, %v11560_v39, %v11556_v50 }
0x1106   : > { %v8779_v1 = vpack.c.bf16 %v6126_v58, %v6124_v54  ;;  %v11644_v60 = vpop.permute.xlu1 %6248  ;;  %v8777_v4 = vpack.c.bf16 %v6127_v16, %v6125_v53  ;;  %v6234_v10 = vmul.f32 %v6225_v19, %v6213_v45  ;;  %v6232_v33 = vmul.f32 %v6225_v19, %v6212_v42 }
0x1107   : > { %v8789_v51 = vpack.c.bf16 %v6183_v14, %v6181_v37  ;;  %v6235_v3 = vmul.f32 %v6229_v17, %v6217_v40  ;;  %v6233_v15 = vmul.f32 %v6229_v17, %v6216_v13 }
0x1108   : > { %8778 = vmatprep.subr.bf16.mxu1 %v8777_v4  ;;  %v6159_v30 = vpop.permute.xlu0 %6158 }
0x1109   : > { %8780 = vmatpush1.bf16.msra.mxu1 %v8779_v1  ;;  %v6163_v18 = vsel %vm1576_vm5, %v6151_v44, %v6159_v30  ;;  %v6167_v28 = vsel %vm1576_vm5, %v6159_v30, %v6151_v44  ;;  %v7998_v44 = vld [vmem:[%s9366_s13 + $0x7] ss:$8 sm:$0x3]  ;;  %v8797_v1 = vpack.c.bf16 %v6235_v3, %v6233_v15 }
0x110a   : > { %v11658_v9 = vpop.permute.xlu1 %6256  ;;  %8782 = vmatprep.subr.bf16.mxu1 %v8781_v38  ;;  %v6186_v58 = vmul.f32 %v6173_v43, %v6163_v18  ;;  %v6187_v16 = vmul.f32 %v6177_v59, %v6167_v28  ;;  %v6281_v30 = vrot.slane %v7998_v44, %v9603_v26 }
0x110b   : > { %v6268_v38 = vsel %vm1624_vm7, %v11658_v9, %v11644_v60  ;;  %v6264_v12 = vsel %vm1624_vm7, %v11644_v60, %v11658_v9 }
0x110c   : > { %v6203_v7 = vpop.permute.xlu0 %6202  ;;  %v6285_v49 = vmul.f32 %v6281_v30, %v6268_v38 }
0x110d   : > { %8784 = vmatpush1.bf16.msra.mxu1 %v8783_v20 }
0x110e   : > { %v6149_v63 = vpop.permute.xlu1 %6148  ;;  %8786 = vmatprep.subr.bf16.mxu1 %v8785_v6  ;;  %v6277_v6 = vrot.slane %v7998_v44, %v9601_v25 }
0x1110   : > { %v6211_v52 = vpop.permute.xlu0 %6210  ;;  %v6284_v18 = vmul.f32 %v6277_v6, %v6264_v12 }
0x1111   : > { %8788 = vmatpush1.bf16.msra.mxu1 %v8787_v11  ;;  %v6215_v23 = vsel %vm1600_vm6, %v6203_v7, %v6211_v52  ;;  %v6219_v34 = vsel %vm1600_vm6, %v6211_v52, %v6203_v7 }
0x1112   : > { %v6157_v57 = vpop.permute.xlu1 %6156  ;;  %8790 = vmatprep.subr.bf16.mxu1 %v8789_v51  ;;  %v6238_v47 = vmul.f32 %v6225_v19, %v6215_v23  ;;  %v6428_v23 = vld [vmem:[%s12466_s6 + $0x20] sm:$0xff] }
0x1113   : > { %v6162_v56 = vsel %vm1576_vm5, %v6149_v63, %v6157_v57  ;;  %v6166_v27 = vsel %vm1576_vm5, %v6157_v57, %v6149_v63  ;;  %v7999_v57 = vld [vmem:[%s9366_s13 + $0x10] ss:$8 sm:$0x3] }
0x1114   : > { %v6184_v48 = vmul.f32 %v6173_v43, %v6162_v56  ;;  %v6185_v50 = vmul.f32 %v6177_v59, %v6166_v27  ;;  %v6251_v39 = vpop.permute.xlu0 %6250  ;;  %v8799_v59 = vpack.c.bf16 %v6234_v10, %v6232_v33  ;;  %v6239_v43 = vmul.f32 %v6229_v17, %v6219_v34 }
0x1115   : > { %8792 = vmatpush1.bf16.msra.mxu1 %v8791_v62 }
0x1116   : > { %v8795_v8 = vpack.c.bf16 %v6186_v58, %v6184_v48  ;;  %v6201_v54 = vpop.permute.xlu1 %6200  ;;  %v8793_v53 = vpack.c.bf16 %v6187_v16, %v6185_v50  ;;  %v6329_v48 = vrot.slane %v7999_v57, %v9601_v25  ;;  %v6333_v50 = vrot.slane %v7999_v57, %v9603_v26 }
0x1118   : > { %8794 = vmatprep.subr.bf16.mxu1 %v8793_v53  ;;  %v6259_v2 = vpop.permute.xlu0 %6258 }
0x1119   : > { %8796 = vmatpush1.bf16.msra.mxu1 %v8795_v8  ;;  %v6269_v4 = vsel %vm1624_vm7, %v6259_v2, %v6251_v39  ;;  %v6265_v35 = vsel %vm1624_vm7, %v6251_v39, %v6259_v2  ;;  %v6424_v8 = vld [vmem:[%s12466_s6] sm:$0xff] }
0x111a   : > { %v6209_v31 = vpop.permute.xlu1 %6208  ;;  %8798 = vmatprep.subr.bf16.mxu1 %v8797_v1  ;;  %v6287_v20 = vmul.f32 %v6281_v30, %v6269_v4  ;;  %v6286_v13 = vmul.f32 %v6277_v6, %v6265_v35 }
0x111b   : > { %v6214_v22 = vsel %vm1600_vm6, %v6201_v54, %v6209_v31  ;;  %v6218_v36 = vsel %vm1600_vm6, %v6209_v31, %v6201_v54 }
0x111c   : > { %v6236_v14 = vmul.f32 %v6225_v19, %v6214_v22  ;;  %v6237_v37 = vmul.f32 %v6229_v17, %v6218_v36  ;;  %v6255_v7 = vpop.permute.xlu0 %6254  ;;  %v8805_v51 = vpack.c.bf16 %v6287_v20, %v6285_v49  ;;  %v8807_v9 = vpack.c.bf16 %v6286_v13, %v6284_v18  ;;  %v6430_v20 = vld [vmem:[%s12466_s6 + $0x30] sm:$0xff]  ;;  %v6429_v18 = vld [vmem:[%s12466_s6 + $0x28] sm:$0xff] }
0x111d   : > { %8800 = vmatpush1.bf16.msra.mxu1 %v8799_v59 }
0x111e   : > { %v8803_v63 = vpack.c.bf16 %v6238_v47, %v6236_v14  ;;  %v6253_v40 = vpop.permute.xlu1 %6252  ;;  %v8801_v11 = vpack.c.bf16 %v6239_v43, %v6237_v37  ;;  %v6431_v43 = vld [vmem:[%s12466_s6 + $0x38] sm:$0xff] }
0x1120   : > { %8802 = vmatprep.subr.bf16.mxu1 %v8801_v11  ;;  %v6263_v52 = vpop.permute.xlu0 %6262  ;;  %v6433_v11 = vld [vmem:[%s12466_s6 + $0x48] sm:$0xff] }
0x1121   : > { %8804 = vmatpush1.bf16.msra.mxu1 %v8803_v63  ;;  %v6267_v17 = vsel %vm1624_vm7, %v6255_v7, %v6263_v52  ;;  %v6271_v28 = vsel %vm1624_vm7, %v6263_v52, %v6255_v7 }
0x1122   : > { %v6290_v62 = vmul.f32 %v6277_v6, %v6267_v17  ;;  %v6291_v19 = vmul.f32 %v6281_v30, %v6271_v28  ;;  %v6261_v60 = vpop.permute.xlu1 %6260  ;;  %8806 = vmatprep.subr.bf16.mxu1 %v8805_v51  ;;  %v6426_v51 = vld [vmem:[%s12466_s6 + $0x10] sm:$0xff]  ;;  %v6432_v17 = vld [vmem:[%s12466_s6 + $0x40] sm:$0xff]  ;;  %v6435_v28 = vld [vmem:[%s12466_s6 + $0x58] sm:$0xff] }
0x1123   : > { %v6266_v45 = vsel %vm1624_vm7, %v6253_v40, %v6261_v60  ;;  %v6270_v3 = vsel %vm1624_vm7, %v6261_v60, %v6253_v40 }
0x1124   : > { %v6288_v42 = vmul.f32 %v6277_v6, %v6266_v45  ;;  %v6289_v15 = vmul.f32 %v6281_v30, %v6270_v3  ;;  %v6303_v56 = vpop.permute.xlu0 %6302  ;;  %v6427_v30 = vld [vmem:[%s12466_s6 + $0x18] sm:$0xff]  ;;  %v6434_v6 = vld [vmem:[%s12466_s6 + $0x50] sm:$0xff]  ;;  %s12468_s6 = sld [smem:[#allocation24_spill]] }
0x1125   : > { %8808 = vmatpush1.bf16.msra.mxu1 %v8807_v9 }
0x1126   : > { %v8811_v27 = vpack.c.bf16 %v6290_v62, %v6288_v42  ;;  %v6301_v58 = vpop.permute.xlu1 %6300  ;;  %v8809_v16 = vpack.c.bf16 %v6291_v19, %v6289_v15 }
0x1128   : > { %8810 = vmatprep.subr.bf16.mxu1 %v8809_v16  ;;  %v6311_v39 = vpop.permute.xlu0 %6310 }
0x1129   : > { %8812 = vmatpush1.bf16.msra.mxu1 %v8811_v27  ;;  %v6317_v10 = vsel %vm1648_vm8, %v6303_v56, %v6311_v39  ;;  %v6321_v33 = vsel %vm1648_vm8, %v6311_v39, %v6303_v56 }
0x112a   : > { %v6338_v54 = vmul.f32 %v6329_v48, %v6317_v10  ;;  %v6339_v53 = vmul.f32 %v6333_v50, %v6321_v33  ;;  %v6309_v44 = vpop.permute.xlu1 %6308 }
0x112b   : > { %v6316_v34 = vsel %vm1648_vm8, %v6301_v58, %v6309_v44  ;;  %v6320_v2 = vsel %vm1648_vm8, %v6309_v44, %v6301_v58 }
0x112c   : > { %v6336_v1 = vmul.f32 %v6329_v48, %v6316_v34  ;;  %v6337_v4 = vmul.f32 %v6333_v50, %v6320_v2  ;;  %6537 = vmatmul.mubr.f32.vlgmr.msra.gmra.mrb[56].mxu1 %v6424_v8  ;;  %v6307_v59 = vpop.permute.xlu0 %6306 }
0x112d   : > { %6542 = vmatprep.mubr.f32.mxu1 %v6428_v23 }
0x112e   : > { %v8815_v38 = vpack.c.bf16 %v6338_v54, %v6336_v1  ;;  %v6305_v31 = vpop.permute.xlu1 %6304  ;;  %v8813_v47 = vpack.c.bf16 %v6339_v53, %v6337_v4 }
0x1130   : > { %6543 = vmatmul.mubr.f32.gmra.mrb[58].mxu1 %v6427_v30  ;;  %8814 = vmatprep.subr.bf16.mxu1 %v8813_v47  ;;  %v6315_v22 = vpop.permute.xlu0 %6314 }
0x1131   : > { %8816 = vmatpush1.bf16.msra.mxu1 %v8815_v38  ;;  %v6319_v36 = vsel %vm1648_vm8, %v6307_v59, %v6315_v22  ;;  %v6323_v35 = vsel %vm1648_vm8, %v6315_v22, %v6307_v59  ;;  %6548 = vmatprep.mubr.f32.mxu1 %v6431_v43 }
0x1132   : > { %v6342_v14 = vmul.f32 %v6329_v48, %v6319_v36  ;;  %v6343_v37 = vmul.f32 %v6333_v50, %v6323_v35  ;;  %v6313_v7 = vpop.permute.xlu1 %6312  ;;  %v6690_v35 = vld [vmem:[%s9371_s17] sm:$0xff] }
0x1133   : > { %v6318_v12 = vsel %vm1648_vm8, %v6305_v31, %v6313_v7  ;;  %v6322_v49 = vsel %vm1648_vm8, %v6313_v7, %v6305_v31  ;;  %8377 = vmatprep.mubr.msk.f32.mxu0 %vm1083_vm0, %v6690_v35  ;;  %v6989_v7 = vld [vmem:[%s9511_s20 + $0x8] sm:$0xff] }
0x1134   : > { %v6340_v63 = vmul.f32 %v6329_v48, %v6318_v12  ;;  %v6341_v40 = vmul.f32 %v6333_v50, %v6322_v49  ;;  %6549 = vmatmul.mubr.f32.gmra.mrb[60].mxu1 %v6430_v20  ;;  %v6956_v20 = vld [vmem:[%s12468_s6] sm:$0xff]  ;;  %v6959_v12 = vld [vmem:[%s12468_s6 + $0x18] sm:$0xff] }
0x1135   : > { %6554 = vmatprep.mubr.f32.mxu1 %v6434_v6  ;;  %v6958_v6 = vld [vmem:[%s12468_s6 + $0x10] sm:$0xff] }
0x1136   : > { %v8819_v13 = vpack.c.bf16 %v6342_v14, %v6340_v63  ;;  %v8817_v52 = vpack.c.bf16 %v6343_v37, %v6341_v40  ;;  %v6957_v14 = vld [vmem:[%s12468_s6 + $0x8] sm:$0xff]  ;;  %v6988_v37 = vld [vmem:[%s9511_s20] sm:$0xff] }
0x1138   : > { %6555 = vmatmul.mubr.f32.gmra.mrb[62].mxu1 %v6433_v11  ;;  %8818 = vmatprep.subr.bf16.mxu1 %v8817_v52 }
0x1139   : > { %8820 = vmatpush1.bf16.msra.mxu1 %v8819_v13  ;;  %6625 = vmatprep.mubr.f32.mxu1 %v12447_v61 }
0x113c   : > { %8000 = vmatmul.mubr.msk.f32.vlgmr.msra.gmra.mrb[56].mxu1 %vm1083_vm0, %v6426_v51 }
0x113d   : > { %6631 = vmatprep.mubr.f32.mxu1 %v12447_v61 }
0x1140   : > { %8001 = vmatmul.mubr.msk.f32.gmra.mrb[58].mxu1 %vm1083_vm0, %v6429_v18 }
0x1141   : > { %6637 = vmatprep.mubr.f32.mxu1 %v12447_v61  ;;  %v6448_v57 = vpop.permute.xlu0 %6447 }
0x1143   : > { %v6443_v62 = vpop.permute.xlu1 %6442 }
0x1144   : > { %8002 = vmatmul.mubr.msk.f32.gmra.mrb[60].mxu1 %vm1083_vm0, %v6432_v17  ;;  %v6691_v17 = vld [vmem:[%s9371_s17 + $0x8] sm:$0xff] }
0x1145   : > { %6643 = vmatprep.mubr.f32.mxu1 %v12447_v61  ;;  %v6458_v54 = vpop.permute.xlu0 %6457 }
0x1147   : > { %v6453_v48 = vpop.permute.xlu1 %6452 }
0x1148   : > { %8003 = vmatmul.mubr.msk.f32.gmra.mrb[62].mxu1 %vm1083_vm0, %v6435_v28 }
0x1149   : > { %7721 = vmatprep.mubr.f32.mxu1 %v12447_v61 }
0x120f   : > { %v6627_v19 = vpop.f32.mrb[56].mxu1 }
0x1210   : > { %v8941_v60 = vadd.f32 %v6627_v19, %v6443_v62  ;;  %v6629_v9 = vpop.f32.mrb[57].mxu1 }
0x1211   : > { %v8942_v45 = vadd.f32 %v6629_v9, %v6443_v62  ;;  %v6692_v62 = vld [vmem:[%s9371_s17 + $0x10] sm:$0xff]  ;;  %v6693_v9 = vld [vmem:[%s9371_s17 + $0x18] sm:$0xff] }
0x1212   : > { %v11772_v3 = vadd.f32 %v8941_v60, %v10771_v5 }
0x1213   : > { %v11775_v42 = vadd.f32 %v8942_v45, %v10774_v29  ;;  %v6633_v15 = vpop.f32.mrb[58].mxu1 }
0x1214   : > { %v8943_v56 = vadd.f32 %v6633_v15, %v6448_v57  ;;  %v6635_v27 = vpop.f32.mrb[59].mxu1  ;;  %v6670_v23 = vmul.f32 %v11772_v3, %v11772_v3 }
0x1215   : > { %v8944_v58 = vadd.f32 %v6635_v27, %v6448_v57  ;;  %v6658_v16 = vadd.f32 %v11775_v42, %v11772_v3  ;;  %v6671_v34 = vmul.f32 %v11775_v42, %v11775_v42 }
0x1216   : > { %v11780_v61 = vadd.f32 %v8943_v56, %v10779_v32 }
0x1217   : > { %v11783_v50 = vadd.f32 %v8944_v58, %v10782_v41  ;;  %v6639_v5 = vpop.f32.mrb[60].mxu1  ;;  %6659 = vadd.xlane.f32.xlu1 %v6658_v16  ;;  %v6678_v4 = vadd.f32 %v6671_v34, %v6670_v23 }
0x1218   : > { %v8945_v39 = vadd.f32 %v6639_v5, %v6453_v48  ;;  %v6641_v10 = vpop.f32.mrb[61].mxu1  ;;  %v6672_v59 = vmul.f32 %v11780_v61, %v11780_v61 }
0x1219   : > { %v8946_v29 = vadd.f32 %v6641_v10, %v6453_v48  ;;  %v6661_v33 = vadd.f32 %v11783_v50, %v11780_v61 }
0x121a   : > { %v11788_v8 = vadd.f32 %v8945_v39, %v10787_v46 }
0x121b   : > { %v11791_v53 = vadd.f32 %v8946_v29, %v10790_v0  ;;  %v6645_v32 = vpop.f32.mrb[62].mxu1  ;;  %6662 = vadd.xlane.f32.xlu0 %v6661_v33 }
0x121c   : > { %v8947_v44 = vadd.f32 %v6645_v32, %v6458_v54  ;;  %v6647_v41 = vpop.f32.mrb[63].mxu1  ;;  %v6674_v38 = vmul.f32 %v11788_v8, %v11788_v8 }
0x121d   : > { %v8948_v2 = vadd.f32 %v6647_v41, %v6458_v54  ;;  %v6664_v1 = vadd.f32 %v11791_v53, %v11788_v8 }
0x121e   : > { %v11800_v46 = vadd.f32 %v8947_v44, %v10799_v55  ;;  %v6675_v55 = vmul.f32 %v11791_v53, %v11791_v53 }
0x121f   : > { %v11803_v0 = vadd.f32 %v8948_v2, %v10802_v21  ;;  %6665 = vadd.xlane.f32.xlu0 %v6664_v1  ;;  %v6673_v21 = vmul.f32 %v11783_v50, %v11783_v50 }
0x1220   : > { %v6684_v31 = vadd.f32 %v6675_v55, %v6674_v38  ;;  %v6676_v43 = vmul.f32 %v11800_v46, %v11800_v46 }
0x1221   : > { %v6667_v30 = vadd.f32 %v11803_v0, %v11800_v46  ;;  %v6681_v47 = vadd.f32 %v6673_v21, %v6672_v59  ;;  %v6677_v22 = vmul.f32 %v11803_v0, %v11803_v0 }
0x1223   : > { %6679 = vadd.xlane.f32.xlu0 %v6678_v4  ;;  %6668 = vadd.xlane.f32.xlu1 %v6667_v30  ;;  %v6687_v36 = vadd.f32 %v6677_v22, %v6676_v43 }
0x1227   : > { %6685 = vadd.xlane.f32.xlu0 %v6684_v31  ;;  %6682 = vadd.xlane.f32.xlu1 %v6681_v47 }
0x122b   : > { %6688 = vadd.xlane.f32.xlu1 %v6687_v36 }
0x123c   : > { %6962 = vperm.xlu1 %9030, %v6956_v20   ;;  %v6991_v20 = vld [vmem:[%s9511_s20 + $0x18] sm:$0xff] }
0x123d   : > { %6967 = vperm.xlu0 %9029, %v6957_v14   ;;  %v6990_v14 = vld [vmem:[%s9511_s20 + $0x10] sm:$0xff] }
0x1240   : > { %6994 = vperm.xlu1 %9030, %v6988_v37  }
0x1241   : > { %6999 = vperm.xlu0 %9029, %v6989_v7  }
0x1244   : > { %6972 = vperm.xlu1 %9030, %v6958_v6  }
0x1245   : > { %6977 = vperm.xlu0 %9029, %v6959_v12  }
0x12a4   : > { %v6660_v49 = vpop.xlane.xlu1 %6659 }
0x12a8   : > { %v6663_v63 = vpop.xlane.xlu0 %6662 }
0x12a9   : > { %v8821_v40 = vpack.c.bf16 %v6663_v63, %v6660_v49 }
0x12ab   : > { %8822 = vmatprep.subr.bf16.mxu0 %v8821_v40 }
0x12ac   : > { %8824 = vmatpush3.bf16.msra.mxu0 %v8821_v40  ;;  %v6666_v11 = vpop.xlane.xlu0 %6665 }
0x12b0   : > { %v6669_v13 = vpop.xlane.xlu1 %6668  ;;  %v6680_v51 = vpop.xlane.xlu0 %6679 }
0x12b1   : > { %v8825_v52 = vpack.c.bf16 %v6669_v13, %v6666_v11 }
0x12b3   : > { %8826 = vmatprep.subr.bf16.mxu0 %v8825_v52 }
0x12b4   : > { %v6683_v18 = vpop.xlane.xlu1 %6682  ;;  %8828 = vmatpush3.bf16.msra.mxu0 %v8825_v52  ;;  %v6686_v19 = vpop.xlane.xlu0 %6685 }
0x12b5   : > { %v8829_v28 = vpack.c.bf16 %v6683_v18, %v6680_v51 }
0x12b7   : > { %8378 = vmatmul.mubr.msk.f32.vlgmr.msra.gmra.mrb[40].mxu0 %vm1083_vm0, %v6691_v17  ;;  %8830 = vmatprep.subr.bf16.mxu0 %v8829_v28 }
0x12b8   : > { %v6689_v60 = vpop.xlane.xlu1 %6688  ;;  %8832 = vmatpush3.bf16.msra.mxu0 %v8829_v28  ;;  %8380 = vmatprep.mubr.msk.f32.mxu0 %vm1083_vm0, %v6692_v62 }
0x12b9   : > { %v8833_v45 = vpack.c.bf16 %v6689_v60, %v6686_v19 }
0x12bb   : > { %8381 = vmatmul.mubr.msk.f32.gmra.mrb[42].mxu0 %vm1083_vm0, %v6693_v9  ;;  %8834 = vmatprep.subr.bf16.mxu0 %v8833_v45 }
0x12bc   : > { %8836 = vmatpush3.bf16.msra.mxu0 %v8833_v45  ;;  %8391 = vmatprep.mubr.msk.f32.mxu0 %vm1083_vm0, %v6690_v35  ;;  %v6968_v37 = vpop.permute.xlu0 %6967  ;;  %v6963_v7 = vpop.permute.xlu1 %6962 }
0x12bf   : > { %8392 = vmatmul.mubr.msk.f32.vlgmr.msra.gmra.mrb[44].mxu0 %vm1083_vm0, %v6691_v17 }
0x12c0   : > { %8394 = vmatprep.mubr.msk.f32.mxu0 %vm1083_vm0, %v6692_v62  ;;  %v7000_v6 = vpop.permute.xlu0 %6999  ;;  %v6995_v12 = vpop.permute.xlu1 %6994 }
0x12c3   : > { %8395 = vmatmul.mubr.msk.f32.gmra.mrb[46].mxu0 %vm1083_vm0, %v6693_v9 }
0x12c4   : > { %v11839_v49 = vpop.permute.xlu0 %6977  ;;  %v11841_v63 = vpop.permute.xlu1 %6972 }
0x138a   : > { %v8379_v57 = vpop.f32.mrb[40].mxu0 }
0x138b   : > { %v6792_v15 = vmul.f32 0.0009765625, %v8379_v57  ;;  %v6772_v56 = vpop.f32.mrb[41].mxu0 }
0x138c   : > { %v6791_v27 = vmul.f32 0.0009765625, %v6772_v56 }
0x138d   : > { %6907 = vperm.xlu1 %9030, %v6792_v15   ;;  %v6885_v10 = vmul.f32 %v6792_v15, %v6792_v15 }
0x138e   : > { %6902 = vperm.xlu0 %9029, %v6791_v27   ;;  %v8382_v58 = vpop.f32.mrb[42].mxu0  ;;  %v6884_v54 = vmul.f32 %v6791_v27, %v6791_v27 }
0x138f   : > { %v6794_v16 = vmul.f32 0.0009765625, %v8382_v58  ;;  %v6782_v48 = vpop.f32.mrb[43].mxu0 }
0x1390   : > { %v6793_v5 = vmul.f32 0.0009765625, %v6782_v48 }
0x1391   : > { %v6887_v34 = vmul.f32 %v6794_v16, %v6794_v16 }
0x1392   : > { %6917 = vperm.xlu0 %9029, %v6794_v16   ;;  %6912 = vperm.xlu1 %9030, %v6793_v5   ;;  %v8393_v39 = vpop.f32.mrb[44].mxu0  ;;  %v6886_v59 = vmul.f32 %v6793_v5, %v6793_v5 }
0x1393   : > { %v6881_v29 = vmul.f32 0.0009765625, %v8393_v39  ;;  %v6861_v33 = vpop.f32.mrb[45].mxu0 }
0x1394   : > { %v6880_v32 = vmul.f32 0.0009765625, %v6861_v33 }
0x1395   : > { %v6889_v44 = vsub.f32 %v6881_v29, %v6885_v10 }
0x1396   : > { %v6888_v41 = vsub.f32 %v6880_v32, %v6884_v54  ;;  %v8396_v23 = vpop.f32.mrb[46].mxu0 }
0x1397   : > { %v6893_v2 = vadd.f32 1e-05, %v6889_v44  ;;  %v6883_v1 = vmul.f32 0.0009765625, %v8396_v23  ;;  %v6871_v4 = vpop.f32.mrb[47].mxu0 }
0x1398   : > { %v6892_v30 = vadd.f32 1e-05, %v6888_v41  ;;  %v6882_v38 = vmul.f32 0.0009765625, %v6871_v4 }
0x1399   : > { %9256 = vrsqrt.f32 %v6893_v2  ;;  %v6891_v55 = vsub.f32 %v6883_v1, %v6887_v34 }
0x139a   : > { %9258 = vrsqrt.f32 %v6892_v30  ;;  %v6890_v21 = vsub.f32 %v6882_v38, %v6886_v59 }
0x139b   : > { %v6895_v31 = vadd.f32 1e-05, %v6891_v55 }
0x139c   : > { %v6894_v47 = vadd.f32 1e-05, %v6890_v21 }
0x139d   : > { %9260 = vrsqrt.f32 %v6895_v31 }
0x139e   : > { %9262 = vrsqrt.f32 %v6894_v47 }
0x13a3   : > { %v9257_v43 = vpop.eup %9256 }
0x13a4   : > { %v9259_v22 = vpop.eup %9258  ;;  %6935 = vperm.xlu0 %9029, %v9257_v43  }
0x13a5   : > { %6930 = vperm.xlu1 %9030, %v9259_v22  }
0x13a7   : > { %v9261_v36 = vpop.eup %9260 }
0x13a8   : > { %v9263_v35 = vpop.eup %9262  ;;  %6945 = vperm.xlu0 %9029, %v9261_v36   ;;  %v8021_v36 = vld [vmem:[%s9366_s13 + $0x2] ss:$8 sm:$0x3] }
0x13a9   : > { %6940 = vperm.xlu1 %9030, %v9263_v35  }
0x13ac   : > { %7009 = vperm.xlu0 %9029, %v6991_v20  }
0x13ad   : > { %7004 = vperm.xlu1 %9030, %v6990_v14  }
0x140c   : > { %v6908_v11 = vpop.permute.xlu1 %6907 }
0x140d   : > { %v6903_v40 = vpop.permute.xlu0 %6902  ;;  %v6922_v51 = vsub.f32 %v11780_v61, %v6908_v11  ;;  %v6923_v18 = vsub.f32 %v11783_v50, %v6908_v11 }
0x140e   : > { %v6920_v17 = vsub.f32 %v11772_v3, %v6903_v40  ;;  %v6921_v28 = vsub.f32 %v11775_v42, %v6903_v40 }
0x1411   : > { %v11843_v13 = vpop.permute.xlu0 %6917  ;;  %v11845_v52 = vpop.permute.xlu1 %6912 }
0x1412   : > { %v6927_v15 = vsub.f32 %v11803_v0, %v11843_v13  ;;  %v6925_v61 = vsub.f32 %v11791_v53, %v11845_v52  ;;  %v6926_v20 = vsub.f32 %v11800_v46, %v11843_v13  ;;  %v6924_v14 = vsub.f32 %v11788_v8, %v11845_v52 }
0x1423   : > { %v6936_v62 = vpop.permute.xlu0 %6935 }
0x1424   : > { %v6950_v19 = vmul.f32 %v6936_v62, %v6922_v51  ;;  %v6951_v60 = vmul.f32 %v6936_v62, %v6923_v18  ;;  %v6931_v9 = vpop.permute.xlu1 %6930 }
0x1425   : > { %v6948_v45 = vmul.f32 %v6931_v9, %v6920_v17  ;;  %v6949_v57 = vmul.f32 %v6931_v9, %v6921_v28 }
0x1426   : > { %v6982_v56 = vmul.f32 %v6968_v37, %v6950_v19  ;;  %v6983_v27 = vmul.f32 %v6968_v37, %v6951_v60 }
0x1427   : > { %v6980_v58 = vmul.f32 %v6963_v7, %v6948_v45  ;;  %v6981_v50 = vmul.f32 %v6963_v7, %v6949_v57  ;;  %v6946_v16 = vpop.permute.xlu0 %6945 }
0x1428   : > { %v7014_v3 = vadd.f32 %v7000_v6, %v6982_v56  ;;  %v7015_v48 = vadd.f32 %v7000_v6, %v6983_v27  ;;  %v6955_v42 = vmul.f32 %v6946_v16, %v6927_v15  ;;  %v6941_v5 = vpop.permute.xlu1 %6940  ;;  %v6954_v37 = vmul.f32 %v6946_v16, %v6926_v20 }
0x1429   : > { %v7012_v39 = vadd.f32 %v6995_v12, %v6980_v58  ;;  %v7013_v10 = vadd.f32 %v6995_v12, %v6981_v50  ;;  %v6953_v29 = vmul.f32 %v6941_v5, %v6925_v61  ;;  %v6952_v7 = vmul.f32 %v6941_v5, %v6924_v14  ;;  %v11999_v5 = vld [vmem:[%s9516_s27] sm:$0xff] }
0x142a   : > { %v8014_v33 = vmul.f32 -1.442695, %v7014_v3  ;;  %v8015_v54 = vmul.f32 -1.442695, %v7015_v48  ;;  %v6987_v32 = vmul.f32 %v11839_v49, %v6955_v42  ;;  %v6986_v6 = vmul.f32 %v11839_v49, %v6954_v37  ;;  %12469 = vst [vmem:[#allocation25_spill] sm:$0xff] %v11999_v5 }
0x142b   : > { %v8012_v0 = vmul.f32 -1.442695, %v7012_v39  ;;  %v8013_v44 = vmul.f32 -1.442695, %v7013_v10  ;;  %v6985_v41 = vmul.f32 %v11841_v63, %v6953_v29  ;;  %v7010_v46 = vpop.permute.xlu0 %7009  ;;  %v6984_v12 = vmul.f32 %v11841_v63, %v6952_v7 }
0x142c   : > { %9264 = vpow2.f32 %v8014_v33  ;;  %v7005_v8 = vpop.permute.xlu1 %7004  ;;  %v7018_v40 = vadd.f32 %v7010_v46, %v6986_v6  ;;  %v7019_v13 = vadd.f32 %v7010_v46, %v6987_v32  ;;  %v7582_v33 = vcombine.high %v11999_v5, %v11999_v5 }
0x142d   : > { %9266 = vpow2.f32 %v8015_v54  ;;  %v7016_v11 = vadd.f32 %v7005_v8, %v6984_v12  ;;  %v7017_v52 = vadd.f32 %v7005_v8, %v6985_v41 }
0x142e   : > { %9268 = vpow2.f32 %v8012_v0  ;;  %v8018_v49 = vmul.f32 -1.442695, %v7018_v40  ;;  %v8019_v63 = vmul.f32 -1.442695, %v7019_v13  ;;  %7650 = vmatprep.mubr.f32.mxu0 %v7582_v33 }
0x142f   : > { %9270 = vpow2.f32 %v8013_v44  ;;  %v8016_v51 = vmul.f32 -1.442695, %v7016_v11  ;;  %v8017_v18 = vmul.f32 -1.442695, %v7017_v52 }
0x1436   : > { %v9265_v53 = vpop.eup %9264 }
0x1437   : > { %v9267_v23 = vpop.eup %9266  ;;  %v7046_v34 = vadd.f32 1.0, %v9265_v53 }
0x1438   : > { %v9269_v2 = vpop.eup %9268  ;;  %v7047_v1 = vadd.f32 1.0, %v9267_v23 }
0x1439   : > { %v9271_v4 = vpop.eup %9270  ;;  %9272 = vrcp.f32 %v7046_v34  ;;  %v7044_v59 = vadd.f32 1.0, %v9269_v2 }
0x143a   : > { %9274 = vrcp.f32 %v7047_v1  ;;  %v7045_v30 = vadd.f32 1.0, %v9271_v4 }
0x143b   : > { %9276 = vrcp.f32 %v7044_v59 }
0x143c   : > { %9278 = vrcp.f32 %v7045_v30 }
0x143d   : > { %9280 = vpow2.f32 %v8018_v49 }
0x143e   : > { %9282 = vpow2.f32 %v8016_v51 }
0x143f   : > { %9284 = vpow2.f32 %v8019_v63 }
0x1440   : > { %9286 = vpow2.f32 %v8017_v18 }
0x1443   : > { %v9273_v38 = vpop.eup %9272 }
0x1444   : > { %v9275_v55 = vpop.eup %9274  ;;  %v11857_v21 = vmul.f32 %v9273_v38, %v7014_v3 }
0x1445   : > { %v9277_v31 = vpop.eup %9276  ;;  %v11863_v22 = vmul.f32 %v9275_v55, %v7015_v48  ;;  %v7100_v48 = vld [vmem:[%s9366_s13] ss:$8 sm:$0x3] }
0x1446   : > { %v11859_v47 = vmul.f32 %v9277_v31, %v7012_v39  ;;  %7078 = vrot.lane.b32.xlu0 %v11857_v21, %s12459_s5  ;;  %v9279_v43 = vpop.eup %9278  ;;  %v12007_v29 = vrot.slane %v7100_v48, %v9603_v26  ;;  %v7574_v31 = vld [vmem:[%s9521_s4] sm:$0xf] }
0x1447   : > { %v11869_v35 = vmul.f32 %v9279_v43, %v7013_v10  ;;  %v9281_v17 = vpop.eup %9280  ;;  %v12004_v10 = vrot.slane %v7100_v48, %v9601_v25 }
0x1448   : > { %7076 = vrot.lane.b32.xlu1 %v11859_v47, %s12459_s5  ;;  %v9283_v28 = vpop.eup %9282  ;;  %v7050_v62 = vadd.f32 1.0, %v9281_v17 }
0x1449   : > { %v9285_v19 = vpop.eup %9284  ;;  %v7048_v60 = vadd.f32 1.0, %v9283_v28 }
0x144a   : > { %7086 = vrot.lane.b32.xlu0 %v11863_v22, %s12459_s5  ;;  %v9287_v9 = vpop.eup %9286  ;;  %v7051_v45 = vadd.f32 1.0, %v9285_v19  ;;  %9288 = vrcp.f32 %v7050_v62 }
0x144b   : > { %v7049_v57 = vadd.f32 1.0, %v9287_v9  ;;  %9290 = vrcp.f32 %v7048_v60  ;;  %v8024_v9 = vld [vmem:[%s9366_s13 + $0x6] ss:$8 sm:$0x3] }
0x144c   : > { %7084 = vrot.lane.b32.xlu1 %v11869_v35, %s12459_s5  ;;  %9292 = vrcp.f32 %v7051_v45  ;;  %v12092_v48 = vrot.slane %v8024_v9, %v9603_v26 }
0x144d   : > { %9294 = vrcp.f32 %v7049_v57 }
0x144e   : > { %7130 = vrot.lane.b32.xlu0 %v11857_v21, %s12454_s0 }
0x1450   : > { %7128 = vrot.lane.b32.xlu1 %v11859_v47, %s12454_s0 }
0x1452   : > { %7138 = vrot.lane.b32.xlu0 %v11863_v22, %s12454_s0 }
0x1454   : > { %7136 = vrot.lane.b32.xlu1 %v11869_v35, %s12454_s0  ;;  %v9289_v15 = vpop.eup %9288 }
0x1455   : > { %v9291_v56 = vpop.eup %9290  ;;  %v11931_v27 = vmul.f32 %v9289_v15, %v7018_v40  ;;  %v8023_v40 = vld [vmem:[%s9366_s13 + $0x5] ss:$8 sm:$0x3] }
0x1456   : > { %7182 = vrot.lane.b32.xlu0 %v11857_v21, %s12455_s26  ;;  %v9293_v61 = vpop.eup %9292  ;;  %v11935_v58 = vmul.f32 %v9291_v56, %v7016_v11  ;;  %v12060_v49 = vrot.slane %v8023_v40, %v9601_v25 }
0x1457   : > { %v9295_v50 = vpop.eup %9294  ;;  %v11939_v16 = vmul.f32 %v9293_v61, %v7019_v13 }
0x1458   : > { %7180 = vrot.lane.b32.xlu1 %v11859_v47, %s12455_s26  ;;  %v11943_v3 = vmul.f32 %v9295_v50, %v7017_v52  ;;  %v12063_v52 = vrot.slane %v8023_v40, %v9603_v26  ;;  %v12089_v50 = vrot.slane %v8024_v9, %v9601_v25 }
0x145a   : > { %7190 = vrot.lane.b32.xlu0 %v11863_v22, %s12455_s26 }
0x145c   : > { %7188 = vrot.lane.b32.xlu1 %v11869_v35, %s12455_s26 }
0x145e   : > { %7234 = vrot.lane.b32.xlu0 %v11857_v21, %s12456_s1 }
0x1460   : > { %7232 = vrot.lane.b32.xlu1 %v11859_v47, %s12456_s1 }
0x1462   : > { %7242 = vrot.lane.b32.xlu0 %v11863_v22, %s12456_s1 }
0x1464   : > { %7240 = vrot.lane.b32.xlu1 %v11869_v35, %s12456_s1 }
0x1466   : > { %7294 = vrot.lane.b32.xlu0 %v11857_v21, %s12457_s2 }
0x1468   : > { %7292 = vrot.lane.b32.xlu1 %v11859_v47, %s12457_s2 }
0x146a   : > { %7302 = vrot.lane.b32.xlu0 %v11863_v22, %s12457_s2 }
0x146c   : > { %7300 = vrot.lane.b32.xlu1 %v11869_v35, %s12457_s2 }
0x146e   : > { %7346 = vrot.lane.b32.xlu0 %v11857_v21, %s12458_s3 }
0x1470   : > { %7344 = vrot.lane.b32.xlu1 %v11859_v47, %s12458_s3 }
0x1472   : > { %7354 = vrot.lane.b32.xlu0 %v11863_v22, %s12458_s3 }
0x1474   : > { %7352 = vrot.lane.b32.xlu1 %v11869_v35, %s12458_s3 }
0x1476   : > { %7398 = vrot.lane.b32.xlu0 %v11857_v21, %s12461_s8 }
0x1478   : > { %7396 = vrot.lane.b32.xlu1 %v11859_v47, %s12461_s8 }
0x147a   : > { %7406 = vrot.lane.b32.xlu0 %v11863_v22, %s12461_s8 }
0x147c   : > { %7404 = vrot.lane.b32.xlu1 %v11869_v35, %s12461_s8 }
0x147e   : > { %7450 = vrot.lane.b32.xlu0 %v11857_v21, %s12445_s7 }
0x1480   : > { %7448 = vrot.lane.b32.xlu1 %v11859_v47, %s12445_s7 }
0x1482   : > { %7082 = vrot.lane.b32.xlu0 %v11931_v27, %s12459_s5 }
0x1484   : > { %7080 = vrot.lane.b32.xlu1 %v11935_v58, %s12459_s5 }
0x1486   : > { %7090 = vrot.lane.b32.xlu0 %v11939_v16, %s12459_s5 }
0x1488   : > { %7088 = vrot.lane.b32.xlu1 %v11943_v3, %s12459_s5  ;;  %s8032_s5 = sshll.u32 %s12485_s16, 3 }
0x148a   : > { %7134 = vrot.lane.b32.xlu0 %v11931_v27, %s12454_s0 }
0x148c   : > { %7132 = vrot.lane.b32.xlu1 %v11935_v58, %s12454_s0 }
0x148e   : > { %7142 = vrot.lane.b32.xlu0 %v11939_v16, %s12454_s0 }
0x1490   : > { %7140 = vrot.lane.b32.xlu1 %v11943_v3, %s12454_s0 }
0x1492   : > { %7186 = vrot.lane.b32.xlu0 %v11931_v27, %s12455_s26 }
0x1494   : > { %7184 = vrot.lane.b32.xlu1 %v11935_v58, %s12455_s26 }
0x1496   : > { %7194 = vrot.lane.b32.xlu0 %v11939_v16, %s12455_s26 }
0x1498   : > { %7192 = vrot.lane.b32.xlu1 %v11943_v3, %s12455_s26 }
0x149a   : > { %7238 = vrot.lane.b32.xlu0 %v11931_v27, %s12456_s1 }
0x149c   : > { %7236 = vrot.lane.b32.xlu1 %v11935_v58, %s12456_s1 }
0x149e   : > { %7246 = vrot.lane.b32.xlu0 %v11939_v16, %s12456_s1 }
0x14a0   : > { %7244 = vrot.lane.b32.xlu1 %v11943_v3, %s12456_s1 }
0x14a2   : > { %7298 = vrot.lane.b32.xlu0 %v11931_v27, %s12457_s2 }
0x14a4   : > { %7456 = vrot.lane.b32.xlu1 %v11869_v35, %s12445_s7 }
0x14a6   : > { %7306 = vrot.lane.b32.xlu0 %v11939_v16, %s12457_s2 }
0x14a8   : > { %7296 = vrot.lane.b32.xlu1 %v11935_v58, %s12457_s2 }
0x14aa   : > { %7350 = vrot.lane.b32.xlu0 %v11931_v27, %s12458_s3 }
0x14ac   : > { %7304 = vrot.lane.b32.xlu1 %v11943_v3, %s12457_s2 }
0x14ae   : > { %7358 = vrot.lane.b32.xlu0 %v11939_v16, %s12458_s3 }
0x14b0   : > { %7348 = vrot.lane.b32.xlu1 %v11935_v58, %s12458_s3 }
0x14b2   : > { %7458 = vrot.lane.b32.xlu0 %v11863_v22, %s12445_s7 }
0x14b4   : > { %7356 = vrot.lane.b32.xlu1 %v11943_v3, %s12458_s3  ;;  %s1062_s3 = scalar_lea.vmem %s9526_s12, %s8032_s5 }
0x14b6   : > { %7402 = vrot.lane.b32.xlu0 %v11931_v27, %s12461_s8 }
0x14b8   : > { %7400 = vrot.lane.b32.xlu1 %v11935_v58, %s12461_s8  ;;  %v7079_v42 = vpop.permute.xlu0 %7078 }
0x14ba   : > { %v7077_v39 = vpop.permute.xlu1 %7076  ;;  %7410 = vrot.lane.b32.xlu0 %v11939_v16, %s12461_s8 }
0x14bc   : > { %7408 = vrot.lane.b32.xlu1 %v11943_v3, %s12461_s8  ;;  %v7087_v54 = vpop.permute.xlu0 %7086 }
0x14bd   : > { %v7093_v32 = vsel %vm1479_vm2, %v7079_v42, %v7087_v54  ;;  %v7097_v0 = vsel %vm1479_vm2, %v7087_v54, %v7079_v42 }
0x14be   : > { %v7114_v44 = vmul.f32 %v12004_v10, %v7097_v0  ;;  %v7115_v41 = vmul.f32 %v12007_v29, %v7093_v32  ;;  %v7085_v53 = vpop.permute.xlu1 %7084  ;;  %7454 = vrot.lane.b32.xlu0 %v11931_v27, %s12445_s7 }
0x14bf   : > { %v7092_v23 = vsel %vm1479_vm2, %v7077_v39, %v7085_v53  ;;  %v7096_v34 = vsel %vm1479_vm2, %v7085_v53, %v7077_v39 }
0x14c0   : > { %v7112_v2 = vmul.f32 %v12004_v10, %v7096_v34  ;;  %v7113_v1 = vmul.f32 %v12007_v29, %v7092_v23  ;;  %7452 = vrot.lane.b32.xlu1 %v11935_v58, %s12445_s7  ;;  %v12029_v4 = vpop.permute.xlu0 %7130  ;;  %v8025_v23 = vld [vmem:[%s9366_s13 + $0x7] ss:$8 sm:$0x3] }
0x14c1   : > { %v12123_v40 = vrot.slane %v8025_v23, %v9603_v26 }
0x14c2   : > { %v8839_v59 = vpack.c.bf16 %v7114_v44, %v7112_v2  ;;  %v12031_v30 = vpop.permute.xlu1 %7128  ;;  %7462 = vrot.lane.b32.xlu0 %v11939_v16, %s12445_s7  ;;  %v8837_v38 = vpack.c.bf16 %v7115_v41, %v7113_v1 }
0x14c4   : > { %7460 = vrot.lane.b32.xlu1 %v11943_v3, %s12445_s7  ;;  %8838 = vmatprep.subr.bf16.mxu0 %v8837_v38  ;;  %v12037_v55 = vpop.permute.xlu0 %7138 }
0x14c5   : > { %8840 = vmatpush1.bf16.msra.mxu0 %v8839_v59  ;;  %v7149_v59 = vsel %vm1502_vm1, %v12037_v55, %v12029_v4 }
0x14c6   : > { %v12040_v43 = vpop.permute.xlu1 %7136 }
0x14c8   : > { %7577 = vperm.xlu1 %9030, %v7574_v31   ;;  %v12042_v20 = vpop.permute.xlu0 %7182  ;;  %v12120_v31 = vrot.slane %v8025_v23, %v9601_v25 }
0x14ca   : > { %v12044_v14 = vpop.permute.xlu1 %7180  ;;  %12470 = vst [vmem:[#allocation26_spill] sm:$0xff] %v12120_v31 }
0x14cc   : > { %v12046_v37 = vpop.permute.xlu0 %7190 }
0x14ce   : > { %v12048_v7 = vpop.permute.xlu1 %7188 }
0x14d0   : > { %v12050_v6 = vpop.permute.xlu0 %7234 }
0x14d2   : > { %v12052_v46 = vpop.permute.xlu1 %7232 }
0x14d4   : > { %v12054_v12 = vpop.permute.xlu0 %7242 }
0x14d6   : > { %v12056_v8 = vpop.permute.xlu1 %7240 }
0x14d8   : > { %v7295_v11 = vpop.permute.xlu0 %7294 }
0x14da   : > { %v7293_v13 = vpop.permute.xlu1 %7292 }
0x14dc   : > { %v7303_v51 = vpop.permute.xlu0 %7302 }
0x14dd   : > { %v7309_v63 = vsel %vm1576_vm5, %v7295_v11, %v7303_v51  ;;  %v7313_v18 = vsel %vm1576_vm5, %v7303_v51, %v7295_v11  ;;  %v7148_v11 = vsel %vm1502_vm1, %v12040_v43, %v12031_v30 }
0x14de   : > { %v12070_v17 = vmul.f32 %v12060_v49, %v7309_v63  ;;  %v12073_v28 = vmul.f32 %v12063_v52, %v7313_v18  ;;  %v7301_v62 = vpop.permute.xlu1 %7300 }
0x14df   : > { %v7308_v19 = vsel %vm1576_vm5, %v7293_v13, %v7301_v62  ;;  %v7312_v60 = vsel %vm1576_vm5, %v7301_v62, %v7293_v13 }
0x14e0   : > { %v12081_v45 = vmul.f32 %v12060_v49, %v7308_v19  ;;  %v12084_v57 = vmul.f32 %v12063_v52, %v7312_v60  ;;  %v7347_v15 = vpop.permute.xlu0 %7346 }
0x14e2   : > { %v7345_v61 = vpop.permute.xlu1 %7344 }
0x14e4   : > { %v7355_v39 = vpop.permute.xlu0 %7354 }
0x14e5   : > { %v7361_v33 = vsel %vm1600_vm6, %v7347_v15, %v7355_v39  ;;  %v7365_v54 = vsel %vm1600_vm6, %v7355_v39, %v7347_v15 }
0x14e6   : > { %v12101_v32 = vmul.f32 %v12089_v50, %v7361_v33  ;;  %v12104_v0 = vmul.f32 %v12092_v48, %v7365_v54  ;;  %v7353_v44 = vpop.permute.xlu1 %7352 }
0x14e7   : > { %v7360_v41 = vsel %vm1600_vm6, %v7345_v61, %v7353_v44  ;;  %v7364_v53 = vsel %vm1600_vm6, %v7353_v44, %v7345_v61 }
0x14e8   : > { %v12112_v34 = vmul.f32 %v12089_v50, %v7360_v41  ;;  %v12115_v2 = vmul.f32 %v12092_v48, %v7364_v53  ;;  %v7399_v1 = vpop.permute.xlu0 %7398  ;;  %v8020_v53 = vld [vmem:[%s9366_s13 + $0x1] ss:$8 sm:$0x3] }
0x14ea   : > { %v7397_v38 = vpop.permute.xlu1 %7396 }
0x14ec   : > { %v7407_v13 = vpop.permute.xlu0 %7406 }
0x14ed   : > { %v7413_v51 = vsel %vm1624_vm7, %v7399_v1, %v7407_v13  ;;  %v7417_v63 = vsel %vm1624_vm7, %v7407_v13, %v7399_v1  ;;  %v7161_v1 = vrot.slane %v8020_v53, %v9603_v26  ;;  %v7145_v13 = vsel %vm1502_vm1, %v12029_v4, %v12037_v55 }
0x14ee   : > { %v12132_v18 = vmul.f32 %v12120_v31, %v7413_v51  ;;  %v12135_v62 = vmul.f32 %v12123_v40, %v7417_v63  ;;  %v7405_v19 = vpop.permute.xlu1 %7404  ;;  %v7144_v51 = vsel %vm1502_vm1, %v12031_v30, %v12040_v43  ;;  %v7213_v30 = vrot.slane %v8021_v36, %v9603_v26 }
0x14ef   : > { %v7412_v60 = vsel %vm1624_vm7, %v7397_v38, %v7405_v19  ;;  %v7416_v9 = vsel %vm1624_vm7, %v7405_v19, %v7397_v38 }
0x14f0   : > { %12471 = vst [vmem:[#allocation27_spill] sm:$0xff] %v12132_v18  ;;  %v12142_v15 = vmul.f32 %v12120_v31, %v7412_v60  ;;  %v12145_v61 = vmul.f32 %v12123_v40, %v7416_v9  ;;  %v12147_v39 = vpop.permute.xlu0 %7450  ;;  %v7157_v60 = vrot.slane %v8020_v53, %v9601_v25 }
0x14f2   : > { %12472 = vst [vmem:[#allocation28_spill] sm:$0xff] %v12142_v15  ;;  %v12151_v54 = vpop.permute.xlu1 %7448  ;;  %v7166_v4 = vmul.f32 %v7157_v60, %v7149_v59  ;;  %v7164_v55 = vmul.f32 %v7157_v60, %v7148_v11  ;;  %v7209_v11 = vrot.slane %v8021_v36, %v9601_v25 }
0x14f4   : > { %v7083_v41 = vpop.permute.xlu0 %7082  ;;  %v8847_v59 = vpack.c.bf16 %v7166_v4, %v7164_v55 }
0x14f6   : > { %v7081_v23 = vpop.permute.xlu1 %7080 }
0x14f8   : > { %v7091_v38 = vpop.permute.xlu0 %7090 }
0x14f9   : > { %v7095_v63 = vsel %vm1479_vm2, %v7083_v41, %v7091_v38  ;;  %v7099_v19 = vsel %vm1479_vm2, %v7091_v38, %v7083_v41  ;;  %v7167_v38 = vmul.f32 %v7161_v1, %v7145_v13  ;;  %v7201_v13 = vsel %vm1526_vm3, %v12046_v37, %v12042_v20 }
0x14fa   : > { %v7118_v9 = vmul.f32 %v12004_v10, %v7099_v19  ;;  %v7119_v33 = vmul.f32 %v12007_v29, %v7095_v63  ;;  %v7089_v44 = vpop.permute.xlu1 %7088  ;;  %v7165_v19 = vmul.f32 %v7161_v1, %v7144_v51 }
0x14fb   : > { %v7094_v41 = vsel %vm1479_vm2, %v7081_v23, %v7089_v44  ;;  %v7098_v53 = vsel %vm1479_vm2, %v7089_v44, %v7081_v23  ;;  %v7197_v44 = vsel %vm1526_vm3, %v12042_v20, %v12046_v37 }
0x14fc   : > { %v7116_v63 = vmul.f32 %v12004_v10, %v7098_v53  ;;  %v7117_v56 = vmul.f32 %v12007_v29, %v7094_v41  ;;  %v7135_v42 = vpop.permute.xlu0 %7134  ;;  %v8845_v31 = vpack.c.bf16 %v7167_v38, %v7165_v19  ;;  %v7196_v10 = vsel %vm1526_vm3, %v12044_v14, %v12048_v7  ;;  %v8022_v41 = vld [vmem:[%s9366_s13 + $0x3] ss:$8 sm:$0x3] }
0x14fd   : > { %v7219_v51 = vmul.f32 %v7213_v30, %v7197_v44  ;;  %v7218_v19 = vmul.f32 %v7209_v11, %v7201_v13 }
0x14fe   : > { %v8843_v5 = vpack.c.bf16 %v7118_v9, %v7116_v63  ;;  %v7133_v15 = vpop.permute.xlu1 %7132  ;;  %v8841_v18 = vpack.c.bf16 %v7119_v33, %v7117_v56  ;;  %v7217_v9 = vmul.f32 %v7213_v30, %v7196_v10  ;;  %v7261_v10 = vrot.slane %v8022_v41, %v9601_v25 }
0x1500   : > { %8842 = vmatprep.subr.bf16.mxu0 %v8841_v18  ;;  %v7143_v43 = vpop.permute.xlu0 %7142  ;;  %v8853_v55 = vpack.c.bf16 %v7219_v51, %v7217_v9 }
0x1501   : > { %8844 = vmatpush1.bf16.msra.mxu0 %v8843_v5  ;;  %v7147_v29 = vsel %vm1502_vm1, %v7135_v42, %v7143_v43  ;;  %v7151_v56 = vsel %vm1502_vm1, %v7143_v43, %v7135_v42  ;;  %v7200_v5 = vsel %vm1526_vm3, %v12048_v7, %v12044_v14  ;;  %v7265_v14 = vrot.slane %v8022_v41, %v9603_v26 }
0x1502   : > { %v7170_v18 = vmul.f32 %v7157_v60, %v7151_v56  ;;  %v7171_v33 = vmul.f32 %v7161_v1, %v7147_v29  ;;  %v7141_v23 = vpop.permute.xlu1 %7140  ;;  %8846 = vmatprep.subr.bf16.mxu0 %v8845_v31  ;;  %v7216_v20 = vmul.f32 %v7209_v11, %v7200_v5  ;;  %v7249_v7 = vsel %vm1550_vm4, %v12050_v6, %v12054_v12 }
0x1503   : > { %v7146_v42 = vsel %vm1502_vm1, %v7133_v15, %v7141_v23  ;;  %v7150_v36 = vsel %vm1502_vm1, %v7141_v23, %v7133_v15  ;;  %v7252_v5 = vsel %vm1550_vm4, %v12056_v8, %v12052_v46 }
0x1504   : > { %v7168_v31 = vmul.f32 %v7157_v60, %v7150_v36  ;;  %v7169_v53 = vmul.f32 %v7161_v1, %v7146_v42  ;;  %v7187_v38 = vpop.permute.xlu0 %7186  ;;  %v7248_v1 = vsel %vm1550_vm4, %v12052_v46, %v12056_v8  ;;  %v8855_v44 = vpack.c.bf16 %v7218_v19, %v7216_v20 }
0x1505   : > { %8848 = vmatpush1.bf16.msra.mxu0 %v8847_v59  ;;  %v7269_v42 = vmul.f32 %v7265_v14, %v7248_v1 }
0x1506   : > { %v8851_v37 = vpack.c.bf16 %v7170_v18, %v7168_v31  ;;  %v7185_v63 = vpop.permute.xlu1 %7184  ;;  %v8849_v4 = vpack.c.bf16 %v7171_v33, %v7169_v53  ;;  %v7253_v18 = vsel %vm1550_vm4, %v12054_v12, %v12050_v6  ;;  %v7271_v33 = vmul.f32 %v7265_v14, %v7249_v7 }
0x1507   : > { %v7270_v12 = vmul.f32 %v7261_v10, %v7253_v18  ;;  %v7268_v53 = vmul.f32 %v7261_v10, %v7252_v5  ;;  %v8873_v18 = vpack.c.bf16 %v11939_v16, %v11943_v3 }
0x1508   : > { %8850 = vmatprep.subr.bf16.mxu0 %v8849_v4  ;;  %v7195_v15 = vpop.permute.xlu0 %7194  ;;  %v8861_v19 = vpack.c.bf16 %v7271_v33, %v7269_v42  ;;  %v8026_v33 = vld [vmem:[%s9366_s13 + $0x10] ss:$8 sm:$0x3] }
0x1509   : > { %8852 = vmatpush1.bf16.msra.mxu0 %v8851_v37  ;;  %v7199_v60 = vsel %vm1526_vm3, %v7187_v38, %v7195_v15  ;;  %v7203_v43 = vsel %vm1526_vm3, %v7195_v15, %v7187_v38  ;;  %v8863_v37 = vpack.c.bf16 %v7270_v12, %v7268_v53 }
0x150a   : > { %v7222_v29 = vmul.f32 %v7209_v11, %v7203_v43  ;;  %v7223_v56 = vmul.f32 %v7213_v30, %v7199_v60  ;;  %v7193_v59 = vpop.permute.xlu1 %7192  ;;  %8854 = vmatprep.subr.bf16.mxu0 %v8853_v55 }
0x150b   : > { %v7198_v23 = vsel %vm1526_vm3, %v7185_v63, %v7193_v59  ;;  %v7202_v13 = vsel %vm1526_vm3, %v7193_v59, %v7185_v63 }
0x150c   : > { %v7220_v36 = vmul.f32 %v7209_v11, %v7202_v13  ;;  %v7221_v51 = vmul.f32 %v7213_v30, %v7198_v23  ;;  %v7239_v9 = vpop.permute.xlu0 %7238 }
0x150d   : > { %8856 = vmatpush1.bf16.msra.mxu0 %v8855_v44 }
0x150e   : > { %v8859_v41 = vpack.c.bf16 %v7222_v29, %v7220_v36  ;;  %v7237_v31 = vpop.permute.xlu1 %7236  ;;  %v8857_v6 = vpack.c.bf16 %v7223_v56, %v7221_v51  ;;  %v8869_v29 = vpack.c.bf16 %v11863_v22, %v11869_v35  ;;  %v8875_v35 = vpack.c.bf16 %v11931_v27, %v11935_v58 }
0x150f   : > { %v12474_v27 = vpack.c.bf16 %v12073_v28, %v12084_v57 }
0x1510   : > { %8858 = vmatprep.subr.bf16.mxu0 %v8857_v6  ;;  %v7247_v38 = vpop.permute.xlu0 %7246 }
0x1511   : > { %8860 = vmatpush1.bf16.msra.mxu0 %v8859_v41  ;;  %v7251_v20 = vsel %vm1550_vm4, %v7239_v9, %v7247_v38  ;;  %v7255_v46 = vsel %vm1550_vm4, %v7247_v38, %v7239_v9 }
0x1512   : > { %v7274_v8 = vmul.f32 %v7261_v10, %v7255_v46  ;;  %v7275_v11 = vmul.f32 %v7265_v14, %v7251_v20  ;;  %v7245_v30 = vpop.permute.xlu1 %7244  ;;  %8862 = vmatprep.subr.bf16.mxu0 %v8861_v19 }
0x1513   : > { %v7250_v63 = vsel %vm1550_vm4, %v7237_v31, %v7245_v30  ;;  %v7254_v4 = vsel %vm1550_vm4, %v7245_v30, %v7237_v31 }
0x1514   : > { %v7272_v7 = vmul.f32 %v7261_v10, %v7254_v4  ;;  %v7273_v15 = vmul.f32 %v7265_v14, %v7250_v63  ;;  %v7299_v55 = vpop.permute.xlu0 %7298  ;;  %v12473_v14 = vpack.c.bf16 %v11857_v21, %v11859_v47  ;;  %v12266_v21 = vrot.slane %v8026_v33, %v9601_v25 }
0x1515   : > { %8864 = vmatpush1.bf16.msra.mxu0 %v8863_v37  ;;  %v12269_v47 = vrot.slane %v8026_v33, %v9603_v26  ;;  %v12476_v37 = vpack.c.bf16 %v12104_v0, %v12115_v2  ;;  %v12480_v33 = vld [vmem:[#allocation27_spill] sm:$0xff] }
0x1516   : > { %v8867_v1 = vpack.c.bf16 %v7274_v8, %v7272_v7  ;;  %v7457_v60 = vpop.permute.xlu1 %7456  ;;  %v8865_v43 = vpack.c.bf16 %v7275_v11, %v7273_v15 }
0x1517   : > { %v7464_v58 = vsel %vm1648_vm8, %v12151_v54, %v7457_v60  ;;  %v7468_v25 = vsel %vm1648_vm8, %v7457_v60, %v12151_v54 }
0x1518   : > { %8866 = vmatprep.subr.bf16.mxu0 %v8865_v43  ;;  %v7307_v44 = vpop.permute.xlu0 %7306  ;;  %v7484_v54 = vmul.f32 %v12266_v21, %v7464_v58  ;;  %v7485_v31 = vmul.f32 %v12269_v47, %v7468_v25  ;;  %v12483_v25 = vld [vmem:[#allocation25_spill] sm:$0xff] }
0x1519   : > { %8868 = vmatpush1.bf16.msra.mxu0 %v8867_v1  ;;  %v7315_v23 = vsel %vm1576_vm5, %v7307_v44, %v7299_v55  ;;  %v7311_v5 = vsel %vm1576_vm5, %v7299_v55, %v7307_v44  ;;  %v12477_v55 = vpack.c.bf16 %v12101_v32, %v12112_v34 }
0x151a   : > { %v7297_v56 = vpop.permute.xlu1 %7296  ;;  %8870 = vmatprep.subr.bf16.mxu0 %v8869_v29  ;;  %v7335_v42 = vmul.f32 %v12063_v52, %v7315_v23  ;;  %v7334_v41 = vmul.f32 %v12060_v49, %v7311_v5  ;;  %v12478_v29 = vpack.c.bf16 %v12135_v62, %v12145_v61  ;;  %v12481_v23 = vld [vmem:[#allocation28_spill] sm:$0xff] }
0x151c   : > { %v7351_v59 = vpop.permute.xlu0 %7350 }
0x151d   : > { %8872 = vmatpush1.bf16.msra.mxu0 %v12473_v14 }
0x151e   : > { %v7305_v10 = vpop.permute.xlu1 %7304  ;;  %8874 = vmatprep.subr.bf16.mxu0 %v8873_v18 }
0x151f   : > { %v7314_v22 = vsel %vm1576_vm5, %v7305_v10, %v7297_v56  ;;  %v7310_v13 = vsel %vm1576_vm5, %v7297_v56, %v7305_v10  ;;  %v12479_v56 = vld [vmem:[#allocation26_spill] sm:$0xff] }
0x1520   : > { %v7333_v16 = vmul.f32 %v12063_v52, %v7314_v22  ;;  %v7359_v3 = vpop.permute.xlu0 %7358  ;;  %v7332_v26 = vmul.f32 %v12060_v49, %v7310_v13  ;;  %v12475_v52 = vpack.c.bf16 %v12070_v17, %v12081_v45  ;;  %v12482_v22 = vpack.c.bf16 %v12480_v33, %v12481_v23 }
0x1521   : > { %8876 = vmatpush1.bf16.msra.mxu0 %v8875_v35  ;;  %v7367_v45 = vsel %vm1600_vm6, %v7359_v3, %v7351_v59  ;;  %v7363_v8 = vsel %vm1600_vm6, %v7351_v59, %v7359_v3 }
0x1522   : > { %v7349_v36 = vpop.permute.xlu1 %7348  ;;  %8878 = vmatprep.subr.bf16.mxu0 %v12474_v27  ;;  %v8881_v9 = vpack.c.bf16 %v7335_v42, %v7333_v16  ;;  %v8883_v17 = vpack.c.bf16 %v7334_v41, %v7332_v26  ;;  %v7387_v11 = vmul.f32 %v12092_v48, %v7367_v45  ;;  %v7386_v15 = vmul.f32 %v12089_v50, %v7363_v8  ;;  %v7573_v26 = vld [vmem:[%s9516_s27 + $0x8] sm:$0xf] }
0x1524   : > { %v7459_v51 = vpop.permute.xlu0 %7458 }
0x1525   : > { %8880 = vmatpush1.bf16.msra.mxu0 %v12475_v52  ;;  %v7465_v28 = vsel %vm1648_vm8, %v12147_v39, %v7459_v51  ;;  %v7469_v57 = vsel %vm1648_vm8, %v7459_v51, %v12147_v39 }
0x1526   : > { %v7486_v6 = vmul.f32 %v12266_v21, %v7465_v28  ;;  %v7487_v49 = vmul.f32 %v12269_v47, %v7469_v57  ;;  %v7357_v12 = vpop.permute.xlu1 %7356  ;;  %8882 = vmatprep.subr.bf16.mxu0 %v8881_v9 }
0x1527   : > { %v7366_v53 = vsel %vm1600_vm6, %v7357_v12, %v7349_v36  ;;  %v7362_v39 = vsel %vm1600_vm6, %v7349_v36, %v7357_v12 }
0x1528   : > { %v8903_v38 = vpack.c.bf16 %v7486_v6, %v7484_v54  ;;  %v7385_v19 = vmul.f32 %v12092_v48, %v7366_v53  ;;  %v7403_v20 = vpop.permute.xlu0 %7402  ;;  %v8901_v46 = vpack.c.bf16 %v7487_v49, %v7485_v31  ;;  %v7384_v63 = vmul.f32 %v12089_v50, %v7362_v39 }
0x1529   : > { %8884 = vmatpush1.bf16.msra.mxu0 %v8883_v17 }
0x152a   : > { %v7401_v30 = vpop.permute.xlu1 %7400  ;;  %8886 = vmatprep.subr.bf16.mxu0 %v12476_v37  ;;  %8902 = vmatprep.subr.bf16.mxu1 %v8901_v46  ;;  %v8889_v7 = vpack.c.bf16 %v7387_v11, %v7385_v19  ;;  %v8891_v60 = vpack.c.bf16 %v7386_v15, %v7384_v63 }
0x152b   : > { %8904 = vmatpush1.bf16.msra.mxu1 %v8903_v38 }
0x152c   : > { %v7411_v4 = vpop.permute.xlu0 %7410 }
0x152d   : > { %8888 = vmatpush1.bf16.msra.mxu0 %v12477_v55  ;;  %v7419_v48 = vsel %vm1624_vm7, %v7411_v4, %v7403_v20  ;;  %v7415_v2 = vsel %vm1624_vm7, %v7403_v20, %v7411_v4 }
0x152e   : > { %v7409_v1 = vpop.permute.xlu1 %7408  ;;  %8890 = vmatprep.subr.bf16.mxu0 %v8889_v7  ;;  %v7439_v43 = vmul.f32 %v12123_v40, %v7419_v48  ;;  %v7438_v59 = vmul.f32 %v12479_v56, %v7415_v2 }
0x152f   : > { %v7418_v0 = vsel %vm1624_vm7, %v7409_v1, %v7401_v30  ;;  %v7414_v50 = vsel %vm1624_vm7, %v7401_v30, %v7409_v1 }
0x1530   : > { %v7437_v32 = vmul.f32 %v12123_v40, %v7418_v0  ;;  %v7455_v34 = vpop.permute.xlu0 %7454  ;;  %v7436_v18 = vmul.f32 %v12479_v56, %v7414_v50 }
0x1531   : > { %8892 = vmatpush1.bf16.msra.mxu0 %v8891_v60 }
0x1532   : > { %v7453_v44 = vpop.permute.xlu1 %7452  ;;  %8894 = vmatprep.subr.bf16.mxu0 %v12478_v29  ;;  %v8897_v10 = vpack.c.bf16 %v7439_v43, %v7437_v32  ;;  %v8899_v16 = vpack.c.bf16 %v7438_v59, %v7436_v18 }
0x1534   : > { %v7463_v14 = vpop.permute.xlu0 %7462 }
0x1535   : > { %8896 = vmatpush1.bf16.msra.mxu0 %v12482_v22  ;;  %v7467_v40 = vsel %vm1648_vm8, %v7455_v34, %v7463_v14  ;;  %v7471_v35 = vsel %vm1648_vm8, %v7463_v14, %v7455_v34 }
0x1536   : > { %v7490_v62 = vmul.f32 %v12266_v21, %v7467_v40  ;;  %v7491_v61 = vmul.f32 %v12269_v47, %v7471_v35  ;;  %v7461_v13 = vpop.permute.xlu1 %7460  ;;  %8898 = vmatprep.subr.bf16.mxu0 %v8897_v10 }
0x1537   : > { %v7466_v3 = vsel %vm1648_vm8, %v7453_v44, %v7461_v13  ;;  %v7470_v5 = vsel %vm1648_vm8, %v7461_v13, %v7453_v44 }
0x1538   : > { %v7488_v42 = vmul.f32 %v12266_v21, %v7466_v3  ;;  %v7489_v36 = vmul.f32 %v12269_v47, %v7470_v5 }
0x1539   : > { %8900 = vmatpush1.bf16.msra.mxu0 %v8899_v16 }
0x153a   : > { %v8907_v27 = vpack.c.bf16 %v7490_v62, %v7488_v42  ;;  %v8905_v58 = vpack.c.bf16 %v7491_v61, %v7489_v36 }
0x153c   : > { %7651 = vmatmul.mubr.f32.vlgmr.msra.gmra.mrb[48].mxu0 %v12483_v25  ;;  %8906 = vmatprep.subr.bf16.mxu1 %v8905_v58 }
0x153d   : > { %8908 = vmatpush1.bf16.msra.mxu1 %v8907_v27 }
0x1540   : > { %8027 = vmatmul.mubr.msk.f32.vlgmr.msra.gmra.mrb[64].mxu1 %vm1083_vm0, %v7573_v26 }
0x1547   : > { %v7578_v24 = vpop.permute.xlu1 %7577 }
0x160f   : > { %v7652_v51 = vpop.f32.mrb[48].mxu0 }
0x1610   : > { %v7654_v9 = vpop.f32.mrb[49].mxu0  ;;  %v7653_v41 = vadd.f32 %v7652_v51, %v7578_v24 }
0x1611   : > { %v7655_v52 = vadd.f32 %v7654_v9, %v7578_v24 }
0x1613   : > { %v7723_v21 = vpop.f32.mrb[64].mxu1 }
0x1614   : > { %v7724_v28 = vadd.f32 %v7723_v21, %v7653_v41  ;;  %v7725_v47 = vpop.f32.mrb[65].mxu1 }
0x1615   : > { %v7726_v57 = vadd.f32 %v7725_v47, %v7655_v52 }
0x1617   : > { %v7730_v54 = vcombine.low %v7724_v28, %v7726_v57 }
0x1619   : > { %7732 = vst [vmem:[%s1062_s3] sm:$0xff] %v7730_v54 }
0x161a PF: > { %s79_s15 = sadd.s32 1, %s9302_s15  }
0x161b   : > { %p76_p4 = scmp.ge.s32.totalorder %s79_s15, 4  }
0x161d   :  { %78 = sbr.rel (!%p76_p4) target bundleno = 67 (0x43), region = 230 }

</bundles_post_ra>
